<compile_context>
chip_gen: v7x
topology: tpu7x:2x2x1
jax: 0.10.0
libtpu: 0.0.40
codegen_flags: <defaults>
</compile_context>

<pallas_src>
import functools
import math

import jax
import jax.numpy as jnp
from jax import lax
from jax.experimental import pallas as pl
from jax.experimental.pallas import tpu as pltpu


def _round_up(x, m):
    return ((x + m - 1) // m) * m


def _pad8(n):
    return max(8, _round_up(n, 8))


def _layout(H, W):
    """Padded flat layout constants: pixel (i, j) of the valid image lives at
    lane q = (i + 1) * (W + 2) + (j + 1); lanes outside the interior are 0."""
    Wp, Hp = W + 2, H + 2
    n_out = H * Wp          # contiguous span holding all interior rows (+ garbage cols)
    start = Wp + 1          # lane offset of pixel (0, 0)
    P = _round_up(Hp * Wp, 128)
    return Wp, Hp, n_out, start, P


# ---------------------------------------------------------------------------
# Fused 3x3 / stride-1 / pad-1 conv kernel (channels-first, padded flat layout)
# ---------------------------------------------------------------------------
def _conv3x3_kernel(x_ref, w_ref, b_ref, o_ref, *, H, W, activation):
    """One batch image.

    x_ref:  (1, Cin_p,  P)  channels on sublanes, padded flat pixels on lanes
    w_ref:  (9, Cout_p, Cin_p)  one (Cout, Cin) matrix per kernel tap
    b_ref:  (Cout_p, 1)
    o_ref:  (1, Cout_p, P)  same padded flat layout; ring / garbage lanes are
                            zeroed so the output IS the next layer's padded input
    """
    Wp = W + 2
    n_out = H * Wp
    start = Wp + 1
    P = x_ref.shape[2]
    cout = w_ref.shape[1]

    xfull = x_ref[0]                                   # (Cin_p, P), read once
    acc = jnp.zeros((cout, P), jnp.float32)
    for k in range(9):
        ki, kj = divmod(k, 3)
        # output lane q needs input lane q - start + (ki*Wp + kj)
        shift = (start - (ki * Wp + kj)) % P           # static per tap
        xs = pltpu.roll(xfull, shift, 1) if shift else xfull
        acc = acc + jnp.dot(w_ref[k], xs, preferred_element_type=jnp.float32)

    y = acc + b_ref[...]                               # (Cout_p, 1) broadcast
    if activation == "relu":
        y = jnp.maximum(y, 0.0)
    elif activation == "sigmoid":
        y = 1.0 / (1.0 + jnp.exp(-y))                  # exp on EUP

    # Zero the padding ring / inter-row garbage columns so this output can be
    # consumed directly as the following conv layer's zero-padded input.
    p = lax.broadcasted_iota(jnp.int32, (cout, P), 1) - start
    valid = (p >= 0) & (p < n_out) & ((p % Wp) < W)
    o_ref[0, :, :] = jnp.where(valid, y, 0.0).astype(o_ref.dtype)


def conv3x3_padded(x, w9, b, *, H, W, activation):
    """x: (B, Cin_p, P) padded flat layout -> (B, Cout_p, P) same layout."""
    B, cin_p, P = x.shape
    cout_p = w9.shape[1]
    kern = functools.partial(_conv3x3_kernel, H=H, W=W, activation=activation)
    return pl.pallas_call(
        kern,
        out_shape=jax.ShapeDtypeStruct((B, cout_p, P), jnp.float32),
        grid=(B,),
        in_specs=[
            pl.BlockSpec((1, cin_p, P), lambda i: (i, 0, 0)),
            pl.BlockSpec((9, cout_p, cin_p), lambda i: (0, 0, 0)),   # resident
            pl.BlockSpec((cout_p, 1), lambda i: (0, 0)),             # resident
        ],
        out_specs=pl.BlockSpec((1, cout_p, P), lambda i: (i, 0, 0)),
        compiler_params=pltpu.CompilerParams(
            dimension_semantics=("parallel",)),
    )(x, w9, b)


# ---------------------------------------------------------------------------
# GEMM + bias (fused fc_mu | fc_logvar), M tiled on a "parallel" grid axis
# ---------------------------------------------------------------------------
def _gemm_bias_kernel(x_ref, w_ref, b_ref, o_ref):
    acc = jnp.dot(x_ref[...], w_ref[...], preferred_element_type=jnp.float32)
    o_ref[...] = (acc + b_ref[...]).astype(o_ref.dtype)


def gemm_bias(x, w, b, *, tile_m=256):
    """y = x @ w + b.  x: (M, K), w: (K, N), b: (N,).
    # TODO(synk): add K-tiling ("arbitrary" grid axis + f32 scratch accumulator)
    # for configs where K = C*H*W no longer fits VMEM.
    """
    M, K = x.shape
    _, N = w.shape
    b2 = b.reshape(1, N).astype(jnp.float32)
    if M <= tile_m:
        tm, mp, x_in = M, M, x
    else:
        mp = _round_up(M, tile_m)
        x_in = jnp.pad(x, ((0, mp - M), (0, 0))) if mp != M else x
        tm = tile_m
    out = pl.pallas_call(
        _gemm_bias_kernel,
        out_shape=jax.ShapeDtypeStruct((mp, N), jnp.float32),
        grid=(mp // tm,),
        in_specs=[pl.BlockSpec((tm, K), lambda i: (i, 0)),
                  pl.BlockSpec((K, N), lambda i: (0, 0)),
                  pl.BlockSpec((1, N), lambda i: (0, 0))],
        out_specs=pl.BlockSpec((tm, N), lambda i: (i, 0)),
        compiler_params=pltpu.CompilerParams(
            dimension_semantics=("parallel",)),
    )(x_in, w, b2)
    return out[:M] if mp != M else out


# ---------------------------------------------------------------------------
# Reparameterise + decoder_fc fused kernel
# ---------------------------------------------------------------------------
def _reparam_decfc_kernel(mu_ref, lv_ref, eps_ref, w_ref, b_ref, o_ref):
    # z = mu + eps * exp(0.5*logvar) in the GEMM prologue (exp -> EUP slot).
    z = mu_ref[...] + eps_ref[...] * jnp.exp(0.5 * lv_ref[...])
    acc = jnp.dot(z, w_ref[...], preferred_element_type=jnp.float32)
    o_ref[...] = (acc + b_ref[...]).astype(o_ref.dtype)


def reparam_decoder_fc(mu, logvar, eps, w, b):
    B, L = mu.shape
    _, N = w.shape
    return pl.pallas_call(
        _reparam_decfc_kernel,
        out_shape=jax.ShapeDtypeStruct((B, N), jnp.float32),
        grid=(1,),
        in_specs=[pl.BlockSpec((B, L), lambda i: (0, 0)),
                  pl.BlockSpec((B, L), lambda i: (0, 0)),
                  pl.BlockSpec((B, L), lambda i: (0, 0)),
                  pl.BlockSpec((L, N), lambda i: (0, 0)),
                  pl.BlockSpec((1, N), lambda i: (0, 0))],
        out_specs=pl.BlockSpec((B, N), lambda i: (0, 0)),
        compiler_params=pltpu.CompilerParams(
            dimension_semantics=("arbitrary",)),
    )(mu, logvar, eps, w, b.reshape(1, N))


# ---------------------------------------------------------------------------
# One-time parameter layout preparation (hoisted out of the hot path)
# ---------------------------------------------------------------------------
def prepare_params(params, *, channels, latent_dim, H, W):
    Wp, Hp, n_out, start, P = _layout(H, W)

    def conv_taps(w, b):
        # w: (Cout, Cin, 3, 3) conv layout -> (9, Cout_p, Cin_p); b -> (Cout_p, 1)
        cout, cin = w.shape[0], w.shape[1]
        cout_p, cin_p = _pad8(cout), _pad8(cin)
        wp = jnp.zeros((cout_p, cin_p, 3, 3), jnp.float32).at[:cout, :cin].set(w)
        w9 = jnp.transpose(wp, (2, 3, 0, 1)).reshape(9, cout_p, cin_p)
        bp = jnp.zeros((cout_p, 1), jnp.float32).at[:cout, 0].set(b)
        return w9, bp

    enc = [conv_taps(w, b) for (w, b) in params["enc"]]
    # ConvTranspose2d(k=3, s=1, p=1) == Conv2d with spatially flipped kernel and
    # swapped in/out channel axes.
    dec = [conv_taps(jnp.transpose(wt[:, :, ::-1, ::-1], (1, 0, 2, 3)), b)
           for (wt, b) in params["dec"]]

    c_last = channels[-1]
    c_last_p = _pad8(c_last)
    feat = c_last * H * W

    # flat NCHW feature index (c, i, j) -> row/column (c * P + q) in the padded
    # flat layout; everything else stays zero.
    c_idx, i_idx, j_idx = jnp.meshgrid(
        jnp.arange(c_last), jnp.arange(H), jnp.arange(W), indexing="ij")
    q_idx = (c_idx * P + (i_idx + 1) * Wp + (j_idx + 1)).reshape(feat)

    # fc_mu | fc_logvar fused along N, rows scattered to the padded layout.
    w_mv = jnp.concatenate([params["w_mu"], params["w_lv"]], axis=1)   # (feat, 2L)
    b_mv = jnp.concatenate([params["b_mu"], params["b_lv"]], axis=0)   # (2L,)
    w_mv_s = jnp.zeros((c_last_p * P, 2 * latent_dim),
                       jnp.float32).at[q_idx].set(w_mv)

    # decoder_fc columns/bias scattered to the padded layout; ring columns stay
    # zero, so its output is already a correctly zero-padded conv input.
    w_dec_s = jnp.zeros((latent_dim, c_last_p * P),
                        jnp.float32).at[:, q_idx].set(params["w_dec"])
    b_dec_s = jnp.zeros((c_last_p * P,), jnp.float32).at[q_idx].set(params["b_dec"])

    return {"enc": enc, "dec": dec,
            "w_mv": w_mv_s, "b_mv": b_mv,
            "w_dec": w_dec_s, "b_dec": b_dec_s}


# ---------------------------------------------------------------------------
# Layout plumbing for model input / output (tiny XLA ops in the wrapper)
# ---------------------------------------------------------------------------
def _to_padded_layout(x, cin_p, P, H, W):
    """(B, Cin, H, W) NCHW -> (B, Cin_p, P) zero-padded channels-first flat."""
    B, cin = x.shape[0], x.shape[1]
    Wp, Hp = W + 2, H + 2
    xp = jnp.pad(x, ((0, 0), (0, cin_p - cin), (1, 1), (1, 1)))
    xf = xp.reshape(B, cin_p, Hp * Wp)
    return jnp.pad(xf, ((0, 0), (0, 0), (0, P - Hp * Wp)))


def _from_padded_layout(y, cout, P, H, W):
    """(B, C_p, P) padded flat layout -> (B, cout, H, W)."""
    B = y.shape[0]
    Wp = W + 2
    start = Wp + 1
    v = y[:, :cout, start:start + H * Wp].reshape(B, cout, H, Wp)
    return v[:, :, :, :W]


# ---------------------------------------------------------------------------
# Full VAE forward (use_blocks=False path)
# ---------------------------------------------------------------------------
def vae_forward(prep, x, eps, *, channels, latent_dim, H, W):
    """x: (B, Cin, H, W) NCHW like the PyTorch module. Returns (recon, mu, logvar)."""
    B = x.shape[0]
    _, _, _, _, P = _layout(H, W)
    c_last_p = _pad8(channels[-1])

    # ---- encoder ----
    h = _to_padded_layout(x, _pad8(channels[0]), P, H, W)
    for (w9, b) in prep["enc"]:
        h = conv3x3_padded(h, w9, b, H=H, W=W, activation="relu")

    # The padded-layout encoder output doubles as the FC input (weights were
    # scattered accordingly) -> no activation transpose / gather.
    flat = h.reshape(B, c_last_p * P)
    mu_logvar = gemm_bias(flat, prep["w_mv"], prep["b_mv"])
    mu = mu_logvar[:, :latent_dim]
    logvar = mu_logvar[:, latent_dim:]

    # ---- reparameterise + decoder_fc (fused) ----
    hdec = reparam_decoder_fc(mu, logvar, eps, prep["w_dec"], prep["b_dec"])
    hh = hdec.reshape(B, c_last_p, P)        # already the padded conv input

    # ---- decoder ----
    n_dec = len(prep["dec"])
    for i, (w9, b) in enumerate(prep["dec"]):
        act = "sigmoid" if i == n_dec - 1 else "relu"
        hh = conv3x3_padded(hh, w9, b, H=H, W=W, activation=act)

    recon = _from_padded_layout(hh, channels[0], P, H, W)
    # transforms.Resize((image_h, image_w)) is the identity here (stride-1).
    # TODO(synk): bilinear Resize for stride>1 configs is not implemented as a Pallas kernel.
    return recon, mu, logvar


# ---------------------------------------------------------------------------
# Pure-JAX reference (XLA convs, HIGHEST precision) for correctness checking
# ---------------------------------------------------------------------------
def _ref_forward(params, x, eps, channels, hc, wc):
    B = x.shape[0]
    h = jnp.transpose(x, (0, 2, 3, 1))
    for (w, b) in params["enc"]:
        w_hwio = jnp.transpose(w, (2, 3, 1, 0))
        h = lax.conv_general_dilated(
            h, w_hwio, (1, 1), "SAME",
            dimension_numbers=("NHWC", "HWIO", "NHWC"),
            precision=lax.Precision.HIGHEST)
        h = jnp.maximum(h + b.reshape(1, 1, 1, -1), 0.0)
    flat = jnp.transpose(h, (0, 3, 1, 2)).reshape(B, -1)
    mu = jnp.dot(flat, params["w_mu"], precision=lax.Precision.HIGHEST) + params["b_mu"]
    logvar = jnp.dot(flat, params["w_lv"], precision=lax.Precision.HIGHEST) + params["b_lv"]
    z = mu + eps * jnp.exp(0.5 * logvar)
    hdec = jnp.dot(z, params["w_dec"], precision=lax.Precision.HIGHEST) + params["b_dec"]
    hdec = hdec.reshape(B, channels[-1], hc, wc)
    hh = jnp.transpose(hdec, (0, 2, 3, 1))
    n_dec = len(params["dec"])
    for i, (wt, b) in enumerate(params["dec"]):
        w_conv = jnp.transpose(wt[:, :, ::-1, ::-1], (1, 0, 2, 3))
        w_hwio = jnp.transpose(w_conv, (2, 3, 1, 0))
        hh = lax.conv_general_dilated(
            hh, w_hwio, (1, 1), "SAME",
            dimension_numbers=("NHWC", "HWIO", "NHWC"),
            precision=lax.Precision.HIGHEST)
        hh = hh + b.reshape(1, 1, 1, -1)
        hh = 1.0 / (1.0 + jnp.exp(-hh)) if i == n_dec - 1 else jnp.maximum(hh, 0.0)
    recon = jnp.transpose(hh, (0, 3, 1, 2))
    return recon, mu, logvar


# ---------------------------------------------------------------------------
# Parameter initialization (fan-in uniform, PyTorch-style layouts)
# ---------------------------------------------------------------------------
def _init_params(key, channels, latent_dim, hc, wc):
    n_layers = len(channels) - 1
    ks = list(jax.random.split(key, 4 * n_layers + 6))
    ki = 0

    def u(k, shape, scale):
        return jax.random.uniform(k, shape, jnp.float32, -scale, scale)

    enc = []
    for i in range(n_layers):
        cin, cout = channels[i], channels[i + 1]
        s = 1.0 / math.sqrt(cin * 9)
        enc.append((u(ks[ki], (cout, cin, 3, 3), s), u(ks[ki + 1], (cout,), s)))
        ki += 2

    feat = channels[-1] * hc * wc

    def lin(kw, kb, fan_in, fan_out):
        s = 1.0 / math.sqrt(fan_in)
        return u(kw, (fan_in, fan_out), s), u(kb, (fan_out,), s)

    w_mu, b_mu = lin(ks[ki], ks[ki + 1], feat, latent_dim); ki += 2
    w_lv, b_lv = lin(ks[ki], ks[ki + 1], feat, latent_dim); ki += 2
    w_dec, b_dec = lin(ks[ki], ks[ki + 1], latent_dim, feat); ki += 2

    dec = []
    for i in reversed(range(1, len(channels))):
        cin, cout = channels[i], channels[i - 1]
        s = 1.0 / math.sqrt(cin * 9)
        dec.append((u(ks[ki], (cin, cout, 3, 3), s), u(ks[ki + 1], (cout,), s)))
        ki += 2

    return {"enc": enc, "w_mu": w_mu, "b_mu": b_mu, "w_lv": w_lv, "b_lv": b_lv,
            "w_dec": w_dec, "b_dec": b_dec, "dec": dec}


if __name__ == "__main__":
    key = jax.random.PRNGKey(0)
    k_par, k_x, k_eps = jax.random.split(key, 3)

    # Small config consistent with the module: num_input_channels=1 prepended
    # to channels=[8, 16]; stride=1 / kernel=3 everywhere; latent_dim=16.
    B, H, W = 2, 16, 16
    channels = [1, 8, 16]
    latent_dim = 16
    hc, wc = H, W               # stride-1 same-padded convs preserve spatial dims

    params = _init_params(k_par, channels, latent_dim, hc, wc)
    x = jax.random.normal(k_x, (B, 1, H, W), dtype=jnp.float32)
    eps = jax.random.normal(k_eps, (B, latent_dim), dtype=jnp.float32)

    # One-time weight layout plumbing, hoisted out of the hot path.
    prep = prepare_params(params, channels=channels, latent_dim=latent_dim, H=H, W=W)
    prep = jax.tree_util.tree_map(jax.block_until_ready, prep)

    fwd = jax.jit(functools.partial(vae_forward, channels=channels,
                                    latent_dim=latent_dim, H=H, W=W))
    recon, mu, logvar = fwd(prep, x, eps)
    recon = jax.block_until_ready(recon)

    r_recon, r_mu, r_lv = _ref_forward(params, x, eps, channels, hc, wc)
    assert recon.shape == (B, 1, H, W), recon.shape
    assert jnp.allclose(mu, r_mu, rtol=1e-4, atol=1e-4)
    assert jnp.allclose(logvar, r_lv, rtol=1e-4, atol=1e-4)
    assert jnp.allclose(recon, r_recon, rtol=1e-4, atol=1e-4)

    print("KERNEL_OK")
</pallas_src>

<mosaic_0001>
module attributes {stable_mosaic.version = 11 : i64} {
  func.func @_conv3x3_kernel(%arg0: i32, %arg1: memref<1x8x384xf32, #tpu.memory_space<vmem>>, %arg2: memref<9x16x8xf32, #tpu.memory_space<vmem>>, %arg3: memref<16x1xf32, #tpu.memory_space<vmem>>, %arg4: memref<1x16x384xf32, #tpu.memory_space<vmem>>) attributes {dimension_semantics = [#tpu.dimension_semantics<parallel>], iteration_bounds = array<i64: 2>, scalar_prefetch = 0 : i64, scratch_operands = 0 : i64, tpu.core_type = #tpu.core_type<tc>, window_params = [{transform_indices = @transform_0, window_bounds = array<i64: 1, 8, 384>}, {pipeline_mode = #tpu.pipeline_mode<synchronous>, transform_indices = @transform_1, window_bounds = array<i64: 9, 16, 8>}, {pipeline_mode = #tpu.pipeline_mode<synchronous>, transform_indices = @transform_2, window_bounds = array<i64: 16, 1>}, {transform_indices = @transform_3, window_bounds = array<i64: 1, 16, 384>}]} {
    %c0 = arith.constant 0 : index
    %c0_0 = arith.constant 0 : index
    %c0_1 = arith.constant 0 : index
    %0 = vector.load %arg1[%c0, %c0_0, %c0_1] : memref<1x8x384xf32, #tpu.memory_space<vmem>>, vector<1x8x384xf32>
    %1 = vector.shape_cast %0 : vector<1x8x384xf32> to vector<8x384xf32>
    %cst = arith.constant 0.000000e+00 : f32
    %2 = vector.broadcast %cst : f32 to vector<16x384xf32>
    %c19_i32 = arith.constant 19 : i32
    %3 = tpu.dynamic_rotate %1 by %c19_i32 dim 1 : vector<8x384xf32>, i32 -> vector<8x384xf32>
    %c0_2 = arith.constant 0 : index
    %c0_3 = arith.constant 0 : index
    %c0_4 = arith.constant 0 : index
    %4 = vector.load %arg2[%c0_2, %c0_3, %c0_4] : memref<9x16x8xf32, #tpu.memory_space<vmem>>, vector<1x16x8xf32>
    %5 = vector.shape_cast %4 : vector<1x16x8xf32> to vector<16x8xf32>
    %cst_5 = arith.constant dense<0.000000e+00> : vector<16x384xf32>
    %6 = tpu.matmul %5, %3, %cst_5 {dimension_numbers = #tpu.dot_dimension_numbers<[1], [0], [0], [1], [0, 0, 1, 1], [], []>} : vector<16x8xf32>, vector<8x384xf32>, vector<16x384xf32> -> vector<16x384xf32>
    %7 = arith.addf %2, %6 : vector<16x384xf32>
    %c18_i32 = arith.constant 18 : i32
    %8 = tpu.dynamic_rotate %1 by %c18_i32 dim 1 : vector<8x384xf32>, i32 -> vector<8x384xf32>
    %c1 = arith.constant 1 : index
    %c0_6 = arith.constant 0 : index
    %c0_7 = arith.constant 0 : index
    %9 = vector.load %arg2[%c1, %c0_6, %c0_7] : memref<9x16x8xf32, #tpu.memory_space<vmem>>, vector<1x16x8xf32>
    %10 = vector.shape_cast %9 : vector<1x16x8xf32> to vector<16x8xf32>
    %cst_8 = arith.constant dense<0.000000e+00> : vector<16x384xf32>
    %11 = tpu.matmul %10, %8, %cst_8 {dimension_numbers = #tpu.dot_dimension_numbers<[1], [0], [0], [1], [0, 0, 1, 1], [], []>} : vector<16x8xf32>, vector<8x384xf32>, vector<16x384xf32> -> vector<16x384xf32>
    %12 = arith.addf %7, %11 : vector<16x384xf32>
    %c17_i32 = arith.constant 17 : i32
    %13 = tpu.dynamic_rotate %1 by %c17_i32 dim 1 : vector<8x384xf32>, i32 -> vector<8x384xf32>
    %c2 = arith.constant 2 : index
    %c0_9 = arith.constant 0 : index
    %c0_10 = arith.constant 0 : index
    %14 = vector.load %arg2[%c2, %c0_9, %c0_10] : memref<9x16x8xf32, #tpu.memory_space<vmem>>, vector<1x16x8xf32>
    %15 = vector.shape_cast %14 : vector<1x16x8xf32> to vector<16x8xf32>
    %cst_11 = arith.constant dense<0.000000e+00> : vector<16x384xf32>
    %16 = tpu.matmul %15, %13, %cst_11 {dimension_numbers = #tpu.dot_dimension_numbers<[1], [0], [0], [1], [0, 0, 1, 1], [], []>} : vector<16x8xf32>, vector<8x384xf32>, vector<16x384xf32> -> vector<16x384xf32>
    %17 = arith.addf %12, %16 : vector<16x384xf32>
    %c1_i32 = arith.constant 1 : i32
    %18 = tpu.dynamic_rotate %1 by %c1_i32 dim 1 : vector<8x384xf32>, i32 -> vector<8x384xf32>
    %c3 = arith.constant 3 : index
    %c0_12 = arith.constant 0 : index
    %c0_13 = arith.constant 0 : index
    %19 = vector.load %arg2[%c3, %c0_12, %c0_13] : memref<9x16x8xf32, #tpu.memory_space<vmem>>, vector<1x16x8xf32>
    %20 = vector.shape_cast %19 : vector<1x16x8xf32> to vector<16x8xf32>
    %cst_14 = arith.constant dense<0.000000e+00> : vector<16x384xf32>
    %21 = tpu.matmul %20, %18, %cst_14 {dimension_numbers = #tpu.dot_dimension_numbers<[1], [0], [0], [1], [0, 0, 1, 1], [], []>} : vector<16x8xf32>, vector<8x384xf32>, vector<16x384xf32> -> vector<16x384xf32>
    %22 = arith.addf %17, %21 : vector<16x384xf32>
    %c4 = arith.constant 4 : index
    %c0_15 = arith.constant 0 : index
    %c0_16 = arith.constant 0 : index
    %23 = vector.load %arg2[%c4, %c0_15, %c0_16] : memref<9x16x8xf32, #tpu.memory_space<vmem>>, vector<1x16x8xf32>
    %24 = vector.shape_cast %23 : vector<1x16x8xf32> to vector<16x8xf32>
    %cst_17 = arith.constant dense<0.000000e+00> : vector<16x384xf32>
    %25 = tpu.matmul %24, %1, %cst_17 {dimension_numbers = #tpu.dot_dimension_numbers<[1], [0], [0], [1], [0, 0, 1, 1], [], []>} : vector<16x8xf32>, vector<8x384xf32>, vector<16x384xf32> -> vector<16x384xf32>
    %26 = arith.addf %22, %25 : vector<16x384xf32>
    %c383_i32 = arith.constant 383 : i32
    %27 = tpu.dynamic_rotate %1 by %c383_i32 dim 1 : vector<8x384xf32>, i32 -> vector<8x384xf32>
    %c5 = arith.constant 5 : index
    %c0_18 = arith.constant 0 : index
    %c0_19 = arith.constant 0 : index
    %28 = vector.load %arg2[%c5, %c0_18, %c0_19] : memref<9x16x8xf32, #tpu.memory_space<vmem>>, vector<1x16x8xf32>
    %29 = vector.shape_cast %28 : vector<1x16x8xf32> to vector<16x8xf32>
    %cst_20 = arith.constant dense<0.000000e+00> : vector<16x384xf32>
    %30 = tpu.matmul %29, %27, %cst_20 {dimension_numbers = #tpu.dot_dimension_numbers<[1], [0], [0], [1], [0, 0, 1, 1], [], []>} : vector<16x8xf32>, vector<8x384xf32>, vector<16x384xf32> -> vector<16x384xf32>
    %31 = arith.addf %26, %30 : vector<16x384xf32>
    %c367_i32 = arith.constant 367 : i32
    %32 = tpu.dynamic_rotate %1 by %c367_i32 dim 1 : vector<8x384xf32>, i32 -> vector<8x384xf32>
    %c6 = arith.constant 6 : index
    %c0_21 = arith.constant 0 : index
    %c0_22 = arith.constant 0 : index
    %33 = vector.load %arg2[%c6, %c0_21, %c0_22] : memref<9x16x8xf32, #tpu.memory_space<vmem>>, vector<1x16x8xf32>
    %34 = vector.shape_cast %33 : vector<1x16x8xf32> to vector<16x8xf32>
    %cst_23 = arith.constant dense<0.000000e+00> : vector<16x384xf32>
    %35 = tpu.matmul %34, %32, %cst_23 {dimension_numbers = #tpu.dot_dimension_numbers<[1], [0], [0], [1], [0, 0, 1, 1], [], []>} : vector<16x8xf32>, vector<8x384xf32>, vector<16x384xf32> -> vector<16x384xf32>
    %36 = arith.addf %31, %35 : vector<16x384xf32>
    %c366_i32 = arith.constant 366 : i32
    %37 = tpu.dynamic_rotate %1 by %c366_i32 dim 1 : vector<8x384xf32>, i32 -> vector<8x384xf32>
    %c7 = arith.constant 7 : index
    %c0_24 = arith.constant 0 : index
    %c0_25 = arith.constant 0 : index
    %38 = vector.load %arg2[%c7, %c0_24, %c0_25] : memref<9x16x8xf32, #tpu.memory_space<vmem>>, vector<1x16x8xf32>
    %39 = vector.shape_cast %38 : vector<1x16x8xf32> to vector<16x8xf32>
    %cst_26 = arith.constant dense<0.000000e+00> : vector<16x384xf32>
    %40 = tpu.matmul %39, %37, %cst_26 {dimension_numbers = #tpu.dot_dimension_numbers<[1], [0], [0], [1], [0, 0, 1, 1], [], []>} : vector<16x8xf32>, vector<8x384xf32>, vector<16x384xf32> -> vector<16x384xf32>
    %41 = arith.addf %36, %40 : vector<16x384xf32>
    %c365_i32 = arith.constant 365 : i32
    %42 = tpu.dynamic_rotate %1 by %c365_i32 dim 1 : vector<8x384xf32>, i32 -> vector<8x384xf32>
    %c8 = arith.constant 8 : index
    %c0_27 = arith.constant 0 : index
    %c0_28 = arith.constant 0 : index
    %43 = vector.load %arg2[%c8, %c0_27, %c0_28] : memref<9x16x8xf32, #tpu.memory_space<vmem>>, vector<1x16x8xf32>
    %44 = vector.shape_cast %43 : vector<1x16x8xf32> to vector<16x8xf32>
    %cst_29 = arith.constant dense<0.000000e+00> : vector<16x384xf32>
    %45 = tpu.matmul %44, %42, %cst_29 {dimension_numbers = #tpu.dot_dimension_numbers<[1], [0], [0], [1], [0, 0, 1, 1], [], []>} : vector<16x8xf32>, vector<8x384xf32>, vector<16x384xf32> -> vector<16x384xf32>
    %46 = arith.addf %41, %45 : vector<16x384xf32>
    %c0_30 = arith.constant 0 : index
    %c0_31 = arith.constant 0 : index
    %47 = vector.load %arg3[%c0_30, %c0_31] : memref<16x1xf32, #tpu.memory_space<vmem>>, vector<16x1xf32>
    %48 = vector.broadcast %47 : vector<16x1xf32> to vector<16x384xf32>
    %49 = arith.addf %46, %48 : vector<16x384xf32>
    %cst_32 = arith.constant 0.000000e+00 : f32
    %50 = vector.broadcast %cst_32 : f32 to vector<16x384xf32>
    %51 = arith.maximumf %49, %50 : vector<16x384xf32>
    %52 = tpu.iota {dimensions = array<i32: 1>} : vector<16x384xi32>
    %c19_i32_33 = arith.constant 19 : i32
    %53 = vector.broadcast %c19_i32_33 : i32 to vector<16x384xi32>
    %54 = arith.subi %52, %53 : vector<16x384xi32>
    %c0_i32 = arith.constant 0 : i32
    %55 = vector.broadcast %c0_i32 : i32 to vector<16x384xi32>
    %56 = arith.cmpi sge, %54, %55 : vector<16x384xi32>
    %c288_i32 = arith.constant 288 : i32
    %57 = vector.broadcast %c288_i32 : i32 to vector<16x384xi32>
    %58 = arith.cmpi slt, %54, %57 : vector<16x384xi32>
    %59 = arith.andi %56, %58 : vector<16x384xi1>
    %c18_i32_34 = arith.constant 18 : i32
    %c0_i32_35 = arith.constant 0 : i32
    %60 = arith.cmpi eq, %c18_i32_34, %c0_i32_35 : i32
    %c1_i32_36 = arith.constant 1 : i32
    %61 = arith.select %60, %c1_i32_36, %c18_i32_34 : i32
    %62 = vector.broadcast %61 : i32 to vector<16x384xi32>
    %63 = arith.remsi %54, %62 : vector<16x384xi32>
    %c0_i32_37 = arith.constant 0 : i32
    %64 = vector.broadcast %c0_i32_37 : i32 to vector<16x384xi32>
    %65 = arith.cmpi ne, %63, %64 : vector<16x384xi32>
    %c0_i32_38 = arith.constant 0 : i32
    %66 = vector.broadcast %c0_i32_38 : i32 to vector<16x384xi32>
    %67 = arith.cmpi slt, %63, %66 : vector<16x384xi32>
    %c0_i32_39 = arith.constant 0 : i32
    %68 = arith.cmpi slt, %61, %c0_i32_39 : i32
    %69 = vector.broadcast %68 : i1 to vector<16x384xi1>
    %70 = vector.broadcast %69 : vector<16x384xi1> to vector<16x384xi1>
    %71 = arith.xori %67, %70 : vector<16x384xi1>
    %72 = arith.andi %71, %65 : vector<16x384xi1>
    %73 = vector.broadcast %61 : i32 to vector<16x384xi32>
    %74 = arith.addi %63, %73 : vector<16x384xi32>
    %75 = arith.select %72, %74, %63 : vector<16x384xi1>, vector<16x384xi32>
    %c16_i32 = arith.constant 16 : i32
    %76 = vector.broadcast %c16_i32 : i32 to vector<16x384xi32>
    %77 = arith.cmpi slt, %75, %76 : vector<16x384xi32>
    %78 = arith.andi %59, %77 : vector<16x384xi1>
    %cst_40 = arith.constant 0.000000e+00 : f32
    %79 = vector.broadcast %cst_40 : f32 to vector<16x384xf32>
    %80 = arith.select %78, %51, %79 : vector<16x384xi1>, vector<16x384xf32>
    %c0_41 = arith.constant 0 : index
    %c0_42 = arith.constant 0 : index
    %c0_43 = arith.constant 0 : index
    %81 = vector.load %arg4[%c0_41, %c0_42, %c0_43] : memref<1x16x384xf32, #tpu.memory_space<vmem>>, vector<1x16x384xf32>
    %82 = vector.shape_cast %81 : vector<1x16x384xf32> to vector<16x384xf32>
    %83 = vector.shape_cast %80 : vector<16x384xf32> to vector<1x16x384xf32>
    tpu.vector_store %arg4[%c0_41, %c0_42, %c0_43], %83 {strides = array<i32>} : memref<1x16x384xf32, #tpu.memory_space<vmem>>, vector<1x16x384xf32>,
    return
  }
  func.func @transform_0(%arg0: i32) -> (i32, i32, i32) {
    %c0_i32 = arith.constant 0 : i32
    %c0_i32_0 = arith.constant 0 : i32
    %c0_i32_1 = arith.constant 0 : i32
    return %arg0, %c0_i32, %c0_i32_0 : i32, i32, i32
  }
  func.func @transform_1(%arg0: i32) -> (i32, i32, i32) {
    %c0_i32 = arith.constant 0 : i32
    %c0_i32_0 = arith.constant 0 : i32
    %c0_i32_1 = arith.constant 0 : i32
    %c0_i32_2 = arith.constant 0 : i32
    return %c0_i32, %c0_i32_0, %c0_i32_1 : i32, i32, i32
  }
  func.func @transform_2(%arg0: i32) -> (i32, i32) {
    %c0_i32 = arith.constant 0 : i32
    %c0_i32_0 = arith.constant 0 : i32
    %c0_i32_1 = arith.constant 0 : i32
    return %c0_i32, %c0_i32_0 : i32, i32
  }
  func.func @transform_3(%arg0: i32) -> (i32, i32, i32) {
    %c0_i32 = arith.constant 0 : i32
    %c0_i32_0 = arith.constant 0 : i32
    %c0_i32_1 = arith.constant 0 : i32
    return %arg0, %c0_i32, %c0_i32_0 : i32, i32, i32
  }
}

module attributes {stable_mosaic.version = 11 : i64} {
  func.func @_conv3x3_kernel(%arg0: i32, %arg1: memref<1x8x384xf32, #tpu.memory_space<vmem>>, %arg2: memref<9x8x8xf32, #tpu.memory_space<vmem>>, %arg3: memref<8x1xf32, #tpu.memory_space<vmem>>, %arg4: memref<1x8x384xf32, #tpu.memory_space<vmem>>) attributes {dimension_semantics = [#tpu.dimension_semantics<parallel>], iteration_bounds = array<i64: 2>, scalar_prefetch = 0 : i64, scratch_operands = 0 : i64, tpu.core_type = #tpu.core_type<tc>, window_params = [{transform_indices = @transform_0, window_bounds = array<i64: 1, 8, 384>}, {pipeline_mode = #tpu.pipeline_mode<synchronous>, transform_indices = @transform_1, window_bounds = array<i64: 9, 8, 8>}, {pipeline_mode = #tpu.pipeline_mode<synchronous>, transform_indices = @transform_2, window_bounds = array<i64: 8, 1>}, {transform_indices = @transform_3, window_bounds = array<i64: 1, 8, 384>}]} {
    %c0 = arith.constant 0 : index
    %c0_0 = arith.constant 0 : index
    %c0_1 = arith.constant 0 : index
    %0 = vector.load %arg1[%c0, %c0_0, %c0_1] : memref<1x8x384xf32, #tpu.memory_space<vmem>>, vector<1x8x384xf32>
    %1 = vector.shape_cast %0 : vector<1x8x384xf32> to vector<8x384xf32>
    %cst = arith.constant 0.000000e+00 : f32
    %2 = vector.broadcast %cst : f32 to vector<8x384xf32>
    %c19_i32 = arith.constant 19 : i32
    %3 = tpu.dynamic_rotate %1 by %c19_i32 dim 1 : vector<8x384xf32>, i32 -> vector<8x384xf32>
    %c0_2 = arith.constant 0 : index
    %c0_3 = arith.constant 0 : index
    %c0_4 = arith.constant 0 : index
    %4 = vector.load %arg2[%c0_2, %c0_3, %c0_4] : memref<9x8x8xf32, #tpu.memory_space<vmem>>, vector<1x8x8xf32>
    %5 = vector.shape_cast %4 : vector<1x8x8xf32> to vector<8x8xf32>
    %cst_5 = arith.constant dense<0.000000e+00> : vector<8x384xf32>
    %6 = tpu.matmul %5, %3, %cst_5 {dimension_numbers = #tpu.dot_dimension_numbers<[1], [0], [0], [1], [0, 0, 1, 1], [], []>} : vector<8x8xf32>, vector<8x384xf32>, vector<8x384xf32> -> vector<8x384xf32>
    %7 = arith.addf %2, %6 : vector<8x384xf32>
    %c18_i32 = arith.constant 18 : i32
    %8 = tpu.dynamic_rotate %1 by %c18_i32 dim 1 : vector<8x384xf32>, i32 -> vector<8x384xf32>
    %c1 = arith.constant 1 : index
    %c0_6 = arith.constant 0 : index
    %c0_7 = arith.constant 0 : index
    %9 = vector.load %arg2[%c1, %c0_6, %c0_7] : memref<9x8x8xf32, #tpu.memory_space<vmem>>, vector<1x8x8xf32>
    %10 = vector.shape_cast %9 : vector<1x8x8xf32> to vector<8x8xf32>
    %cst_8 = arith.constant dense<0.000000e+00> : vector<8x384xf32>
    %11 = tpu.matmul %10, %8, %cst_8 {dimension_numbers = #tpu.dot_dimension_numbers<[1], [0], [0], [1], [0, 0, 1, 1], [], []>} : vector<8x8xf32>, vector<8x384xf32>, vector<8x384xf32> -> vector<8x384xf32>
    %12 = arith.addf %7, %11 : vector<8x384xf32>
    %c17_i32 = arith.constant 17 : i32
    %13 = tpu.dynamic_rotate %1 by %c17_i32 dim 1 : vector<8x384xf32>, i32 -> vector<8x384xf32>
    %c2 = arith.constant 2 : index
    %c0_9 = arith.constant 0 : index
    %c0_10 = arith.constant 0 : index
    %14 = vector.load %arg2[%c2, %c0_9, %c0_10] : memref<9x8x8xf32, #tpu.memory_space<vmem>>, vector<1x8x8xf32>
    %15 = vector.shape_cast %14 : vector<1x8x8xf32> to vector<8x8xf32>
    %cst_11 = arith.constant dense<0.000000e+00> : vector<8x384xf32>
    %16 = tpu.matmul %15, %13, %cst_11 {dimension_numbers = #tpu.dot_dimension_numbers<[1], [0], [0], [1], [0, 0, 1, 1], [], []>} : vector<8x8xf32>, vector<8x384xf32>, vector<8x384xf32> -> vector<8x384xf32>
    %17 = arith.addf %12, %16 : vector<8x384xf32>
    %c1_i32 = arith.constant 1 : i32
    %18 = tpu.dynamic_rotate %1 by %c1_i32 dim 1 : vector<8x384xf32>, i32 -> vector<8x384xf32>
    %c3 = arith.constant 3 : index
    %c0_12 = arith.constant 0 : index
    %c0_13 = arith.constant 0 : index
    %19 = vector.load %arg2[%c3, %c0_12, %c0_13] : memref<9x8x8xf32, #tpu.memory_space<vmem>>, vector<1x8x8xf32>
    %20 = vector.shape_cast %19 : vector<1x8x8xf32> to vector<8x8xf32>
    %cst_14 = arith.constant dense<0.000000e+00> : vector<8x384xf32>
    %21 = tpu.matmul %20, %18, %cst_14 {dimension_numbers = #tpu.dot_dimension_numbers<[1], [0], [0], [1], [0, 0, 1, 1], [], []>} : vector<8x8xf32>, vector<8x384xf32>, vector<8x384xf32> -> vector<8x384xf32>
    %22 = arith.addf %17, %21 : vector<8x384xf32>
    %c4 = arith.constant 4 : index
    %c0_15 = arith.constant 0 : index
    %c0_16 = arith.constant 0 : index
    %23 = vector.load %arg2[%c4, %c0_15, %c0_16] : memref<9x8x8xf32, #tpu.memory_space<vmem>>, vector<1x8x8xf32>
    %24 = vector.shape_cast %23 : vector<1x8x8xf32> to vector<8x8xf32>
    %cst_17 = arith.constant dense<0.000000e+00> : vector<8x384xf32>
    %25 = tpu.matmul %24, %1, %cst_17 {dimension_numbers = #tpu.dot_dimension_numbers<[1], [0], [0], [1], [0, 0, 1, 1], [], []>} : vector<8x8xf32>, vector<8x384xf32>, vector<8x384xf32> -> vector<8x384xf32>
    %26 = arith.addf %22, %25 : vector<8x384xf32>
    %c383_i32 = arith.constant 383 : i32
    %27 = tpu.dynamic_rotate %1 by %c383_i32 dim 1 : vector<8x384xf32>, i32 -> vector<8x384xf32>
    %c5 = arith.constant 5 : index
    %c0_18 = arith.constant 0 : index
    %c0_19 = arith.constant 0 : index
    %28 = vector.load %arg2[%c5, %c0_18, %c0_19] : memref<9x8x8xf32, #tpu.memory_space<vmem>>, vector<1x8x8xf32>
    %29 = vector.shape_cast %28 : vector<1x8x8xf32> to vector<8x8xf32>
    %cst_20 = arith.constant dense<0.000000e+00> : vector<8x384xf32>
    %30 = tpu.matmul %29, %27, %cst_20 {dimension_numbers = #tpu.dot_dimension_numbers<[1], [0], [0], [1], [0, 0, 1, 1], [], []>} : vector<8x8xf32>, vector<8x384xf32>, vector<8x384xf32> -> vector<8x384xf32>
    %31 = arith.addf %26, %30 : vector<8x384xf32>
    %c367_i32 = arith.constant 367 : i32
    %32 = tpu.dynamic_rotate %1 by %c367_i32 dim 1 : vector<8x384xf32>, i32 -> vector<8x384xf32>
    %c6 = arith.constant 6 : index
    %c0_21 = arith.constant 0 : index
    %c0_22 = arith.constant 0 : index
    %33 = vector.load %arg2[%c6, %c0_21, %c0_22] : memref<9x8x8xf32, #tpu.memory_space<vmem>>, vector<1x8x8xf32>
    %34 = vector.shape_cast %33 : vector<1x8x8xf32> to vector<8x8xf32>
    %cst_23 = arith.constant dense<0.000000e+00> : vector<8x384xf32>
    %35 = tpu.matmul %34, %32, %cst_23 {dimension_numbers = #tpu.dot_dimension_numbers<[1], [0], [0], [1], [0, 0, 1, 1], [], []>} : vector<8x8xf32>, vector<8x384xf32>, vector<8x384xf32> -> vector<8x384xf32>
    %36 = arith.addf %31, %35 : vector<8x384xf32>
    %c366_i32 = arith.constant 366 : i32
    %37 = tpu.dynamic_rotate %1 by %c366_i32 dim 1 : vector<8x384xf32>, i32 -> vector<8x384xf32>
    %c7 = arith.constant 7 : index
    %c0_24 = arith.constant 0 : index
    %c0_25 = arith.constant 0 : index
    %38 = vector.load %arg2[%c7, %c0_24, %c0_25] : memref<9x8x8xf32, #tpu.memory_space<vmem>>, vector<1x8x8xf32>
    %39 = vector.shape_cast %38 : vector<1x8x8xf32> to vector<8x8xf32>
    %cst_26 = arith.constant dense<0.000000e+00> : vector<8x384xf32>
    %40 = tpu.matmul %39, %37, %cst_26 {dimension_numbers = #tpu.dot_dimension_numbers<[1], [0], [0], [1], [0, 0, 1, 1], [], []>} : vector<8x8xf32>, vector<8x384xf32>, vector<8x384xf32> -> vector<8x384xf32>
    %41 = arith.addf %36, %40 : vector<8x384xf32>
    %c365_i32 = arith.constant 365 : i32
    %42 = tpu.dynamic_rotate %1 by %c365_i32 dim 1 : vector<8x384xf32>, i32 -> vector<8x384xf32>
    %c8 = arith.constant 8 : index
    %c0_27 = arith.constant 0 : index
    %c0_28 = arith.constant 0 : index
    %43 = vector.load %arg2[%c8, %c0_27, %c0_28] : memref<9x8x8xf32, #tpu.memory_space<vmem>>, vector<1x8x8xf32>
    %44 = vector.shape_cast %43 : vector<1x8x8xf32> to vector<8x8xf32>
    %cst_29 = arith.constant dense<0.000000e+00> : vector<8x384xf32>
    %45 = tpu.matmul %44, %42, %cst_29 {dimension_numbers = #tpu.dot_dimension_numbers<[1], [0], [0], [1], [0, 0, 1, 1], [], []>} : vector<8x8xf32>, vector<8x384xf32>, vector<8x384xf32> -> vector<8x384xf32>
    %46 = arith.addf %41, %45 : vector<8x384xf32>
    %c0_30 = arith.constant 0 : index
    %c0_31 = arith.constant 0 : index
    %47 = vector.load %arg3[%c0_30, %c0_31] : memref<8x1xf32, #tpu.memory_space<vmem>>, vector<8x1xf32>
    %48 = vector.broadcast %47 : vector<8x1xf32> to vector<8x384xf32>
    %49 = arith.addf %46, %48 : vector<8x384xf32>
    %cst_32 = arith.constant 0.000000e+00 : f32
    %50 = vector.broadcast %cst_32 : f32 to vector<8x384xf32>
    %51 = arith.maximumf %49, %50 : vector<8x384xf32>
    %52 = tpu.iota {dimensions = array<i32: 1>} : vector<8x384xi32>
    %c19_i32_33 = arith.constant 19 : i32
    %53 = vector.broadcast %c19_i32_33 : i32 to vector<8x384xi32>
    %54 = arith.subi %52, %53 : vector<8x384xi32>
    %c0_i32 = arith.constant 0 : i32
    %55 = vector.broadcast %c0_i32 : i32 to vector<8x384xi32>
    %56 = arith.cmpi sge, %54, %55 : vector<8x384xi32>
    %c288_i32 = arith.constant 288 : i32
    %57 = vector.broadcast %c288_i32 : i32 to vector<8x384xi32>
    %58 = arith.cmpi slt, %54, %57 : vector<8x384xi32>
    %59 = arith.andi %56, %58 : vector<8x384xi1>
    %c18_i32_34 = arith.constant 18 : i32
    %c0_i32_35 = arith.constant 0 : i32
    %60 = arith.cmpi eq, %c18_i32_34, %c0_i32_35 : i32
    %c1_i32_36 = arith.constant 1 : i32
    %61 = arith.select %60, %c1_i32_36, %c18_i32_34 : i32
    %62 = vector.broadcast %61 : i32 to vector<8x384xi32>
    %63 = arith.remsi %54, %62 : vector<8x384xi32>
    %c0_i32_37 = arith.constant 0 : i32
    %64 = vector.broadcast %c0_i32_37 : i32 to vector<8x384xi32>
    %65 = arith.cmpi ne, %63, %64 : vector<8x384xi32>
    %c0_i32_38 = arith.constant 0 : i32
    %66 = vector.broadcast %c0_i32_38 : i32 to vector<8x384xi32>
    %67 = arith.cmpi slt, %63, %66 : vector<8x384xi32>
    %c0_i32_39 = arith.constant 0 : i32
    %68 = arith.cmpi slt, %61, %c0_i32_39 : i32
    %69 = vector.broadcast %68 : i1 to vector<8x384xi1>
    %70 = vector.broadcast %69 : vector<8x384xi1> to vector<8x384xi1>
    %71 = arith.xori %67, %70 : vector<8x384xi1>
    %72 = arith.andi %71, %65 : vector<8x384xi1>
    %73 = vector.broadcast %61 : i32 to vector<8x384xi32>
    %74 = arith.addi %63, %73 : vector<8x384xi32>
    %75 = arith.select %72, %74, %63 : vector<8x384xi1>, vector<8x384xi32>
    %c16_i32 = arith.constant 16 : i32
    %76 = vector.broadcast %c16_i32 : i32 to vector<8x384xi32>
    %77 = arith.cmpi slt, %75, %76 : vector<8x384xi32>
    %78 = arith.andi %59, %77 : vector<8x384xi1>
    %cst_40 = arith.constant 0.000000e+00 : f32
    %79 = vector.broadcast %cst_40 : f32 to vector<8x384xf32>
    %80 = arith.select %78, %51, %79 : vector<8x384xi1>, vector<8x384xf32>
    %c0_41 = arith.constant 0 : index
    %c0_42 = arith.constant 0 : index
    %c0_43 = arith.constant 0 : index
    %81 = vector.load %arg4[%c0_41, %c0_42, %c0_43] : memref<1x8x384xf32, #tpu.memory_space<vmem>>, vector<1x8x384xf32>
    %82 = vector.shape_cast %81 : vector<1x8x384xf32> to vector<8x384xf32>
    %83 = vector.shape_cast %80 : vector<8x384xf32> to vector<1x8x384xf32>
    tpu.vector_store %arg4[%c0_41, %c0_42, %c0_43], %83 {strides = array<i32>} : memref<1x8x384xf32, #tpu.memory_space<vmem>>, vector<1x8x384xf32>,
    return
  }
  func.func @transform_0(%arg0: i32) -> (i32, i32, i32) {
    %c0_i32 = arith.constant 0 : i32
    %c0_i32_0 = arith.constant 0 : i32
    %c0_i32_1 = arith.constant 0 : i32
    return %arg0, %c0_i32, %c0_i32_0 : i32, i32, i32
  }
  func.func @transform_1(%arg0: i32) -> (i32, i32, i32) {
    %c0_i32 = arith.constant 0 : i32
    %c0_i32_0 = arith.constant 0 : i32
    %c0_i32_1 = arith.constant 0 : i32
    %c0_i32_2 = arith.constant 0 : i32
    return %c0_i32, %c0_i32_0, %c0_i32_1 : i32, i32, i32
  }
  func.func @transform_2(%arg0: i32) -> (i32, i32) {
    %c0_i32 = arith.constant 0 : i32
    %c0_i32_0 = arith.constant 0 : i32
    %c0_i32_1 = arith.constant 0 : i32
    return %c0_i32, %c0_i32_0 : i32, i32
  }
  func.func @transform_3(%arg0: i32) -> (i32, i32, i32) {
    %c0_i32 = arith.constant 0 : i32
    %c0_i32_0 = arith.constant 0 : i32
    %c0_i32_1 = arith.constant 0 : i32
    return %arg0, %c0_i32, %c0_i32_0 : i32, i32, i32
  }
}

module attributes {stable_mosaic.version = 11 : i64} {
  func.func @_gemm_bias_kernel(%arg0: i32, %arg1: memref<2x6144xf32, #tpu.memory_space<vmem>>, %arg2: memref<6144x32xf32, #tpu.memory_space<vmem>>, %arg3: memref<1x32xf32, #tpu.memory_space<vmem>>, %arg4: memref<2x32xf32, #tpu.memory_space<vmem>>) attributes {dimension_semantics = [#tpu.dimension_semantics<parallel>], iteration_bounds = array<i64: 1>, scalar_prefetch = 0 : i64, scratch_operands = 0 : i64, tpu.core_type = #tpu.core_type<tc>, window_params = [{transform_indices = @transform_0, window_bounds = array<i64: 2, 6144>}, {pipeline_mode = #tpu.pipeline_mode<synchronous>, transform_indices = @transform_1, window_bounds = array<i64: 6144, 32>}, {pipeline_mode = #tpu.pipeline_mode<synchronous>, transform_indices = @transform_2, window_bounds = array<i64: 1, 32>}, {transform_indices = @transform_3, window_bounds = array<i64: 2, 32>}]} {
    %c0 = arith.constant 0 : index
    %c0_0 = arith.constant 0 : index
    %0 = vector.load %arg1[%c0, %c0_0] : memref<2x6144xf32, #tpu.memory_space<vmem>>, vector<2x6144xf32>
    %c0_1 = arith.constant 0 : index
    %c0_2 = arith.constant 0 : index
    %1 = vector.load %arg2[%c0_1, %c0_2] : memref<6144x32xf32, #tpu.memory_space<vmem>>, vector<6144x32xf32>
    %cst = arith.constant dense<0.000000e+00> : vector<2x32xf32>
    %2 = tpu.matmul %0, %1, %cst {dimension_numbers = #tpu.dot_dimension_numbers<[1], [0], [0], [1], [0, 0, 1, 1], [], []>} : vector<2x6144xf32>, vector<6144x32xf32>, vector<2x32xf32> -> vector<2x32xf32>
    %c0_3 = arith.constant 0 : index
    %c0_4 = arith.constant 0 : index
    %3 = vector.load %arg3[%c0_3, %c0_4] : memref<1x32xf32, #tpu.memory_space<vmem>>, vector<1x32xf32>
    %4 = vector.broadcast %3 : vector<1x32xf32> to vector<2x32xf32>
    %5 = arith.addf %2, %4 : vector<2x32xf32>
    %c0_5 = arith.constant 0 : index
    %c0_6 = arith.constant 0 : index
    %6 = vector.load %arg4[%c0_5, %c0_6] : memref<2x32xf32, #tpu.memory_space<vmem>>, vector<2x32xf32>
    tpu.vector_store %arg4[%c0_5, %c0_6], %5 {strides = array<i32>} : memref<2x32xf32, #tpu.memory_space<vmem>>, vector<2x32xf32>,
    return
  }
  func.func @transform_0(%arg0: i32) -> (i32, i32) {
    %c0_i32 = arith.constant 0 : i32
    %c0_i32_0 = arith.constant 0 : i32
    return %arg0, %c0_i32 : i32, i32
  }
  func.func @transform_1(%arg0: i32) -> (i32, i32) {
    %c0_i32 = arith.constant 0 : i32
    %c0_i32_0 = arith.constant 0 : i32
    %c0_i32_1 = arith.constant 0 : i32
    return %c0_i32, %c0_i32_0 : i32, i32
  }
  func.func @transform_2(%arg0: i32) -> (i32, i32) {
    %c0_i32 = arith.constant 0 : i32
    %c0_i32_0 = arith.constant 0 : i32
    %c0_i32_1 = arith.constant 0 : i32
    return %c0_i32, %c0_i32_0 : i32, i32
  }
  func.func @transform_3(%arg0: i32) -> (i32, i32) {
    %c0_i32 = arith.constant 0 : i32
    %c0_i32_0 = arith.constant 0 : i32
    return %arg0, %c0_i32 : i32, i32
  }
}

module attributes {stable_mosaic.version = 11 : i64} {
  func.func @_reparam_decfc_kernel(%arg0: i32, %arg1: memref<2x16xf32, #tpu.memory_space<vmem>>, %arg2: memref<2x16xf32, #tpu.memory_space<vmem>>, %arg3: memref<2x16xf32, #tpu.memory_space<vmem>>, %arg4: memref<16x6144xf32, #tpu.memory_space<vmem>>, %arg5: memref<1x6144xf32, #tpu.memory_space<vmem>>, %arg6: memref<2x6144xf32, #tpu.memory_space<vmem>>) attributes {dimension_semantics = [#tpu.dimension_semantics<arbitrary>], iteration_bounds = array<i64: 1>, scalar_prefetch = 0 : i64, scratch_operands = 0 : i64, tpu.core_type = #tpu.core_type<tc>, window_params = [{pipeline_mode = #tpu.pipeline_mode<synchronous>, transform_indices = @transform_0, window_bounds = array<i64: 2, 16>}, {pipeline_mode = #tpu.pipeline_mode<synchronous>, transform_indices = @transform_1, window_bounds = array<i64: 2, 16>}, {pipeline_mode = #tpu.pipeline_mode<synchronous>, transform_indices = @transform_2, window_bounds = array<i64: 2, 16>}, {pipeline_mode = #tpu.pipeline_mode<synchronous>, transform_indices = @transform_3, window_bounds = array<i64: 16, 6144>}, {pipeline_mode = #tpu.pipeline_mode<synchronous>, transform_indices = @transform_4, window_bounds = array<i64: 1, 6144>}, {pipeline_mode = #tpu.pipeline_mode<synchronous>, transform_indices = @transform_5, window_bounds = array<i64: 2, 6144>}]} {
    %c0 = arith.constant 0 : index
    %c0_0 = arith.constant 0 : index
    %0 = vector.load %arg1[%c0, %c0_0] : memref<2x16xf32, #tpu.memory_space<vmem>>, vector<2x16xf32>
    %c0_1 = arith.constant 0 : index
    %c0_2 = arith.constant 0 : index
    %1 = vector.load %arg3[%c0_1, %c0_2] : memref<2x16xf32, #tpu.memory_space<vmem>>, vector<2x16xf32>
    %c0_3 = arith.constant 0 : index
    %c0_4 = arith.constant 0 : index
    %2 = vector.load %arg2[%c0_3, %c0_4] : memref<2x16xf32, #tpu.memory_space<vmem>>, vector<2x16xf32>
    %cst = arith.constant 5.000000e-01 : f32
    %3 = vector.broadcast %cst : f32 to vector<2x16xf32>
    %4 = arith.mulf %3, %2 : vector<2x16xf32>
    %5 = math.exp %4 : vector<2x16xf32>
    %6 = arith.mulf %1, %5 : vector<2x16xf32>
    %7 = arith.addf %0, %6 : vector<2x16xf32>
    %c0_5 = arith.constant 0 : index
    %c0_6 = arith.constant 0 : index
    %8 = vector.load %arg4[%c0_5, %c0_6] : memref<16x6144xf32, #tpu.memory_space<vmem>>, vector<16x6144xf32>
    %cst_7 = arith.constant dense<0.000000e+00> : vector<2x6144xf32>
    %9 = tpu.matmul %7, %8, %cst_7 {dimension_numbers = #tpu.dot_dimension_numbers<[1], [0], [0], [1], [0, 0, 1, 1], [], []>} : vector<2x16xf32>, vector<16x6144xf32>, vector<2x6144xf32> -> vector<2x6144xf32>
    %c0_8 = arith.constant 0 : index
    %c0_9 = arith.constant 0 : index
    %10 = vector.load %arg5[%c0_8, %c0_9] : memref<1x6144xf32, #tpu.memory_space<vmem>>, vector<1x6144xf32>
    %11 = vector.broadcast %10 : vector<1x6144xf32> to vector<2x6144xf32>
    %12 = arith.addf %9, %11 : vector<2x6144xf32>
    %c0_10 = arith.constant 0 : index
    %c0_11 = arith.constant 0 : index
    %13 = vector.load %arg6[%c0_10, %c0_11] : memref<2x6144xf32, #tpu.memory_space<vmem>>, vector<2x6144xf32>
    tpu.vector_store %arg6[%c0_10, %c0_11], %12 {strides = array<i32>} : memref<2x6144xf32, #tpu.memory_space<vmem>>, vector<2x6144xf32>,
    return
  }
  func.func @transform_0(%arg0: i32) -> (i32, i32) {
    %c0_i32 = arith.constant 0 : i32
    %c0_i32_0 = arith.constant 0 : i32
    %c0_i32_1 = arith.constant 0 : i32
    return %c0_i32, %c0_i32_0 : i32, i32
  }
  func.func @transform_1(%arg0: i32) -> (i32, i32) {
    %c0_i32 = arith.constant 0 : i32
    %c0_i32_0 = arith.constant 0 : i32
    %c0_i32_1 = arith.constant 0 : i32
    return %c0_i32, %c0_i32_0 : i32, i32
  }
  func.func @transform_2(%arg0: i32) -> (i32, i32) {
    %c0_i32 = arith.constant 0 : i32
    %c0_i32_0 = arith.constant 0 : i32
    %c0_i32_1 = arith.constant 0 : i32
    return %c0_i32, %c0_i32_0 : i32, i32
  }
  func.func @transform_3(%arg0: i32) -> (i32, i32) {
    %c0_i32 = arith.constant 0 : i32
    %c0_i32_0 = arith.constant 0 : i32
    %c0_i32_1 = arith.constant 0 : i32
    return %c0_i32, %c0_i32_0 : i32, i32
  }
  func.func @transform_4(%arg0: i32) -> (i32, i32) {
    %c0_i32 = arith.constant 0 : i32
    %c0_i32_0 = arith.constant 0 : i32
    %c0_i32_1 = arith.constant 0 : i32
    return %c0_i32, %c0_i32_0 : i32, i32
  }
  func.func @transform_5(%arg0: i32) -> (i32, i32) {
    %c0_i32 = arith.constant 0 : i32
    %c0_i32_0 = arith.constant 0 : i32
    %c0_i32_1 = arith.constant 0 : i32
    return %c0_i32, %c0_i32_0 : i32, i32
  }
}

module attributes {stable_mosaic.version = 11 : i64} {
  func.func @_conv3x3_kernel(%arg0: i32, %arg1: memref<1x16x384xf32, #tpu.memory_space<vmem>>, %arg2: memref<9x8x16xf32, #tpu.memory_space<vmem>>, %arg3: memref<8x1xf32, #tpu.memory_space<vmem>>, %arg4: memref<1x8x384xf32, #tpu.memory_space<vmem>>) attributes {dimension_semantics = [#tpu.dimension_semantics<parallel>], iteration_bounds = array<i64: 2>, scalar_prefetch = 0 : i64, scratch_operands = 0 : i64, tpu.core_type = #tpu.core_type<tc>, window_params = [{transform_indices = @transform_0, window_bounds = array<i64: 1, 16, 384>}, {pipeline_mode = #tpu.pipeline_mode<synchronous>, transform_indices = @transform_1, window_bounds = array<i64: 9, 8, 16>}, {pipeline_mode = #tpu.pipeline_mode<synchronous>, transform_indices = @transform_2, window_bounds = array<i64: 8, 1>}, {transform_indices = @transform_3, window_bounds = array<i64: 1, 8, 384>}]} {
    %c0 = arith.constant 0 : index
    %c0_0 = arith.constant 0 : index
    %c0_1 = arith.constant 0 : index
    %0 = vector.load %arg1[%c0, %c0_0, %c0_1] : memref<1x16x384xf32, #tpu.memory_space<vmem>>, vector<1x16x384xf32>
    %1 = vector.shape_cast %0 : vector<1x16x384xf32> to vector<16x384xf32>
    %cst = arith.constant 0.000000e+00 : f32
    %2 = vector.broadcast %cst : f32 to vector<8x384xf32>
    %c19_i32 = arith.constant 19 : i32
    %3 = tpu.dynamic_rotate %1 by %c19_i32 dim 1 : vector<16x384xf32>, i32 -> vector<16x384xf32>
    %c0_2 = arith.constant 0 : index
    %c0_3 = arith.constant 0 : index
    %c0_4 = arith.constant 0 : index
    %4 = vector.load %arg2[%c0_2, %c0_3, %c0_4] : memref<9x8x16xf32, #tpu.memory_space<vmem>>, vector<1x8x16xf32>
    %5 = vector.shape_cast %4 : vector<1x8x16xf32> to vector<8x16xf32>
    %cst_5 = arith.constant dense<0.000000e+00> : vector<8x384xf32>
    %6 = tpu.matmul %5, %3, %cst_5 {dimension_numbers = #tpu.dot_dimension_numbers<[1], [0], [0], [1], [0, 0, 1, 1], [], []>} : vector<8x16xf32>, vector<16x384xf32>, vector<8x384xf32> -> vector<8x384xf32>
    %7 = arith.addf %2, %6 : vector<8x384xf32>
    %c18_i32 = arith.constant 18 : i32
    %8 = tpu.dynamic_rotate %1 by %c18_i32 dim 1 : vector<16x384xf32>, i32 -> vector<16x384xf32>
    %c1 = arith.constant 1 : index
    %c0_6 = arith.constant 0 : index
    %c0_7 = arith.constant 0 : index
    %9 = vector.load %arg2[%c1, %c0_6, %c0_7] : memref<9x8x16xf32, #tpu.memory_space<vmem>>, vector<1x8x16xf32>
    %10 = vector.shape_cast %9 : vector<1x8x16xf32> to vector<8x16xf32>
    %cst_8 = arith.constant dense<0.000000e+00> : vector<8x384xf32>
    %11 = tpu.matmul %10, %8, %cst_8 {dimension_numbers = #tpu.dot_dimension_numbers<[1], [0], [0], [1], [0, 0, 1, 1], [], []>} : vector<8x16xf32>, vector<16x384xf32>, vector<8x384xf32> -> vector<8x384xf32>
    %12 = arith.addf %7, %11 : vector<8x384xf32>
    %c17_i32 = arith.constant 17 : i32
    %13 = tpu.dynamic_rotate %1 by %c17_i32 dim 1 : vector<16x384xf32>, i32 -> vector<16x384xf32>
    %c2 = arith.constant 2 : index
    %c0_9 = arith.constant 0 : index
    %c0_10 = arith.constant 0 : index
    %14 = vector.load %arg2[%c2, %c0_9, %c0_10] : memref<9x8x16xf32, #tpu.memory_space<vmem>>, vector<1x8x16xf32>
    %15 = vector.shape_cast %14 : vector<1x8x16xf32> to vector<8x16xf32>
    %cst_11 = arith.constant dense<0.000000e+00> : vector<8x384xf32>
    %16 = tpu.matmul %15, %13, %cst_11 {dimension_numbers = #tpu.dot_dimension_numbers<[1], [0], [0], [1], [0, 0, 1, 1], [], []>} : vector<8x16xf32>, vector<16x384xf32>, vector<8x384xf32> -> vector<8x384xf32>
    %17 = arith.addf %12, %16 : vector<8x384xf32>
    %c1_i32 = arith.constant 1 : i32
    %18 = tpu.dynamic_rotate %1 by %c1_i32 dim 1 : vector<16x384xf32>, i32 -> vector<16x384xf32>
    %c3 = arith.constant 3 : index
    %c0_12 = arith.constant 0 : index
    %c0_13 = arith.constant 0 : index
    %19 = vector.load %arg2[%c3, %c0_12, %c0_13] : memref<9x8x16xf32, #tpu.memory_space<vmem>>, vector<1x8x16xf32>
    %20 = vector.shape_cast %19 : vector<1x8x16xf32> to vector<8x16xf32>
    %cst_14 = arith.constant dense<0.000000e+00> : vector<8x384xf32>
    %21 = tpu.matmul %20, %18, %cst_14 {dimension_numbers = #tpu.dot_dimension_numbers<[1], [0], [0], [1], [0, 0, 1, 1], [], []>} : vector<8x16xf32>, vector<16x384xf32>, vector<8x384xf32> -> vector<8x384xf32>
    %22 = arith.addf %17, %21 : vector<8x384xf32>
    %c4 = arith.constant 4 : index
    %c0_15 = arith.constant 0 : index
    %c0_16 = arith.constant 0 : index
    %23 = vector.load %arg2[%c4, %c0_15, %c0_16] : memref<9x8x16xf32, #tpu.memory_space<vmem>>, vector<1x8x16xf32>
    %24 = vector.shape_cast %23 : vector<1x8x16xf32> to vector<8x16xf32>
    %cst_17 = arith.constant dense<0.000000e+00> : vector<8x384xf32>
    %25 = tpu.matmul %24, %1, %cst_17 {dimension_numbers = #tpu.dot_dimension_numbers<[1], [0], [0], [1], [0, 0, 1, 1], [], []>} : vector<8x16xf32>, vector<16x384xf32>, vector<8x384xf32> -> vector<8x384xf32>
    %26 = arith.addf %22, %25 : vector<8x384xf32>
    %c383_i32 = arith.constant 383 : i32
    %27 = tpu.dynamic_rotate %1 by %c383_i32 dim 1 : vector<16x384xf32>, i32 -> vector<16x384xf32>
    %c5 = arith.constant 5 : index
    %c0_18 = arith.constant 0 : index
    %c0_19 = arith.constant 0 : index
    %28 = vector.load %arg2[%c5, %c0_18, %c0_19] : memref<9x8x16xf32, #tpu.memory_space<vmem>>, vector<1x8x16xf32>
    %29 = vector.shape_cast %28 : vector<1x8x16xf32> to vector<8x16xf32>
    %cst_20 = arith.constant dense<0.000000e+00> : vector<8x384xf32>
    %30 = tpu.matmul %29, %27, %cst_20 {dimension_numbers = #tpu.dot_dimension_numbers<[1], [0], [0], [1], [0, 0, 1, 1], [], []>} : vector<8x16xf32>, vector<16x384xf32>, vector<8x384xf32> -> vector<8x384xf32>
    %31 = arith.addf %26, %30 : vector<8x384xf32>
    %c367_i32 = arith.constant 367 : i32
    %32 = tpu.dynamic_rotate %1 by %c367_i32 dim 1 : vector<16x384xf32>, i32 -> vector<16x384xf32>
    %c6 = arith.constant 6 : index
    %c0_21 = arith.constant 0 : index
    %c0_22 = arith.constant 0 : index
    %33 = vector.load %arg2[%c6, %c0_21, %c0_22] : memref<9x8x16xf32, #tpu.memory_space<vmem>>, vector<1x8x16xf32>
    %34 = vector.shape_cast %33 : vector<1x8x16xf32> to vector<8x16xf32>
    %cst_23 = arith.constant dense<0.000000e+00> : vector<8x384xf32>
    %35 = tpu.matmul %34, %32, %cst_23 {dimension_numbers = #tpu.dot_dimension_numbers<[1], [0], [0], [1], [0, 0, 1, 1], [], []>} : vector<8x16xf32>, vector<16x384xf32>, vector<8x384xf32> -> vector<8x384xf32>
    %36 = arith.addf %31, %35 : vector<8x384xf32>
    %c366_i32 = arith.constant 366 : i32
    %37 = tpu.dynamic_rotate %1 by %c366_i32 dim 1 : vector<16x384xf32>, i32 -> vector<16x384xf32>
    %c7 = arith.constant 7 : index
    %c0_24 = arith.constant 0 : index
    %c0_25 = arith.constant 0 : index
    %38 = vector.load %arg2[%c7, %c0_24, %c0_25] : memref<9x8x16xf32, #tpu.memory_space<vmem>>, vector<1x8x16xf32>
    %39 = vector.shape_cast %38 : vector<1x8x16xf32> to vector<8x16xf32>
    %cst_26 = arith.constant dense<0.000000e+00> : vector<8x384xf32>
    %40 = tpu.matmul %39, %37, %cst_26 {dimension_numbers = #tpu.dot_dimension_numbers<[1], [0], [0], [1], [0, 0, 1, 1], [], []>} : vector<8x16xf32>, vector<16x384xf32>, vector<8x384xf32> -> vector<8x384xf32>
    %41 = arith.addf %36, %40 : vector<8x384xf32>
    %c365_i32 = arith.constant 365 : i32
    %42 = tpu.dynamic_rotate %1 by %c365_i32 dim 1 : vector<16x384xf32>, i32 -> vector<16x384xf32>
    %c8 = arith.constant 8 : index
    %c0_27 = arith.constant 0 : index
    %c0_28 = arith.constant 0 : index
    %43 = vector.load %arg2[%c8, %c0_27, %c0_28] : memref<9x8x16xf32, #tpu.memory_space<vmem>>, vector<1x8x16xf32>
    %44 = vector.shape_cast %43 : vector<1x8x16xf32> to vector<8x16xf32>
    %cst_29 = arith.constant dense<0.000000e+00> : vector<8x384xf32>
    %45 = tpu.matmul %44, %42, %cst_29 {dimension_numbers = #tpu.dot_dimension_numbers<[1], [0], [0], [1], [0, 0, 1, 1], [], []>} : vector<8x16xf32>, vector<16x384xf32>, vector<8x384xf32> -> vector<8x384xf32>
    %46 = arith.addf %41, %45 : vector<8x384xf32>
    %c0_30 = arith.constant 0 : index
    %c0_31 = arith.constant 0 : index
    %47 = vector.load %arg3[%c0_30, %c0_31] : memref<8x1xf32, #tpu.memory_space<vmem>>, vector<8x1xf32>
    %48 = vector.broadcast %47 : vector<8x1xf32> to vector<8x384xf32>
    %49 = arith.addf %46, %48 : vector<8x384xf32>
    %cst_32 = arith.constant 0.000000e+00 : f32
    %50 = vector.broadcast %cst_32 : f32 to vector<8x384xf32>
    %51 = arith.maximumf %49, %50 : vector<8x384xf32>
    %52 = tpu.iota {dimensions = array<i32: 1>} : vector<8x384xi32>
    %c19_i32_33 = arith.constant 19 : i32
    %53 = vector.broadcast %c19_i32_33 : i32 to vector<8x384xi32>
    %54 = arith.subi %52, %53 : vector<8x384xi32>
    %c0_i32 = arith.constant 0 : i32
    %55 = vector.broadcast %c0_i32 : i32 to vector<8x384xi32>
    %56 = arith.cmpi sge, %54, %55 : vector<8x384xi32>
    %c288_i32 = arith.constant 288 : i32
    %57 = vector.broadcast %c288_i32 : i32 to vector<8x384xi32>
    %58 = arith.cmpi slt, %54, %57 : vector<8x384xi32>
    %59 = arith.andi %56, %58 : vector<8x384xi1>
    %c18_i32_34 = arith.constant 18 : i32
    %c0_i32_35 = arith.constant 0 : i32
    %60 = arith.cmpi eq, %c18_i32_34, %c0_i32_35 : i32
    %c1_i32_36 = arith.constant 1 : i32
    %61 = arith.select %60, %c1_i32_36, %c18_i32_34 : i32
    %62 = vector.broadcast %61 : i32 to vector<8x384xi32>
    %63 = arith.remsi %54, %62 : vector<8x384xi32>
    %c0_i32_37 = arith.constant 0 : i32
    %64 = vector.broadcast %c0_i32_37 : i32 to vector<8x384xi32>
    %65 = arith.cmpi ne, %63, %64 : vector<8x384xi32>
    %c0_i32_38 = arith.constant 0 : i32
    %66 = vector.broadcast %c0_i32_38 : i32 to vector<8x384xi32>
    %67 = arith.cmpi slt, %63, %66 : vector<8x384xi32>
    %c0_i32_39 = arith.constant 0 : i32
    %68 = arith.cmpi slt, %61, %c0_i32_39 : i32
    %69 = vector.broadcast %68 : i1 to vector<8x384xi1>
    %70 = vector.broadcast %69 : vector<8x384xi1> to vector<8x384xi1>
    %71 = arith.xori %67, %70 : vector<8x384xi1>
    %72 = arith.andi %71, %65 : vector<8x384xi1>
    %73 = vector.broadcast %61 : i32 to vector<8x384xi32>
    %74 = arith.addi %63, %73 : vector<8x384xi32>
    %75 = arith.select %72, %74, %63 : vector<8x384xi1>, vector<8x384xi32>
    %c16_i32 = arith.constant 16 : i32
    %76 = vector.broadcast %c16_i32 : i32 to vector<8x384xi32>
    %77 = arith.cmpi slt, %75, %76 : vector<8x384xi32>
    %78 = arith.andi %59, %77 : vector<8x384xi1>
    %cst_40 = arith.constant 0.000000e+00 : f32
    %79 = vector.broadcast %cst_40 : f32 to vector<8x384xf32>
    %80 = arith.select %78, %51, %79 : vector<8x384xi1>, vector<8x384xf32>
    %c0_41 = arith.constant 0 : index
    %c0_42 = arith.constant 0 : index
    %c0_43 = arith.constant 0 : index
    %81 = vector.load %arg4[%c0_41, %c0_42, %c0_43] : memref<1x8x384xf32, #tpu.memory_space<vmem>>, vector<1x8x384xf32>
    %82 = vector.shape_cast %81 : vector<1x8x384xf32> to vector<8x384xf32>
    %83 = vector.shape_cast %80 : vector<8x384xf32> to vector<1x8x384xf32>
    tpu.vector_store %arg4[%c0_41, %c0_42, %c0_43], %83 {strides = array<i32>} : memref<1x8x384xf32, #tpu.memory_space<vmem>>, vector<1x8x384xf32>,
    return
  }
  func.func @transform_0(%arg0: i32) -> (i32, i32, i32) {
    %c0_i32 = arith.constant 0 : i32
    %c0_i32_0 = arith.constant 0 : i32
    %c0_i32_1 = arith.constant 0 : i32
    return %arg0, %c0_i32, %c0_i32_0 : i32, i32, i32
  }
  func.func @transform_1(%arg0: i32) -> (i32, i32, i32) {
    %c0_i32 = arith.constant 0 : i32
    %c0_i32_0 = arith.constant 0 : i32
    %c0_i32_1 = arith.constant 0 : i32
    %c0_i32_2 = arith.constant 0 : i32
    return %c0_i32, %c0_i32_0, %c0_i32_1 : i32, i32, i32
  }
  func.func @transform_2(%arg0: i32) -> (i32, i32) {
    %c0_i32 = arith.constant 0 : i32
    %c0_i32_0 = arith.constant 0 : i32
    %c0_i32_1 = arith.constant 0 : i32
    return %c0_i32, %c0_i32_0 : i32, i32
  }
  func.func @transform_3(%arg0: i32) -> (i32, i32, i32) {
    %c0_i32 = arith.constant 0 : i32
    %c0_i32_0 = arith.constant 0 : i32
    %c0_i32_1 = arith.constant 0 : i32
    return %arg0, %c0_i32, %c0_i32_0 : i32, i32, i32
  }
}

module attributes {stable_mosaic.version = 11 : i64} {
  func.func @_conv3x3_kernel(%arg0: i32, %arg1: memref<1x8x384xf32, #tpu.memory_space<vmem>>, %arg2: memref<9x8x8xf32, #tpu.memory_space<vmem>>, %arg3: memref<8x1xf32, #tpu.memory_space<vmem>>, %arg4: memref<1x8x384xf32, #tpu.memory_space<vmem>>) attributes {dimension_semantics = [#tpu.dimension_semantics<parallel>], iteration_bounds = array<i64: 2>, scalar_prefetch = 0 : i64, scratch_operands = 0 : i64, tpu.core_type = #tpu.core_type<tc>, window_params = [{transform_indices = @transform_0, window_bounds = array<i64: 1, 8, 384>}, {pipeline_mode = #tpu.pipeline_mode<synchronous>, transform_indices = @transform_1, window_bounds = array<i64: 9, 8, 8>}, {pipeline_mode = #tpu.pipeline_mode<synchronous>, transform_indices = @transform_2, window_bounds = array<i64: 8, 1>}, {transform_indices = @transform_3, window_bounds = array<i64: 1, 8, 384>}]} {
    %c0 = arith.constant 0 : index
    %c0_0 = arith.constant 0 : index
    %c0_1 = arith.constant 0 : index
    %0 = vector.load %arg1[%c0, %c0_0, %c0_1] : memref<1x8x384xf32, #tpu.memory_space<vmem>>, vector<1x8x384xf32>
    %1 = vector.shape_cast %0 : vector<1x8x384xf32> to vector<8x384xf32>
    %cst = arith.constant 0.000000e+00 : f32
    %2 = vector.broadcast %cst : f32 to vector<8x384xf32>
    %c19_i32 = arith.constant 19 : i32
    %3 = tpu.dynamic_rotate %1 by %c19_i32 dim 1 : vector<8x384xf32>, i32 -> vector<8x384xf32>
    %c0_2 = arith.constant 0 : index
    %c0_3 = arith.constant 0 : index
    %c0_4 = arith.constant 0 : index
    %4 = vector.load %arg2[%c0_2, %c0_3, %c0_4] : memref<9x8x8xf32, #tpu.memory_space<vmem>>, vector<1x8x8xf32>
    %5 = vector.shape_cast %4 : vector<1x8x8xf32> to vector<8x8xf32>
    %cst_5 = arith.constant dense<0.000000e+00> : vector<8x384xf32>
    %6 = tpu.matmul %5, %3, %cst_5 {dimension_numbers = #tpu.dot_dimension_numbers<[1], [0], [0], [1], [0, 0, 1, 1], [], []>} : vector<8x8xf32>, vector<8x384xf32>, vector<8x384xf32> -> vector<8x384xf32>
    %7 = arith.addf %2, %6 : vector<8x384xf32>
    %c18_i32 = arith.constant 18 : i32
    %8 = tpu.dynamic_rotate %1 by %c18_i32 dim 1 : vector<8x384xf32>, i32 -> vector<8x384xf32>
    %c1 = arith.constant 1 : index
    %c0_6 = arith.constant 0 : index
    %c0_7 = arith.constant 0 : index
    %9 = vector.load %arg2[%c1, %c0_6, %c0_7] : memref<9x8x8xf32, #tpu.memory_space<vmem>>, vector<1x8x8xf32>
    %10 = vector.shape_cast %9 : vector<1x8x8xf32> to vector<8x8xf32>
    %cst_8 = arith.constant dense<0.000000e+00> : vector<8x384xf32>
    %11 = tpu.matmul %10, %8, %cst_8 {dimension_numbers = #tpu.dot_dimension_numbers<[1], [0], [0], [1], [0, 0, 1, 1], [], []>} : vector<8x8xf32>, vector<8x384xf32>, vector<8x384xf32> -> vector<8x384xf32>
    %12 = arith.addf %7, %11 : vector<8x384xf32>
    %c17_i32 = arith.constant 17 : i32
    %13 = tpu.dynamic_rotate %1 by %c17_i32 dim 1 : vector<8x384xf32>, i32 -> vector<8x384xf32>
    %c2 = arith.constant 2 : index
    %c0_9 = arith.constant 0 : index
    %c0_10 = arith.constant 0 : index
    %14 = vector.load %arg2[%c2, %c0_9, %c0_10] : memref<9x8x8xf32, #tpu.memory_space<vmem>>, vector<1x8x8xf32>
    %15 = vector.shape_cast %14 : vector<1x8x8xf32> to vector<8x8xf32>
    %cst_11 = arith.constant dense<0.000000e+00> : vector<8x384xf32>
    %16 = tpu.matmul %15, %13, %cst_11 {dimension_numbers = #tpu.dot_dimension_numbers<[1], [0], [0], [1], [0, 0, 1, 1], [], []>} : vector<8x8xf32>, vector<8x384xf32>, vector<8x384xf32> -> vector<8x384xf32>
    %17 = arith.addf %12, %16 : vector<8x384xf32>
    %c1_i32 = arith.constant 1 : i32
    %18 = tpu.dynamic_rotate %1 by %c1_i32 dim 1 : vector<8x384xf32>, i32 -> vector<8x384xf32>
    %c3 = arith.constant 3 : index
    %c0_12 = arith.constant 0 : index
    %c0_13 = arith.constant 0 : index
    %19 = vector.load %arg2[%c3, %c0_12, %c0_13] : memref<9x8x8xf32, #tpu.memory_space<vmem>>, vector<1x8x8xf32>
    %20 = vector.shape_cast %19 : vector<1x8x8xf32> to vector<8x8xf32>
    %cst_14 = arith.constant dense<0.000000e+00> : vector<8x384xf32>
    %21 = tpu.matmul %20, %18, %cst_14 {dimension_numbers = #tpu.dot_dimension_numbers<[1], [0], [0], [1], [0, 0, 1, 1], [], []>} : vector<8x8xf32>, vector<8x384xf32>, vector<8x384xf32> -> vector<8x384xf32>
    %22 = arith.addf %17, %21 : vector<8x384xf32>
    %c4 = arith.constant 4 : index
    %c0_15 = arith.constant 0 : index
    %c0_16 = arith.constant 0 : index
    %23 = vector.load %arg2[%c4, %c0_15, %c0_16] : memref<9x8x8xf32, #tpu.memory_space<vmem>>, vector<1x8x8xf32>
    %24 = vector.shape_cast %23 : vector<1x8x8xf32> to vector<8x8xf32>
    %cst_17 = arith.constant dense<0.000000e+00> : vector<8x384xf32>
    %25 = tpu.matmul %24, %1, %cst_17 {dimension_numbers = #tpu.dot_dimension_numbers<[1], [0], [0], [1], [0, 0, 1, 1], [], []>} : vector<8x8xf32>, vector<8x384xf32>, vector<8x384xf32> -> vector<8x384xf32>
    %26 = arith.addf %22, %25 : vector<8x384xf32>
    %c383_i32 = arith.constant 383 : i32
    %27 = tpu.dynamic_rotate %1 by %c383_i32 dim 1 : vector<8x384xf32>, i32 -> vector<8x384xf32>
    %c5 = arith.constant 5 : index
    %c0_18 = arith.constant 0 : index
    %c0_19 = arith.constant 0 : index
    %28 = vector.load %arg2[%c5, %c0_18, %c0_19] : memref<9x8x8xf32, #tpu.memory_space<vmem>>, vector<1x8x8xf32>
    %29 = vector.shape_cast %28 : vector<1x8x8xf32> to vector<8x8xf32>
    %cst_20 = arith.constant dense<0.000000e+00> : vector<8x384xf32>
    %30 = tpu.matmul %29, %27, %cst_20 {dimension_numbers = #tpu.dot_dimension_numbers<[1], [0], [0], [1], [0, 0, 1, 1], [], []>} : vector<8x8xf32>, vector<8x384xf32>, vector<8x384xf32> -> vector<8x384xf32>
    %31 = arith.addf %26, %30 : vector<8x384xf32>
    %c367_i32 = arith.constant 367 : i32
    %32 = tpu.dynamic_rotate %1 by %c367_i32 dim 1 : vector<8x384xf32>, i32 -> vector<8x384xf32>
    %c6 = arith.constant 6 : index
    %c0_21 = arith.constant 0 : index
    %c0_22 = arith.constant 0 : index
    %33 = vector.load %arg2[%c6, %c0_21, %c0_22] : memref<9x8x8xf32, #tpu.memory_space<vmem>>, vector<1x8x8xf32>
    %34 = vector.shape_cast %33 : vector<1x8x8xf32> to vector<8x8xf32>
    %cst_23 = arith.constant dense<0.000000e+00> : vector<8x384xf32>
    %35 = tpu.matmul %34, %32, %cst_23 {dimension_numbers = #tpu.dot_dimension_numbers<[1], [0], [0], [1], [0, 0, 1, 1], [], []>} : vector<8x8xf32>, vector<8x384xf32>, vector<8x384xf32> -> vector<8x384xf32>
    %36 = arith.addf %31, %35 : vector<8x384xf32>
    %c366_i32 = arith.constant 366 : i32
    %37 = tpu.dynamic_rotate %1 by %c366_i32 dim 1 : vector<8x384xf32>, i32 -> vector<8x384xf32>
    %c7 = arith.constant 7 : index
    %c0_24 = arith.constant 0 : index
    %c0_25 = arith.constant 0 : index
    %38 = vector.load %arg2[%c7, %c0_24, %c0_25] : memref<9x8x8xf32, #tpu.memory_space<vmem>>, vector<1x8x8xf32>
    %39 = vector.shape_cast %38 : vector<1x8x8xf32> to vector<8x8xf32>
    %cst_26 = arith.constant dense<0.000000e+00> : vector<8x384xf32>
    %40 = tpu.matmul %39, %37, %cst_26 {dimension_numbers = #tpu.dot_dimension_numbers<[1], [0], [0], [1], [0, 0, 1, 1], [], []>} : vector<8x8xf32>, vector<8x384xf32>, vector<8x384xf32> -> vector<8x384xf32>
    %41 = arith.addf %36, %40 : vector<8x384xf32>
    %c365_i32 = arith.constant 365 : i32
    %42 = tpu.dynamic_rotate %1 by %c365_i32 dim 1 : vector<8x384xf32>, i32 -> vector<8x384xf32>
    %c8 = arith.constant 8 : index
    %c0_27 = arith.constant 0 : index
    %c0_28 = arith.constant 0 : index
    %43 = vector.load %arg2[%c8, %c0_27, %c0_28] : memref<9x8x8xf32, #tpu.memory_space<vmem>>, vector<1x8x8xf32>
    %44 = vector.shape_cast %43 : vector<1x8x8xf32> to vector<8x8xf32>
    %cst_29 = arith.constant dense<0.000000e+00> : vector<8x384xf32>
    %45 = tpu.matmul %44, %42, %cst_29 {dimension_numbers = #tpu.dot_dimension_numbers<[1], [0], [0], [1], [0, 0, 1, 1], [], []>} : vector<8x8xf32>, vector<8x384xf32>, vector<8x384xf32> -> vector<8x384xf32>
    %46 = arith.addf %41, %45 : vector<8x384xf32>
    %c0_30 = arith.constant 0 : index
    %c0_31 = arith.constant 0 : index
    %47 = vector.load %arg3[%c0_30, %c0_31] : memref<8x1xf32, #tpu.memory_space<vmem>>, vector<8x1xf32>
    %48 = vector.broadcast %47 : vector<8x1xf32> to vector<8x384xf32>
    %49 = arith.addf %46, %48 : vector<8x384xf32>
    %cst_32 = arith.constant 0.000000e+00 : f32
    %50 = vector.broadcast %cst_32 : f32 to vector<8x384xf32>
    %51 = arith.subf %50, %49 : vector<8x384xf32>
    %52 = math.exp %51 : vector<8x384xf32>
    %cst_33 = arith.constant 1.000000e+00 : f32
    %53 = vector.broadcast %cst_33 : f32 to vector<8x384xf32>
    %54 = arith.addf %53, %52 : vector<8x384xf32>
    %cst_34 = arith.constant 1.000000e+00 : f32
    %55 = vector.broadcast %cst_34 : f32 to vector<8x384xf32>
    %56 = arith.divf %55, %54 : vector<8x384xf32>
    %57 = tpu.iota {dimensions = array<i32: 1>} : vector<8x384xi32>
    %c19_i32_35 = arith.constant 19 : i32
    %58 = vector.broadcast %c19_i32_35 : i32 to vector<8x384xi32>
    %59 = arith.subi %57, %58 : vector<8x384xi32>
    %c0_i32 = arith.constant 0 : i32
    %60 = vector.broadcast %c0_i32 : i32 to vector<8x384xi32>
    %61 = arith.cmpi sge, %59, %60 : vector<8x384xi32>
    %c288_i32 = arith.constant 288 : i32
    %62 = vector.broadcast %c288_i32 : i32 to vector<8x384xi32>
    %63 = arith.cmpi slt, %59, %62 : vector<8x384xi32>
    %64 = arith.andi %61, %63 : vector<8x384xi1>
    %c18_i32_36 = arith.constant 18 : i32
    %c0_i32_37 = arith.constant 0 : i32
    %65 = arith.cmpi eq, %c18_i32_36, %c0_i32_37 : i32
    %c1_i32_38 = arith.constant 1 : i32
    %66 = arith.select %65, %c1_i32_38, %c18_i32_36 : i32
    %67 = vector.broadcast %66 : i32 to vector<8x384xi32>
    %68 = arith.remsi %59, %67 : vector<8x384xi32>
    %c0_i32_39 = arith.constant 0 : i32
    %69 = vector.broadcast %c0_i32_39 : i32 to vector<8x384xi32>
    %70 = arith.cmpi ne, %68, %69 : vector<8x384xi32>
    %c0_i32_40 = arith.constant 0 : i32
    %71 = vector.broadcast %c0_i32_40 : i32 to vector<8x384xi32>
    %72 = arith.cmpi slt, %68, %71 : vector<8x384xi32>
    %c0_i32_41 = arith.constant 0 : i32
    %73 = arith.cmpi slt, %66, %c0_i32_41 : i32
    %74 = vector.broadcast %73 : i1 to vector<8x384xi1>
    %75 = vector.broadcast %74 : vector<8x384xi1> to vector<8x384xi1>
    %76 = arith.xori %72, %75 : vector<8x384xi1>
    %77 = arith.andi %76, %70 : vector<8x384xi1>
    %78 = vector.broadcast %66 : i32 to vector<8x384xi32>
    %79 = arith.addi %68, %78 : vector<8x384xi32>
    %80 = arith.select %77, %79, %68 : vector<8x384xi1>, vector<8x384xi32>
    %c16_i32 = arith.constant 16 : i32
    %81 = vector.broadcast %c16_i32 : i32 to vector<8x384xi32>
    %82 = arith.cmpi slt, %80, %81 : vector<8x384xi32>
    %83 = arith.andi %64, %82 : vector<8x384xi1>
    %cst_42 = arith.constant 0.000000e+00 : f32
    %84 = vector.broadcast %cst_42 : f32 to vector<8x384xf32>
    %85 = arith.select %83, %56, %84 : vector<8x384xi1>, vector<8x384xf32>
    %c0_43 = arith.constant 0 : index
    %c0_44 = arith.constant 0 : index
    %c0_45 = arith.constant 0 : index
    %86 = vector.load %arg4[%c0_43, %c0_44, %c0_45] : memref<1x8x384xf32, #tpu.memory_space<vmem>>, vector<1x8x384xf32>
    %87 = vector.shape_cast %86 : vector<1x8x384xf32> to vector<8x384xf32>
    %88 = vector.shape_cast %85 : vector<8x384xf32> to vector<1x8x384xf32>
    tpu.vector_store %arg4[%c0_43, %c0_44, %c0_45], %88 {strides = array<i32>} : memref<1x8x384xf32, #tpu.memory_space<vmem>>, vector<1x8x384xf32>,
    return
  }
  func.func @transform_0(%arg0: i32) -> (i32, i32, i32) {
    %c0_i32 = arith.constant 0 : i32
    %c0_i32_0 = arith.constant 0 : i32
    %c0_i32_1 = arith.constant 0 : i32
    return %arg0, %c0_i32, %c0_i32_0 : i32, i32, i32
  }
  func.func @transform_1(%arg0: i32) -> (i32, i32, i32) {
    %c0_i32 = arith.constant 0 : i32
    %c0_i32_0 = arith.constant 0 : i32
    %c0_i32_1 = arith.constant 0 : i32
    %c0_i32_2 = arith.constant 0 : i32
    return %c0_i32, %c0_i32_0, %c0_i32_1 : i32, i32, i32
  }
  func.func @transform_2(%arg0: i32) -> (i32, i32) {
    %c0_i32 = arith.constant 0 : i32
    %c0_i32_0 = arith.constant 0 : i32
    %c0_i32_1 = arith.constant 0 : i32
    return %c0_i32, %c0_i32_0 : i32, i32
  }
  func.func @transform_3(%arg0: i32) -> (i32, i32, i32) {
    %c0_i32 = arith.constant 0 : i32
    %c0_i32_0 = arith.constant 0 : i32
    %c0_i32_1 = arith.constant 0 : i32
    return %arg0, %c0_i32, %c0_i32_0 : i32, i32, i32
  }
}

</mosaic_0001>

<bundles_post_ra>
// kernel: vae_forward.6
= control target key start
LH: loop header
LB: loop body
LE: loop exit
PB: predicated region body
PF: predicated region fallthrough
CT: control target
= control target key end

     0   :  { %s1916_s12 = smov 0   ;;  %s2117_s0 = inlined_call_operand.vmem [shape: f32[2,8,384], index: 0, kind: input, shape index: {}]   ;;  %s2118_s1 = inlined_call_operand.vmem [shape: f32[9,8,8], index: 1, kind: input, shape index: {}]   ;;  %s2119_s2 = inlined_call_operand.vmem [shape: f32[8,1], index: 2, kind: input, shape index: {}]   ;;  %s2120_s3 = inlined_call_operand.vmem [shape: f32[2,8,384], index: 3, kind: output, shape index: {}]  }
   0x1 LB: > { %s1732_s13 = sadd.s32 4294967295, %s1883_s12   ;;  %p1736_p0 = scmp.ge.s32.totalorder %s1883_s12, 1  ;;  %s1883_s12 = sphi %s1916_s12, %s13_s12  }
   0x2   : > { %p137_p1 = scmp.lt.s32.totalorder %s1883_s12, 3 }
   0x4   : > { %p138_p2 = pnand %p1736_p0, %p137_p1 }
   0x5   : > { %p161_p3 = scmp.lt.s32.totalorder (!%p138_p2), %s1732_s13, 1  ;;  %v1885_v0 = vmov (!%p138_p2), 0.0   ;;  %vm1886_vm0 = vmmov (!%p138_p2), 0   ;;  %s1887_s18 = smov (!%p138_p2), 18   ;;  %v1591_v4 = vld [vmem:[%s2119_s2] sm:$0xff] (!%p138_p2)  ;;  %v1895_v5 = vmov (!%p138_p2), 0   ;;  %v180_v6 = vlaneseq (!%p138_p2) }
   0x6   : > { %141 = sbr.rel (%p138_p2) target bundleno = 423 (0x1a7), region = 32  ;;  %1789 = vmatprep.subr.mxu1 (!%p138_p2), %v1885_v0  ;;  %267 = vmatprep.mubr.f32.mxu0 (!%p138_p2), %v1885_v0  ;;  %s1888_s19 = smov (!%p138_p2), 19   ;;  %v1739_v14 = vld [vmem:[%s2118_s1 + $0x8] sm:$0xff] (!%p138_p2)  ;;  %vm199_vm2 = vcmask (!%p138_p2), 64512   ;;  %v186_v21 = vld [vmem:[%s2118_s1] sm:$0xff] (!%p138_p2)  ;;  %v1744_v29 = vld [vmem:[%s2118_s1 + $0x10] sm:$0xff] (!%p138_p2) }
   0x7   : > { %1791 = vmatprep.mubr.msk.f32.mxu1 (!%p138_p2), %vm1886_vm0, %v1885_v0  ;;  %s1889_s20 = smov (!%p138_p2), 17   ;;  %s1890_s21 = smov (!%p138_p2), 1   ;;  %1876 = vset.pattern.permute.xlu0 (!%p138_p2), %v1895_v5  ;;  %v1969_v7 = vand.u32 (!%p138_p2), 127, %v180_v6  ;;  %v1747_v32 = vld [vmem:[%s2118_s1 + $0x18] sm:$0xff] (!%p138_p2)  ;;  %v1750_v38 = vld [vmem:[%s2118_s1 + $0x20] sm:$0xff] (!%p138_p2)  ;;  %v1753_v41 = vld [vmem:[%s2118_s1 + $0x28] sm:$0xff] (!%p138_p2) }
   0x8   : > { %s1891_s22 = smov (!%p138_p2), 127   ;;  %s1892_s23 = smov (!%p138_p2), 111   ;;  %v1756_v46 = vld [vmem:[%s2118_s1 + $0x30] sm:$0xff] (!%p138_p2)  ;;  %v1759_v54 = vld [vmem:[%s2118_s1 + $0x38] sm:$0xff] (!%p138_p2)  ;;  %v1762_v57 = vld [vmem:[%s2118_s1 + $0x40] sm:$0xff] (!%p138_p2) }
   0x9   : > { %s1893_s24 = smov (!%p138_p2), 110   ;;  %s1894_s25 = smov (!%p138_p2), 109   ;;  %vm193_vm1 = vcmp.lt.s32.totalorder (!%p138_p2), %v1969_v7, 18  ;;  %vm182_vm3 = vcmp.lt.s32.totalorder (!%p138_p2), %v1969_v7, 19  ;;  %vm494_vm4 = vcmp.lt.s32.totalorder (!%p138_p2), %v1969_v7, 17  ;;  %vm653_vm5 = vcmp.lt.s32.totalorder (!%p138_p2), %v1969_v7, 1 }
   0xa   : > { %vm961_vm6 = vcmp.lt.s32.totalorder (!%p138_p2), %v1969_v7, 127  ;;  %vm1120_vm7 = vcmp.lt.s32.totalorder (!%p138_p2), %v1969_v7, 111  ;;  %vm1279_vm8 = vcmp.lt.s32.totalorder (!%p138_p2), %v1969_v7, 110  ;;  %vm1438_vm9 = vcmp.lt.s32.totalorder (!%p138_p2), %v1969_v7, 109 }
   0xd   : > { %s2122_s13 = smov (!%p161_p3, %s1732_s13), 1 }
   0xe   : > { %s1850_s14 = smul.u32 24, %s2122_s13 }
  0x10   : > { %s165_s17 = scalar_lea.vmem %s2117_s0, %s1850_s14 }
  0x11   : > { %v1936_v1 = vld [vmem:[%s165_s17 + $0x10] sm:$0xff]  ;;  %v1938_v2 = vld [vmem:[%s165_s17] sm:$0xff]  ;;  %v1942_v3 = vld [vmem:[%s165_s17 + $0x8] sm:$0xff] }
  0x12   : > { %191 = vrot.lane.b32.xlu1 %v1936_v1, %s1887_s18  ;;  %187 = vrot.lane.b32.xlu0 %v1938_v2, %s1887_s18 }
  0x16   : > { %174 = vrot.lane.b32.xlu1 %v1938_v2, %s1888_s19  ;;  %189 = vrot.lane.b32.xlu0 %v1942_v3, %s1887_s18 }
  0x1a   : > { %178 = vrot.lane.b32.xlu1 %v1936_v1, %s1888_s19  ;;  %176 = vrot.lane.b32.xlu0 %v1942_v3, %s1888_s19 }
  0x1e   : > { %488 = vrot.lane.b32.xlu0 %v1938_v2, %s1889_s20  ;;  %490 = vrot.lane.b32.xlu1 %v1942_v3, %s1889_s20 }
  0x22   : > { %492 = vrot.lane.b32.xlu0 %v1936_v1, %s1889_s20  ;;  %647 = vrot.lane.b32.xlu1 %v1938_v2, %s1890_s21 }
  0x26   : > { %651 = vrot.lane.b32.xlu1 %v1936_v1, %s1890_s21  ;;  %649 = vrot.lane.b32.xlu0 %v1942_v3, %s1890_s21 }
  0x2a   : > { %959 = vrot.lane.b32.xlu1 %v1936_v1, %s1891_s22  ;;  %957 = vrot.lane.b32.xlu0 %v1942_v3, %s1891_s22 }
  0x2e   : > { %1116 = vrot.lane.b32.xlu1 %v1942_v3, %s1892_s23  ;;  %955 = vrot.lane.b32.xlu0 %v1938_v2, %s1891_s22 }
  0x32   : > { %1114 = vrot.lane.b32.xlu1 %v1938_v2, %s1892_s23  ;;  %1118 = vrot.lane.b32.xlu0 %v1936_v1, %s1892_s23 }
  0x36   : > { %1277 = vrot.lane.b32.xlu1 %v1936_v1, %s1893_s24  ;;  %1275 = vrot.lane.b32.xlu0 %v1942_v3, %s1893_s24 }
  0x3a   : > { %1432 = vrot.lane.b32.xlu1 %v1938_v2, %s1894_s25  ;;  %1273 = vrot.lane.b32.xlu0 %v1938_v2, %s1893_s24  ;;  %s2106_s24 = scalar_lea.vmem %s2120_s3, %s1850_s14 }
  0x3e   : > { %1436 = vrot.lane.b32.xlu1 %v1936_v1, %s1894_s25  ;;  %1434 = vrot.lane.b32.xlu0 %v1942_v3, %s1894_s25 }
  0x42   : > { %1594 = vperm.xlu0 %1876, %v1591_v4   ;;  %v1604_v4 = vadd.s32 256, %v1969_v7 }
  0x84   : > { %v192_v8 = vpop.permute.xlu1 %191  ;;  %v188_v9 = vpop.permute.xlu0 %187 }
  0x85   : > { %v196_v15 = vsel %vm193_vm1, %v192_v8, %v188_v9 }
  0x88   : > { %v175_v10 = vpop.permute.xlu1 %174  ;;  %v190_v11 = vpop.permute.xlu0 %189 }
  0x89   : > { %v195_v12 = vsel %vm193_vm1, %v188_v9, %v190_v11  ;;  %v194_v13 = vsel %vm193_vm1, %v190_v11, %v192_v8  ;;  %v1767_v9 = vadd.s32 4294967277, %v1604_v4 }
  0x8a   : > { %203 = vmatprep.subr.mxu0 %v195_v12  ;;  %1790 = vmatpush3.msra.mxu1 %v194_v13 }
  0x8b   : > { %204 = vmatpush1.msra.mxu0 %v196_v15  ;;  %1794 = vmatprep.subr.mxu1 %v1885_v0  ;;  %v2084_v11 = vmul.u32.u64.low 3817748708, %v1767_v9  ;;  %v2085_v12 = vmul.u32.u64.high 3817748708, %v1767_v9, %v2084_v11  ;;  %vm1613_vm13 = vcmp.lt.s32.totalorder %v1767_v9, 288 }
  0x8c   : > { %v179_v16 = vpop.permute.xlu1 %178  ;;  %1740 = vmatmul.mubr.msk.f32.vlgmr.msra.gmra.mrb[0].mxu0 %vm199_vm2, %v1739_v14  ;;  %v177_v17 = vpop.permute.xlu0 %176  ;;  %1792 = vmatmul.mubr.msk.f32.vlgmr.msra.gmra.mrb[0].mxu1 %vm199_vm2, %v1739_v14 }
  0x8d   : > { %v185_v18 = vsel %vm182_vm3, %v179_v16, %v175_v10  ;;  %v183_v19 = vsel %vm182_vm3, %v177_v17, %v179_v16  ;;  %v184_v20 = vsel %vm182_vm3, %v175_v10, %v177_v17  ;;  %411 = vmatprep.mubr.f32.mxu0 %v1885_v0  ;;  %1796 = vmatprep.mubr.msk.f32.mxu1 %vm1886_vm0, %v1885_v0  ;;  %v2088_v16 = vadd.s32 4294967277, %v1969_v7 }
  0x8e   : > { %347 = vmatprep.subr.mxu0 %v184_v20  ;;  %1795 = vmatpush3.msra.mxu1 %v183_v19  ;;  %v1645_v19 = vshrl.u32 %v2085_v12, 4 }
  0x8f   : > { %348 = vmatpush1.msra.mxu0 %v185_v18  ;;  %1799 = vmatprep.subr.mxu1 %v1885_v0  ;;  %v1618_v20 = vsub.s32 0, %v2088_v16 }
  0x90   : > { %v489_v22 = vpop.permute.xlu0 %488  ;;  %v491_v23 = vpop.permute.xlu1 %490  ;;  %1797 = vmatmul.mubr.msk.f32.vlgmr.msra.gmra.mrb[2].mxu1 %vm199_vm2, %v186_v21 }
  0x91   : > { %v496_v24 = vsel %vm494_vm4, %v489_v22, %v491_v23  ;;  %1801 = vmatprep.mubr.msk.f32.mxu1 %vm1886_vm0, %v1885_v0 }
  0x92   : > { %503 = vmatprep.subr.mxu0 %v496_v24  ;;  %v1646_v24 = vmul.u32 18, %v1645_v19 }
  0x94   : > { %1742 = vmatmul.mubr.msk.f32.vlgmr.msra.gmra.mrb[0].mxu0 %vm199_vm2, %v186_v21  ;;  %v493_v25 = vpop.permute.xlu0 %492  ;;  %v648_v26 = vpop.permute.xlu1 %647 }
  0x95   : > { %v495_v27 = vsel %vm494_vm4, %v491_v23, %v493_v25  ;;  %v497_v28 = vsel %vm494_vm4, %v493_v25, %v489_v22  ;;  %567 = vmatprep.mubr.f32.mxu0 %v1885_v0  ;;  %v1768_v25 = vmin.u32 %v2088_v16, %v1618_v20 }
  0x96   : > { %504 = vmatpush1.msra.mxu0 %v497_v28  ;;  %1800 = vmatpush3.msra.mxu1 %v495_v27 }
  0x97   : > { %1804 = vmatprep.subr.mxu1 %v1885_v0  ;;  %1802 = vmatmul.mubr.msk.f32.vlgmr.msra.gmra.mrb[4].mxu1 %vm199_vm2, %v1744_v29 }
  0x98   : > { %v652_v30 = vpop.permute.xlu1 %651  ;;  %v650_v31 = vpop.permute.xlu0 %649  ;;  %1806 = vmatprep.mubr.msk.f32.mxu1 %vm1886_vm0, %v1885_v0 }
  0x99   : > { %v654_v33 = vsel %vm653_vm5, %v650_v31, %v652_v30  ;;  %v655_v34 = vsel %vm653_vm5, %v648_v26, %v650_v31  ;;  %v656_v35 = vsel %vm653_vm5, %v652_v30, %v648_v26 }
  0x9a   : > { %662 = vmatprep.subr.mxu0 %v655_v34  ;;  %1805 = vmatpush3.msra.mxu1 %v654_v33  ;;  %v2093_v30 = vmul.u32.u64.low 3817748708, %v1768_v25  ;;  %v2094_v31 = vmul.u32.u64.high 3817748708, %v1768_v25, %v2093_v30  ;;  %v1603_v34 = vadd.s32 128, %v1969_v7 }
  0x9b   : > { %1807 = vmatmul.mubr.msk.f32.vlgmr.msra.gmra.mrb[6].mxu1 %vm199_vm2, %v1747_v32  ;;  %1809 = vmatprep.subr.mxu1 %v1885_v0 }
  0x9c   : > { %1745 = vmatmul.mubr.msk.f32.vlgmr.msra.gmra.mrb[0].mxu0 %vm199_vm2, %v1744_v29  ;;  %v960_v36 = vpop.permute.xlu1 %959  ;;  %v958_v37 = vpop.permute.xlu0 %957  ;;  %1810 = vmatpush3.msra.mxu1 %v1936_v1  ;;  %v1647_v29 = vsub.s32 %v1767_v9, %v1646_v24 }
  0x9d   : > { %663 = vmatpush1.msra.mxu0 %v656_v35  ;;  %726 = vmatprep.mubr.f32.mxu0 %v1885_v0  ;;  %v962_v43 = vsel %vm961_vm6, %v958_v37, %v960_v36 }
  0x9e   : > { %811 = vmatprep.subr.mxu0 %v1942_v3  ;;  %1811 = vmatprep.mubr.msk.f32.mxu1 %vm1886_vm0, %v1885_v0  ;;  %vm1652_vm10 = vcmp.ne.s32.totalorder %v1647_v29, 0  ;;  %vm1655_vm11 = vcmp.lt.s32.totalorder %v1647_v29, 0  ;;  %v1661_v35 = vadd.s32 18, %v1647_v29 }
  0x9f   : > { %1812 = vmatmul.mubr.msk.f32.vlgmr.msra.gmra.mrb[8].mxu1 %vm199_vm2, %v1750_v38  ;;  %1814 = vmatprep.subr.mxu1 %v1885_v0  ;;  %vm1658_vm12 = vmand %vm1655_vm11, %vm1652_vm10 }
  0xa0   : > { %v1117_v39 = vpop.permute.xlu1 %1116  ;;  %v956_v40 = vpop.permute.xlu0 %955  ;;  %1816 = vmatprep.mubr.msk.f32.mxu1 %vm1886_vm0, %v1885_v0 }
  0xa1   : > { %v964_v42 = vsel %vm961_vm6, %v960_v36, %v956_v40  ;;  %v963_v50 = vsel %vm961_vm6, %v956_v40, %v958_v37  ;;  %v1766_v36 = vadd.s32 4294967277, %v1603_v34 }
  0xa2   : > { %1815 = vmatpush3.msra.mxu1 %v964_v42 }
  0xa3   : > { %1817 = vmatmul.mubr.msk.f32.vlgmr.msra.gmra.mrb[10].mxu1 %vm199_vm2, %v1753_v41  ;;  %1819 = vmatprep.subr.mxu1 %v1885_v0 }
  0xa4   : > { %1748 = vmatmul.mubr.msk.f32.vlgmr.msra.gmra.mrb[0].mxu0 %vm199_vm2, %v1747_v32  ;;  %v1115_v44 = vpop.permute.xlu1 %1114  ;;  %v1119_v45 = vpop.permute.xlu0 %1118  ;;  %1821 = vmatprep.mubr.msk.f32.mxu1 %vm1886_vm0, %v1885_v0 }
  0xa5   : > { %812 = vmatpush1.msra.mxu0 %v1938_v2  ;;  %875 = vmatprep.mubr.f32.mxu0 %v1885_v0  ;;  %v1123_v47 = vsel %vm1120_vm7, %v1119_v45, %v1115_v44  ;;  %v1121_v51 = vsel %vm1120_vm7, %v1117_v39, %v1119_v45  ;;  %v1122_v59 = vsel %vm1120_vm7, %v1115_v44, %v1117_v39  ;;  %vm1608_vm7 = vcmp.ge.s32.totalorder %v2088_v16, 0 }
  0xa6   : > { %970 = vmatprep.subr.mxu0 %v962_v43  ;;  %1820 = vmatpush3.msra.mxu1 %v1123_v47  ;;  %v2098_v42 = vmul.u32.u64.low 3817748708, %v1766_v36  ;;  %v2099_v43 = vmul.u32.u64.high 3817748708, %v1766_v36, %v2098_v42 }
  0xa7   : > { %1822 = vmatmul.mubr.msk.f32.vlgmr.msra.gmra.mrb[12].mxu1 %vm199_vm2, %v1756_v46  ;;  %1824 = vmatprep.subr.mxu1 %v1885_v0 }
  0xa8   : > { %v1278_v48 = vpop.permute.xlu1 %1277  ;;  %v1276_v49 = vpop.permute.xlu0 %1275  ;;  %1826 = vmatprep.mubr.msk.f32.mxu1 %vm1886_vm0, %v1885_v0 }
  0xa9   : > { %v1280_v60 = vsel %vm1279_vm8, %v1276_v49, %v1278_v48 }
  0xac   : > { %1751 = vmatmul.mubr.msk.f32.vlgmr.msra.gmra.mrb[0].mxu0 %vm199_vm2, %v1750_v38  ;;  %v1433_v52 = vpop.permute.xlu1 %1432  ;;  %v1274_v53 = vpop.permute.xlu0 %1273  ;;  %v1623_v38 = vshrl.u32 %v2094_v31, 4 }
  0xad   : > { %971 = vmatpush1.msra.mxu0 %v963_v50  ;;  %1034 = vmatprep.mubr.f32.mxu0 %v1885_v0  ;;  %v1282_v55 = vsel %vm1279_vm8, %v1278_v48, %v1274_v53  ;;  %v1281_v62 = vsel %vm1279_vm8, %v1274_v53, %v1276_v49 }
  0xae   : > { %1129 = vmatprep.subr.mxu0 %v1121_v51  ;;  %1825 = vmatpush3.msra.mxu1 %v1282_v55 }
  0xaf   : > { %1827 = vmatmul.mubr.msk.f32.vlgmr.msra.gmra.mrb[14].mxu1 %vm199_vm2, %v1759_v54  ;;  %1829 = vmatprep.subr.mxu1 %v1885_v0 }
  0xb0   : > { %v1437_v56 = vpop.permute.xlu1 %1436  ;;  %1831 = vmatprep.mubr.msk.f32.mxu1 %vm1886_vm0, %v1885_v0  ;;  %v1435_v61 = vpop.permute.xlu0 %1434  ;;  %vm1617_vm0 = vcmp.lt.s32.totalorder %v2088_v16, 0 }
  0xb1   : > { %v1441_v58 = vsel %vm1438_vm9, %v1437_v56, %v1433_v52  ;;  %v1439_v63 = vsel %vm1438_vm9, %v1435_v61, %v1437_v56  ;;  %v1440_v1 = vsel %vm1438_vm9, %v1433_v52, %v1435_v61  ;;  %v1634_v52 = vshrl.u32 %v2099_v43, 4 }
  0xb2   : > { %1830 = vmatpush3.msra.mxu1 %v1441_v58 }
  0xb3   : > { %1832 = vmatmul.mubr.msk.f32.vlgmr.msra.gmra.mrb[16].mxu1 %vm199_vm2, %v1762_v57 }
  0xb4   : > { %1754 = vmatmul.mubr.msk.f32.vlgmr.msra.gmra.mrb[0].mxu0 %vm199_vm2, %v1753_v41  ;;  %v1664_v41 = vsel %vm1658_vm12, %v1661_v35, %v1647_v29 }
  0xb5   : > { %1130 = vmatpush1.msra.mxu0 %v1122_v59  ;;  %1193 = vmatprep.mubr.f32.mxu0 %v1885_v0  ;;  %vm1667_vm14 = vcmp.lt.s32.totalorder %v1664_v41, 16 }
  0xb6   : > { %1288 = vmatprep.subr.mxu0 %v1280_v60  ;;  %vm1670_vm15 = vmand %vm1613_vm13, %vm1667_vm14 }
  0xbc   : > { %1757 = vmatmul.mubr.msk.f32.vlgmr.msra.gmra.mrb[0].mxu0 %vm199_vm2, %v1756_v46  ;;  %v1624_v46 = vmul.u32 18, %v1623_v38 }
  0xbd   : > { %1289 = vmatpush1.msra.mxu0 %v1281_v62  ;;  %1352 = vmatprep.mubr.f32.mxu0 %v1885_v0 }
  0xbe   : > { %1447 = vmatprep.subr.mxu0 %v1439_v63  ;;  %v1625_v49 = vsub.s32 %v1768_v25, %v1624_v46 }
  0xc0   : > { %v1626_v53 = vsub.s32 0, %v1625_v49 }
  0xc1   : > { %v1595_v45 = vpop.permute.xlu0 %1594 }
  0xc2   : > { %v1627_v55 = vsel %vm1617_vm0, %v1626_v53, %v1625_v49 }
  0xc3   : > { %vm1650_vm1 = vcmp.ne.s32.totalorder %v1627_v55, 0 }
  0xc4   : > { %1760 = vmatmul.mubr.msk.f32.vlgmr.msra.gmra.mrb[0].mxu0 %vm199_vm2, %v1759_v54  ;;  %v1635_v54 = vmul.u32 18, %v1634_v52 }
  0xc5   : > { %1448 = vmatpush1.msra.mxu0 %v1440_v1  ;;  %1511 = vmatprep.mubr.f32.mxu0 %v1885_v0 }
  0xc6   : > { %v1636_v56 = vsub.s32 %v1766_v36, %v1635_v54 }
  0xc8   : > { %vm1651_vm4 = vcmp.ne.s32.totalorder %v1636_v56, 0  ;;  %vm1654_vm5 = vcmp.lt.s32.totalorder %v1636_v56, 0  ;;  %v1660_v59 = vadd.s32 18, %v1636_v56 }
  0xc9   : > { %vm1657_vm6 = vmand %vm1654_vm5, %vm1651_vm4 }
  0xca   : > { %v1663_v61 = vsel %vm1657_vm6, %v1660_v59, %v1636_v56 }
  0xcb   : > { %vm1666_vm10 = vcmp.lt.s32.totalorder %v1663_v61, 16 }
  0xcc   : > { %1763 = vmatmul.mubr.msk.f32.vlgmr.msra.gmra.mrb[0].mxu0 %vm199_vm2, %v1762_v57  ;;  %vm1653_vm2 = vcmp.lt.s32.totalorder %v1627_v55, 0  ;;  %v1659_v57 = vadd.s32 18, %v1627_v55 }
  0xcd   : > { %vm1656_vm3 = vmand %vm1653_vm2, %vm1650_vm1 }
  0xce   : > { %v1662_v58 = vsel %vm1656_vm3, %v1659_v57, %v1627_v55 }
  0xcf   : > { %vm1665_vm8 = vcmp.lt.s32.totalorder %v1662_v58, 16 }
  0xd0   : > { %vm1668_vm9 = vmand %vm1608_vm7, %vm1665_vm8 }
 0x15f   : > { %v340_v2 = vpop.f32.mrb[0].mxu1 }
 0x160   : > { %v1793_v3 = vpop.f32.mrb[1].mxu1 }
 0x163   : > { %v484_v5 = vpop.f32.mrb[2].mxu1 }
 0x164   : > { %v485_v6 = vadd.f32 %v484_v5, %v340_v2  ;;  %v1798_v8 = vpop.f32.mrb[3].mxu1 }
 0x16a   : > { %v640_v10 = vpop.f32.mrb[4].mxu1 }
 0x16b   : > { %v646_v13 = vadd.f32 %v640_v10, %v485_v6  ;;  %v1803_v14 = vpop.f32.mrb[5].mxu1 }
 0x16e   : > { %v799_v15 = vpop.f32.mrb[6].mxu1 }
 0x16f   : > { %v805_v0 = vadd.f32 %v799_v15, %v646_v13  ;;  %v1808_v17 = vpop.f32.mrb[7].mxu1 }
 0x172   : > { %v948_v18 = vpop.f32.mrb[8].mxu1 }
 0x173   : > { %v954_v21 = vadd.f32 %v948_v18, %v805_v0  ;;  %v1813_v22 = vpop.f32.mrb[9].mxu1 }
 0x176   : > { %v1107_v23 = vpop.f32.mrb[10].mxu1 }
 0x177   : > { %v1113_v26 = vadd.f32 %v1107_v23, %v954_v21  ;;  %v1818_v27 = vpop.f32.mrb[11].mxu1 }
 0x17a   : > { %v1266_v28 = vpop.f32.mrb[12].mxu1 }
 0x17b   : > { %v1272_v32 = vadd.f32 %v1266_v28, %v1113_v26  ;;  %v1823_v33 = vpop.f32.mrb[13].mxu1 }
 0x182   : > { %v1425_v37 = vpop.f32.mrb[14].mxu1 }
 0x183   : > { %v1431_v39 = vadd.f32 %v1425_v37, %v1272_v32  ;;  %v1828_v40 = vpop.f32.mrb[15].mxu1 }
 0x186   : > { %v1584_v44 = vpop.f32.mrb[16].mxu1 }
 0x187   : > { %v1590_v47 = vadd.f32 %v1584_v44, %v1431_v39  ;;  %v1833_v7 = vpop.f32.mrb[17].mxu1 }
 0x189   : > { %v1599_v48 = vadd.f32 %v1595_v45, %v1590_v47 }
 0x18b   : > { %v1602_v50 = vmax.f32 %v1599_v48, 0.0 }
 0x18d   : > { %v1673_v51 = vsel %vm1670_vm15, %v1602_v50, 0.0 }
 0x18e   : > { %1676 = vst [vmem:[%s2106_s24 + $0x10] sm:$0xff] %v1673_v51 }
 0x19f   : > { %v1513_v60 = vpop.f32.mrb[0].mxu0 }
 0x1a0   : > { %v1597_v62 = vadd.f32 %v1595_v45, %v1513_v60  ;;  %v1515_v63 = vpop.f32.mrb[1].mxu0 }
 0x1a1   : > { %v1598_v1 = vadd.f32 %v1595_v45, %v1515_v63 }
 0x1a2   : > { %v1600_v2 = vmax.f32 %v1597_v62, 0.0 }
 0x1a3   : > { %v1601_v3 = vmax.f32 %v1598_v1, 0.0 }
 0x1a4   : > { %v1671_v4 = vsel %vm1668_vm9, %v1600_v2, 0.0 }
 0x1a5   : > { %1674 = vst [vmem:[%s2106_s24] sm:$0xff] %v1671_v4  ;;  %v1672_v5 = vsel %vm1666_vm10, %v1601_v3, 0.0 }
 0x1a6   : > { %1675 = vst [vmem:[%s2106_s24 + $0x8] sm:$0xff] %v1672_v5 }
 0x1a7 PF: > { %s13_s12 = sadd.s32 1, %s1883_s12  }
 0x1a8   : > { %p10_p4 = scmp.ge.s32.totalorder %s13_s12, 4  }
 0x1aa   :  { %12 = sbr.rel (!%p10_p4) target bundleno = 1 (0x1), region = 70 }

// kernel: vae_forward.7
= control target key start
LH: loop header
LB: loop body
LE: loop exit
PB: predicated region body
PF: predicated region fallthrough
CT: control target
= control target key end

     0   :  { %s2157_s12 = smov 0   ;;  %s2428_s0 = inlined_call_operand.vmem [shape: f32[2,8,384], index: 0, kind: input, shape index: {}]   ;;  %s2429_s1 = inlined_call_operand.vmem [shape: f32[9,16,8], index: 1, kind: input, shape index: {}]   ;;  %s2430_s2 = inlined_call_operand.vmem [shape: f32[16,1], index: 2, kind: input, shape index: {}]   ;;  %s2431_s3 = inlined_call_operand.vmem [shape: f32[2,16,384], index: 3, kind: output, shape index: {}]  }
   0x1 LB: > { %s1906_s13 = sadd.s32 4294967295, %s2125_s12   ;;  %p1910_p0 = scmp.ge.s32.totalorder %s2125_s12, 1  ;;  %s2125_s12 = sphi %s2157_s12, %s13_s12  }
   0x2   : > { %p137_p1 = scmp.lt.s32.totalorder %s2125_s12, 3 }
   0x4   : > { %p138_p2 = pnand %p1910_p0, %p137_p1 }
   0x5   : > { %p161_p3 = scmp.lt.s32.totalorder (!%p138_p2), %s1906_s13, 1  ;;  %v2127_v0 = vmov (!%p138_p2), 0.0   ;;  %s2128_s18 = smov (!%p138_p2), 18   ;;  %v1747_v4 = vld [vmem:[%s2430_s2] sm:$0xff] (!%p138_p2)  ;;  %v1748_v5 = vld [vmem:[%s2430_s2 + $0x8] sm:$0xff] (!%p138_p2)  ;;  %v2136_v6 = vmov (!%p138_p2), 0   ;;  %v180_v7 = vlaneseq (!%p138_p2) }
   0x6   : > { %141 = sbr.rel (%p138_p2) target bundleno = 435 (0x1b3), region = 32  ;;  %272 = vmatprep.mubr.f32.mxu1 (!%p138_p2), %v2127_v0  ;;  %601 = vmatprep.mubr.f32.mxu0 (!%p138_p2), %v2127_v0  ;;  %s2129_s19 = smov (!%p138_p2), 19   ;;  %v1913_v14 = vld [vmem:[%s2429_s1 + $0x10] sm:$0xff] (!%p138_p2)  ;;  %vm201_vm1 = vcmask (!%p138_p2), 64512   ;;  %v1914_v19 = vld [vmem:[%s2429_s1 + $0x18] sm:$0xff] (!%p138_p2)  ;;  %v1923_v27 = vld [vmem:[%s2429_s1 + $0x20] sm:$0xff] (!%p138_p2) }
   0x7   : > { %s2130_s20 = smov (!%p138_p2), 17   ;;  %s2131_s21 = smov (!%p138_p2), 1   ;;  %2117 = vset.pattern.permute.xlu0 (!%p138_p2), %v2136_v6  ;;  %2118 = vset.pattern.permute.xlu1 (!%p138_p2), %v2136_v6  ;;  %v2209_v8 = vand.u32 (!%p138_p2), 127, %v180_v7  ;;  %v186_v30 = vld [vmem:[%s2429_s1] sm:$0xff] (!%p138_p2)  ;;  %v1924_v32 = vld [vmem:[%s2429_s1 + $0x28] sm:$0xff] (!%p138_p2)  ;;  %v1929_v38 = vld [vmem:[%s2429_s1 + $0x30] sm:$0xff] (!%p138_p2) }
   0x8   : > { %s2132_s22 = smov (!%p138_p2), 127   ;;  %s2133_s23 = smov (!%p138_p2), 111   ;;  %v187_v36 = vld [vmem:[%s2429_s1 + $0x8] sm:$0xff] (!%p138_p2)  ;;  %v1930_v42 = vld [vmem:[%s2429_s1 + $0x38] sm:$0xff] (!%p138_p2)  ;;  %v1935_v46 = vld [vmem:[%s2429_s1 + $0x40] sm:$0xff] (!%p138_p2) }
   0x9   : > { %s2134_s24 = smov (!%p138_p2), 110   ;;  %s2135_s25 = smov (!%p138_p2), 109   ;;  %vm194_vm0 = vcmp.lt.s32.totalorder (!%p138_p2), %v2209_v8, 18  ;;  %vm182_vm2 = vcmp.lt.s32.totalorder (!%p138_p2), %v2209_v8, 19  ;;  %vm524_vm3 = vcmp.lt.s32.totalorder (!%p138_p2), %v2209_v8, 17  ;;  %vm701_vm4 = vcmp.lt.s32.totalorder (!%p138_p2), %v2209_v8, 1 }
   0xa   : > { %vm1045_vm5 = vcmp.lt.s32.totalorder (!%p138_p2), %v2209_v8, 127  ;;  %vm1222_vm6 = vcmp.lt.s32.totalorder (!%p138_p2), %v2209_v8, 111  ;;  %v1936_v49 = vld [vmem:[%s2429_s1 + $0x48] sm:$0xff] (!%p138_p2)  ;;  %v1941_v53 = vld [vmem:[%s2429_s1 + $0x50] sm:$0xff] (!%p138_p2)  ;;  %vm1399_vm7 = vcmp.lt.s32.totalorder (!%p138_p2), %v2209_v8, 110  ;;  %v1942_v57 = vld [vmem:[%s2429_s1 + $0x58] sm:$0xff] (!%p138_p2) }
   0xb   : > { %v1947_v60 = vld [vmem:[%s2429_s1 + $0x60] sm:$0xff] (!%p138_p2)  ;;  %vm1576_vm8 = vcmp.lt.s32.totalorder (!%p138_p2), %v2209_v8, 109 }
   0xd   : > { %s2439_s13 = smov (!%p161_p3, %s1906_s13), 1 }
   0xe   : > { %s2091_s14 = smul.u32 24, %s2439_s13 }
   0xf   : > { %s2092_s16 = smul.u32 48, %s2439_s13 }
  0x10   : > { %s165_s17 = scalar_lea.vmem %s2428_s0, %s2091_s14 }
  0x11   : > { %v2173_v1 = vld [vmem:[%s165_s17 + $0x10] sm:$0xff]  ;;  %v2175_v2 = vld [vmem:[%s165_s17] sm:$0xff]  ;;  %v2179_v3 = vld [vmem:[%s165_s17 + $0x8] sm:$0xff]  ;;  %s2404_s13 = scalar_lea.vmem %s2431_s3, %s2092_s16 }
  0x12   : > { %192 = vrot.lane.b32.xlu1 %v2173_v1, %s2128_s18  ;;  %188 = vrot.lane.b32.xlu0 %v2175_v2, %s2128_s18 }
  0x16   : > { %190 = vrot.lane.b32.xlu0 %v2179_v3, %s2128_s18  ;;  %174 = vrot.lane.b32.xlu1 %v2175_v2, %s2129_s19 }
  0x1a   : > { %176 = vrot.lane.b32.xlu0 %v2179_v3, %s2129_s19  ;;  %178 = vrot.lane.b32.xlu1 %v2173_v1, %s2129_s19 }
  0x1e   : > { %518 = vrot.lane.b32.xlu0 %v2175_v2, %s2130_s20  ;;  %520 = vrot.lane.b32.xlu1 %v2179_v3, %s2130_s20 }
  0x22   : > { %522 = vrot.lane.b32.xlu0 %v2173_v1, %s2130_s20  ;;  %695 = vrot.lane.b32.xlu1 %v2175_v2, %s2131_s21 }
  0x26   : > { %697 = vrot.lane.b32.xlu0 %v2179_v3, %s2131_s21  ;;  %699 = vrot.lane.b32.xlu1 %v2173_v1, %s2131_s21 }
  0x2a   : > { %1041 = vrot.lane.b32.xlu0 %v2179_v3, %s2132_s22  ;;  %1043 = vrot.lane.b32.xlu1 %v2173_v1, %s2132_s22 }
  0x2e   : > { %1039 = vrot.lane.b32.xlu0 %v2175_v2, %s2132_s22  ;;  %1218 = vrot.lane.b32.xlu1 %v2179_v3, %s2133_s23 }
  0x32   : > { %1220 = vrot.lane.b32.xlu0 %v2173_v1, %s2133_s23  ;;  %1216 = vrot.lane.b32.xlu1 %v2175_v2, %s2133_s23 }
  0x36   : > { %1395 = vrot.lane.b32.xlu0 %v2179_v3, %s2134_s24  ;;  %1397 = vrot.lane.b32.xlu1 %v2173_v1, %s2134_s24 }
  0x3a   : > { %1393 = vrot.lane.b32.xlu0 %v2175_v2, %s2134_s24  ;;  %1572 = vrot.lane.b32.xlu1 %v2179_v3, %s2135_s25 }
  0x3e   : > { %1574 = vrot.lane.b32.xlu0 %v2173_v1, %s2135_s25  ;;  %1570 = vrot.lane.b32.xlu1 %v2175_v2, %s2135_s25 }
  0x42   : > { %1751 = vperm.xlu0 %2117, %v1747_v4   ;;  %1756 = vperm.xlu1 %2118, %v1748_v5   ;;  %v1953_v5 = vld [vmem:[%s2429_s1 + $0x70] sm:$0xff] }
  0x84   : > { %v193_v9 = vpop.permute.xlu1 %192  ;;  %v189_v10 = vpop.permute.xlu0 %188 }
  0x85   : > { %v197_v15 = vsel %vm194_vm0, %v193_v9, %v189_v10 }
  0x88   : > { %v191_v11 = vpop.permute.xlu0 %190  ;;  %v175_v12 = vpop.permute.xlu1 %174 }
  0x89   : > { %v196_v13 = vsel %vm194_vm0, %v189_v10, %v191_v11  ;;  %v195_v16 = vsel %vm194_vm0, %v191_v11, %v193_v9  ;;  %v1954_v9 = vld [vmem:[%s2429_s1 + $0x78] sm:$0xff]  ;;  %v1959_v10 = vld [vmem:[%s2429_s1 + $0x80] sm:$0xff] }
  0x8a   : > { %208 = vmatprep.subr.mxu1 %v196_v13 }
  0x8b   : > { %209 = vmatpush1.msra.mxu1 %v197_v15 }
  0x8c   : > { %1915 = vmatmul.mubr.msk.f32.vlgmr.msra.gmra.mrb[0].mxu1 %vm201_vm1, %v1913_v14  ;;  %1998 = vmatprep.subr.mxu1 %v195_v16  ;;  %v177_v17 = vpop.permute.xlu0 %176  ;;  %v179_v18 = vpop.permute.xlu1 %178 }
  0x8d   : > { %1999 = vmatpush3.msra.mxu1 %v195_v16  ;;  %278 = vmatprep.mubr.f32.mxu1 %v2127_v0  ;;  %v184_v20 = vsel %vm182_vm2, %v175_v12, %v177_v17  ;;  %v185_v24 = vsel %vm182_vm2, %v179_v18, %v175_v12  ;;  %v183_v25 = vsel %vm182_vm2, %v177_v17, %v179_v18  ;;  %v1960_v12 = vld [vmem:[%s2429_s1 + $0x88] sm:$0xff] }
  0x8e   : > { %366 = vmatprep.subr.mxu1 %v184_v20 }
  0x90   : > { %1916 = vmatmul.mubr.msk.f32.gmra.mrb[2].mxu1 %vm201_vm1, %v1914_v19  ;;  %v519_v21 = vpop.permute.xlu0 %518  ;;  %v521_v22 = vpop.permute.xlu1 %520 }
  0x91   : > { %2000 = vmatprep.mubr.msk.f32.mxu1 %vm201_vm1, %v1913_v14  ;;  %v526_v23 = vsel %vm524_vm3, %v519_v21, %v521_v22 }
  0x92   : > { %537 = vmatprep.subr.mxu0 %v526_v23 }
  0x94   : > { %2001 = vmatmul.mubr.msk.f32.vlgmr.msra.gmra.mrb[4].mxu1 %vm201_vm1, %v1914_v19  ;;  %v523_v26 = vpop.permute.xlu0 %522  ;;  %v696_v28 = vpop.permute.xlu1 %695 }
  0x95   : > { %367 = vmatpush1.msra.mxu1 %v185_v24  ;;  %v527_v29 = vsel %vm524_vm3, %v523_v26, %v519_v21  ;;  %430 = vmatprep.mubr.f32.mxu1 %v2127_v0  ;;  %v525_v31 = vsel %vm524_vm3, %v521_v22, %v523_v26  ;;  %v1771_v21 = vadd.s32 128, %v2209_v8 }
  0x96   : > { %2003 = vmatprep.subr.mxu1 %v183_v25  ;;  %538 = vmatpush1.msra.mxu0 %v527_v29 }
  0x97   : > { %1925 = vmatmul.mubr.msk.f32.vlgmr.msra.gmra.mrb[0].mxu0 %vm201_vm1, %v1923_v27  ;;  %v1966_v22 = vadd.s32 4294967277, %v1771_v21 }
  0x98   : > { %1919 = vmatmul.mubr.msk.f32.vlgmr.msra.gmra.mrb[0].mxu1 %vm201_vm1, %v186_v30  ;;  %607 = vmatprep.mubr.f32.mxu0 %v2127_v0  ;;  %v698_v33 = vpop.permute.xlu0 %697  ;;  %v700_v34 = vpop.permute.xlu1 %699 }
  0x99   : > { %2004 = vmatpush3.msra.mxu1 %v183_v25  ;;  %436 = vmatprep.mubr.f32.mxu1 %v2127_v0  ;;  %v704_v35 = vsel %vm701_vm4, %v700_v34, %v696_v28  ;;  %v703_v37 = vsel %vm701_vm4, %v696_v28, %v698_v33  ;;  %v702_v41 = vsel %vm701_vm4, %v698_v33, %v700_v34 }
  0x9a   : > { %2008 = vmatprep.subr.mxu1 %v525_v31  ;;  %714 = vmatprep.subr.mxu0 %v703_v37  ;;  %v2377_v24 = vmul.u32.u64.low 3817748708, %v1966_v22  ;;  %v2378_v25 = vmul.u32.u64.high 3817748708, %v1966_v22, %v2377_v24 }
  0x9b   : > { %1926 = vmatmul.mubr.msk.f32.gmra.mrb[2].mxu0 %vm201_vm1, %v1924_v32 }
  0x9c   : > { %1920 = vmatmul.mubr.msk.f32.gmra.mrb[2].mxu1 %vm201_vm1, %v187_v36  ;;  %715 = vmatpush1.msra.mxu0 %v704_v35  ;;  %v1042_v39 = vpop.permute.xlu0 %1041  ;;  %v1044_v40 = vpop.permute.xlu1 %1043 }
  0x9d   : > { %778 = vmatprep.mubr.f32.mxu0 %v2127_v0  ;;  %2005 = vmatprep.mubr.msk.f32.mxu1 %vm201_vm1, %v186_v30  ;;  %v1046_v43 = vsel %vm1045_vm5, %v1042_v39, %v1044_v40  ;;  %v1802_v30 = vshrl.u32 %v2378_v25, 4 }
  0x9e   : > { %881 = vmatprep.subr.mxu0 %v2179_v3 }
  0x9f   : > { %1931 = vmatmul.mubr.msk.f32.vlgmr.msra.gmra.mrb[0].mxu0 %vm201_vm1, %v1929_v38  ;;  %v1803_v34 = vmul.u32 18, %v1802_v30 }
  0xa0   : > { %2006 = vmatmul.mubr.msk.f32.vlgmr.msra.gmra.mrb[4].mxu1 %vm201_vm1, %v187_v36  ;;  %784 = vmatprep.mubr.f32.mxu0 %v2127_v0  ;;  %v1040_v44 = vpop.permute.xlu0 %1039  ;;  %v1219_v45 = vpop.permute.xlu1 %1218 }
  0xa1   : > { %2009 = vmatpush3.msra.mxu1 %v525_v31  ;;  %882 = vmatpush1.msra.mxu0 %v2175_v2  ;;  %v1047_v48 = vsel %vm1045_vm5, %v1040_v44, %v1042_v39  ;;  %v1048_v56 = vsel %vm1045_vm5, %v1044_v40, %v1040_v44  ;;  %v1948_v2 = vld [vmem:[%s2429_s1 + $0x68] sm:$0xff]  ;;  %v1804_v36 = vsub.s32 %v1966_v22, %v1803_v34 }
  0xa2   : > { %2013 = vmatprep.subr.mxu1 %v702_v41  ;;  %2010 = vmatprep.mubr.msk.f32.mxu1 %vm201_vm1, %v1923_v27  ;;  %v1772_v27 = vadd.s32 256, %v2209_v8 }
  0xa3   : > { %1932 = vmatmul.mubr.msk.f32.gmra.mrb[2].mxu0 %vm201_vm1, %v1930_v42  ;;  %1058 = vmatprep.subr.mxu0 %v1046_v43  ;;  %vm1819_vm13 = vcmp.ne.s32.totalorder %v1804_v36, 0  ;;  %vm1822_vm14 = vcmp.lt.s32.totalorder %v1804_v36, 0 }
  0xa4   : > { %945 = vmatprep.mubr.f32.mxu0 %v2127_v0  ;;  %v1221_v47 = vpop.permute.xlu0 %1220  ;;  %v1217_v51 = vpop.permute.xlu1 %1216  ;;  %v2381_v29 = vadd.s32 4294967277, %v1772_v27  ;;  %vm2389_vm15 = vmand %vm1822_vm14, %vm1819_vm13 }
  0xa5   : > { %v1223_v50 = vsel %vm1222_vm6, %v1219_v45, %v1221_v47  ;;  %v1224_v55 = vsel %vm1222_vm6, %v1217_v51, %v1219_v45 }
  0xa7   : > { %1937 = vmatmul.mubr.msk.f32.vlgmr.msra.gmra.mrb[0].mxu0 %vm201_vm1, %v1935_v46 }
  0xa8   : > { %2011 = vmatmul.mubr.msk.f32.vlgmr.msra.gmra.mrb[4].mxu1 %vm201_vm1, %v1924_v32  ;;  %951 = vmatprep.mubr.f32.mxu0 %v2127_v0  ;;  %v1396_v52 = vpop.permute.xlu0 %1395  ;;  %v1398_v54 = vpop.permute.xlu1 %1397  ;;  %v2385_v32 = vmul.u32.u64.low 3817748708, %v2381_v29  ;;  %v2386_v33 = vmul.u32.u64.high 3817748708, %v2381_v29, %v2385_v32 }
  0xa9   : > { %2014 = vmatpush3.msra.mxu1 %v702_v41  ;;  %1059 = vmatpush1.msra.mxu0 %v1047_v48  ;;  %v1400_v58 = vsel %vm1399_vm7, %v1396_v52, %v1398_v54 }
  0xaa   : > { %2015 = vmatprep.mubr.msk.f32.mxu1 %vm201_vm1, %v1929_v38  ;;  %2018 = vmatprep.subr.mxu1 %v2173_v1  ;;  %v1828_v38 = vadd.s32 18, %v1804_v36 }
  0xab   : > { %1938 = vmatmul.mubr.msk.f32.gmra.mrb[2].mxu0 %vm201_vm1, %v1936_v49  ;;  %1235 = vmatprep.subr.mxu0 %v1223_v50 }
  0xac   : > { %1122 = vmatprep.mubr.f32.mxu0 %v2127_v0  ;;  %v1394_v59 = vpop.permute.xlu0 %1393  ;;  %v1573_v61 = vpop.permute.xlu1 %1572 }
  0xad   : > { %v1401_v63 = vsel %vm1399_vm7, %v1394_v59, %v1396_v52  ;;  %v1402_v7 = vsel %vm1399_vm7, %v1398_v54, %v1394_v59  ;;  %vm1781_vm7 = vcmp.lt.s32.totalorder %v2381_v29, 288 }
  0xaf   : > { %1943 = vmatmul.mubr.msk.f32.vlgmr.msra.gmra.mrb[0].mxu0 %vm201_vm1, %v1941_v53 }
  0xb0   : > { %2016 = vmatmul.mubr.msk.f32.vlgmr.msra.gmra.mrb[4].mxu1 %vm201_vm1, %v1930_v42  ;;  %1128 = vmatprep.mubr.f32.mxu0 %v2127_v0  ;;  %v1575_v62 = vpop.permute.xlu0 %1574  ;;  %v1571_v4 = vpop.permute.xlu1 %1570 }
  0xb1   : > { %2019 = vmatpush3.msra.mxu1 %v2173_v1  ;;  %1236 = vmatpush1.msra.mxu0 %v1224_v55  ;;  %v1225_v1 = vsel %vm1222_vm6, %v1221_v47, %v1217_v51  ;;  %v1577_v3 = vsel %vm1576_vm8, %v1573_v61, %v1575_v62  ;;  %v1578_v6 = vsel %vm1576_vm8, %v1571_v4, %v1573_v61 }
  0xb2   : > { %2023 = vmatprep.subr.mxu1 %v1048_v56  ;;  %2020 = vmatprep.mubr.msk.f32.mxu1 %vm201_vm1, %v1935_v46  ;;  %v1579_v11 = vsel %vm1576_vm8, %v1575_v62, %v1571_v4  ;;  %v1831_v47 = vsel %vm2389_vm15, %v1828_v38, %v1804_v36 }
  0xb3   : > { %1944 = vmatmul.mubr.msk.f32.gmra.mrb[2].mxu0 %vm201_vm1, %v1942_v57  ;;  %1412 = vmatprep.subr.mxu0 %v1400_v58  ;;  %vm2406_vm3 = vcmp.lt.s32.totalorder %v1831_v47, 16 }
  0xb4   : > { %1299 = vmatprep.mubr.f32.mxu0 %v2127_v0 }
  0xb7   : > { %1949 = vmatmul.mubr.msk.f32.vlgmr.msra.gmra.mrb[0].mxu0 %vm201_vm1, %v1947_v60 }
  0xb8   : > { %2021 = vmatmul.mubr.msk.f32.vlgmr.msra.gmra.mrb[4].mxu1 %vm201_vm1, %v1936_v49  ;;  %1305 = vmatprep.mubr.f32.mxu0 %v2127_v0 }
  0xb9   : > { %2024 = vmatpush3.msra.mxu1 %v1048_v56  ;;  %1413 = vmatpush1.msra.mxu0 %v1401_v63 }
  0xba   : > { %2028 = vmatprep.subr.mxu1 %v1225_v1  ;;  %2025 = vmatprep.mubr.msk.f32.mxu1 %vm201_vm1, %v1941_v53 }
  0xbb   : > { %1950 = vmatmul.mubr.msk.f32.gmra.mrb[2].mxu0 %vm201_vm1, %v1948_v2  ;;  %1589 = vmatprep.subr.mxu0 %v1577_v3 }
  0xbc   : > { %1476 = vmatprep.mubr.f32.mxu0 %v2127_v0 }
  0xbf   : > { %1955 = vmatmul.mubr.msk.f32.vlgmr.msra.gmra.mrb[0].mxu0 %vm201_vm1, %v1953_v5 }
  0xc0   : > { %2026 = vmatmul.mubr.msk.f32.vlgmr.msra.gmra.mrb[4].mxu1 %vm201_vm1, %v1942_v57  ;;  %1482 = vmatprep.mubr.f32.mxu0 %v2127_v0 }
  0xc1   : > { %2029 = vmatpush3.msra.mxu1 %v1225_v1  ;;  %1590 = vmatpush1.msra.mxu0 %v1578_v6  ;;  %v1752_v43 = vpop.permute.xlu0 %1751  ;;  %v1757_v53 = vpop.permute.xlu1 %1756 }
  0xc2   : > { %2033 = vmatprep.subr.mxu1 %v1402_v7  ;;  %2030 = vmatprep.mubr.msk.f32.mxu1 %vm201_vm1, %v1947_v60 }
  0xc3   : > { %1956 = vmatmul.mubr.msk.f32.gmra.mrb[2].mxu0 %vm201_vm1, %v1954_v9 }
  0xc4   : > { %1653 = vmatprep.mubr.f32.mxu0 %v2127_v0 }
  0xc7   : > { %1961 = vmatmul.mubr.msk.f32.vlgmr.msra.gmra.mrb[0].mxu0 %vm201_vm1, %v1959_v10 }
  0xc8   : > { %2031 = vmatmul.mubr.msk.f32.vlgmr.msra.gmra.mrb[4].mxu1 %vm201_vm1, %v1948_v2  ;;  %1659 = vmatprep.mubr.f32.mxu0 %v2127_v0  ;;  %v1965_v0 = vadd.s32 4294967277, %v2209_v8  ;;  %v1813_v8 = vshrl.u32 %v2386_v33, 4 }
  0xc9   : > { %2034 = vmatpush3.msra.mxu1 %v1402_v7  ;;  %2035 = vmatprep.mubr.msk.f32.mxu1 %vm201_vm1, %v1953_v5 }
  0xca   : > { %2038 = vmatprep.subr.mxu1 %v1579_v11  ;;  %v1786_v16 = vsub.s32 0, %v1965_v0  ;;  %vm1785_vm9 = vcmp.lt.s32.totalorder %v1965_v0, 0  ;;  %v1814_v41 = vmul.u32 18, %v1813_v8  ;;  %vm1776_vm0 = vcmp.ge.s32.totalorder %v1965_v0, 0 }
  0xcb   : > { %1962 = vmatmul.mubr.msk.f32.gmra.mrb[2].mxu0 %vm201_vm1, %v1960_v12 }
  0xcc   : > { %v1968_v18 = vmin.u32 %v1965_v0, %v1786_v16  ;;  %v1815_v49 = vsub.s32 %v2381_v29, %v1814_v41 }
  0xce   : > { %v2372_v19 = vmul.u32.u64.low 3817748708, %v1968_v18  ;;  %v2373_v20 = vmul.u32.u64.high 3817748708, %v1968_v18, %v2372_v19  ;;  %vm1820_vm4 = vcmp.ne.s32.totalorder %v1815_v49, 0  ;;  %vm1823_vm5 = vcmp.lt.s32.totalorder %v1815_v49, 0 }
  0xcf   : > { %v1829_v2 = vadd.s32 18, %v1815_v49  ;;  %vm1826_vm6 = vmand %vm1823_vm5, %vm1820_vm4 }
  0xd0   : > { %2036 = vmatmul.mubr.msk.f32.vlgmr.msra.gmra.mrb[4].mxu1 %vm201_vm1, %v1954_v9  ;;  %v1791_v23 = vshrl.u32 %v2373_v20, 4 }
  0xd1   : > { %2039 = vmatpush3.msra.mxu1 %v1579_v11  ;;  %2040 = vmatprep.mubr.msk.f32.mxu1 %vm201_vm1, %v1959_v10  ;;  %v1832_v6 = vsel %vm1826_vm6, %v1829_v2, %v1815_v49 }
  0xd2   : > { %v1792_v26 = vmul.u32 18, %v1791_v23  ;;  %vm1835_vm8 = vcmp.lt.s32.totalorder %v1832_v6, 16 }
  0xd4   : > { %v1793_v28 = vsub.s32 %v1968_v18, %v1792_v26 }
  0xd6   : > { %v1794_v31 = vsub.s32 0, %v1793_v28 }
  0xd8   : > { %2041 = vmatmul.mubr.msk.f32.vlgmr.msra.gmra.mrb[4].mxu1 %vm201_vm1, %v1960_v12  ;;  %v1795_v35 = vsel %vm1785_vm9, %v1794_v31, %v1793_v28  ;;  %vm1838_vm9 = vmand %vm1781_vm7, %vm1835_vm8 }
  0xd9   : > { %vm1818_vm10 = vcmp.ne.s32.totalorder %v1795_v35, 0  ;;  %vm1821_vm11 = vcmp.lt.s32.totalorder %v1795_v35, 0  ;;  %v1827_v37 = vadd.s32 18, %v1795_v35 }
  0xda   : > { %vm1824_vm12 = vmand %vm1821_vm11, %vm1818_vm10 }
  0xdb   : > { %v1830_v39 = vsel %vm1824_vm12, %v1827_v37, %v1795_v35 }
  0xdc   : > { %vm1833_vm1 = vcmp.lt.s32.totalorder %v1830_v39, 16 }
  0xdd   : > { %vm2397_vm2 = vmand %vm1776_vm0, %vm1833_vm1 }
 0x16b   : > { %v432_v13 = vpop.f32.mrb[0].mxu1 }
 0x16c   : > { %v434_v14 = vpop.f32.mrb[1].mxu1 }
 0x16f   : > { %v438_v15 = vpop.f32.mrb[2].mxu1 }
 0x170   : > { %v440_v17 = vpop.f32.mrb[3].mxu1 }
 0x19a   : > { %v1655_v42 = vpop.f32.mrb[0].mxu0 }
 0x19b   : > { %v2043_v44 = vadd.f32 %v1655_v42, %v432_v13  ;;  %v1657_v45 = vpop.f32.mrb[1].mxu0 }
 0x19c   : > { %v2044_v46 = vadd.f32 %v1657_v45, %v434_v14 }
 0x19d   : > { %v1759_v48 = vadd.f32 %v2043_v44, %v1752_v43 }
 0x19e   : > { %v1760_v51 = vadd.f32 %v2044_v46, %v1752_v43  ;;  %v1661_v52 = vpop.f32.mrb[2].mxu0 }
 0x19f   : > { %v1765_v55 = vmax.f32 %v1759_v48, 0.0  ;;  %v2045_v56 = vadd.f32 %v1661_v52, %v438_v15  ;;  %v1663_v57 = vpop.f32.mrb[3].mxu0 }
 0x1a0   : > { %v1766_v58 = vmax.f32 %v1760_v51, 0.0  ;;  %v2046_v59 = vadd.f32 %v1663_v57, %v440_v17 }
 0x1a1   : > { %v1839_v60 = vsel %vm2397_vm2, %v1765_v55, 0.0  ;;  %v1762_v61 = vadd.f32 %v2045_v56, %v1757_v53 }
 0x1a2   : > { %v1840_v62 = vsel %vm2406_vm3, %v1766_v58, 0.0  ;;  %1845 = vst [vmem:[%s2404_s13] sm:$0xff] %v1839_v60  ;;  %v1763_v63 = vadd.f32 %v2046_v59, %v1757_v53 }
 0x1a3   : > { %1846 = vst [vmem:[%s2404_s13 + $0x8] sm:$0xff] %v1840_v62  ;;  %v1768_v1 = vmax.f32 %v1762_v61, 0.0 }
 0x1a4   : > { %v1769_v3 = vmax.f32 %v1763_v63, 0.0 }
 0x1a5   : > { %v1842_v4 = vsel %vm2397_vm2, %v1768_v1, 0.0 }
 0x1a6   : > { %v1843_v5 = vsel %vm2406_vm3, %v1769_v3, 0.0  ;;  %1848 = vst [vmem:[%s2404_s13 + $0x18] sm:$0xff] %v1842_v4 }
 0x1a7   : > { %1849 = vst [vmem:[%s2404_s13 + $0x20] sm:$0xff] %v1843_v5 }
 0x1ab   : > { %v2042_v7 = vpop.f32.mrb[4].mxu1 }
 0x1ac   : > { %v1764_v9 = vadd.f32 %v2042_v7, %v1757_v53  ;;  %v1732_v10 = vpop.f32.mrb[5].mxu1 }
 0x1ad   : > { %v1761_v11 = vadd.f32 %v1752_v43, %v1732_v10 }
 0x1ae   : > { %v1770_v12 = vmax.f32 %v1764_v9, 0.0 }
 0x1af   : > { %v1767_v13 = vmax.f32 %v1761_v11, 0.0 }
 0x1b0   : > { %v1844_v0 = vsel %vm1838_vm9, %v1770_v12, 0.0 }
 0x1b1   : > { %1850 = vst [vmem:[%s2404_s13 + $0x28] sm:$0xff] %v1844_v0  ;;  %v1841_v14 = vsel %vm1838_vm9, %v1767_v13, 0.0 }
 0x1b2   : > { %1847 = vst [vmem:[%s2404_s13 + $0x10] sm:$0xff] %v1841_v14 }
 0x1b3 PF: > { %s13_s12 = sadd.s32 1, %s2125_s12  }
 0x1b4   : > { %p10_p4 = scmp.ge.s32.totalorder %s13_s12, 4  }
 0x1b6   :  { %12 = sbr.rel (!%p10_p4) target bundleno = 1 (0x1), region = 70 }

// kernel: vae_forward.8
= control target key start
LH: loop header
LB: loop body
LE: loop exit
PB: predicated region body
PF: predicated region fallthrough
CT: control target
= control target key end

     0   :  { %v4373_v47 = vmov 1983009808   ;;  %v817_v49 = vlaneseq  ;;  %vm2745_vm0 = vcmask 254976   ;;  %s6888_s1 = inlined_call_operand.vmem [shape: f32[6144,32], index: 1, kind: input, shape index: {}]   ;;  %s6889_s0 = inlined_call_operand.vmem [shape: f32[2,6144], index: 0, kind: input, shape index: {}]   ;;  %s6890_s2 = inlined_call_operand.vmem [shape: f32[1,32], index: 2, kind: input, shape index: {}]   ;;  %s6891_s3 = inlined_call_operand.vmem [shape: f32[2,32], index: 3, kind: output, shape index: {}]  }
   0x1   :  { %v42_v0 = vld [vmem:[%s6888_s1 + $0x80] sm:$0xff]  ;;  %v43_v1 = vld [vmem:[%s6888_s1 + $0x88] sm:$0xff]  ;;  %v44_v11 = vld [vmem:[%s6888_s1 + $0x90] sm:$0xff]  ;;  %v815_v48 = vunpack.c.l.s4 %v4373_v47 }
   0x2   :  { %v26_v2 = vld [vmem:[%s6888_s1] sm:$0xff]  ;;  %v3592_v3 = vpack.c.bf16 %v43_v1, %v42_v0  ;;  %v27_v4 = vld [vmem:[%s6888_s1 + $0x8] sm:$0xff]  ;;  %v45_v13 = vld [vmem:[%s6888_s1 + $0x98] sm:$0xff]  ;;  %v818_v0 = vshrl.u32 %v817_v49, 7 }
   0x3   :  { %v74_v5 = vld [vmem:[%s6888_s1 + $0x180] sm:$0xff]  ;;  %v75_v6 = vld [vmem:[%s6888_s1 + $0x188] sm:$0xff]  ;;  %v3594_v7 = vpack.c.bf16 %v27_v4, %v26_v2  ;;  %v28_v14 = vld [vmem:[%s6888_s1 + $0x10] sm:$0xff]  ;;  %v3596_v16 = vpack.c.bf16 %v45_v13, %v44_v11  ;;  %v816_v63 = vunpack.c.0.s8 %v815_v48 }
   0x4   :  { %v3624_v8 = vpack.c.bf16 %v75_v6, %v74_v5  ;;  %v58_v9 = vld [vmem:[%s6888_s1 + $0x100] sm:$0xff]  ;;  %v59_v10 = vld [vmem:[%s6888_s1 + $0x108] sm:$0xff]  ;;  %3593 = vmatprep.subr.bf16.mxu0 %v3592_v3  ;;  %v29_v15 = vld [vmem:[%s6888_s1 + $0x18] sm:$0xff] }
   0x5   :  { %v3626_v12 = vpack.c.bf16 %v59_v10, %v58_v9  ;;  %3595 = vmatpush3.bf16.msra.mxu0 %v3594_v7  ;;  %v3598_v17 = vpack.c.bf16 %v29_v15, %v28_v14  ;;  %v76_v18 = vld [vmem:[%s6888_s1 + $0x190] sm:$0xff]  ;;  %v77_v19 = vld [vmem:[%s6888_s1 + $0x198] sm:$0xff]  ;;  %v46_v23 = vld [vmem:[%s6888_s1 + $0xa0] sm:$0xff]  ;;  %v4544_v13 = vsub.s32 %v816_v63, %v818_v0 }
   0x6   :  { %3625 = vmatprep.subr.bf16.mxu1 %v3624_v8  ;;  %v60_v20 = vld [vmem:[%s6888_s1 + $0x110] sm:$0xff]  ;;  %v3628_v21 = vpack.c.bf16 %v77_v19, %v76_v18  ;;  %v61_v22 = vld [vmem:[%s6888_s1 + $0x118] sm:$0xff]  ;;  %v47_v24 = vld [vmem:[%s6888_s1 + $0xa8] sm:$0xff]  ;;  %3597 = vmatprep.subr.bf16.mxu0 %v3596_v16 }
   0x7   :  { %3627 = vmatpush3.bf16.msra.mxu1 %v3626_v12  ;;  %v3630_v25 = vpack.c.bf16 %v61_v22, %v60_v20  ;;  %v3600_v26 = vpack.c.bf16 %v47_v24, %v46_v23  ;;  %v30_v27 = vld [vmem:[%s6888_s1 + $0x20] sm:$0xff]  ;;  %v31_v28 = vld [vmem:[%s6888_s1 + $0x28] sm:$0xff]  ;;  %v48_v35 = vld [vmem:[%s6888_s1 + $0xb0] sm:$0xff] }
   0x8   :  { %v78_v29 = vld [vmem:[%s6888_s1 + $0x1a0] sm:$0xff]  ;;  %3629 = vmatprep.subr.bf16.mxu1 %v3628_v21  ;;  %v79_v30 = vld [vmem:[%s6888_s1 + $0x1a8] sm:$0xff]  ;;  %v3602_v33 = vpack.c.bf16 %v31_v28, %v30_v27  ;;  %v49_v36 = vld [vmem:[%s6888_s1 + $0xb8] sm:$0xff] }
   0x9   :  { %v62_v31 = vld [vmem:[%s6888_s1 + $0x120] sm:$0xff]  ;;  %v63_v32 = vld [vmem:[%s6888_s1 + $0x128] sm:$0xff]  ;;  %3599 = vmatpush3.bf16.msra.mxu0 %v3598_v17  ;;  %v3632_v34 = vpack.c.bf16 %v79_v30, %v78_v29  ;;  %v32_v37 = vld [vmem:[%s6888_s1 + $0x30] sm:$0xff]  ;;  %v3604_v39 = vpack.c.bf16 %v49_v36, %v48_v35 }
   0xa   :  { %3601 = vmatprep.subr.bf16.mxu0 %v3600_v26  ;;  %v3634_v38 = vpack.c.bf16 %v63_v32, %v62_v31  ;;  %v33_v40 = vld [vmem:[%s6888_s1 + $0x38] sm:$0xff]  ;;  %v80_v41 = vld [vmem:[%s6888_s1 + $0x1b0] sm:$0xff]  ;;  %v50_v46 = vld [vmem:[%s6888_s1 + $0xc0] sm:$0xff] }
   0xb   :  { %3631 = vmatpush3.bf16.msra.mxu1 %v3630_v25  ;;  %v81_v42 = vld [vmem:[%s6888_s1 + $0x1b8] sm:$0xff]  ;;  %v64_v44 = vld [vmem:[%s6888_s1 + $0x130] sm:$0xff]  ;;  %v51_v50 = vld [vmem:[%s6888_s1 + $0xc8] sm:$0xff]  ;;  %v3606_v51 = vpack.c.bf16 %v33_v40, %v32_v37 }
   0xc   :  { %3633 = vmatprep.subr.bf16.mxu1 %v3632_v34  ;;  %v3636_v43 = vpack.c.bf16 %v81_v42, %v80_v41  ;;  %v65_v45 = vld [vmem:[%s6888_s1 + $0x138] sm:$0xff]  ;;  %v82_v52 = vld [vmem:[%s6888_s1 + $0x1c0] sm:$0xff]  ;;  %v83_v53 = vld [vmem:[%s6888_s1 + $0x1c8] sm:$0xff]  ;;  %v3608_v55 = vpack.c.bf16 %v51_v50, %v50_v46 }
   0xd   :  { %3603 = vmatpush3.bf16.msra.mxu0 %v3602_v33  ;;  %v3638_v54 = vpack.c.bf16 %v65_v45, %v64_v44  ;;  %v34_v56 = vld [vmem:[%s6888_s1 + $0x40] sm:$0xff]  ;;  %v35_v57 = vld [vmem:[%s6888_s1 + $0x48] sm:$0xff]  ;;  %v3640_v59 = vpack.c.bf16 %v83_v53, %v82_v52  ;;  %v52_v61 = vld [vmem:[%s6888_s1 + $0xd0] sm:$0xff] }
   0xe   :  { %3605 = vmatprep.subr.bf16.mxu0 %v3604_v39  ;;  %v66_v58 = vld [vmem:[%s6888_s1 + $0x140] sm:$0xff]  ;;  %v67_v60 = vld [vmem:[%s6888_s1 + $0x148] sm:$0xff]  ;;  %v53_v62 = vld [vmem:[%s6888_s1 + $0xd8] sm:$0xff]  ;;  %v3610_v3 = vpack.c.bf16 %v35_v57, %v34_v56 }
   0xf   :  { %3635 = vmatpush3.bf16.msra.mxu1 %v3634_v38  ;;  %v84_v1 = vld [vmem:[%s6888_s1 + $0x1d0] sm:$0xff]  ;;  %v85_v2 = vld [vmem:[%s6888_s1 + $0x1d8] sm:$0xff]  ;;  %v3642_v4 = vpack.c.bf16 %v67_v60, %v66_v58  ;;  %v3612_v5 = vpack.c.bf16 %v53_v62, %v52_v61  ;;  %v54_v11 = vld [vmem:[%s6888_s1 + $0xe0] sm:$0xff] }
  0x10   :  { %3637 = vmatprep.subr.bf16.mxu1 %v3636_v43  ;;  %v36_v6 = vld [vmem:[%s6888_s1 + $0x50] sm:$0xff]  ;;  %v37_v7 = vld [vmem:[%s6888_s1 + $0x58] sm:$0xff]  ;;  %v3644_v9 = vpack.c.bf16 %v85_v2, %v84_v1  ;;  %v55_v12 = vld [vmem:[%s6888_s1 + $0xe8] sm:$0xff] }
  0x11   :  { %3607 = vmatpush3.bf16.msra.mxu0 %v3606_v51  ;;  %v68_v8 = vld [vmem:[%s6888_s1 + $0x150] sm:$0xff]  ;;  %v69_v10 = vld [vmem:[%s6888_s1 + $0x158] sm:$0xff]  ;;  %v86_v14 = vld [vmem:[%s6888_s1 + $0x1e0] sm:$0xff]  ;;  %v3614_v16 = vpack.c.bf16 %v37_v7, %v36_v6  ;;  %v3616_v19 = vpack.c.bf16 %v55_v12, %v54_v11 }
  0x12   :  { %3609 = vmatprep.subr.bf16.mxu0 %v3608_v55  ;;  %v87_v15 = vld [vmem:[%s6888_s1 + $0x1e8] sm:$0xff]  ;;  %v38_v17 = vld [vmem:[%s6888_s1 + $0x60] sm:$0xff]  ;;  %v3646_v18 = vpack.c.bf16 %v69_v10, %v68_v8  ;;  %v56_v25 = vld [vmem:[%s6888_s1 + $0xf0] sm:$0xff] }
  0x13   :  { %3639 = vmatpush3.bf16.msra.mxu1 %v3638_v54  ;;  %v39_v20 = vld [vmem:[%s6888_s1 + $0x68] sm:$0xff]  ;;  %v70_v21 = vld [vmem:[%s6888_s1 + $0x160] sm:$0xff]  ;;  %v3648_v23 = vpack.c.bf16 %v87_v15, %v86_v14  ;;  %v57_v26 = vld [vmem:[%s6888_s1 + $0xf8] sm:$0xff] }
  0x14   :  { %3641 = vmatprep.subr.bf16.mxu1 %v3640_v59  ;;  %v14_v22 = vld [vmem:[%s6889_s0] sm:$0xff]  ;;  %v71_v24 = vld [vmem:[%s6888_s1 + $0x168] sm:$0xff]  ;;  %v88_v29 = vld [vmem:[%s6888_s1 + $0x1f0] sm:$0xff]  ;;  %v3618_v31 = vpack.c.bf16 %v39_v20, %v38_v17  ;;  %v3620_v35 = vpack.c.bf16 %v57_v26, %v56_v25 }
  0x15   :  { %3611 = vmatpush3.bf16.msra.mxu0 %v3610_v3  ;;  %v820_v27 = vrot.slane %v14_v22, %v4544_v13  ;;  %v813_v28 = vcombine.high %v14_v22, %v14_v22  ;;  %v89_v30 = vld [vmem:[%s6888_s1 + $0x1f8] sm:$0xff]  ;;  %v3650_v34 = vpack.c.bf16 %v71_v24, %v70_v21  ;;  %v40_v36 = vld [vmem:[%s6888_s1 + $0x70] sm:$0xff]  ;;  %v106_v41 = vld [vmem:[%s6888_s1 + $0x280] sm:$0xff] }
  0x16   :  { %3613 = vmatprep.subr.bf16.mxu0 %v3612_v5  ;;  %v41_v37 = vld [vmem:[%s6888_s1 + $0x78] sm:$0xff]  ;;  %v72_v38 = vld [vmem:[%s6888_s1 + $0x170] sm:$0xff]  ;;  %v3652_v39 = vpack.c.bf16 %v89_v30, %v88_v29  ;;  %v107_v42 = vld [vmem:[%s6888_s1 + $0x288] sm:$0xff] }
  0x17   :  { %3643 = vmatpush3.bf16.msra.mxu1 %v3642_v4  ;;  %v828_v32 = vcombine.high %v820_v27, %v820_v27  ;;  %v827_v33 = vrot.slane %v813_v28, %v4544_v13  ;;  %v73_v40 = vld [vmem:[%s6888_s1 + $0x178] sm:$0xff]  ;;  %v138_v44 = vld [vmem:[%s6888_s1 + $0x380] sm:$0xff]  ;;  %v139_v45 = vld [vmem:[%s6888_s1 + $0x388] sm:$0xff]  ;;  %v3622_v46 = vpack.c.bf16 %v41_v37, %v40_v36  ;;  %v3656_v48 = vpack.c.bf16 %v107_v42, %v106_v41 }
  0x18   :  { %3645 = vmatprep.subr.bf16.mxu1 %v3644_v9  ;;  %v3654_v47 = vpack.c.bf16 %v73_v40, %v72_v38  ;;  %v90_v49 = vld [vmem:[%s6888_s1 + $0x200] sm:$0xff]  ;;  %v91_v50 = vld [vmem:[%s6888_s1 + $0x208] sm:$0xff]  ;;  %v3688_v52 = vpack.c.bf16 %v139_v45, %v138_v44  ;;  %v108_v54 = vld [vmem:[%s6888_s1 + $0x290] sm:$0xff] }
  0x19   :  { %3615 = vmatpush3.bf16.msra.mxu0 %v3614_v16  ;;  %1129 = vmatprep.mubr.f32.mxu0 %v828_v32  ;;  %v829_v43 = vcombine.high %v827_v33, %v827_v33  ;;  %v122_v51 = vld [vmem:[%s6888_s1 + $0x300] sm:$0xff]  ;;  %v123_v53 = vld [vmem:[%s6888_s1 + $0x308] sm:$0xff]  ;;  %v109_v55 = vld [vmem:[%s6888_s1 + $0x298] sm:$0xff]  ;;  %v3658_v58 = vpack.c.bf16 %v91_v50, %v90_v49 }
  0x1a   :  { %3617 = vmatprep.subr.bf16.mxu0 %v3616_v19  ;;  %v140_v56 = vld [vmem:[%s6888_s1 + $0x390] sm:$0xff]  ;;  %v141_v57 = vld [vmem:[%s6888_s1 + $0x398] sm:$0xff]  ;;  %v3690_v59 = vpack.c.bf16 %v123_v53, %v122_v51  ;;  %v3660_v60 = vpack.c.bf16 %v109_v55, %v108_v54  ;;  %v110_v2 = vld [vmem:[%s6888_s1 + $0x2a0] sm:$0xff] }
  0x1b   :  { %3647 = vmatpush3.bf16.msra.mxu1 %v3646_v18  ;;  %1199 = vmatprep.mubr.f32.mxu1 %v829_v43  ;;  %v92_v61 = vld [vmem:[%s6888_s1 + $0x210] sm:$0xff]  ;;  %v93_v62 = vld [vmem:[%s6888_s1 + $0x218] sm:$0xff]  ;;  %v3692_v0 = vpack.c.bf16 %v141_v57, %v140_v56  ;;  %v111_v3 = vld [vmem:[%s6888_s1 + $0x2a8] sm:$0xff] }
  0x1c   :  { %3649 = vmatprep.subr.bf16.mxu1 %v3648_v23  ;;  %v124_v63 = vld [vmem:[%s6888_s1 + $0x310] sm:$0xff]  ;;  %v125_v1 = vld [vmem:[%s6888_s1 + $0x318] sm:$0xff]  ;;  %v142_v4 = vld [vmem:[%s6888_s1 + $0x3a0] sm:$0xff]  ;;  %v3662_v6 = vpack.c.bf16 %v93_v62, %v92_v61  ;;  %v3664_v8 = vpack.c.bf16 %v111_v3, %v110_v2 }
  0x1d   :  { %3619 = vmatpush3.bf16.msra.mxu0 %v3618_v31  ;;  %v143_v5 = vld [vmem:[%s6888_s1 + $0x3a8] sm:$0xff]  ;;  %v3694_v7 = vpack.c.bf16 %v125_v1, %v124_v63  ;;  %v94_v9 = vld [vmem:[%s6888_s1 + $0x220] sm:$0xff]  ;;  %v112_v15 = vld [vmem:[%s6888_s1 + $0x2b0] sm:$0xff] }
  0x1e   :  { %3621 = vmatprep.subr.bf16.mxu0 %v3620_v35  ;;  %v95_v10 = vld [vmem:[%s6888_s1 + $0x228] sm:$0xff]  ;;  %v126_v11 = vld [vmem:[%s6888_s1 + $0x320] sm:$0xff]  ;;  %v3696_v12 = vpack.c.bf16 %v143_v5, %v142_v4  ;;  %v113_v16 = vld [vmem:[%s6888_s1 + $0x2b8] sm:$0xff] }
  0x1f   :  { %3651 = vmatpush3.bf16.msra.mxu1 %v3650_v34  ;;  %v127_v14 = vld [vmem:[%s6888_s1 + $0x328] sm:$0xff]  ;;  %v144_v17 = vld [vmem:[%s6888_s1 + $0x3b0] sm:$0xff]  ;;  %v145_v18 = vld [vmem:[%s6888_s1 + $0x3b8] sm:$0xff]  ;;  %v3666_v19 = vpack.c.bf16 %v95_v10, %v94_v9  ;;  %v3668_v21 = vpack.c.bf16 %v113_v16, %v112_v15 }
  0x20   :  { %3653 = vmatprep.subr.bf16.mxu1 %v3652_v39  ;;  %v3698_v20 = vpack.c.bf16 %v127_v14, %v126_v11  ;;  %v96_v22 = vld [vmem:[%s6888_s1 + $0x230] sm:$0xff]  ;;  %v97_v23 = vld [vmem:[%s6888_s1 + $0x238] sm:$0xff]  ;;  %v3700_v25 = vpack.c.bf16 %v145_v18, %v144_v17  ;;  %v115_v28 = vld [vmem:[%s6888_s1 + $0x2c8] sm:$0xff] }
  0x21   :  { %3623 = vmatpush3.bf16.msra.mxu0 %v3622_v46  ;;  %v128_v24 = vld [vmem:[%s6888_s1 + $0x330] sm:$0xff]  ;;  %v129_v26 = vld [vmem:[%s6888_s1 + $0x338] sm:$0xff]  ;;  %v146_v29 = vld [vmem:[%s6888_s1 + $0x3c0] sm:$0xff]  ;;  %v3670_v32 = vpack.c.bf16 %v97_v23, %v96_v22 }
  0x22   :  { %3657 = vmatprep.subr.bf16.mxu0 %v3656_v48  ;;  %v147_v30 = vld [vmem:[%s6888_s1 + $0x3c8] sm:$0xff]  ;;  %v3702_v35 = vpack.c.bf16 %v129_v26, %v128_v24  ;;  %v98_v37 = vld [vmem:[%s6888_s1 + $0x240] sm:$0xff]  ;;  %v116_v42 = vld [vmem:[%s6888_s1 + $0x2d0] sm:$0xff] }
  0x23   :  { %3655 = vmatpush3.bf16.msra.mxu1 %v3654_v47  ;;  %v15_v31 = vld [vmem:[%s6889_s0 + $0x8] sm:$0xff]  ;;  %v130_v39 = vld [vmem:[%s6888_s1 + $0x340] sm:$0xff]  ;;  %v3704_v40 = vpack.c.bf16 %v147_v30, %v146_v29  ;;  %v117_v43 = vld [vmem:[%s6888_s1 + $0x2d8] sm:$0xff] }
  0x24   :  { %3689 = vmatprep.subr.bf16.mxu1 %v3688_v52  ;;  %1130 = vmatmul.mubr.f32.vlgmr.msra.gmra.mrb[0].mxu0 %v820_v27  ;;  %v114_v27 = vld [vmem:[%s6888_s1 + $0x2c0] sm:$0xff]  ;;  %v830_v34 = vcombine.high %v15_v31, %v15_v31  ;;  %v99_v38 = vld [vmem:[%s6888_s1 + $0x248] sm:$0xff]  ;;  %v148_v46 = vld [vmem:[%s6888_s1 + $0x3d0] sm:$0xff]  ;;  %v3676_v51 = vpack.c.bf16 %v117_v43, %v116_v42 }
  0x25   :  { %3659 = vmatpush3.bf16.msra.mxu0 %v3658_v58  ;;  %v3672_v36 = vpack.c.bf16 %v115_v28, %v114_v27  ;;  %v131_v41 = vld [vmem:[%s6888_s1 + $0x348] sm:$0xff]  ;;  %v149_v47 = vld [vmem:[%s6888_s1 + $0x3d8] sm:$0xff]  ;;  %v3674_v48 = vpack.c.bf16 %v99_v38, %v98_v37  ;;  %v100_v52 = vld [vmem:[%s6888_s1 + $0x250] sm:$0xff] }
  0x26   :  { %1200 = vmatmul.mubr.f32.vlgmr.msra.gmra.mrb[0].mxu1 %v827_v33  ;;  %3661 = vmatprep.subr.bf16.mxu0 %v3660_v60  ;;  %v4705_v33 = vrot.slane %v15_v31, %v4544_v13  ;;  %v4728_v45 = vrot.slane %v830_v34, %v4544_v13  ;;  %v3706_v50 = vpack.c.bf16 %v131_v41, %v130_v39  ;;  %v101_v53 = vld [vmem:[%s6888_s1 + $0x258] sm:$0xff]  ;;  %v132_v54 = vld [vmem:[%s6888_s1 + $0x350] sm:$0xff]  ;;  %v118_v57 = vld [vmem:[%s6888_s1 + $0x2e0] sm:$0xff] }
  0x27   :  { %3691 = vmatpush3.bf16.msra.mxu1 %v3690_v59  ;;  %v3708_v55 = vpack.c.bf16 %v149_v47, %v148_v46  ;;  %v133_v56 = vld [vmem:[%s6888_s1 + $0x358] sm:$0xff]  ;;  %v119_v58 = vld [vmem:[%s6888_s1 + $0x2e8] sm:$0xff]  ;;  %v150_v59 = vld [vmem:[%s6888_s1 + $0x3e0] sm:$0xff]  ;;  %v3678_v61 = vpack.c.bf16 %v101_v53, %v100_v52 }
  0x28   :  { %3693 = vmatprep.subr.bf16.mxu1 %v3692_v0  ;;  %v845_v44 = vcombine.high %v4705_v33, %v4705_v33  ;;  %v846_v49 = vcombine.high %v4728_v45, %v4728_v45  ;;  %v151_v60 = vld [vmem:[%s6888_s1 + $0x3e8] sm:$0xff]  ;;  %v3710_v62 = vpack.c.bf16 %v133_v56, %v132_v54  ;;  %v3680_v63 = vpack.c.bf16 %v119_v58, %v118_v57  ;;  %v102_v0 = vld [vmem:[%s6888_s1 + $0x260] sm:$0xff]  ;;  %v120_v5 = vld [vmem:[%s6888_s1 + $0x2f0] sm:$0xff] }
  0x29   :  { %3663 = vmatpush3.bf16.msra.mxu0 %v3662_v6  ;;  %v103_v1 = vld [vmem:[%s6888_s1 + $0x268] sm:$0xff]  ;;  %v134_v2 = vld [vmem:[%s6888_s1 + $0x360] sm:$0xff]  ;;  %v3712_v3 = vpack.c.bf16 %v151_v60, %v150_v59  ;;  %v121_v6 = vld [vmem:[%s6888_s1 + $0x2f8] sm:$0xff] }
  0x2a   :  { %3665 = vmatprep.subr.bf16.mxu0 %v3664_v8  ;;  %1269 = vmatprep.mubr.f32.mxu0 %v845_v44  ;;  %v135_v4 = vld [vmem:[%s6888_s1 + $0x368] sm:$0xff]  ;;  %v153_v8 = vld [vmem:[%s6888_s1 + $0x3f8] sm:$0xff]  ;;  %v3682_v9 = vpack.c.bf16 %v103_v1, %v102_v0  ;;  %v3684_v11 = vpack.c.bf16 %v121_v6, %v120_v5  ;;  %v136_v15 = vld [vmem:[%s6888_s1 + $0x370] sm:$0xff] }
  0x2b   :  { %3695 = vmatpush3.bf16.msra.mxu1 %v3694_v7  ;;  %1339 = vmatprep.mubr.f32.mxu1 %v846_v49  ;;  %v152_v7 = vld [vmem:[%s6888_s1 + $0x3f0] sm:$0xff]  ;;  %v3714_v10 = vpack.c.bf16 %v135_v4, %v134_v2  ;;  %v105_v14 = vld [vmem:[%s6888_s1 + $0x278] sm:$0xff]  ;;  %v170_v18 = vld [vmem:[%s6888_s1 + $0x480] sm:$0xff] }
  0x2c   :  { %3697 = vmatprep.subr.bf16.mxu1 %v3696_v12  ;;  %v104_v12 = vld [vmem:[%s6888_s1 + $0x270] sm:$0xff]  ;;  %v3716_v16 = vpack.c.bf16 %v153_v8, %v152_v7  ;;  %v137_v17 = vld [vmem:[%s6888_s1 + $0x378] sm:$0xff]  ;;  %v154_v23 = vld [vmem:[%s6888_s1 + $0x400] sm:$0xff] }
  0x2d   :  { %3667 = vmatpush3.bf16.msra.mxu0 %v3666_v19  ;;  %v171_v19 = vld [vmem:[%s6888_s1 + $0x488] sm:$0xff]  ;;  %v3686_v22 = vpack.c.bf16 %v105_v14, %v104_v12  ;;  %v3718_v24 = vpack.c.bf16 %v137_v17, %v136_v15  ;;  %v186_v27 = vld [vmem:[%s6888_s1 + $0x500] sm:$0xff]  ;;  %v172_v30 = vld [vmem:[%s6888_s1 + $0x490] sm:$0xff] }
  0x2e   :  { %3669 = vmatprep.subr.bf16.mxu0 %v3668_v21  ;;  %v203_v21 = vld [vmem:[%s6888_s1 + $0x588] sm:$0xff]  ;;  %v173_v31 = vld [vmem:[%s6888_s1 + $0x498] sm:$0xff]  ;;  %v16_v37 = vld [vmem:[%s6889_s0 + $0x10] sm:$0xff] }
  0x2f   :  { %3699 = vmatpush3.bf16.msra.mxu1 %v3698_v20  ;;  %v202_v20 = vld [vmem:[%s6888_s1 + $0x580] sm:$0xff]  ;;  %v155_v26 = vld [vmem:[%s6888_s1 + $0x408] sm:$0xff]  ;;  %v205_v34 = vld [vmem:[%s6888_s1 + $0x598] sm:$0xff]  ;;  %v3724_v38 = vpack.c.bf16 %v173_v31, %v172_v30  ;;  %v4847_v42 = vrot.slane %v16_v37, %v4544_v13  ;;  %v847_v43 = vcombine.high %v16_v37, %v16_v37 }
  0x30   :  { %3701 = vmatprep.subr.bf16.mxu1 %v3700_v25  ;;  %v3720_v25 = vpack.c.bf16 %v171_v19, %v170_v18  ;;  %v187_v28 = vld [vmem:[%s6888_s1 + $0x508] sm:$0xff]  ;;  %v3752_v29 = vpack.c.bf16 %v203_v21, %v202_v20  ;;  %v156_v39 = vld [vmem:[%s6888_s1 + $0x410] sm:$0xff]  ;;  %v189_v46 = vld [vmem:[%s6888_s1 + $0x518] sm:$0xff] }
  0x31   :  { %3671 = vmatpush3.bf16.msra.mxu0 %v3670_v32  ;;  %v204_v32 = vld [vmem:[%s6888_s1 + $0x590] sm:$0xff]  ;;  %v174_v47 = vld [vmem:[%s6888_s1 + $0x4a0] sm:$0xff]  ;;  %v4868_v52 = vrot.slane %v847_v43, %v4544_v13  ;;  %v159_v56 = vld [vmem:[%s6888_s1 + $0x428] sm:$0xff] }
  0x32   :  { %3673 = vmatprep.subr.bf16.mxu0 %v3672_v36  ;;  %v3754_v36 = vpack.c.bf16 %v187_v28, %v186_v27  ;;  %v188_v41 = vld [vmem:[%s6888_s1 + $0x510] sm:$0xff]  ;;  %v3756_v44 = vpack.c.bf16 %v205_v34, %v204_v32  ;;  %v206_v49 = vld [vmem:[%s6888_s1 + $0x5a0] sm:$0xff]  ;;  %v191_v59 = vld [vmem:[%s6888_s1 + $0x528] sm:$0xff] }
  0x33   :  { %3703 = vmatpush3.bf16.msra.mxu1 %v3702_v35  ;;  %v3722_v35 = vpack.c.bf16 %v155_v26, %v154_v23  ;;  %v190_v57 = vld [vmem:[%s6888_s1 + $0x520] sm:$0xff]  ;;  %v176_v60 = vld [vmem:[%s6888_s1 + $0x4b0] sm:$0xff]  ;;  %v161_v4 = vld [vmem:[%s6888_s1 + $0x438] sm:$0xff] }
  0x34   :  { %3705 = vmatprep.subr.bf16.mxu1 %v3704_v40  ;;  %v157_v40 = vld [vmem:[%s6888_s1 + $0x418] sm:$0xff]  ;;  %v3762_v1 = vpack.c.bf16 %v191_v59, %v190_v57  ;;  %v192_v5 = vld [vmem:[%s6888_s1 + $0x530] sm:$0xff]  ;;  %v178_v8 = vld [vmem:[%s6888_s1 + $0x4c0] sm:$0xff] }
  0x35   :  { %3675 = vmatpush3.bf16.msra.mxu0 %v3674_v48  ;;  %v175_v48 = vld [vmem:[%s6888_s1 + $0x4a8] sm:$0xff]  ;;  %v3726_v53 = vpack.c.bf16 %v157_v40, %v156_v39  ;;  %v193_v7 = vld [vmem:[%s6888_s1 + $0x538] sm:$0xff]  ;;  %v194_v18 = vld [vmem:[%s6888_s1 + $0x540] sm:$0xff] }
  0x36   :  { %3677 = vmatprep.subr.bf16.mxu0 %v3676_v51  ;;  %v862_v51 = vcombine.high %v4847_v42, %v4847_v42  ;;  %v3728_v54 = vpack.c.bf16 %v175_v48, %v174_v47  ;;  %v3766_v14 = vpack.c.bf16 %v193_v7, %v192_v5  ;;  %v163_v17 = vld [vmem:[%s6888_s1 + $0x448] sm:$0xff]  ;;  %v180_v21 = vld [vmem:[%s6888_s1 + $0x4d0] sm:$0xff]  ;;  %v197_v32 = vld [vmem:[%s6888_s1 + $0x558] sm:$0xff] }
  0x37   :  { %3707 = vmatpush3.bf16.msra.mxu1 %v3706_v50  ;;  %v207_v50 = vld [vmem:[%s6888_s1 + $0x5a8] sm:$0xff]  ;;  %v212_v23 = vld [vmem:[%s6888_s1 + $0x5d0] sm:$0xff]  ;;  %v182_v34 = vld [vmem:[%s6888_s1 + $0x4e0] sm:$0xff] }
  0x38   :  { %3709 = vmatprep.subr.bf16.mxu1 %v3708_v55  ;;  %v158_v55 = vld [vmem:[%s6888_s1 + $0x420] sm:$0xff]  ;;  %v3760_v58 = vpack.c.bf16 %v207_v50, %v206_v49  ;;  %v195_v20 = vld [vmem:[%s6888_s1 + $0x548] sm:$0xff]  ;;  %v164_v28 = vld [vmem:[%s6888_s1 + $0x450] sm:$0xff] }
  0x39   :  { %3679 = vmatpush3.bf16.msra.mxu0 %v3678_v61  ;;  %v177_v61 = vld [vmem:[%s6888_s1 + $0x4b8] sm:$0xff]  ;;  %v3730_v0 = vpack.c.bf16 %v159_v56, %v158_v55  ;;  %v3770_v26 = vpack.c.bf16 %v195_v20, %v194_v18  ;;  %v196_v30 = vld [vmem:[%s6888_s1 + $0x550] sm:$0xff]  ;;  %v215_v37 = vld [vmem:[%s6888_s1 + $0x5e8] sm:$0xff] }
  0x3a   :  { %3681 = vmatprep.subr.bf16.mxu0 %v3680_v63  ;;  %v209_v63 = vld [vmem:[%s6888_s1 + $0x5b8] sm:$0xff]  ;;  %v3732_v2 = vpack.c.bf16 %v177_v61, %v176_v60  ;;  %v3774_v39 = vpack.c.bf16 %v197_v32, %v196_v30  ;;  %v167_v43 = vld [vmem:[%s6888_s1 + $0x468] sm:$0xff]  ;;  %v184_v48 = vld [vmem:[%s6888_s1 + $0x4f0] sm:$0xff] }
  0x3b   :  { %3711 = vmatpush3.bf16.msra.mxu1 %v3710_v62  ;;  %v208_v62 = vld [vmem:[%s6888_s1 + $0x5b0] sm:$0xff]  ;;  %v199_v47 = vld [vmem:[%s6888_s1 + $0x568] sm:$0xff]  ;;  %v185_v49 = vld [vmem:[%s6888_s1 + $0x4f8] sm:$0xff] }
  0x3c   :  { %3713 = vmatprep.subr.bf16.mxu1 %v3712_v3  ;;  %v160_v3 = vld [vmem:[%s6888_s1 + $0x430] sm:$0xff]  ;;  %v3764_v6 = vpack.c.bf16 %v209_v63, %v208_v62  ;;  %v3748_v55 = vpack.c.bf16 %v185_v49, %v184_v48  ;;  %v169_v57 = vld [vmem:[%s6888_s1 + $0x478] sm:$0xff]  ;;  %v234_v60 = vld [vmem:[%s6888_s1 + $0x680] sm:$0xff] }
  0x3d   :  { %3683 = vmatpush3.bf16.msra.mxu0 %v3682_v9  ;;  %v179_v9 = vld [vmem:[%s6888_s1 + $0x4c8] sm:$0xff]  ;;  %v3734_v12 = vpack.c.bf16 %v161_v4, %v160_v3  ;;  %v216_v50 = vld [vmem:[%s6888_s1 + $0x5f0] sm:$0xff]  ;;  %v201_v59 = vld [vmem:[%s6888_s1 + $0x578] sm:$0xff] }
  0x3e   :  { %3685 = vmatprep.subr.bf16.mxu0 %v3684_v11  ;;  %v211_v11 = vld [vmem:[%s6888_s1 + $0x5c8] sm:$0xff]  ;;  %v3736_v15 = vpack.c.bf16 %v179_v9, %v178_v8  ;;  %v168_v56 = vld [vmem:[%s6888_s1 + $0x470] sm:$0xff]  ;;  %v266_v62 = vld [vmem:[%s6888_s1 + $0x780] sm:$0xff] }
  0x3f   :  { %3715 = vmatpush3.bf16.msra.mxu1 %v3714_v10  ;;  %v210_v10 = vld [vmem:[%s6888_s1 + $0x5c0] sm:$0xff]  ;;  %v235_v61 = vld [vmem:[%s6888_s1 + $0x688] sm:$0xff]  ;;  %v236_v9 = vld [vmem:[%s6888_s1 + $0x690] sm:$0xff] }
  0x40   :  { %3717 = vmatprep.subr.bf16.mxu1 %v3716_v16  ;;  %v162_v16 = vld [vmem:[%s6888_s1 + $0x440] sm:$0xff]  ;;  %v3768_v19 = vpack.c.bf16 %v211_v11, %v210_v10  ;;  %v267_v63 = vld [vmem:[%s6888_s1 + $0x788] sm:$0xff]  ;;  %v3784_v3 = vpack.c.bf16 %v235_v61, %v234_v60  ;;  %v237_v10 = vld [vmem:[%s6888_s1 + $0x698] sm:$0xff] }
  0x41   :  { %3687 = vmatpush3.bf16.msra.mxu0 %v3686_v22  ;;  %v181_v22 = vld [vmem:[%s6888_s1 + $0x4d8] sm:$0xff]  ;;  %v218_v4 = vld [vmem:[%s6888_s1 + $0x600] sm:$0xff]  ;;  %v219_v5 = vld [vmem:[%s6888_s1 + $0x608] sm:$0xff]  ;;  %v3816_v7 = vpack.c.bf16 %v267_v63, %v266_v62  ;;  %v3788_v18 = vpack.c.bf16 %v237_v10, %v236_v9 }
  0x42   :  { %3721 = vmatprep.subr.bf16.mxu0 %v3720_v25  ;;  %v3738_v25 = vpack.c.bf16 %v163_v17, %v162_v16  ;;  %v3740_v27 = vpack.c.bf16 %v181_v22, %v180_v21  ;;  %v251_v8 = vld [vmem:[%s6888_s1 + $0x708] sm:$0xff]  ;;  %v3786_v16 = vpack.c.bf16 %v219_v5, %v218_v4  ;;  %v221_v20 = vld [vmem:[%s6888_s1 + $0x618] sm:$0xff]  ;;  %v252_v21 = vld [vmem:[%s6888_s1 + $0x710] sm:$0xff] }
  0x43   :  { %3719 = vmatpush3.bf16.msra.mxu1 %v3718_v24  ;;  %v213_v24 = vld [vmem:[%s6888_s1 + $0x5d8] sm:$0xff]  ;;  %v256_v48 = vld [vmem:[%s6888_s1 + $0x730] sm:$0xff]  ;;  %v259_v61 = vld [vmem:[%s6888_s1 + $0x748] sm:$0xff] }
  0x44   :  { %3753 = vmatprep.subr.bf16.mxu1 %v3752_v29  ;;  %1270 = vmatmul.mubr.f32.vlgmr.msra.gmra.mrb[2].mxu0 %v4705_v33  ;;  %v3758_v33 = vpack.c.bf16 %v189_v46, %v188_v41  ;;  %v165_v29 = vld [vmem:[%s6888_s1 + $0x458] sm:$0xff]  ;;  %v3772_v31 = vpack.c.bf16 %v213_v24, %v212_v23  ;;  %v166_v41 = vld [vmem:[%s6888_s1 + $0x460] sm:$0xff]  ;;  %v244_v62 = vld [vmem:[%s6888_s1 + $0x6d0] sm:$0xff] }
  0x45   :  { %3723 = vmatpush3.bf16.msra.mxu0 %v3722_v35  ;;  %1409 = vmatprep.mubr.f32.mxu0 %v862_v51  ;;  %v183_v35 = vld [vmem:[%s6888_s1 + $0x4e8] sm:$0xff]  ;;  %v217_v51 = vld [vmem:[%s6888_s1 + $0x5f8] sm:$0xff]  ;;  %v238_v24 = vld [vmem:[%s6888_s1 + $0x6a0] sm:$0xff] }
  0x46   :  { %1340 = vmatmul.mubr.f32.vlgmr.msra.gmra.mrb[2].mxu1 %v4728_v45  ;;  %3725 = vmatprep.subr.bf16.mxu0 %v3724_v38  ;;  %v863_v45 = vcombine.high %v4868_v52, %v4868_v52  ;;  %v3742_v38 = vpack.c.bf16 %v165_v29, %v164_v28  ;;  %v3744_v40 = vpack.c.bf16 %v183_v35, %v182_v34  ;;  %v253_v23 = vld [vmem:[%s6888_s1 + $0x718] sm:$0xff]  ;;  %v271_v28 = vld [vmem:[%s6888_s1 + $0x7a8] sm:$0xff]  ;;  %v254_v35 = vld [vmem:[%s6888_s1 + $0x720] sm:$0xff] }
  0x47   :  { %3755 = vmatpush3.bf16.msra.mxu1 %v3754_v36  ;;  %v214_v36 = vld [vmem:[%s6888_s1 + $0x5e0] sm:$0xff]  ;;  %v223_v34 = vld [vmem:[%s6888_s1 + $0x628] sm:$0xff]  ;;  %v245_v63 = vld [vmem:[%s6888_s1 + $0x6d8] sm:$0xff] }
  0x48   :  { %3757 = vmatprep.subr.bf16.mxu1 %v3756_v44  ;;  %1479 = vmatprep.mubr.f32.mxu1 %v863_v45  ;;  %v198_v44 = vld [vmem:[%s6888_s1 + $0x560] sm:$0xff]  ;;  %v3776_v46 = vpack.c.bf16 %v215_v37, %v214_v36  ;;  %v200_v45 = vld [vmem:[%s6888_s1 + $0x570] sm:$0xff]  ;;  %v3804_v4 = vpack.c.bf16 %v245_v63, %v244_v62  ;;  %v261_v9 = vld [vmem:[%s6888_s1 + $0x758] sm:$0xff] }
  0x49   :  { %3727 = vmatpush3.bf16.msra.mxu0 %v3726_v53  ;;  %v3746_v53 = vpack.c.bf16 %v167_v43, %v166_v41  ;;  %v240_v37 = vld [vmem:[%s6888_s1 + $0x6b0] sm:$0xff]  ;;  %v246_v10 = vld [vmem:[%s6888_s1 + $0x6e0] sm:$0xff] }
  0x4a   :  { %3729 = vmatprep.subr.bf16.mxu0 %v3728_v54  ;;  %v3778_v54 = vpack.c.bf16 %v199_v47, %v198_v44  ;;  %v225_v47 = vld [vmem:[%s6888_s1 + $0x638] sm:$0xff]  ;;  %v228_v5 = vld [vmem:[%s6888_s1 + $0x650] sm:$0xff] }
  0x4b   :  { %3759 = vmatpush3.bf16.msra.mxu1 %v3758_v33  ;;  %v17_v33 = vld [vmem:[%s6889_s0 + $0x18] sm:$0xff]  ;;  %v316_v62 = vld [vmem:[%s6888_s1 + $0x910] sm:$0xff] }
  0x4c   :  { %3761 = vmatprep.subr.bf16.mxu1 %v3760_v58  ;;  %v3780_v58 = vpack.c.bf16 %v217_v51, %v216_v50  ;;  %v5039_v11 = vrot.slane %v17_v33, %v4544_v13  ;;  %v257_v50 = vld [vmem:[%s6888_s1 + $0x738] sm:$0xff]  ;;  %v242_v51 = vld [vmem:[%s6888_s1 + $0x6c0] sm:$0xff] }
  0x4d   :  { %3731 = vmatpush3.bf16.msra.mxu0 %v3730_v0  ;;  %v864_v0 = vcombine.high %v17_v33, %v17_v33  ;;  %v274_v33 = vld [vmem:[%s6888_s1 + $0x7c0] sm:$0xff] }
  0x4e   :  { %3733 = vmatprep.subr.bf16.mxu0 %v3732_v2  ;;  %v3782_v2 = vpack.c.bf16 %v201_v59, %v200_v45  ;;  %v226_v45 = vld [vmem:[%s6888_s1 + $0x640] sm:$0xff] }
  0x4f   :  { %3763 = vmatpush3.bf16.msra.mxu1 %v3762_v1  ;;  %v3750_v1 = vpack.c.bf16 %v169_v57, %v168_v56  ;;  %v3830_v56 = vpack.c.bf16 %v257_v50, %v256_v48  ;;  %v258_v59 = vld [vmem:[%s6888_s1 + $0x740] sm:$0xff]  ;;  %v283_v48 = vld [vmem:[%s6888_s1 + $0x808] sm:$0xff] }
  0x50   :  { %3765 = vmatprep.subr.bf16.mxu1 %v3764_v6  ;;  %v250_v6 = vld [vmem:[%s6888_s1 + $0x700] sm:$0xff] }
  0x51   :  { %3735 = vmatpush3.bf16.msra.mxu0 %v3734_v12  ;;  %v268_v12 = vld [vmem:[%s6888_s1 + $0x790] sm:$0xff]  ;;  %v3818_v17 = vpack.c.bf16 %v251_v8, %v250_v6  ;;  %v229_v6 = vld [vmem:[%s6888_s1 + $0x658] sm:$0xff] }
  0x52   :  { %3737 = vmatprep.subr.bf16.mxu0 %v3736_v15  ;;  %v5048_v15 = vrot.slane %v864_v0, %v4544_v13  ;;  %v276_v0 = vld [vmem:[%s6888_s1 + $0x7d0] sm:$0xff] }
  0x53   :  { %3767 = vmatpush3.bf16.msra.mxu1 %v3766_v14  ;;  %v269_v14 = vld [vmem:[%s6888_s1 + $0x798] sm:$0xff] }
  0x54   :  { %3769 = vmatprep.subr.bf16.mxu1 %v3768_v19  ;;  %v220_v19 = vld [vmem:[%s6888_s1 + $0x610] sm:$0xff]  ;;  %v3820_v22 = vpack.c.bf16 %v269_v14, %v268_v12  ;;  %v880_v29 = vcombine.high %v5048_v15, %v5048_v15  ;;  %v247_v12 = vld [vmem:[%s6888_s1 + $0x6e8] sm:$0xff]  ;;  %v278_v14 = vld [vmem:[%s6888_s1 + $0x7e0] sm:$0xff] }
  0x55   :  { %3739 = vmatpush3.bf16.msra.mxu0 %v3738_v25  ;;  %v239_v25 = vld [vmem:[%s6888_s1 + $0x6a8] sm:$0xff]  ;;  %v3790_v30 = vpack.c.bf16 %v221_v20, %v220_v19  ;;  %v3808_v19 = vpack.c.bf16 %v247_v12, %v246_v10  ;;  %v230_v20 = vld [vmem:[%s6888_s1 + $0x660] sm:$0xff] }
  0x56   :  { %3741 = vmatprep.subr.bf16.mxu0 %v3740_v27  ;;  %v270_v27 = vld [vmem:[%s6888_s1 + $0x7a0] sm:$0xff]  ;;  %v3792_v32 = vpack.c.bf16 %v239_v25, %v238_v24  ;;  %v263_v24 = vld [vmem:[%s6888_s1 + $0x768] sm:$0xff]  ;;  %v248_v25 = vld [vmem:[%s6888_s1 + $0x6f0] sm:$0xff] }
  0x57   :  { %3771 = vmatpush3.bf16.msra.mxu1 %v3770_v26  ;;  %v879_v26 = vcombine.high %v5039_v11, %v5039_v11  ;;  %v3824_v36 = vpack.c.bf16 %v271_v28, %v270_v27  ;;  %v280_v27 = vld [vmem:[%s6888_s1 + $0x7f0] sm:$0xff]  ;;  %v281_v28 = vld [vmem:[%s6888_s1 + $0x7f8] sm:$0xff]  ;;  %v287_v10 = vld [vmem:[%s6888_s1 + $0x828] sm:$0xff] }
  0x58   :  { %3773 = vmatprep.subr.bf16.mxu1 %v3772_v31  ;;  %v3822_v31 = vpack.c.bf16 %v253_v23, %v252_v21  ;;  %v231_v21 = vld [vmem:[%s6888_s1 + $0x668] sm:$0xff]  ;;  %v318_v12 = vld [vmem:[%s6888_s1 + $0x920] sm:$0xff] }
  0x59   :  { %3743 = vmatpush3.bf16.msra.mxu0 %v3742_v38  ;;  %v241_v38 = vld [vmem:[%s6888_s1 + $0x6b8] sm:$0xff] }
  0x5a   :  { %3745 = vmatprep.subr.bf16.mxu0 %v3744_v40  ;;  %v273_v40 = vld [vmem:[%s6888_s1 + $0x7b8] sm:$0xff]  ;;  %v3796_v44 = vpack.c.bf16 %v241_v38, %v240_v37  ;;  %v298_v37 = vld [vmem:[%s6888_s1 + $0x880] sm:$0xff]  ;;  %v299_v38 = vld [vmem:[%s6888_s1 + $0x888] sm:$0xff] }
  0x5b   :  { %3775 = vmatpush3.bf16.msra.mxu1 %v3774_v39  ;;  %v272_v39 = vld [vmem:[%s6888_s1 + $0x7b0] sm:$0xff] }
  0x5c   :  { %3777 = vmatprep.subr.bf16.mxu1 %v3776_v46  ;;  %v224_v46 = vld [vmem:[%s6888_s1 + $0x630] sm:$0xff]  ;;  %v3828_v49 = vpack.c.bf16 %v273_v40, %v272_v39  ;;  %v330_v39 = vld [vmem:[%s6888_s1 + $0x980] sm:$0xff]  ;;  %v331_v40 = vld [vmem:[%s6888_s1 + $0x988] sm:$0xff] }
  0x5d   :  { %3747 = vmatpush3.bf16.msra.mxu0 %v3746_v53  ;;  %v243_v53 = vld [vmem:[%s6888_s1 + $0x6c8] sm:$0xff]  ;;  %v3880_v50 = vpack.c.bf16 %v331_v40, %v330_v39  ;;  %v308_v39 = vld [vmem:[%s6888_s1 + $0x8d0] sm:$0xff]  ;;  %v309_v40 = vld [vmem:[%s6888_s1 + $0x8d8] sm:$0xff] }
  0x5e   :  { %3749 = vmatprep.subr.bf16.mxu0 %v3748_v55  ;;  %v3798_v55 = vpack.c.bf16 %v225_v47, %v224_v46  ;;  %v3800_v57 = vpack.c.bf16 %v243_v53, %v242_v51  ;;  %v3848_v46 = vpack.c.bf16 %v299_v38, %v298_v37  ;;  %v282_v47 = vld [vmem:[%s6888_s1 + $0x800] sm:$0xff]  ;;  %v315_v51 = vld [vmem:[%s6888_s1 + $0x908] sm:$0xff]  ;;  %v300_v53 = vld [vmem:[%s6888_s1 + $0x890] sm:$0xff] }
  0x5f   :  { %3779 = vmatpush3.bf16.msra.mxu1 %v3778_v54  ;;  %v275_v54 = vld [vmem:[%s6888_s1 + $0x7c8] sm:$0xff] }
  0x60   :  { %3781 = vmatprep.subr.bf16.mxu1 %v3780_v58  ;;  %v227_v58 = vld [vmem:[%s6888_s1 + $0x648] sm:$0xff]  ;;  %v3832_v60 = vpack.c.bf16 %v275_v54, %v274_v33  ;;  %v301_v33 = vld [vmem:[%s6888_s1 + $0x898] sm:$0xff] }
  0x61   :  { %3751 = vmatpush3.bf16.msra.mxu0 %v3750_v1  ;;  %v277_v1 = vld [vmem:[%s6888_s1 + $0x7d8] sm:$0xff]  ;;  %v323_v38 = vld [vmem:[%s6888_s1 + $0x948] sm:$0xff] }
  0x62   :  { %3785 = vmatprep.subr.bf16.mxu0 %v3784_v3  ;;  %v3834_v3 = vpack.c.bf16 %v259_v61, %v258_v59  ;;  %v3836_v8 = vpack.c.bf16 %v277_v1, %v276_v0  ;;  %v3852_v59 = vpack.c.bf16 %v301_v33, %v300_v53  ;;  %v285_v61 = vld [vmem:[%s6888_s1 + $0x818] sm:$0xff]  ;;  %v302_v1 = vld [vmem:[%s6888_s1 + $0x8a0] sm:$0xff] }
  0x63   :  { %3783 = vmatpush3.bf16.msra.mxu1 %v3782_v2  ;;  %v3802_v2 = vpack.c.bf16 %v227_v58, %v226_v45  ;;  %v3850_v45 = vpack.c.bf16 %v283_v48, %v282_v47  ;;  %v317_v0 = vld [vmem:[%s6888_s1 + $0x918] sm:$0xff]  ;;  %v3868_v47 = vpack.c.bf16 %v309_v40, %v308_v39  ;;  %v292_v48 = vld [vmem:[%s6888_s1 + $0x850] sm:$0xff]  ;;  %v310_v33 = vld [vmem:[%s6888_s1 + $0x8e0] sm:$0xff] }
  0x64   :  { %3817 = vmatprep.subr.bf16.mxu1 %v3816_v7  ;;  %1410 = vmatmul.mubr.f32.vlgmr.msra.gmra.mrb[4].mxu0 %v4847_v42  ;;  %v222_v42 = vld [vmem:[%s6888_s1 + $0x620] sm:$0xff]  ;;  %v260_v7 = vld [vmem:[%s6888_s1 + $0x750] sm:$0xff]  ;;  %v325_v53 = vld [vmem:[%s6888_s1 + $0x958] sm:$0xff] }
  0x65   :  { %3787 = vmatpush3.bf16.msra.mxu0 %v3786_v16  ;;  %1549 = vmatprep.mubr.f32.mxu0 %v879_v26  ;;  %v3794_v41 = vpack.c.bf16 %v223_v34, %v222_v42  ;;  %v279_v16 = vld [vmem:[%s6888_s1 + $0x7e8] sm:$0xff]  ;;  %v249_v26 = vld [vmem:[%s6888_s1 + $0x6f8] sm:$0xff]  ;;  %v232_v42 = vld [vmem:[%s6888_s1 + $0x670] sm:$0xff] }
  0x66   :  { %1480 = vmatmul.mubr.f32.vlgmr.msra.gmra.mrb[4].mxu1 %v4868_v52  ;;  %3789 = vmatprep.subr.bf16.mxu0 %v3788_v18  ;;  %v255_v52 = vld [vmem:[%s6888_s1 + $0x728] sm:$0xff]  ;;  %v3838_v18 = vpack.c.bf16 %v261_v9, %v260_v7  ;;  %v3840_v23 = vpack.c.bf16 %v279_v16, %v278_v14  ;;  %v233_v34 = vld [vmem:[%s6888_s1 + $0x678] sm:$0xff]  ;;  %v304_v16 = vld [vmem:[%s6888_s1 + $0x8b0] sm:$0xff] }
  0x67   :  { %3819 = vmatpush3.bf16.msra.mxu1 %v3818_v17  ;;  %1619 = vmatprep.mubr.f32.mxu1 %v880_v29  ;;  %v3826_v43 = vpack.c.bf16 %v255_v52, %v254_v35  ;;  %v3806_v17 = vpack.c.bf16 %v229_v6, %v228_v5  ;;  %v3810_v29 = vpack.c.bf16 %v231_v21, %v230_v20  ;;  %v264_v35 = vld [vmem:[%s6888_s1 + $0x770] sm:$0xff]  ;;  %v265_v52 = vld [vmem:[%s6888_s1 + $0x778] sm:$0xff]  ;;  %v335_v5 = vld [vmem:[%s6888_s1 + $0x9a8] sm:$0xff] }
  0x68   :  { %3821 = vmatprep.subr.bf16.mxu1 %v3820_v22  ;;  %v262_v22 = vld [vmem:[%s6888_s1 + $0x760] sm:$0xff]  ;;  %v380_v39 = vld [vmem:[%s6888_s1 + $0xb10] sm:$0xff] }
  0x69   :  { %3791 = vmatpush3.bf16.msra.mxu0 %v3790_v30  ;;  %v18_v30 = vld [vmem:[%s6889_s0 + $0x20] sm:$0xff] }
  0x6a   :  { %3793 = vmatprep.subr.bf16.mxu0 %v3792_v32  ;;  %v3812_v32 = vpack.c.bf16 %v249_v26, %v248_v25  ;;  %v5246_v54 = vrot.slane %v18_v30, %v4544_v13  ;;  %v320_v25 = vld [vmem:[%s6888_s1 + $0x930] sm:$0xff] }
  0x6b   :  { %3823 = vmatpush3.bf16.msra.mxu1 %v3822_v31  ;;  %v3842_v31 = vpack.c.bf16 %v263_v24, %v262_v22  ;;  %v289_v24 = vld [vmem:[%s6888_s1 + $0x838] sm:$0xff] }
  0x6c   :  { %3825 = vmatprep.subr.bf16.mxu1 %v3824_v36  ;;  %v3844_v36 = vpack.c.bf16 %v281_v28, %v280_v27  ;;  %v321_v27 = vld [vmem:[%s6888_s1 + $0x938] sm:$0xff]  ;;  %v306_v28 = vld [vmem:[%s6888_s1 + $0x8c0] sm:$0xff] }
  0x6d   :  { %3795 = vmatpush3.bf16.msra.mxu0 %v3794_v41  ;;  %v881_v41 = vcombine.high %v18_v30, %v18_v30  ;;  %v338_v30 = vld [vmem:[%s6888_s1 + $0x9c0] sm:$0xff] }
  0x6e   :  { %3797 = vmatprep.subr.bf16.mxu0 %v3796_v44  ;;  %v3846_v44 = vpack.c.bf16 %v265_v52, %v264_v35  ;;  %v290_v35 = vld [vmem:[%s6888_s1 + $0x840] sm:$0xff] }
  0x6f   :  { %3827 = vmatpush3.bf16.msra.mxu1 %v3826_v43  ;;  %v3814_v43 = vpack.c.bf16 %v233_v34, %v232_v42  ;;  %v3894_v42 = vpack.c.bf16 %v321_v27, %v320_v25  ;;  %v322_v52 = vld [vmem:[%s6888_s1 + $0x940] sm:$0xff]  ;;  %v347_v25 = vld [vmem:[%s6888_s1 + $0xa08] sm:$0xff] }
  0x70   :  { %3829 = vmatprep.subr.bf16.mxu1 %v3828_v49  ;;  %v314_v49 = vld [vmem:[%s6888_s1 + $0x900] sm:$0xff] }
  0x71   :  { %3799 = vmatpush3.bf16.msra.mxu0 %v3798_v55  ;;  %v332_v55 = vld [vmem:[%s6888_s1 + $0x990] sm:$0xff]  ;;  %v3882_v58 = vpack.c.bf16 %v315_v51, %v314_v49  ;;  %v293_v49 = vld [vmem:[%s6888_s1 + $0x858] sm:$0xff] }
  0x72   :  { %3801 = vmatprep.subr.bf16.mxu0 %v3800_v57  ;;  %v5255_v57 = vrot.slane %v881_v41, %v4544_v13  ;;  %v340_v41 = vld [vmem:[%s6888_s1 + $0x9d0] sm:$0xff] }
  0x73   :  { %3831 = vmatpush3.bf16.msra.mxu1 %v3830_v56  ;;  %v333_v56 = vld [vmem:[%s6888_s1 + $0x998] sm:$0xff] }
  0x74   :  { %3833 = vmatprep.subr.bf16.mxu1 %v3832_v60  ;;  %v284_v60 = vld [vmem:[%s6888_s1 + $0x810] sm:$0xff]  ;;  %v3884_v63 = vpack.c.bf16 %v333_v56, %v332_v55  ;;  %v897_v6 = vcombine.high %v5255_v57, %v5255_v57  ;;  %v311_v55 = vld [vmem:[%s6888_s1 + $0x8e8] sm:$0xff]  ;;  %v342_v56 = vld [vmem:[%s6888_s1 + $0x9e0] sm:$0xff] }
  0x75   :  { %3803 = vmatpush3.bf16.msra.mxu0 %v3802_v2  ;;  %v303_v2 = vld [vmem:[%s6888_s1 + $0x8a8] sm:$0xff]  ;;  %v3854_v7 = vpack.c.bf16 %v285_v61, %v284_v60  ;;  %v3872_v60 = vpack.c.bf16 %v311_v55, %v310_v33  ;;  %v294_v61 = vld [vmem:[%s6888_s1 + $0x860] sm:$0xff] }
  0x76   :  { %3805 = vmatprep.subr.bf16.mxu0 %v3804_v4  ;;  %v334_v4 = vld [vmem:[%s6888_s1 + $0x9a0] sm:$0xff]  ;;  %v3856_v9 = vpack.c.bf16 %v303_v2, %v302_v1  ;;  %v327_v1 = vld [vmem:[%s6888_s1 + $0x968] sm:$0xff]  ;;  %v312_v2 = vld [vmem:[%s6888_s1 + $0x8f0] sm:$0xff] }
  0x77   :  { %3835 = vmatpush3.bf16.msra.mxu1 %v3834_v3  ;;  %v896_v3 = vcombine.high %v5246_v54, %v5246_v54  ;;  %v3888_v14 = vpack.c.bf16 %v335_v5, %v334_v4  ;;  %v344_v4 = vld [vmem:[%s6888_s1 + $0x9f0] sm:$0xff]  ;;  %v345_v5 = vld [vmem:[%s6888_s1 + $0x9f8] sm:$0xff]  ;;  %v351_v33 = vld [vmem:[%s6888_s1 + $0xa28] sm:$0xff] }
  0x78   :  { %3837 = vmatprep.subr.bf16.mxu1 %v3836_v8  ;;  %v3886_v8 = vpack.c.bf16 %v317_v0, %v316_v62  ;;  %v295_v62 = vld [vmem:[%s6888_s1 + $0x868] sm:$0xff]  ;;  %v382_v55 = vld [vmem:[%s6888_s1 + $0xb20] sm:$0xff] }
  0x79   :  { %3807 = vmatpush3.bf16.msra.mxu0 %v3806_v17  ;;  %v305_v17 = vld [vmem:[%s6888_s1 + $0x8b8] sm:$0xff] }
  0x7a   :  { %3809 = vmatprep.subr.bf16.mxu0 %v3808_v19  ;;  %v337_v19 = vld [vmem:[%s6888_s1 + $0x9b8] sm:$0xff]  ;;  %v3860_v22 = vpack.c.bf16 %v305_v17, %v304_v16  ;;  %v362_v16 = vld [vmem:[%s6888_s1 + $0xa80] sm:$0xff]  ;;  %v363_v17 = vld [vmem:[%s6888_s1 + $0xa88] sm:$0xff] }
  0x7b   :  { %3839 = vmatpush3.bf16.msra.mxu1 %v3838_v18  ;;  %v336_v18 = vld [vmem:[%s6888_s1 + $0x9b0] sm:$0xff] }
  0x7c   :  { %3841 = vmatprep.subr.bf16.mxu1 %v3840_v23  ;;  %v288_v23 = vld [vmem:[%s6888_s1 + $0x830] sm:$0xff]  ;;  %v3892_v26 = vpack.c.bf16 %v337_v19, %v336_v18  ;;  %v394_v18 = vld [vmem:[%s6888_s1 + $0xb80] sm:$0xff]  ;;  %v395_v19 = vld [vmem:[%s6888_s1 + $0xb88] sm:$0xff] }
  0x7d   :  { %3811 = vmatpush3.bf16.msra.mxu0 %v3810_v29  ;;  %v307_v29 = vld [vmem:[%s6888_s1 + $0x8c8] sm:$0xff]  ;;  %v3944_v27 = vpack.c.bf16 %v395_v19, %v394_v18  ;;  %v372_v18 = vld [vmem:[%s6888_s1 + $0xad0] sm:$0xff]  ;;  %v373_v19 = vld [vmem:[%s6888_s1 + $0xad8] sm:$0xff] }
  0x7e   :  { %3813 = vmatprep.subr.bf16.mxu0 %v3812_v32  ;;  %v3862_v32 = vpack.c.bf16 %v289_v24, %v288_v23  ;;  %v3864_v34 = vpack.c.bf16 %v307_v29, %v306_v28  ;;  %v3912_v23 = vpack.c.bf16 %v363_v17, %v362_v16  ;;  %v346_v24 = vld [vmem:[%s6888_s1 + $0xa00] sm:$0xff]  ;;  %v379_v28 = vld [vmem:[%s6888_s1 + $0xb08] sm:$0xff]  ;;  %v364_v29 = vld [vmem:[%s6888_s1 + $0xa90] sm:$0xff] }
  0x7f   :  { %3843 = vmatpush3.bf16.msra.mxu1 %v3842_v31  ;;  %v339_v31 = vld [vmem:[%s6888_s1 + $0x9c8] sm:$0xff] }
  0x80   :  { %3845 = vmatprep.subr.bf16.mxu1 %v3844_v36  ;;  %v291_v36 = vld [vmem:[%s6888_s1 + $0x848] sm:$0xff]  ;;  %v3896_v37 = vpack.c.bf16 %v339_v31, %v338_v30  ;;  %v365_v30 = vld [vmem:[%s6888_s1 + $0xa98] sm:$0xff] }
  0x81   :  { %3815 = vmatpush3.bf16.msra.mxu0 %v3814_v43  ;;  %v341_v43 = vld [vmem:[%s6888_s1 + $0x9d8] sm:$0xff]  ;;  %v387_v17 = vld [vmem:[%s6888_s1 + $0xb48] sm:$0xff] }
  0x82   :  { %3849 = vmatprep.subr.bf16.mxu0 %v3848_v46  ;;  %v3898_v46 = vpack.c.bf16 %v323_v38, %v322_v52  ;;  %v3900_v51 = vpack.c.bf16 %v341_v43, %v340_v41  ;;  %v3916_v52 = vpack.c.bf16 %v365_v30, %v364_v29  ;;  %v349_v38 = vld [vmem:[%s6888_s1 + $0xa18] sm:$0xff]  ;;  %v366_v43 = vld [vmem:[%s6888_s1 + $0xaa0] sm:$0xff] }
  0x83   :  { %3847 = vmatpush3.bf16.msra.mxu1 %v3846_v44  ;;  %v3866_v44 = vpack.c.bf16 %v291_v36, %v290_v35  ;;  %v3914_v35 = vpack.c.bf16 %v347_v25, %v346_v24  ;;  %v381_v41 = vld [vmem:[%s6888_s1 + $0xb18] sm:$0xff]  ;;  %v3932_v24 = vpack.c.bf16 %v373_v19, %v372_v18  ;;  %v356_v25 = vld [vmem:[%s6888_s1 + $0xa50] sm:$0xff]  ;;  %v374_v30 = vld [vmem:[%s6888_s1 + $0xae0] sm:$0xff] }
  0x84   :  { %3881 = vmatprep.subr.bf16.mxu1 %v3880_v50  ;;  %1550 = vmatmul.mubr.f32.vlgmr.msra.gmra.mrb[6].mxu0 %v5039_v11  ;;  %v286_v11 = vld [vmem:[%s6888_s1 + $0x820] sm:$0xff]  ;;  %v324_v50 = vld [vmem:[%s6888_s1 + $0x950] sm:$0xff]  ;;  %v389_v29 = vld [vmem:[%s6888_s1 + $0xb58] sm:$0xff] }
  0x85   :  { %3851 = vmatpush3.bf16.msra.mxu0 %v3850_v45  ;;  %1689 = vmatprep.mubr.f32.mxu0 %v896_v3  ;;  %v3858_v20 = vpack.c.bf16 %v287_v10, %v286_v11  ;;  %v343_v45 = vld [vmem:[%s6888_s1 + $0x9e8] sm:$0xff]  ;;  %v313_v3 = vld [vmem:[%s6888_s1 + $0x8f8] sm:$0xff]  ;;  %v296_v11 = vld [vmem:[%s6888_s1 + $0x870] sm:$0xff] }
  0x86   :  { %1620 = vmatmul.mubr.f32.vlgmr.msra.gmra.mrb[6].mxu1 %v5048_v15  ;;  %3853 = vmatprep.subr.bf16.mxu0 %v3852_v59  ;;  %v319_v15 = vld [vmem:[%s6888_s1 + $0x928] sm:$0xff]  ;;  %v3902_v59 = vpack.c.bf16 %v325_v53, %v324_v50  ;;  %v3904_v0 = vpack.c.bf16 %v343_v45, %v342_v56  ;;  %v297_v10 = vld [vmem:[%s6888_s1 + $0x878] sm:$0xff]  ;;  %v368_v45 = vld [vmem:[%s6888_s1 + $0xab0] sm:$0xff] }
  0x87   :  { %3883 = vmatpush3.bf16.msra.mxu1 %v3882_v58  ;;  %1759 = vmatprep.mubr.f32.mxu1 %v897_v6  ;;  %v3890_v21 = vpack.c.bf16 %v319_v15, %v318_v12  ;;  %v3870_v58 = vpack.c.bf16 %v293_v49, %v292_v48  ;;  %v3874_v6 = vpack.c.bf16 %v295_v62, %v294_v61  ;;  %v328_v12 = vld [vmem:[%s6888_s1 + $0x970] sm:$0xff]  ;;  %v329_v15 = vld [vmem:[%s6888_s1 + $0x978] sm:$0xff]  ;;  %v399_v48 = vld [vmem:[%s6888_s1 + $0xba8] sm:$0xff] }
  0x88   :  { %3885 = vmatprep.subr.bf16.mxu1 %v3884_v63  ;;  %v326_v63 = vld [vmem:[%s6888_s1 + $0x960] sm:$0xff]  ;;  %v444_v18 = vld [vmem:[%s6888_s1 + $0xd10] sm:$0xff] }
  0x89   :  { %3855 = vmatpush3.bf16.msra.mxu0 %v3854_v7  ;;  %v19_v7 = vld [vmem:[%s6889_s0 + $0x28] sm:$0xff] }
  0x8a   :  { %3857 = vmatprep.subr.bf16.mxu0 %v3856_v9  ;;  %v3876_v9 = vpack.c.bf16 %v313_v3, %v312_v2  ;;  %v5453_v31 = vrot.slane %v19_v7, %v4544_v13  ;;  %v384_v2 = vld [vmem:[%s6888_s1 + $0xb30] sm:$0xff] }
  0x8b   :  { %3887 = vmatpush3.bf16.msra.mxu1 %v3886_v8  ;;  %v3906_v8 = vpack.c.bf16 %v327_v1, %v326_v63  ;;  %v353_v1 = vld [vmem:[%s6888_s1 + $0xa38] sm:$0xff] }
  0x8c   :  { %3889 = vmatprep.subr.bf16.mxu1 %v3888_v14  ;;  %v3908_v14 = vpack.c.bf16 %v345_v5, %v344_v4  ;;  %v385_v4 = vld [vmem:[%s6888_s1 + $0xb38] sm:$0xff]  ;;  %v370_v5 = vld [vmem:[%s6888_s1 + $0xac0] sm:$0xff] }
  0x8d   :  { %3859 = vmatpush3.bf16.msra.mxu0 %v3858_v20  ;;  %v898_v20 = vcombine.high %v19_v7, %v19_v7  ;;  %v402_v7 = vld [vmem:[%s6888_s1 + $0xbc0] sm:$0xff] }
  0x8e   :  { %3861 = vmatprep.subr.bf16.mxu0 %v3860_v22  ;;  %v3910_v22 = vpack.c.bf16 %v329_v15, %v328_v12  ;;  %v354_v12 = vld [vmem:[%s6888_s1 + $0xa40] sm:$0xff] }
  0x8f   :  { %3891 = vmatpush3.bf16.msra.mxu1 %v3890_v21  ;;  %v3878_v21 = vpack.c.bf16 %v297_v10, %v296_v11  ;;  %v3958_v11 = vpack.c.bf16 %v385_v4, %v384_v2  ;;  %v386_v15 = vld [vmem:[%s6888_s1 + $0xb40] sm:$0xff]  ;;  %v411_v2 = vld [vmem:[%s6888_s1 + $0xc08] sm:$0xff] }
  0x90   :  { %3893 = vmatprep.subr.bf16.mxu1 %v3892_v26  ;;  %v378_v26 = vld [vmem:[%s6888_s1 + $0xb00] sm:$0xff] }
  0x91   :  { %3863 = vmatpush3.bf16.msra.mxu0 %v3862_v32  ;;  %v396_v32 = vld [vmem:[%s6888_s1 + $0xb90] sm:$0xff]  ;;  %v3946_v36 = vpack.c.bf16 %v379_v28, %v378_v26  ;;  %v357_v26 = vld [vmem:[%s6888_s1 + $0xa58] sm:$0xff] }
  0x92   :  { %3865 = vmatprep.subr.bf16.mxu0 %v3864_v34  ;;  %v5462_v34 = vrot.slane %v898_v20, %v4544_v13  ;;  %v404_v20 = vld [vmem:[%s6888_s1 + $0xbd0] sm:$0xff] }
  0x93   :  { %3895 = vmatpush3.bf16.msra.mxu1 %v3894_v42  ;;  %v397_v42 = vld [vmem:[%s6888_s1 + $0xb98] sm:$0xff] }
  0x94   :  { %3897 = vmatprep.subr.bf16.mxu1 %v3896_v37  ;;  %v348_v37 = vld [vmem:[%s6888_s1 + $0xa10] sm:$0xff]  ;;  %v3948_v40 = vpack.c.bf16 %v397_v42, %v396_v32  ;;  %v914_v49 = vcombine.high %v5462_v34, %v5462_v34  ;;  %v375_v32 = vld [vmem:[%s6888_s1 + $0xae8] sm:$0xff]  ;;  %v406_v42 = vld [vmem:[%s6888_s1 + $0xbe0] sm:$0xff] }
  0x95   :  { %3867 = vmatpush3.bf16.msra.mxu0 %v3866_v44  ;;  %v367_v44 = vld [vmem:[%s6888_s1 + $0xaa8] sm:$0xff]  ;;  %v3918_v50 = vpack.c.bf16 %v349_v38, %v348_v37  ;;  %v3936_v37 = vpack.c.bf16 %v375_v32, %v374_v30  ;;  %v358_v38 = vld [vmem:[%s6888_s1 + $0xa60] sm:$0xff] }
  0x96   :  { %3869 = vmatprep.subr.bf16.mxu0 %v3868_v47  ;;  %v398_v47 = vld [vmem:[%s6888_s1 + $0xba0] sm:$0xff]  ;;  %v3920_v53 = vpack.c.bf16 %v367_v44, %v366_v43  ;;  %v391_v43 = vld [vmem:[%s6888_s1 + $0xb68] sm:$0xff]  ;;  %v376_v44 = vld [vmem:[%s6888_s1 + $0xaf0] sm:$0xff] }
  0x97   :  { %3899 = vmatpush3.bf16.msra.mxu1 %v3898_v46  ;;  %v913_v46 = vcombine.high %v5453_v31, %v5453_v31  ;;  %v3952_v56 = vpack.c.bf16 %v399_v48, %v398_v47  ;;  %v408_v47 = vld [vmem:[%s6888_s1 + $0xbf0] sm:$0xff]  ;;  %v409_v48 = vld [vmem:[%s6888_s1 + $0xbf8] sm:$0xff]  ;;  %v415_v30 = vld [vmem:[%s6888_s1 + $0xc28] sm:$0xff] }
  0x98   :  { %3901 = vmatprep.subr.bf16.mxu1 %v3900_v51  ;;  %v3950_v51 = vpack.c.bf16 %v381_v41, %v380_v39  ;;  %v359_v39 = vld [vmem:[%s6888_s1 + $0xa68] sm:$0xff]  ;;  %v446_v32 = vld [vmem:[%s6888_s1 + $0xd20] sm:$0xff] }
  0x99   :  { %3871 = vmatpush3.bf16.msra.mxu0 %v3870_v58  ;;  %v369_v58 = vld [vmem:[%s6888_s1 + $0xab8] sm:$0xff] }
  0x9a   :  { %3873 = vmatprep.subr.bf16.mxu0 %v3872_v60  ;;  %v401_v60 = vld [vmem:[%s6888_s1 + $0xbb8] sm:$0xff]  ;;  %v3924_v63 = vpack.c.bf16 %v369_v58, %v368_v45  ;;  %v426_v45 = vld [vmem:[%s6888_s1 + $0xc80] sm:$0xff]  ;;  %v427_v58 = vld [vmem:[%s6888_s1 + $0xc88] sm:$0xff] }
  0x9b   :  { %3903 = vmatpush3.bf16.msra.mxu1 %v3902_v59  ;;  %v400_v59 = vld [vmem:[%s6888_s1 + $0xbb0] sm:$0xff] }
  0x9c   :  { %3905 = vmatprep.subr.bf16.mxu1 %v3904_v0  ;;  %v352_v0 = vld [vmem:[%s6888_s1 + $0xa30] sm:$0xff]  ;;  %v3956_v3 = vpack.c.bf16 %v401_v60, %v400_v59  ;;  %v458_v59 = vld [vmem:[%s6888_s1 + $0xd80] sm:$0xff]  ;;  %v459_v60 = vld [vmem:[%s6888_s1 + $0xd88] sm:$0xff] }
  0x9d   :  { %3875 = vmatpush3.bf16.msra.mxu0 %v3874_v6  ;;  %v371_v6 = vld [vmem:[%s6888_s1 + $0xac8] sm:$0xff]  ;;  %v4008_v4 = vpack.c.bf16 %v459_v60, %v458_v59  ;;  %v436_v59 = vld [vmem:[%s6888_s1 + $0xcd0] sm:$0xff]  ;;  %v437_v60 = vld [vmem:[%s6888_s1 + $0xcd8] sm:$0xff] }
  0x9e   :  { %3877 = vmatprep.subr.bf16.mxu0 %v3876_v9  ;;  %v3926_v9 = vpack.c.bf16 %v353_v1, %v352_v0  ;;  %v3928_v10 = vpack.c.bf16 %v371_v6, %v370_v5  ;;  %v3976_v0 = vpack.c.bf16 %v427_v58, %v426_v45  ;;  %v410_v1 = vld [vmem:[%s6888_s1 + $0xc00] sm:$0xff]  ;;  %v443_v5 = vld [vmem:[%s6888_s1 + $0xd08] sm:$0xff]  ;;  %v428_v6 = vld [vmem:[%s6888_s1 + $0xc90] sm:$0xff] }
  0x9f   :  { %3907 = vmatpush3.bf16.msra.mxu1 %v3906_v8  ;;  %v403_v8 = vld [vmem:[%s6888_s1 + $0xbc8] sm:$0xff] }
  0xa0   :  { %3909 = vmatprep.subr.bf16.mxu1 %v3908_v14  ;;  %v355_v14 = vld [vmem:[%s6888_s1 + $0xa48] sm:$0xff]  ;;  %v3960_v16 = vpack.c.bf16 %v403_v8, %v402_v7  ;;  %v429_v7 = vld [vmem:[%s6888_s1 + $0xc98] sm:$0xff] }
  0xa1   :  { %3879 = vmatpush3.bf16.msra.mxu0 %v3878_v21  ;;  %v405_v21 = vld [vmem:[%s6888_s1 + $0xbd8] sm:$0xff]  ;;  %v451_v58 = vld [vmem:[%s6888_s1 + $0xd48] sm:$0xff] }
  0xa2   :  { %3913 = vmatprep.subr.bf16.mxu0 %v3912_v23  ;;  %v3962_v23 = vpack.c.bf16 %v387_v17, %v386_v15  ;;  %v3964_v28 = vpack.c.bf16 %v405_v21, %v404_v20  ;;  %v3980_v15 = vpack.c.bf16 %v429_v7, %v428_v6  ;;  %v413_v17 = vld [vmem:[%s6888_s1 + $0xc18] sm:$0xff]  ;;  %v430_v21 = vld [vmem:[%s6888_s1 + $0xca0] sm:$0xff] }
  0xa3   :  { %3911 = vmatpush3.bf16.msra.mxu1 %v3910_v22  ;;  %v3930_v22 = vpack.c.bf16 %v355_v14, %v354_v12  ;;  %v3978_v12 = vpack.c.bf16 %v411_v2, %v410_v1  ;;  %v445_v20 = vld [vmem:[%s6888_s1 + $0xd18] sm:$0xff]  ;;  %v3996_v1 = vpack.c.bf16 %v437_v60, %v436_v59  ;;  %v420_v2 = vld [vmem:[%s6888_s1 + $0xc50] sm:$0xff]  ;;  %v438_v7 = vld [vmem:[%s6888_s1 + $0xce0] sm:$0xff] }
  0xa4   :  { %3945 = vmatprep.subr.bf16.mxu1 %v3944_v27  ;;  %1690 = vmatmul.mubr.f32.vlgmr.msra.gmra.mrb[8].mxu0 %v5246_v54  ;;  %v350_v54 = vld [vmem:[%s6888_s1 + $0xa20] sm:$0xff]  ;;  %v388_v27 = vld [vmem:[%s6888_s1 + $0xb50] sm:$0xff]  ;;  %v453_v6 = vld [vmem:[%s6888_s1 + $0xd58] sm:$0xff] }
  0xa5   :  { %3915 = vmatpush3.bf16.msra.mxu0 %v3914_v35  ;;  %1829 = vmatprep.mubr.f32.mxu0 %v913_v46  ;;  %v3922_v61 = vpack.c.bf16 %v351_v33, %v350_v54  ;;  %v407_v35 = vld [vmem:[%s6888_s1 + $0xbe8] sm:$0xff]  ;;  %v377_v46 = vld [vmem:[%s6888_s1 + $0xaf8] sm:$0xff]  ;;  %v360_v54 = vld [vmem:[%s6888_s1 + $0xa70] sm:$0xff] }
  0xa6   :  { %1760 = vmatmul.mubr.f32.vlgmr.msra.gmra.mrb[8].mxu1 %v5255_v57  ;;  %3917 = vmatprep.subr.bf16.mxu0 %v3916_v52  ;;  %v383_v57 = vld [vmem:[%s6888_s1 + $0xb28] sm:$0xff]  ;;  %v3966_v52 = vpack.c.bf16 %v389_v29, %v388_v27  ;;  %v3968_v41 = vpack.c.bf16 %v407_v35, %v406_v42  ;;  %v361_v33 = vld [vmem:[%s6888_s1 + $0xa78] sm:$0xff]  ;;  %v432_v35 = vld [vmem:[%s6888_s1 + $0xcb0] sm:$0xff] }
  0xa7   :  { %3947 = vmatpush3.bf16.msra.mxu1 %v3946_v36  ;;  %1899 = vmatprep.mubr.f32.mxu1 %v914_v49  ;;  %v3954_v62 = vpack.c.bf16 %v383_v57, %v382_v55  ;;  %v3934_v36 = vpack.c.bf16 %v357_v26, %v356_v25  ;;  %v3938_v49 = vpack.c.bf16 %v359_v39, %v358_v38  ;;  %v392_v55 = vld [vmem:[%s6888_s1 + $0xb70] sm:$0xff]  ;;  %v393_v57 = vld [vmem:[%s6888_s1 + $0xb78] sm:$0xff]  ;;  %v463_v25 = vld [vmem:[%s6888_s1 + $0xda8] sm:$0xff] }
  0xa8   :  { %3949 = vmatprep.subr.bf16.mxu1 %v3948_v40  ;;  %v390_v40 = vld [vmem:[%s6888_s1 + $0xb60] sm:$0xff]  ;;  %v508_v59 = vld [vmem:[%s6888_s1 + $0xf10] sm:$0xff] }
  0xa9   :  { %3919 = vmatpush3.bf16.msra.mxu0 %v3918_v50  ;;  %v20_v50 = vld [vmem:[%s6889_s0 + $0x30] sm:$0xff] }
  0xaa   :  { %3921 = vmatprep.subr.bf16.mxu0 %v3920_v53  ;;  %v3940_v53 = vpack.c.bf16 %v377_v46, %v376_v44  ;;  %v5660_v8 = vrot.slane %v20_v50, %v4544_v13  ;;  %v448_v44 = vld [vmem:[%s6888_s1 + $0xd30] sm:$0xff] }
  0xab   :  { %3951 = vmatpush3.bf16.msra.mxu1 %v3950_v51  ;;  %v3970_v51 = vpack.c.bf16 %v391_v43, %v390_v40  ;;  %v417_v43 = vld [vmem:[%s6888_s1 + $0xc38] sm:$0xff] }
  0xac   :  { %3953 = vmatprep.subr.bf16.mxu1 %v3952_v56  ;;  %v3972_v56 = vpack.c.bf16 %v409_v48, %v408_v47  ;;  %v449_v47 = vld [vmem:[%s6888_s1 + $0xd38] sm:$0xff]  ;;  %v434_v48 = vld [vmem:[%s6888_s1 + $0xcc0] sm:$0xff] }
  0xad   :  { %3923 = vmatpush3.bf16.msra.mxu0 %v3922_v61  ;;  %v915_v61 = vcombine.high %v20_v50, %v20_v50  ;;  %v466_v50 = vld [vmem:[%s6888_s1 + $0xdc0] sm:$0xff] }
  0xae   :  { %3925 = vmatprep.subr.bf16.mxu0 %v3924_v63  ;;  %v3974_v63 = vpack.c.bf16 %v393_v57, %v392_v55  ;;  %v418_v55 = vld [vmem:[%s6888_s1 + $0xc40] sm:$0xff] }
  0xaf   :  { %3955 = vmatpush3.bf16.msra.mxu1 %v3954_v62  ;;  %v3942_v62 = vpack.c.bf16 %v361_v33, %v360_v54  ;;  %v4022_v54 = vpack.c.bf16 %v449_v47, %v448_v44  ;;  %v450_v57 = vld [vmem:[%s6888_s1 + $0xd40] sm:$0xff]  ;;  %v475_v44 = vld [vmem:[%s6888_s1 + $0xe08] sm:$0xff] }
  0xb0   :  { %3957 = vmatprep.subr.bf16.mxu1 %v3956_v3  ;;  %v442_v3 = vld [vmem:[%s6888_s1 + $0xd00] sm:$0xff] }
  0xb1   :  { %3927 = vmatpush3.bf16.msra.mxu0 %v3926_v9  ;;  %v460_v9 = vld [vmem:[%s6888_s1 + $0xd90] sm:$0xff]  ;;  %v4010_v14 = vpack.c.bf16 %v443_v5, %v442_v3  ;;  %v421_v3 = vld [vmem:[%s6888_s1 + $0xc58] sm:$0xff] }
  0xb2   :  { %3929 = vmatprep.subr.bf16.mxu0 %v3928_v10  ;;  %v5669_v10 = vrot.slane %v915_v61, %v4544_v13  ;;  %v468_v61 = vld [vmem:[%s6888_s1 + $0xdd0] sm:$0xff] }
  0xb3   :  { %3959 = vmatpush3.bf16.msra.mxu1 %v3958_v11  ;;  %v461_v11 = vld [vmem:[%s6888_s1 + $0xd98] sm:$0xff] }
  0xb4   :  { %3961 = vmatprep.subr.bf16.mxu1 %v3960_v16  ;;  %v412_v16 = vld [vmem:[%s6888_s1 + $0xc10] sm:$0xff]  ;;  %v4012_v19 = vpack.c.bf16 %v461_v11, %v460_v9  ;;  %v931_v26 = vcombine.high %v5669_v10, %v5669_v10  ;;  %v439_v9 = vld [vmem:[%s6888_s1 + $0xce8] sm:$0xff]  ;;  %v470_v11 = vld [vmem:[%s6888_s1 + $0xde0] sm:$0xff] }
  0xb5   :  { %3931 = vmatpush3.bf16.msra.mxu0 %v3930_v22  ;;  %v431_v22 = vld [vmem:[%s6888_s1 + $0xca8] sm:$0xff]  ;;  %v3982_v27 = vpack.c.bf16 %v413_v17, %v412_v16  ;;  %v4000_v16 = vpack.c.bf16 %v439_v9, %v438_v7  ;;  %v422_v17 = vld [vmem:[%s6888_s1 + $0xc60] sm:$0xff] }
  0xb6   :  { %3933 = vmatprep.subr.bf16.mxu0 %v3932_v24  ;;  %v462_v24 = vld [vmem:[%s6888_s1 + $0xda0] sm:$0xff]  ;;  %v3984_v29 = vpack.c.bf16 %v431_v22, %v430_v21  ;;  %v455_v21 = vld [vmem:[%s6888_s1 + $0xd68] sm:$0xff]  ;;  %v440_v22 = vld [vmem:[%s6888_s1 + $0xcf0] sm:$0xff] }
  0xb7   :  { %3963 = vmatpush3.bf16.msra.mxu1 %v3962_v23  ;;  %v930_v23 = vcombine.high %v5660_v8, %v5660_v8  ;;  %v4016_v42 = vpack.c.bf16 %v463_v25, %v462_v24  ;;  %v472_v24 = vld [vmem:[%s6888_s1 + $0xdf0] sm:$0xff]  ;;  %v473_v25 = vld [vmem:[%s6888_s1 + $0xdf8] sm:$0xff]  ;;  %v479_v7 = vld [vmem:[%s6888_s1 + $0xe28] sm:$0xff] }
  0xb8   :  { %3965 = vmatprep.subr.bf16.mxu1 %v3964_v28  ;;  %v4014_v28 = vpack.c.bf16 %v445_v20, %v444_v18  ;;  %v423_v18 = vld [vmem:[%s6888_s1 + $0xc68] sm:$0xff]  ;;  %v510_v9 = vld [vmem:[%s6888_s1 + $0xf20] sm:$0xff] }
  0xb9   :  { %3935 = vmatpush3.bf16.msra.mxu0 %v3934_v36  ;;  %v433_v36 = vld [vmem:[%s6888_s1 + $0xcb8] sm:$0xff] }
  0xba   :  { %3937 = vmatprep.subr.bf16.mxu0 %v3936_v37  ;;  %v465_v37 = vld [vmem:[%s6888_s1 + $0xdb8] sm:$0xff]  ;;  %v3988_v40 = vpack.c.bf16 %v433_v36, %v432_v35  ;;  %v490_v35 = vld [vmem:[%s6888_s1 + $0xe80] sm:$0xff]  ;;  %v491_v36 = vld [vmem:[%s6888_s1 + $0xe88] sm:$0xff] }
  0xbb   :  { %3967 = vmatpush3.bf16.msra.mxu1 %v3966_v52  ;;  %v464_v52 = vld [vmem:[%s6888_s1 + $0xdb0] sm:$0xff] }
  0xbc   :  { %3969 = vmatprep.subr.bf16.mxu1 %v3968_v41  ;;  %v416_v41 = vld [vmem:[%s6888_s1 + $0xc30] sm:$0xff]  ;;  %v4020_v46 = vpack.c.bf16 %v465_v37, %v464_v52  ;;  %v522_v52 = vld [vmem:[%s6888_s1 + $0xf80] sm:$0xff]  ;;  %v523_v37 = vld [vmem:[%s6888_s1 + $0xf88] sm:$0xff] }
  0xbd   :  { %3939 = vmatpush3.bf16.msra.mxu0 %v3938_v49  ;;  %v435_v49 = vld [vmem:[%s6888_s1 + $0xcc8] sm:$0xff]  ;;  %v4072_v47 = vpack.c.bf16 %v523_v37, %v522_v52  ;;  %v500_v52 = vld [vmem:[%s6888_s1 + $0xed0] sm:$0xff]  ;;  %v501_v37 = vld [vmem:[%s6888_s1 + $0xed8] sm:$0xff] }
  0xbe   :  { %3941 = vmatprep.subr.bf16.mxu0 %v3940_v53  ;;  %v3990_v53 = vpack.c.bf16 %v417_v43, %v416_v41  ;;  %v3992_v33 = vpack.c.bf16 %v435_v49, %v434_v48  ;;  %v4040_v41 = vpack.c.bf16 %v491_v36, %v490_v35  ;;  %v474_v43 = vld [vmem:[%s6888_s1 + $0xe00] sm:$0xff]  ;;  %v507_v48 = vld [vmem:[%s6888_s1 + $0xf08] sm:$0xff]  ;;  %v492_v49 = vld [vmem:[%s6888_s1 + $0xe90] sm:$0xff] }
  0xbf   :  { %3971 = vmatpush3.bf16.msra.mxu1 %v3970_v51  ;;  %v467_v51 = vld [vmem:[%s6888_s1 + $0xdc8] sm:$0xff] }
  0xc0   :  { %3973 = vmatprep.subr.bf16.mxu1 %v3972_v56  ;;  %v419_v56 = vld [vmem:[%s6888_s1 + $0xc48] sm:$0xff]  ;;  %v4024_v45 = vpack.c.bf16 %v467_v51, %v466_v50  ;;  %v493_v50 = vld [vmem:[%s6888_s1 + $0xe98] sm:$0xff] }
  0xc1   :  { %3943 = vmatpush3.bf16.msra.mxu0 %v3942_v62  ;;  %v469_v62 = vld [vmem:[%s6888_s1 + $0xdd8] sm:$0xff]  ;;  %v515_v36 = vld [vmem:[%s6888_s1 + $0xf48] sm:$0xff] }
  0xc2   :  { %3977 = vmatprep.subr.bf16.mxu0 %v3976_v0  ;;  %v4026_v0 = vpack.c.bf16 %v451_v58, %v450_v57  ;;  %v4028_v5 = vpack.c.bf16 %v469_v62, %v468_v61  ;;  %v4044_v57 = vpack.c.bf16 %v493_v50, %v492_v49  ;;  %v477_v58 = vld [vmem:[%s6888_s1 + $0xe18] sm:$0xff]  ;;  %v494_v62 = vld [vmem:[%s6888_s1 + $0xea0] sm:$0xff] }
  0xc3   :  { %3975 = vmatpush3.bf16.msra.mxu1 %v3974_v63  ;;  %v3994_v63 = vpack.c.bf16 %v419_v56, %v418_v55  ;;  %v4042_v55 = vpack.c.bf16 %v475_v44, %v474_v43  ;;  %v509_v61 = vld [vmem:[%s6888_s1 + $0xf18] sm:$0xff]  ;;  %v4060_v43 = vpack.c.bf16 %v501_v37, %v500_v52  ;;  %v484_v44 = vld [vmem:[%s6888_s1 + $0xe50] sm:$0xff]  ;;  %v502_v50 = vld [vmem:[%s6888_s1 + $0xee0] sm:$0xff] }
  0xc4   :  { %4009 = vmatprep.subr.bf16.mxu1 %v4008_v4  ;;  %1830 = vmatmul.mubr.f32.vlgmr.msra.gmra.mrb[10].mxu0 %v5453_v31  ;;  %v414_v31 = vld [vmem:[%s6888_s1 + $0xc20] sm:$0xff]  ;;  %v452_v4 = vld [vmem:[%s6888_s1 + $0xd50] sm:$0xff]  ;;  %v517_v49 = vld [vmem:[%s6888_s1 + $0xf58] sm:$0xff] }
  0xc5   :  { %3979 = vmatpush3.bf16.msra.mxu0 %v3978_v12  ;;  %1969 = vmatprep.mubr.f32.mxu0 %v930_v23  ;;  %v3986_v38 = vpack.c.bf16 %v415_v30, %v414_v31  ;;  %v471_v12 = vld [vmem:[%s6888_s1 + $0xde8] sm:$0xff]  ;;  %v441_v23 = vld [vmem:[%s6888_s1 + $0xcf8] sm:$0xff]  ;;  %v424_v31 = vld [vmem:[%s6888_s1 + $0xc70] sm:$0xff] }
  0xc6   :  { %1900 = vmatmul.mubr.f32.vlgmr.msra.gmra.mrb[10].mxu1 %v5462_v34  ;;  %3981 = vmatprep.subr.bf16.mxu0 %v3980_v15  ;;  %v447_v34 = vld [vmem:[%s6888_s1 + $0xd28] sm:$0xff]  ;;  %v4030_v15 = vpack.c.bf16 %v453_v6, %v452_v4  ;;  %v4032_v20 = vpack.c.bf16 %v471_v12, %v470_v11  ;;  %v425_v30 = vld [vmem:[%s6888_s1 + $0xc78] sm:$0xff]  ;;  %v496_v12 = vld [vmem:[%s6888_s1 + $0xeb0] sm:$0xff] }
  0xc7   :  { %4011 = vmatpush3.bf16.msra.mxu1 %v4010_v14  ;;  %2039 = vmatprep.mubr.f32.mxu1 %v931_v26  ;;  %v4018_v39 = vpack.c.bf16 %v447_v34, %v446_v32  ;;  %v3998_v14 = vpack.c.bf16 %v421_v3, %v420_v2  ;;  %v4002_v26 = vpack.c.bf16 %v423_v18, %v422_v17  ;;  %v456_v32 = vld [vmem:[%s6888_s1 + $0xd70] sm:$0xff]  ;;  %v457_v34 = vld [vmem:[%s6888_s1 + $0xd78] sm:$0xff]  ;;  %v527_v2 = vld [vmem:[%s6888_s1 + $0xfa8] sm:$0xff] }
  0xc8   :  { %4013 = vmatprep.subr.bf16.mxu1 %v4012_v19  ;;  %v454_v19 = vld [vmem:[%s6888_s1 + $0xd60] sm:$0xff]  ;;  %v588_v37 = vld [vmem:[%s6888_s1 + $0x1190] sm:$0xff] }
  0xc9   :  { %3983 = vmatpush3.bf16.msra.mxu0 %v3982_v27  ;;  %v21_v27 = vld [vmem:[%s6889_s0 + $0x38] sm:$0xff] }
  0xca   :  { %3985 = vmatprep.subr.bf16.mxu0 %v3984_v29  ;;  %v4004_v29 = vpack.c.bf16 %v441_v23, %v440_v22  ;;  %v5867_v51 = vrot.slane %v21_v27, %v4544_v13  ;;  %v512_v22 = vld [vmem:[%s6888_s1 + $0xf30] sm:$0xff] }
  0xcb   :  { %4015 = vmatpush3.bf16.msra.mxu1 %v4014_v28  ;;  %v4034_v28 = vpack.c.bf16 %v455_v21, %v454_v19  ;;  %v481_v21 = vld [vmem:[%s6888_s1 + $0xe38] sm:$0xff] }
  0xcc   :  { %4017 = vmatprep.subr.bf16.mxu1 %v4016_v42  ;;  %v4036_v42 = vpack.c.bf16 %v473_v25, %v472_v24  ;;  %v513_v24 = vld [vmem:[%s6888_s1 + $0xf38] sm:$0xff]  ;;  %v498_v25 = vld [vmem:[%s6888_s1 + $0xec0] sm:$0xff] }
  0xcd   :  { %3987 = vmatpush3.bf16.msra.mxu0 %v3986_v38  ;;  %v932_v38 = vcombine.high %v21_v27, %v21_v27  ;;  %v530_v27 = vld [vmem:[%s6888_s1 + $0xfc0] sm:$0xff] }
  0xce   :  { %3989 = vmatprep.subr.bf16.mxu0 %v3988_v40  ;;  %v4038_v40 = vpack.c.bf16 %v457_v34, %v456_v32  ;;  %v482_v32 = vld [vmem:[%s6888_s1 + $0xe40] sm:$0xff] }
  0xcf   :  { %4019 = vmatpush3.bf16.msra.mxu1 %v4018_v39  ;;  %v4006_v39 = vpack.c.bf16 %v425_v30, %v424_v31  ;;  %v4086_v31 = vpack.c.bf16 %v513_v24, %v512_v22  ;;  %v514_v34 = vld [vmem:[%s6888_s1 + $0xf40] sm:$0xff]  ;;  %v555_v22 = vld [vmem:[%s6888_s1 + $0x1088] sm:$0xff] }
  0xd0   :  { %4021 = vmatprep.subr.bf16.mxu1 %v4020_v46  ;;  %v506_v46 = vld [vmem:[%s6888_s1 + $0xf00] sm:$0xff]  ;;  %v587_v24 = vld [vmem:[%s6888_s1 + $0x1188] sm:$0xff] }
  0xd1   :  { %3991 = vmatpush3.bf16.msra.mxu0 %v3990_v53  ;;  %v524_v53 = vld [vmem:[%s6888_s1 + $0xf90] sm:$0xff]  ;;  %v4074_v56 = vpack.c.bf16 %v507_v48, %v506_v46  ;;  %v485_v46 = vld [vmem:[%s6888_s1 + $0xe58] sm:$0xff] }
  0xd2   :  { %3993 = vmatprep.subr.bf16.mxu0 %v3992_v33  ;;  %v5876_v33 = vrot.slane %v932_v38, %v4544_v13  ;;  %v532_v38 = vld [vmem:[%s6888_s1 + $0xfd0] sm:$0xff] }
  0xd3   :  { %4023 = vmatpush3.bf16.msra.mxu1 %v4022_v54  ;;  %v525_v54 = vld [vmem:[%s6888_s1 + $0xf98] sm:$0xff] }
  0xd4   :  { %4025 = vmatprep.subr.bf16.mxu1 %v4024_v45  ;;  %v476_v45 = vld [vmem:[%s6888_s1 + $0xe10] sm:$0xff]  ;;  %v4076_v60 = vpack.c.bf16 %v525_v54, %v524_v53  ;;  %v948_v3 = vcombine.high %v5876_v33, %v5876_v33  ;;  %v503_v53 = vld [vmem:[%s6888_s1 + $0xee8] sm:$0xff]  ;;  %v534_v54 = vld [vmem:[%s6888_s1 + $0xfe0] sm:$0xff] }
  0xd5   :  { %3995 = vmatpush3.bf16.msra.mxu0 %v3994_v63  ;;  %v495_v63 = vld [vmem:[%s6888_s1 + $0xea8] sm:$0xff]  ;;  %v4046_v4 = vpack.c.bf16 %v477_v58, %v476_v45  ;;  %v4064_v45 = vpack.c.bf16 %v503_v53, %v502_v50  ;;  %v486_v58 = vld [vmem:[%s6888_s1 + $0xe60] sm:$0xff] }
  0xd6   :  { %3997 = vmatprep.subr.bf16.mxu0 %v3996_v1  ;;  %v526_v1 = vld [vmem:[%s6888_s1 + $0xfa0] sm:$0xff]  ;;  %v4048_v6 = vpack.c.bf16 %v495_v63, %v494_v62  ;;  %v519_v63 = vld [vmem:[%s6888_s1 + $0xf68] sm:$0xff] }
  0xd7   :  { %4027 = vmatpush3.bf16.msra.mxu1 %v4026_v0  ;;  %v947_v0 = vcombine.high %v5867_v51, %v5867_v51  ;;  %v4080_v11 = vpack.c.bf16 %v527_v2, %v526_v1  ;;  %v505_v1 = vld [vmem:[%s6888_s1 + $0xef8] sm:$0xff]  ;;  %v2751_v2 = vld [vmem:[%s6890_s2] ss:$0 sm:$0xff]  ;;  %v559_v53 = vld [vmem:[%s6888_s1 + $0x10a8] sm:$0xff] }
  0xd8   :  { %4029 = vmatprep.subr.bf16.mxu1 %v4028_v5  ;;  %v4078_v5 = vpack.c.bf16 %v509_v61, %v508_v59  ;;  %v487_v59 = vld [vmem:[%s6888_s1 + $0xe68] sm:$0xff]  ;;  %v558_v50 = vld [vmem:[%s6888_s1 + $0x10a0] sm:$0xff] }
  0xd9   :  { %3999 = vmatpush3.bf16.msra.mxu0 %v3998_v14  ;;  %v497_v14 = vld [vmem:[%s6888_s1 + $0xeb8] sm:$0xff] }
  0xda   :  { %4001 = vmatprep.subr.bf16.mxu0 %v4000_v16  ;;  %v529_v16 = vld [vmem:[%s6888_s1 + $0xfb8] sm:$0xff]  ;;  %v4052_v19 = vpack.c.bf16 %v497_v14, %v496_v12 }
  0xdb   :  { %4031 = vmatpush3.bf16.msra.mxu1 %v4030_v15  ;;  %v528_v15 = vld [vmem:[%s6888_s1 + $0xfb0] sm:$0xff] }
  0xdc   :  { %4033 = vmatprep.subr.bf16.mxu1 %v4032_v20  ;;  %v480_v20 = vld [vmem:[%s6888_s1 + $0xe30] sm:$0xff]  ;;  %v4084_v23 = vpack.c.bf16 %v529_v16, %v528_v15  ;;  %v489_v16 = vld [vmem:[%s6888_s1 + $0xe78] sm:$0xff] }
  0xdd   :  { %4003 = vmatpush3.bf16.msra.mxu0 %v4002_v26  ;;  %v499_v26 = vld [vmem:[%s6888_s1 + $0xec8] sm:$0xff]  ;;  %v488_v15 = vld [vmem:[%s6888_s1 + $0xe70] sm:$0xff] }
  0xde   :  { %4005 = vmatprep.subr.bf16.mxu0 %v4004_v29  ;;  %v4054_v29 = vpack.c.bf16 %v481_v21, %v480_v20  ;;  %v4056_v30 = vpack.c.bf16 %v499_v26, %v498_v25  ;;  %v521_v20 = vld [vmem:[%s6888_s1 + $0xf78] sm:$0xff]  ;;  %v554_v21 = vld [vmem:[%s6888_s1 + $0x1080] sm:$0xff] }
  0xdf   :  { %4035 = vmatpush3.bf16.msra.mxu1 %v4034_v28  ;;  %v531_v28 = vld [vmem:[%s6888_s1 + $0xfc8] sm:$0xff] }
  0xe0   :  { %4037 = vmatprep.subr.bf16.mxu1 %v4036_v42  ;;  %v483_v42 = vld [vmem:[%s6888_s1 + $0xe48] sm:$0xff]  ;;  %v4088_v35 = vpack.c.bf16 %v531_v28, %v530_v27  ;;  %v4070_v27 = vpack.c.bf16 %v489_v16, %v488_v15 }
  0xe1   :  { %4007 = vmatpush3.bf16.msra.mxu0 %v4006_v39  ;;  %v533_v39 = vld [vmem:[%s6888_s1 + $0xfd8] sm:$0xff]  ;;  %v595_v15 = vld [vmem:[%s6888_s1 + $0x11c8] sm:$0xff] }
  0xe2   :  { %4041 = vmatprep.subr.bf16.mxu0 %v4040_v41  ;;  %v4090_v41 = vpack.c.bf16 %v515_v36, %v514_v34  ;;  %v4092_v48 = vpack.c.bf16 %v533_v39, %v532_v38  ;;  %v571_v34 = vld [vmem:[%s6888_s1 + $0x1108] sm:$0xff]  ;;  %v557_v36 = vld [vmem:[%s6888_s1 + $0x1098] sm:$0xff] }
  0xe3   :  { %4039 = vmatpush3.bf16.msra.mxu1 %v4038_v40  ;;  %v4058_v40 = vpack.c.bf16 %v483_v42, %v482_v32  ;;  %v570_v32 = vld [vmem:[%s6888_s1 + $0x1100] sm:$0xff]  ;;  %v589_v38 = vld [vmem:[%s6888_s1 + $0x1198] sm:$0xff] }
  0xe4   :  { %4073 = vmatprep.subr.bf16.mxu1 %v4072_v47  ;;  %1970 = vmatmul.mubr.f32.vlgmr.msra.gmra.mrb[12].mxu0 %v5660_v8  ;;  %v478_v8 = vld [vmem:[%s6888_s1 + $0xe20] sm:$0xff]  ;;  %v516_v47 = vld [vmem:[%s6888_s1 + $0xf50] sm:$0xff] }
  0xe5   :  { %4043 = vmatpush3.bf16.msra.mxu0 %v4042_v55  ;;  %2109 = vmatprep.mubr.f32.mxu0 %v947_v0  ;;  %v4050_v17 = vpack.c.bf16 %v479_v7, %v478_v8  ;;  %v535_v55 = vld [vmem:[%s6888_s1 + $0xfe8] sm:$0xff]  ;;  %v504_v0 = vld [vmem:[%s6888_s1 + $0xef0] sm:$0xff] }
  0xe6   :  { %2040 = vmatmul.mubr.f32.vlgmr.msra.gmra.mrb[12].mxu1 %v5669_v10  ;;  %4045 = vmatprep.subr.bf16.mxu0 %v4044_v57  ;;  %v511_v10 = vld [vmem:[%s6888_s1 + $0xf28] sm:$0xff]  ;;  %v4094_v57 = vpack.c.bf16 %v517_v49, %v516_v47  ;;  %v4096_v62 = vpack.c.bf16 %v535_v55, %v534_v54  ;;  %v4068_v14 = vpack.c.bf16 %v505_v1, %v504_v0  ;;  %v572_v47 = vld [vmem:[%s6888_s1 + $0x1110] sm:$0xff]  ;;  %v573_v49 = vld [vmem:[%s6888_s1 + $0x1118] sm:$0xff] }
  0xe7   :  { %4075 = vmatpush3.bf16.msra.mxu1 %v4074_v56  ;;  %2179 = vmatprep.mubr.f32.mxu1 %v948_v3  ;;  %v4082_v18 = vpack.c.bf16 %v511_v10, %v510_v9  ;;  %v4062_v56 = vpack.c.bf16 %v485_v46, %v484_v44  ;;  %v4066_v9 = vpack.c.bf16 %v487_v59, %v486_v58  ;;  %v540_v44 = vld [vmem:[%s6888_s1 + $0x1010] sm:$0xff]  ;;  %v541_v46 = vld [vmem:[%s6888_s1 + $0x1018] sm:$0xff]  ;;  %v590_v55 = vld [vmem:[%s6888_s1 + $0x11a0] sm:$0xff] }
  0xe8   :  { %4077 = vmatprep.subr.bf16.mxu1 %v4076_v60  ;;  %v518_v60 = vld [vmem:[%s6888_s1 + $0xf60] sm:$0xff]  ;;  %v4142_v58 = vpack.c.bf16 %v573_v49, %v572_v47  ;;  %v4112_v59 = vpack.c.bf16 %v559_v53, %v558_v50  ;;  %v561_v0 = vld [vmem:[%s6888_s1 + $0x10b8] sm:$0xff]  ;;  %v592_v1 = vld [vmem:[%s6888_s1 + $0x11b0] sm:$0xff] }
  0xe9   :  { %4047 = vmatpush3.bf16.msra.mxu0 %v4046_v4  ;;  %v4098_v12 = vpack.c.bf16 %v519_v63, %v518_v60  ;;  %v543_v60 = vld [vmem:[%s6888_s1 + $0x1028] sm:$0xff]  ;;  %v560_v63 = vld [vmem:[%s6888_s1 + $0x10b0] sm:$0xff]  ;;  %v550_v47 = vld [vmem:[%s6888_s1 + $0x1060] sm:$0xff] }
  0xea   :  { %4049 = vmatprep.subr.bf16.mxu0 %v4048_v6  ;;  %v537_v6 = vld [vmem:[%s6888_s1 + $0xff8] sm:$0xff]  ;;  %v582_v49 = vld [vmem:[%s6888_s1 + $0x1160] sm:$0xff] }
  0xeb   :  { %4079 = vmatpush3.bf16.msra.mxu1 %v4078_v5  ;;  %v536_v5 = vld [vmem:[%s6888_s1 + $0xff0] sm:$0xff] }
  0xec   :  { %4081 = vmatprep.subr.bf16.mxu1 %v4080_v11  ;;  %v22_v11 = vld [vmem:[%s6889_s0 + $0x40] sm:$0xff] }
  0xed   :  { %4051 = vmatpush3.bf16.msra.mxu0 %v4050_v17  ;;  %v520_v17 = vld [vmem:[%s6888_s1 + $0xf70] sm:$0xff]  ;;  %v949_v25 = vcombine.high %v22_v11, %v22_v11  ;;  %v6079_v52 = vrot.slane %v22_v11, %v4544_v13  ;;  %v577_v11 = vld [vmem:[%s6888_s1 + $0x1138] sm:$0xff] }
  0xee   :  { %4053 = vmatprep.subr.bf16.mxu0 %v4052_v19  ;;  %v4100_v19 = vpack.c.bf16 %v537_v6, %v536_v5  ;;  %v4102_v28 = vpack.c.bf16 %v521_v20, %v520_v17  ;;  %v4116_v5 = vpack.c.bf16 %v561_v0, %v560_v63  ;;  %v544_v6 = vld [vmem:[%s6888_s1 + $0x1030] sm:$0xff]  ;;  %v547_v20 = vld [vmem:[%s6888_s1 + $0x1048] sm:$0xff] }
  0xef   :  { %4083 = vmatpush3.bf16.msra.mxu1 %v4082_v18  ;;  %v6088_v39 = vrot.slane %v949_v25, %v4544_v13  ;;  %v964_v54 = vcombine.high %v6079_v52, %v6079_v52  ;;  %v565_v25 = vld [vmem:[%s6888_s1 + $0x10d8] sm:$0xff] }
  0xf0   :  { %4085 = vmatprep.subr.bf16.mxu1 %v4084_v23  ;;  %v586_v23 = vld [vmem:[%s6888_s1 + $0x1180] sm:$0xff] }
  0xf1   :  { %4055 = vmatpush3.bf16.msra.mxu0 %v4054_v29  ;;  %v4104_v29 = vpack.c.bf16 %v555_v22, %v554_v21  ;;  %v4136_v42 = vpack.c.bf16 %v587_v24, %v586_v23  ;;  %v578_v21 = vld [vmem:[%s6888_s1 + $0x1140] sm:$0xff]  ;;  %v579_v23 = vld [vmem:[%s6888_s1 + $0x1148] sm:$0xff]  ;;  %v564_v24 = vld [vmem:[%s6888_s1 + $0x10d0] sm:$0xff] }
  0xf2   :  { %4057 = vmatprep.subr.bf16.mxu0 %v4056_v30  ;;  %v539_v30 = vld [vmem:[%s6888_s1 + $0x1008] sm:$0xff] }
  0xf3   :  { %4087 = vmatpush3.bf16.msra.mxu1 %v4086_v31  ;;  %v538_v31 = vld [vmem:[%s6888_s1 + $0x1000] sm:$0xff] }
  0xf4   :  { %4089 = vmatprep.subr.bf16.mxu1 %v4088_v35  ;;  %v556_v35 = vld [vmem:[%s6888_s1 + $0x1090] sm:$0xff] }
  0xf5   :  { %4059 = vmatpush3.bf16.msra.mxu0 %v4058_v40  ;;  %v4106_v40 = vpack.c.bf16 %v539_v30, %v538_v31  ;;  %v4154_v31 = vpack.c.bf16 %v579_v23, %v578_v21  ;;  %v4124_v30 = vpack.c.bf16 %v565_v25, %v564_v24  ;;  %v620_v21 = vld [vmem:[%s6888_s1 + $0x1290] sm:$0xff]  ;;  %v653_v25 = vld [vmem:[%s6888_s1 + $0x1398] sm:$0xff] }
  0xf6   :  { %4061 = vmatprep.subr.bf16.mxu0 %v4060_v43  ;;  %v4108_v43 = vpack.c.bf16 %v557_v36, %v556_v35  ;;  %v581_v36 = vld [vmem:[%s6888_s1 + $0x1158] sm:$0xff]  ;;  %v652_v24 = vld [vmem:[%s6888_s1 + $0x1390] sm:$0xff] }
  0xf7   :  { %4091 = vmatpush3.bf16.msra.mxu1 %v4090_v41  ;;  %v2784_v61 = vpop.f32.mrb[0].mxu0  ;;  %v4138_v41 = vpack.c.bf16 %v571_v34, %v570_v32  ;;  %v548_v32 = vld [vmem:[%s6888_s1 + $0x1050] sm:$0xff] }
  0xf8   :  { %4093 = vmatprep.subr.bf16.mxu1 %v4092_v48  ;;  %v2785_v3 = vpop.f32.mrb[1].mxu0  ;;  %v4140_v48 = vpack.c.bf16 %v589_v38, %v588_v37  ;;  %v580_v34 = vld [vmem:[%s6888_s1 + $0x1150] sm:$0xff]  ;;  %v566_v37 = vld [vmem:[%s6888_s1 + $0x10e0] sm:$0xff]  ;;  %v567_v38 = vld [vmem:[%s6888_s1 + $0x10e8] sm:$0xff] }
  0xf9   :  { %v2819_v4 = vpop.f32.mrb[0].mxu1  ;;  %v2786_v8 = vadd.f32 %v2785_v3, %v2784_v61  ;;  %4063 = vmatpush3.bf16.msra.mxu0 %v4062_v56  ;;  %v591_v56 = vld [vmem:[%s6888_s1 + $0x11a8] sm:$0xff]  ;;  %v574_v61 = vld [vmem:[%s6888_s1 + $0x1120] sm:$0xff] }
  0xfa   :  { %v2820_v7 = vpop.f32.mrb[1].mxu1  ;;  %4065 = vmatprep.subr.bf16.mxu0 %v4064_v45  ;;  %v4110_v45 = vpack.c.bf16 %v541_v46, %v540_v44  ;;  %v4158_v44 = vpack.c.bf16 %v581_v36, %v580_v34  ;;  %v4128_v46 = vpack.c.bf16 %v567_v38, %v566_v37  ;;  %v4204_v34 = vpack.c.bf16 %v653_v25, %v652_v24  ;;  %v622_v36 = vld [vmem:[%s6888_s1 + $0x12a0] sm:$0xff]  ;;  %v623_v37 = vld [vmem:[%s6888_s1 + $0x12a8] sm:$0xff] }
  0xfb   :  { %v2821_v10 = vadd.f32 %v2820_v7, %v2819_v4  ;;  %4095 = vmatpush3.bf16.msra.mxu1 %v4094_v57  ;;  %v1132_v18 = vadd.f32 %v2786_v8, %v2751_v2  ;;  %v965_v57 = vcombine.high %v6088_v39, %v6088_v39  ;;  %v593_v2 = vld [vmem:[%s6888_s1 + $0x11b8] sm:$0xff]  ;;  %v576_v7 = vld [vmem:[%s6888_s1 + $0x1130] sm:$0xff]  ;;  %v630_v24 = vld [vmem:[%s6888_s1 + $0x12e0] sm:$0xff] }
  0xfc   :  { %4097 = vmatprep.subr.bf16.mxu1 %v4096_v62  ;;  %v4144_v62 = vpack.c.bf16 %v591_v56, %v590_v55  ;;  %v545_v8 = vld [vmem:[%s6888_s1 + $0x1038] sm:$0xff]  ;;  %v4150_v17 = vpack.c.bf16 %v577_v11, %v576_v7  ;;  %v568_v55 = vld [vmem:[%s6888_s1 + $0x10f0] sm:$0xff]  ;;  %v619_v7 = vld [vmem:[%s6888_s1 + $0x1288] sm:$0xff] }
  0xfd   :  { %v6058_v26 = vadd.f32 %v2821_v10, %v1132_v18  ;;  %4067 = vmatpush3.bf16.msra.mxu0 %v4066_v9  ;;  %v4148_v9 = vpack.c.bf16 %v593_v2, %v592_v1  ;;  %v562_v10 = vld [vmem:[%s6888_s1 + $0x10c0] sm:$0xff]  ;;  %v4118_v16 = vpack.c.bf16 %v545_v8, %v544_v6  ;;  %v569_v56 = vld [vmem:[%s6888_s1 + $0x10f8] sm:$0xff]  ;;  %v552_v1 = vld [vmem:[%s6888_s1 + $0x1070] sm:$0xff] }
  0xfe   :  { %4069 = vmatprep.subr.bf16.mxu0 %v4068_v14  ;;  %v594_v14 = vld [vmem:[%s6888_s1 + $0x11c0] sm:$0xff]  ;;  %v4132_v0 = vpack.c.bf16 %v569_v56, %v568_v55  ;;  %v553_v2 = vld [vmem:[%s6888_s1 + $0x1078] sm:$0xff]  ;;  %v656_v55 = vld [vmem:[%s6888_s1 + $0x13b0] sm:$0xff] }
  0xff   :  { %4099 = vmatpush3.bf16.msra.mxu1 %v4098_v12  ;;  %v563_v12 = vld [vmem:[%s6888_s1 + $0x10c8] sm:$0xff]  ;;  %v4152_v22 = vpack.c.bf16 %v595_v15, %v594_v14  ;;  %v585_v6 = vld [vmem:[%s6888_s1 + $0x1178] sm:$0xff]  ;;  %v618_v8 = vld [vmem:[%s6888_s1 + $0x1280] sm:$0xff] }
 0x100   :  { %4101 = vmatprep.subr.bf16.mxu1 %v4100_v19  ;;  %v4120_v18 = vpack.c.bf16 %v563_v12, %v562_v10  ;;  %v546_v19 = vld [vmem:[%s6888_s1 + $0x1040] sm:$0xff]  ;;  %v4134_v12 = vpack.c.bf16 %v553_v2, %v552_v1  ;;  %v4168_v15 = vpack.c.bf16 %v619_v7, %v618_v8  ;;  %v657_v56 = vld [vmem:[%s6888_s1 + $0x13b8] sm:$0xff]  ;;  %v659_v1 = vld [vmem:[%s6888_s1 + $0x13c8] sm:$0xff] }
 0x101   :  { %4071 = vmatpush3.bf16.msra.mxu0 %v4070_v27  ;;  %v596_v27 = vld [vmem:[%s6888_s1 + $0x11d0] sm:$0xff]  ;;  %v642_v8 = vld [vmem:[%s6888_s1 + $0x1340] sm:$0xff]  ;;  %v631_v25 = vld [vmem:[%s6888_s1 + $0x12e8] sm:$0xff] }
 0x102   :  { %4105 = vmatprep.subr.bf16.mxu0 %v4104_v29  ;;  %v4122_v29 = vpack.c.bf16 %v547_v20, %v546_v19  ;;  %v635_v20 = vld [vmem:[%s6888_s1 + $0x1308] sm:$0xff] }
 0x103   :  { %4103 = vmatpush3.bf16.msra.mxu1 %v4102_v28  ;;  %v597_v28 = vld [vmem:[%s6888_s1 + $0x11d8] sm:$0xff] }
 0x104   :  { %4137 = vmatprep.subr.bf16.mxu1 %v4136_v42  ;;  %2110 = vmatmul.mubr.f32.vlgmr.msra.gmra.mrb[14].mxu0 %v5867_v51  ;;  %v542_v51 = vld [vmem:[%s6888_s1 + $0x1020] sm:$0xff]  ;;  %v549_v42 = vld [vmem:[%s6888_s1 + $0x1058] sm:$0xff]  ;;  %v4156_v35 = vpack.c.bf16 %v597_v28, %v596_v27 }
 0x105   :  { %4107 = vmatpush3.bf16.msra.mxu0 %v4106_v40  ;;  %2249 = vmatprep.mubr.f32.mxu0 %v964_v54  ;;  %v4114_v3 = vpack.c.bf16 %v543_v60, %v542_v51  ;;  %v598_v40 = vld [vmem:[%s6888_s1 + $0x11e0] sm:$0xff]  ;;  %v583_v54 = vld [vmem:[%s6888_s1 + $0x1168] sm:$0xff] }
 0x106   :  { %2180 = vmatmul.mubr.f32.vlgmr.msra.gmra.mrb[14].mxu1 %v5876_v33  ;;  %4109 = vmatprep.subr.bf16.mxu0 %v4108_v43  ;;  %v575_v33 = vld [vmem:[%s6888_s1 + $0x1128] sm:$0xff]  ;;  %v4126_v43 = vpack.c.bf16 %v549_v42, %v548_v32  ;;  %v4162_v63 = vpack.c.bf16 %v583_v54, %v582_v49  ;;  %v605_v32 = vld [vmem:[%s6888_s1 + $0x1218] sm:$0xff]  ;;  %v636_v42 = vld [vmem:[%s6888_s1 + $0x1310] sm:$0xff] }
 0x107   :  { %4139 = vmatpush3.bf16.msra.mxu1 %v4138_v41  ;;  %2319 = vmatprep.mubr.f32.mxu1 %v965_v57  ;;  %v4146_v4 = vpack.c.bf16 %v575_v33, %v574_v61  ;;  %v599_v41 = vld [vmem:[%s6888_s1 + $0x11e8] sm:$0xff]  ;;  %v638_v49 = vld [vmem:[%s6888_s1 + $0x1320] sm:$0xff]  ;;  %v625_v54 = vld [vmem:[%s6888_s1 + $0x12b8] sm:$0xff] }
 0x108   :  { %4141 = vmatprep.subr.bf16.mxu1 %v4140_v48  ;;  %v551_v48 = vld [vmem:[%s6888_s1 + $0x1068] sm:$0xff]  ;;  %v4160_v53 = vpack.c.bf16 %v599_v41, %v598_v40  ;;  %v654_v40 = vld [vmem:[%s6888_s1 + $0x13a0] sm:$0xff] }
 0x109   :  { %4111 = vmatpush3.bf16.msra.mxu0 %v4110_v45  ;;  %v4130_v61 = vpack.c.bf16 %v551_v48, %v550_v47  ;;  %v655_v41 = vld [vmem:[%s6888_s1 + $0x13a8] sm:$0xff]  ;;  %v4176_v47 = vpack.c.bf16 %v623_v37, %v622_v36 }
 0x10a   :  { %4113 = vmatprep.subr.bf16.mxu0 %v4112_v59  ;;  %v601_v59 = vld [vmem:[%s6888_s1 + $0x11f8] sm:$0xff]  ;;  %v607_v48 = vld [vmem:[%s6888_s1 + $0x1228] sm:$0xff] }
 0x10b   :  { %4143 = vmatpush3.bf16.msra.mxu1 %v4142_v58  ;;  %v600_v58 = vld [vmem:[%s6888_s1 + $0x11f0] sm:$0xff] }
 0x10c   :  { %4145 = vmatprep.subr.bf16.mxu1 %v4144_v62  ;;  %v23_v62 = vld [vmem:[%s6889_s0 + $0x48] sm:$0xff] }
 0x10d   :  { %4115 = vmatpush3.bf16.msra.mxu0 %v4114_v3  ;;  %v584_v3 = vld [vmem:[%s6888_s1 + $0x1170] sm:$0xff]  ;;  %v966_v11 = vcombine.high %v23_v62, %v23_v62  ;;  %v6289_v23 = vrot.slane %v23_v62, %v4544_v13  ;;  %v641_v62 = vld [vmem:[%s6888_s1 + $0x1338] sm:$0xff] }
 0x10e   :  { %4117 = vmatprep.subr.bf16.mxu0 %v4116_v5  ;;  %v4164_v5 = vpack.c.bf16 %v601_v59, %v600_v58  ;;  %v4166_v14 = vpack.c.bf16 %v585_v6, %v584_v3  ;;  %v608_v59 = vld [vmem:[%s6888_s1 + $0x1230] sm:$0xff]  ;;  %v611_v6 = vld [vmem:[%s6888_s1 + $0x1248] sm:$0xff] }
 0x10f   :  { %4147 = vmatpush3.bf16.msra.mxu1 %v4146_v4  ;;  %v6298_v27 = vrot.slane %v966_v11, %v4544_v13  ;;  %v981_v38 = vcombine.high %v6289_v23, %v6289_v23  ;;  %v629_v11 = vld [vmem:[%s6888_s1 + $0x12d8] sm:$0xff] }
 0x110   :  { %4149 = vmatprep.subr.bf16.mxu1 %v4148_v9  ;;  %v650_v9 = vld [vmem:[%s6888_s1 + $0x1380] sm:$0xff] }
 0x111   :  { %4119 = vmatpush3.bf16.msra.mxu0 %v4118_v16  ;;  %v602_v16 = vld [vmem:[%s6888_s1 + $0x1200] sm:$0xff] }
 0x112   :  { %4121 = vmatprep.subr.bf16.mxu0 %v4120_v18  ;;  %v634_v18 = vld [vmem:[%s6888_s1 + $0x1300] sm:$0xff] }
 0x113   :  { %4151 = vmatpush3.bf16.msra.mxu1 %v4150_v17  ;;  %v603_v17 = vld [vmem:[%s6888_s1 + $0x1208] sm:$0xff] }
 0x114   :  { %4153 = vmatprep.subr.bf16.mxu1 %v4152_v22  ;;  %v621_v22 = vld [vmem:[%s6888_s1 + $0x1298] sm:$0xff]  ;;  %v4170_v28 = vpack.c.bf16 %v603_v17, %v602_v16 }
 0x115   :  { %4123 = vmatpush3.bf16.msra.mxu0 %v4122_v29  ;;  %v4202_v29 = vpack.c.bf16 %v635_v20, %v634_v18  ;;  %v612_v18 = vld [vmem:[%s6888_s1 + $0x1250] sm:$0xff] }
 0x116   :  { %4125 = vmatprep.subr.bf16.mxu0 %v4124_v30  ;;  %v604_v30 = vld [vmem:[%s6888_s1 + $0x1210] sm:$0xff] }
 0x117   :  { %4155 = vmatpush3.bf16.msra.mxu1 %v4154_v31  ;;  %v2854_v50 = vpop.f32.mrb[2].mxu0  ;;  %v4172_v31 = vpack.c.bf16 %v621_v22, %v620_v21  ;;  %v644_v20 = vld [vmem:[%s6888_s1 + $0x1350] sm:$0xff]  ;;  %v645_v22 = vld [vmem:[%s6888_s1 + $0x1358] sm:$0xff] }
 0x118   :  { %4157 = vmatprep.subr.bf16.mxu1 %v4156_v35  ;;  %v2855_v57 = vpop.f32.mrb[3].mxu0  ;;  %v637_v35 = vld [vmem:[%s6888_s1 + $0x1318] sm:$0xff] }
 0x119   :  { %v2889_v45 = vpop.f32.mrb[2].mxu1  ;;  %v2856_v51 = vadd.f32 %v2855_v57, %v2854_v50  ;;  %4127 = vmatpush3.bf16.msra.mxu0 %v4126_v43  ;;  %v982_v43 = vcombine.high %v6298_v27, %v6298_v27  ;;  %v4208_v50 = vpack.c.bf16 %v655_v41, %v654_v40  ;;  %v632_v40 = vld [vmem:[%s6888_s1 + $0x12f0] sm:$0xff]  ;;  %v633_v41 = vld [vmem:[%s6888_s1 + $0x12f8] sm:$0xff] }
 0x11a   :  { %v2890_v60 = vpop.f32.mrb[3].mxu1  ;;  %4129 = vmatprep.subr.bf16.mxu0 %v4128_v46  ;;  %v4206_v46 = vpack.c.bf16 %v637_v35, %v636_v42  ;;  %v614_v42 = vld [vmem:[%s6888_s1 + $0x1260] sm:$0xff] }
 0x11b   :  { %v2891_v33 = vadd.f32 %v2890_v60, %v2889_v45  ;;  %4159 = vmatpush3.bf16.msra.mxu1 %v4158_v44  ;;  %v1272_v4 = vadd.f32 %v2856_v51, %v6058_v26  ;;  %v651_v26 = vld [vmem:[%s6888_s1 + $0x1388] sm:$0xff]  ;;  %v4174_v44 = vpack.c.bf16 %v605_v32, %v604_v30  ;;  %v609_v51 = vld [vmem:[%s6888_s1 + $0x1238] sm:$0xff]  ;;  %v640_v60 = vld [vmem:[%s6888_s1 + $0x1330] sm:$0xff]  ;;  %v4222_v30 = vpack.c.bf16 %v645_v22, %v644_v20 }
 0x11c   :  { %4161 = vmatprep.subr.bf16.mxu1 %v4160_v53  ;;  %v4200_v19 = vpack.c.bf16 %v651_v26, %v650_v9  ;;  %v624_v53 = vld [vmem:[%s6888_s1 + $0x12b0] sm:$0xff]  ;;  %v4182_v2 = vpack.c.bf16 %v609_v51, %v608_v59  ;;  %v4214_v3 = vpack.c.bf16 %v641_v62, %v640_v60  ;;  %v643_v9 = vld [vmem:[%s6888_s1 + $0x1348] sm:$0xff]  ;;  %v4192_v32 = vpack.c.bf16 %v631_v25, %v630_v24  ;;  %v646_v35 = vld [vmem:[%s6888_s1 + $0x1360] sm:$0xff] }
 0x11d   :  { %v6268_v10 = vadd.f32 %v2891_v33, %v1272_v4  ;;  %4131 = vmatpush3.bf16.msra.mxu0 %v4130_v61  ;;  %v4180_v58 = vpack.c.bf16 %v625_v54, %v624_v53  ;;  %v4212_v61 = vpack.c.bf16 %v657_v56, %v656_v55  ;;  %v626_v33 = vld [vmem:[%s6888_s1 + $0x12c0] sm:$0xff]  ;;  %v628_v26 = vld [vmem:[%s6888_s1 + $0x12d0] sm:$0xff]  ;;  %v4218_v16 = vpack.c.bf16 %v643_v9, %v642_v8  ;;  %v617_v56 = vld [vmem:[%s6888_s1 + $0x1278] sm:$0xff] }
 0x11e   :  { %4133 = vmatprep.subr.bf16.mxu0 %v4132_v0  ;;  %v658_v0 = vld [vmem:[%s6888_s1 + $0x13c0] sm:$0xff]  ;;  %v4188_v17 = vpack.c.bf16 %v629_v11, %v628_v26  ;;  %v4196_v54 = vpack.c.bf16 %v633_v41, %v632_v40  ;;  %v616_v55 = vld [vmem:[%s6888_s1 + $0x1270] sm:$0xff]  ;;  %v649_v59 = vld [vmem:[%s6888_s1 + $0x1378] sm:$0xff] }
 0x11f   :  { %4163 = vmatpush3.bf16.msra.mxu1 %v4162_v63  ;;  %v627_v63 = vld [vmem:[%s6888_s1 + $0x12c8] sm:$0xff]  ;;  %v4216_v7 = vpack.c.bf16 %v659_v1, %v658_v0  ;;  %v682_v51 = vld [vmem:[%s6888_s1 + $0x1480] sm:$0xff]  ;;  %v684_v8 = vld [vmem:[%s6888_s1 + $0x1490] sm:$0xff] }
 0x120   :  { %4165 = vmatprep.subr.bf16.mxu1 %v4164_v5  ;;  %v4184_v4 = vpack.c.bf16 %v627_v63, %v626_v33  ;;  %v610_v5 = vld [vmem:[%s6888_s1 + $0x1240] sm:$0xff]  ;;  %v683_v60 = vld [vmem:[%s6888_s1 + $0x1488] sm:$0xff]  ;;  %v4198_v63 = vpack.c.bf16 %v617_v56, %v616_v55  ;;  %v716_v26 = vld [vmem:[%s6888_s1 + $0x1590] sm:$0xff] }
 0x121   :  { %4135 = vmatpush3.bf16.msra.mxu0 %v4134_v12  ;;  %v660_v12 = vld [vmem:[%s6888_s1 + $0x13d0] sm:$0xff]  ;;  %v4232_v1 = vpack.c.bf16 %v683_v60, %v682_v51  ;;  %v717_v11 = vld [vmem:[%s6888_s1 + $0x1598] sm:$0xff]  ;;  %v686_v22 = vld [vmem:[%s6888_s1 + $0x14a0] sm:$0xff] }
 0x122   :  { %4169 = vmatprep.subr.bf16.mxu0 %v4168_v15  ;;  %v4186_v15 = vpack.c.bf16 %v611_v6, %v610_v5  ;;  %v699_v6 = vld [vmem:[%s6888_s1 + $0x1508] sm:$0xff]  ;;  %v4268_v20 = vpack.c.bf16 %v717_v11, %v716_v26  ;;  %v720_v40 = vld [vmem:[%s6888_s1 + $0x15b0] sm:$0xff]  ;;  %v721_v41 = vld [vmem:[%s6888_s1 + $0x15b8] sm:$0xff] }
 0x123   :  { %4167 = vmatpush3.bf16.msra.mxu1 %v4166_v14  ;;  %v661_v14 = vld [vmem:[%s6888_s1 + $0x13d8] sm:$0xff]  ;;  %v687_v24 = vld [vmem:[%s6888_s1 + $0x14a8] sm:$0xff]  ;;  %v706_v51 = vld [vmem:[%s6888_s1 + $0x1540] sm:$0xff] }
 0x124   :  { %4201 = vmatprep.subr.bf16.mxu1 %v4200_v19  ;;  %2250 = vmatmul.mubr.f32.vlgmr.msra.gmra.mrb[16].mxu0 %v6079_v52  ;;  %v606_v52 = vld [vmem:[%s6888_s1 + $0x1220] sm:$0xff]  ;;  %v613_v19 = vld [vmem:[%s6888_s1 + $0x1258] sm:$0xff]  ;;  %v4220_v21 = vpack.c.bf16 %v661_v14, %v660_v12  ;;  %v723_v55 = vld [vmem:[%s6888_s1 + $0x15c8] sm:$0xff] }
 0x125   :  { %4171 = vmatpush3.bf16.msra.mxu0 %v4170_v28  ;;  %2389 = vmatprep.mubr.f32.mxu0 %v981_v38  ;;  %v4178_v57 = vpack.c.bf16 %v607_v48, %v606_v52  ;;  %v662_v28 = vld [vmem:[%s6888_s1 + $0x13e0] sm:$0xff]  ;;  %v647_v38 = vld [vmem:[%s6888_s1 + $0x1368] sm:$0xff] }
 0x126   :  { %2320 = vmatmul.mubr.f32.vlgmr.msra.gmra.mrb[16].mxu1 %v6088_v39  ;;  %4173 = vmatprep.subr.bf16.mxu0 %v4172_v31  ;;  %v639_v39 = vld [vmem:[%s6888_s1 + $0x1328] sm:$0xff]  ;;  %v4190_v31 = vpack.c.bf16 %v613_v19, %v612_v18  ;;  %v4226_v53 = vpack.c.bf16 %v647_v38, %v646_v35  ;;  %v669_v18 = vld [vmem:[%s6888_s1 + $0x1418] sm:$0xff]  ;;  %v700_v19 = vld [vmem:[%s6888_s1 + $0x1510] sm:$0xff] }
 0x127   :  { %4203 = vmatpush3.bf16.msra.mxu1 %v4202_v29  ;;  %2459 = vmatprep.mubr.f32.mxu1 %v982_v43  ;;  %v4210_v45 = vpack.c.bf16 %v639_v39, %v638_v49  ;;  %v663_v29 = vld [vmem:[%s6888_s1 + $0x13e8] sm:$0xff]  ;;  %v702_v35 = vld [vmem:[%s6888_s1 + $0x1520] sm:$0xff]  ;;  %v689_v38 = vld [vmem:[%s6888_s1 + $0x14b8] sm:$0xff] }
 0x128   :  { %4205 = vmatprep.subr.bf16.mxu1 %v4204_v34  ;;  %v615_v34 = vld [vmem:[%s6888_s1 + $0x1268] sm:$0xff]  ;;  %v4224_v37 = vpack.c.bf16 %v663_v29, %v662_v28  ;;  %v718_v28 = vld [vmem:[%s6888_s1 + $0x15a0] sm:$0xff] }
 0x129   :  { %4175 = vmatpush3.bf16.msra.mxu0 %v4174_v44  ;;  %v4194_v49 = vpack.c.bf16 %v615_v34, %v614_v42  ;;  %v719_v29 = vld [vmem:[%s6888_s1 + $0x15a8] sm:$0xff]  ;;  %v4240_v42 = vpack.c.bf16 %v687_v24, %v686_v22  ;;  %v694_v26 = vld [vmem:[%s6888_s1 + $0x14e0] sm:$0xff] }
 0x12a   :  { %4177 = vmatprep.subr.bf16.mxu0 %v4176_v47  ;;  %v665_v47 = vld [vmem:[%s6888_s1 + $0x13f8] sm:$0xff]  ;;  %v671_v34 = vld [vmem:[%s6888_s1 + $0x1428] sm:$0xff] }
 0x12b   :  { %4207 = vmatpush3.bf16.msra.mxu1 %v4206_v46  ;;  %v664_v46 = vld [vmem:[%s6888_s1 + $0x13f0] sm:$0xff]  ;;  %v695_v11 = vld [vmem:[%s6888_s1 + $0x14e8] sm:$0xff] }
 0x12c   :  { %4209 = vmatprep.subr.bf16.mxu1 %v4208_v50  ;;  %v24_v50 = vld [vmem:[%s6889_s0 + $0x50] sm:$0xff] }
 0x12d   :  { %4179 = vmatpush3.bf16.msra.mxu0 %v4178_v57  ;;  %v648_v57 = vld [vmem:[%s6888_s1 + $0x1370] sm:$0xff]  ;;  %v983_v62 = vcombine.high %v24_v50, %v24_v50  ;;  %v6499_v9 = vrot.slane %v24_v50, %v4544_v13  ;;  %v705_v50 = vld [vmem:[%s6888_s1 + $0x1538] sm:$0xff] }
 0x12e   :  { %4181 = vmatprep.subr.bf16.mxu0 %v4180_v58  ;;  %v4228_v58 = vpack.c.bf16 %v665_v47, %v664_v46  ;;  %v4230_v0 = vpack.c.bf16 %v649_v59, %v648_v57  ;;  %v672_v47 = vld [vmem:[%s6888_s1 + $0x1430] sm:$0xff]  ;;  %v675_v59 = vld [vmem:[%s6888_s1 + $0x1448] sm:$0xff] }
 0x12f   :  { %4211 = vmatpush3.bf16.msra.mxu1 %v4210_v45  ;;  %v6508_v12 = vrot.slane %v983_v62, %v4544_v13  ;;  %v998_v25 = vcombine.high %v6499_v9, %v6499_v9  ;;  %v693_v62 = vld [vmem:[%s6888_s1 + $0x14d8] sm:$0xff] }
 0x130   :  { %4213 = vmatprep.subr.bf16.mxu1 %v4212_v61  ;;  %v714_v61 = vld [vmem:[%s6888_s1 + $0x1580] sm:$0xff] }
 0x131   :  { %4183 = vmatpush3.bf16.msra.mxu0 %v4182_v2  ;;  %v666_v2 = vld [vmem:[%s6888_s1 + $0x1400] sm:$0xff] }
 0x132   :  { %4185 = vmatprep.subr.bf16.mxu0 %v4184_v4  ;;  %v698_v4 = vld [vmem:[%s6888_s1 + $0x1500] sm:$0xff] }
 0x133   :  { %4215 = vmatpush3.bf16.msra.mxu1 %v4214_v3  ;;  %v667_v3 = vld [vmem:[%s6888_s1 + $0x1408] sm:$0xff] }
 0x134   :  { %4217 = vmatprep.subr.bf16.mxu1 %v4216_v7  ;;  %v685_v7 = vld [vmem:[%s6888_s1 + $0x1498] sm:$0xff]  ;;  %v4234_v14 = vpack.c.bf16 %v667_v3, %v666_v2 }
 0x135   :  { %4187 = vmatpush3.bf16.msra.mxu0 %v4186_v15  ;;  %v4266_v15 = vpack.c.bf16 %v699_v6, %v698_v4  ;;  %v676_v4 = vld [vmem:[%s6888_s1 + $0x1450] sm:$0xff] }
 0x136   :  { %4189 = vmatprep.subr.bf16.mxu0 %v4188_v17  ;;  %v668_v17 = vld [vmem:[%s6888_s1 + $0x1410] sm:$0xff] }
 0x137   :  { %4219 = vmatpush3.bf16.msra.mxu1 %v4218_v16  ;;  %v2924_v36 = vpop.f32.mrb[4].mxu0  ;;  %v4236_v16 = vpack.c.bf16 %v685_v7, %v684_v8  ;;  %v708_v6 = vld [vmem:[%s6888_s1 + $0x1550] sm:$0xff]  ;;  %v709_v7 = vld [vmem:[%s6888_s1 + $0x1558] sm:$0xff] }
 0x138   :  { %4221 = vmatprep.subr.bf16.mxu1 %v4220_v21  ;;  %v2925_v43 = vpop.f32.mrb[5].mxu0  ;;  %v701_v21 = vld [vmem:[%s6888_s1 + $0x1518] sm:$0xff] }
 0x139   :  { %v2959_v44 = vpop.f32.mrb[4].mxu1  ;;  %v2926_v52 = vadd.f32 %v2925_v43, %v2924_v36  ;;  %4191 = vmatpush3.bf16.msra.mxu0 %v4190_v31  ;;  %v999_v31 = vcombine.high %v6508_v12, %v6508_v12  ;;  %v4272_v36 = vpack.c.bf16 %v719_v29, %v718_v28  ;;  %v696_v28 = vld [vmem:[%s6888_s1 + $0x14f0] sm:$0xff]  ;;  %v697_v29 = vld [vmem:[%s6888_s1 + $0x14f8] sm:$0xff] }
 0x13a   :  { %v2960_v48 = vpop.f32.mrb[5].mxu1  ;;  %4193 = vmatprep.subr.bf16.mxu0 %v4192_v32  ;;  %v4270_v32 = vpack.c.bf16 %v701_v21, %v700_v19  ;;  %v678_v19 = vld [vmem:[%s6888_s1 + $0x1460] sm:$0xff] }
 0x13b   :  { %v2961_v39 = vadd.f32 %v2960_v48, %v2959_v44  ;;  %4223 = vmatpush3.bf16.msra.mxu1 %v4222_v30  ;;  %v1412_v45 = vadd.f32 %v2926_v52, %v6268_v10  ;;  %v715_v10 = vld [vmem:[%s6888_s1 + $0x1588] sm:$0xff]  ;;  %v4238_v30 = vpack.c.bf16 %v669_v18, %v668_v17  ;;  %v673_v52 = vld [vmem:[%s6888_s1 + $0x1438] sm:$0xff]  ;;  %v704_v48 = vld [vmem:[%s6888_s1 + $0x1530] sm:$0xff]  ;;  %v4286_v17 = vpack.c.bf16 %v709_v7, %v708_v6 }
 0x13c   :  { %4225 = vmatprep.subr.bf16.mxu1 %v4224_v37  ;;  %v4264_v5 = vpack.c.bf16 %v715_v10, %v714_v61  ;;  %v688_v37 = vld [vmem:[%s6888_s1 + $0x14b0] sm:$0xff]  ;;  %v4246_v56 = vpack.c.bf16 %v673_v52, %v672_v47  ;;  %v4278_v57 = vpack.c.bf16 %v705_v50, %v704_v48  ;;  %v707_v61 = vld [vmem:[%s6888_s1 + $0x1548] sm:$0xff]  ;;  %v4256_v18 = vpack.c.bf16 %v695_v11, %v694_v26  ;;  %v710_v21 = vld [vmem:[%s6888_s1 + $0x1560] sm:$0xff] }
 0x13d   :  { %v6478_v33 = vadd.f32 %v2961_v39, %v1412_v45  ;;  %4195 = vmatpush3.bf16.msra.mxu0 %v4194_v49  ;;  %v4244_v46 = vpack.c.bf16 %v689_v38, %v688_v37  ;;  %v4276_v49 = vpack.c.bf16 %v721_v41, %v720_v40  ;;  %v690_v39 = vld [vmem:[%s6888_s1 + $0x14c0] sm:$0xff]  ;;  %v692_v10 = vld [vmem:[%s6888_s1 + $0x14d0] sm:$0xff]  ;;  %v4282_v2 = vpack.c.bf16 %v707_v61, %v706_v51  ;;  %v681_v41 = vld [vmem:[%s6888_s1 + $0x1478] sm:$0xff] }
 0x13e   :  { %4197 = vmatprep.subr.bf16.mxu0 %v4196_v54  ;;  %v722_v54 = vld [vmem:[%s6888_s1 + $0x15c0] sm:$0xff]  ;;  %v4252_v3 = vpack.c.bf16 %v693_v62, %v692_v10  ;;  %v4260_v38 = vpack.c.bf16 %v697_v29, %v696_v28  ;;  %v680_v40 = vld [vmem:[%s6888_s1 + $0x1470] sm:$0xff]  ;;  %v713_v47 = vld [vmem:[%s6888_s1 + $0x1578] sm:$0xff] }
 0x13f   :  { %4227 = vmatpush3.bf16.msra.mxu1 %v4226_v53  ;;  %v691_v53 = vld [vmem:[%s6888_s1 + $0x14c8] sm:$0xff]  ;;  %v4280_v60 = vpack.c.bf16 %v723_v55, %v722_v54  ;;  %v746_v52 = vld [vmem:[%s6888_s1 + $0x1680] sm:$0xff]  ;;  %v748_v51 = vld [vmem:[%s6888_s1 + $0x1690] sm:$0xff] }
 0x140   :  { %4229 = vmatprep.subr.bf16.mxu1 %v4228_v58  ;;  %v4248_v45 = vpack.c.bf16 %v691_v53, %v690_v39  ;;  %v674_v58 = vld [vmem:[%s6888_s1 + $0x1440] sm:$0xff]  ;;  %v747_v48 = vld [vmem:[%s6888_s1 + $0x1688] sm:$0xff]  ;;  %v4262_v53 = vpack.c.bf16 %v681_v41, %v680_v40  ;;  %v780_v10 = vld [vmem:[%s6888_s1 + $0x1790] sm:$0xff] }
 0x141   :  { %4199 = vmatpush3.bf16.msra.mxu0 %v4198_v63  ;;  %v724_v63 = vld [vmem:[%s6888_s1 + $0x15d0] sm:$0xff]  ;;  %v4296_v55 = vpack.c.bf16 %v747_v48, %v746_v52  ;;  %v781_v62 = vld [vmem:[%s6888_s1 + $0x1798] sm:$0xff]  ;;  %v751_v7 = vld [vmem:[%s6888_s1 + $0x16a8] sm:$0xff] }
 0x142   :  { %4233 = vmatprep.subr.bf16.mxu0 %v4232_v1  ;;  %v4250_v1 = vpack.c.bf16 %v675_v59, %v674_v58  ;;  %v763_v59 = vld [vmem:[%s6888_s1 + $0x1708] sm:$0xff]  ;;  %v765_v6 = vld [vmem:[%s6888_s1 + $0x1718] sm:$0xff]  ;;  %v782_v11 = vld [vmem:[%s6888_s1 + $0x17a0] sm:$0xff] }
 0x143   :  { %4231 = vmatpush3.bf16.msra.mxu1 %v4230_v0  ;;  %v725_v0 = vld [vmem:[%s6888_s1 + $0x15d8] sm:$0xff]  ;;  %v771_v48 = vld [vmem:[%s6888_s1 + $0x1748] sm:$0xff] }
 0x144   :  { %4265 = vmatprep.subr.bf16.mxu1 %v4264_v5  ;;  %2390 = vmatmul.mubr.f32.vlgmr.msra.gmra.mrb[18].mxu0 %v6289_v23  ;;  %v670_v23 = vld [vmem:[%s6888_s1 + $0x1420] sm:$0xff]  ;;  %v677_v5 = vld [vmem:[%s6888_s1 + $0x1458] sm:$0xff]  ;;  %v4284_v8 = vpack.c.bf16 %v725_v0, %v724_v63 }
 0x145   :  { %4235 = vmatpush3.bf16.msra.mxu0 %v4234_v14  ;;  %2529 = vmatprep.mubr.f32.mxu0 %v998_v25  ;;  %v4242_v43 = vpack.c.bf16 %v671_v34, %v670_v23  ;;  %v726_v14 = vld [vmem:[%s6888_s1 + $0x15e0] sm:$0xff]  ;;  %v711_v25 = vld [vmem:[%s6888_s1 + $0x1568] sm:$0xff]  ;;  %v785_v28 = vld [vmem:[%s6888_s1 + $0x17b8] sm:$0xff] }
 0x146   :  { %2460 = vmatmul.mubr.f32.vlgmr.msra.gmra.mrb[18].mxu1 %v6298_v27  ;;  %4237 = vmatprep.subr.bf16.mxu0 %v4236_v16  ;;  %v703_v27 = vld [vmem:[%s6888_s1 + $0x1528] sm:$0xff]  ;;  %v4254_v16 = vpack.c.bf16 %v677_v5, %v676_v4  ;;  %v4290_v37 = vpack.c.bf16 %v711_v25, %v710_v21  ;;  %v733_v4 = vld [vmem:[%s6888_s1 + $0x1618] sm:$0xff]  ;;  %v764_v5 = vld [vmem:[%s6888_s1 + $0x1710] sm:$0xff] }
 0x147   :  { %4267 = vmatpush3.bf16.msra.mxu1 %v4266_v15  ;;  %2599 = vmatprep.mubr.f32.mxu1 %v999_v31  ;;  %v4274_v44 = vpack.c.bf16 %v703_v27, %v702_v35  ;;  %v727_v15 = vld [vmem:[%s6888_s1 + $0x15e8] sm:$0xff]  ;;  %v784_v25 = vld [vmem:[%s6888_s1 + $0x17b0] sm:$0xff] }
 0x148   :  { %4269 = vmatprep.subr.bf16.mxu1 %v4268_v20  ;;  %v679_v20 = vld [vmem:[%s6888_s1 + $0x1468] sm:$0xff]  ;;  %v4288_v24 = vpack.c.bf16 %v727_v15, %v726_v14 }
 0x149   :  { %4239 = vmatpush3.bf16.msra.mxu0 %v4238_v30  ;;  %v4258_v35 = vpack.c.bf16 %v679_v20, %v678_v19  ;;  %v783_v14 = vld [vmem:[%s6888_s1 + $0x17a8] sm:$0xff]  ;;  %v766_v20 = vld [vmem:[%s6888_s1 + $0x1720] sm:$0xff] }
 0x14a   :  { %4241 = vmatprep.subr.bf16.mxu0 %v4240_v42  ;;  %v729_v42 = vld [vmem:[%s6888_s1 + $0x15f8] sm:$0xff]  ;;  %v735_v19 = vld [vmem:[%s6888_s1 + $0x1628] sm:$0xff]  ;;  %v4336_v21 = vpack.c.bf16 %v783_v14, %v782_v11 }
 0x14b   :  { %4271 = vmatpush3.bf16.msra.mxu1 %v4270_v32  ;;  %v728_v32 = vld [vmem:[%s6888_s1 + $0x15f0] sm:$0xff]  ;;  %v761_v11 = vld [vmem:[%s6888_s1 + $0x16f8] sm:$0xff] }
 0x14c   :  { %4273 = vmatprep.subr.bf16.mxu1 %v4272_v36  ;;  %v25_v36 = vld [vmem:[%s6889_s0 + $0x58] sm:$0xff] }
 0x14d   :  { %4243 = vmatpush3.bf16.msra.mxu0 %v4242_v43  ;;  %v712_v43 = vld [vmem:[%s6888_s1 + $0x1570] sm:$0xff]  ;;  %v1000_v50 = vcombine.high %v25_v36, %v25_v36  ;;  %v6709_v61 = vrot.slane %v25_v36, %v4544_v13  ;;  %v754_v36 = vld [vmem:[%s6888_s1 + $0x16c0] sm:$0xff] }
 0x14e   :  { %4245 = vmatprep.subr.bf16.mxu0 %v4244_v46  ;;  %v4292_v46 = vpack.c.bf16 %v729_v42, %v728_v32  ;;  %v4294_v54 = vpack.c.bf16 %v713_v47, %v712_v43  ;;  %v736_v32 = vld [vmem:[%s6888_s1 + $0x1630] sm:$0xff]  ;;  %v737_v42 = vld [vmem:[%s6888_s1 + $0x1638] sm:$0xff]  ;;  %v770_v47 = vld [vmem:[%s6888_s1 + $0x1740] sm:$0xff] }
 0x14f   :  { %4275 = vmatpush3.bf16.msra.mxu1 %v4274_v44  ;;  %v6718_v63 = vrot.slane %v1000_v50, %v4544_v13  ;;  %v4332_v13 = vpack.c.bf16 %v781_v62, %v780_v10  ;;  %v1015_v26 = vcombine.high %v6709_v61, %v6709_v61  ;;  %v4310_v40 = vpack.c.bf16 %v737_v42, %v736_v32  ;;  %v788_v50 = vld [vmem:[%s6888_s1 + $0x17d0] sm:$0xff]  ;;  %v759_v10 = vld [vmem:[%s6888_s1 + $0x16e8] sm:$0xff]  ;;  %v790_v62 = vld [vmem:[%s6888_s1 + $0x17e0] sm:$0xff] }
 0x150   :  { %4277 = vmatprep.subr.bf16.mxu1 %v4276_v49  ;;  %v778_v49 = vld [vmem:[%s6888_s1 + $0x1780] sm:$0xff] }
 0x151   :  { %4247 = vmatpush3.bf16.msra.mxu0 %v4246_v56  ;;  %v730_v56 = vld [vmem:[%s6888_s1 + $0x1600] sm:$0xff]  ;;  %v1016_v15 = vcombine.high %v6718_v63, %v6718_v63 }
 0x152   :  { %4249 = vmatprep.subr.bf16.mxu0 %v4248_v45  ;;  %v762_v45 = vld [vmem:[%s6888_s1 + $0x1700] sm:$0xff] }
 0x153   :  { %4279 = vmatpush3.bf16.msra.mxu1 %v4278_v57  ;;  %v731_v57 = vld [vmem:[%s6888_s1 + $0x1608] sm:$0xff] }
 0x154   :  { %4281 = vmatprep.subr.bf16.mxu1 %v4280_v60  ;;  %v749_v60 = vld [vmem:[%s6888_s1 + $0x1698] sm:$0xff]  ;;  %v4298_v0 = vpack.c.bf16 %v731_v57, %v730_v56  ;;  %v740_v57 = vld [vmem:[%s6888_s1 + $0x1650] sm:$0xff] }
 0x155   :  { %4251 = vmatpush3.bf16.msra.mxu0 %v4250_v1  ;;  %v4330_v1 = vpack.c.bf16 %v763_v59, %v762_v45  ;;  %v741_v45 = vld [vmem:[%s6888_s1 + $0x1658] sm:$0xff] }
 0x156   :  { %4253 = vmatprep.subr.bf16.mxu0 %v4252_v3  ;;  %v732_v3 = vld [vmem:[%s6888_s1 + $0x1610] sm:$0xff] }
 0x157   :  { %4283 = vmatpush3.bf16.msra.mxu1 %v4282_v2  ;;  %v2994_v22 = vpop.f32.mrb[6].mxu0  ;;  %v4300_v2 = vpack.c.bf16 %v749_v60, %v748_v51  ;;  %v773_v51 = vld [vmem:[%s6888_s1 + $0x1758] sm:$0xff]  ;;  %v758_v60 = vld [vmem:[%s6888_s1 + $0x16e0] sm:$0xff] }
 0x158   :  { %4285 = vmatprep.subr.bf16.mxu1 %v4284_v8  ;;  %v2995_v31 = vpop.f32.mrb[7].mxu0  ;;  %v750_v8 = vld [vmem:[%s6888_s1 + $0x16a0] sm:$0xff] }
 0x159   :  { %v3029_v30 = vpop.f32.mrb[6].mxu1  ;;  %v2996_v23 = vadd.f32 %v2995_v31, %v2994_v22  ;;  %4255 = vmatpush3.bf16.msra.mxu0 %v4254_v16  ;;  %v4302_v16 = vpack.c.bf16 %v733_v4, %v732_v3  ;;  %v752_v22 = vld [vmem:[%s6888_s1 + $0x16b0] sm:$0xff]  ;;  %v4320_v3 = vpack.c.bf16 %v759_v10, %v758_v60  ;;  %v742_v4 = vld [vmem:[%s6888_s1 + $0x1660] sm:$0xff] }
 0x15a   :  { %v3030_v34 = vpop.f32.mrb[7].mxu1  ;;  %4257 = vmatprep.subr.bf16.mxu0 %v4256_v18  ;;  %v4304_v18 = vpack.c.bf16 %v751_v7, %v750_v8  ;;  %v775_v7 = vld [vmem:[%s6888_s1 + $0x1768] sm:$0xff] }
 0x15b   :  { %v3031_v27 = vadd.f32 %v3030_v34, %v3029_v30  ;;  %4287 = vmatpush3.bf16.msra.mxu1 %v4286_v17  ;;  %v1552_v44 = vadd.f32 %v2996_v23, %v6478_v33  ;;  %v779_v33 = vld [vmem:[%s6888_s1 + $0x1788] sm:$0xff]  ;;  %v4334_v17 = vpack.c.bf16 %v765_v6, %v764_v5  ;;  %v768_v23 = vld [vmem:[%s6888_s1 + $0x1730] sm:$0xff]  ;;  %v4340_v34 = vpack.c.bf16 %v785_v28, %v784_v25 }
 0x15c   :  { %4289 = vmatprep.subr.bf16.mxu1 %v4288_v24  ;;  %v4328_v58 = vpack.c.bf16 %v779_v33, %v778_v49  ;;  %v753_v24 = vld [vmem:[%s6888_s1 + $0x16b8] sm:$0xff]  ;;  %v756_v49 = vld [vmem:[%s6888_s1 + $0x16d0] sm:$0xff]  ;;  %v743_v5 = vld [vmem:[%s6888_s1 + $0x1668] sm:$0xff] }
 0x15d   :  { %v6688_v39 = vadd.f32 %v3031_v27, %v1552_v44  ;;  %4259 = vmatpush3.bf16.msra.mxu0 %v4258_v35  ;;  %v4308_v30 = vpack.c.bf16 %v753_v24, %v752_v22  ;;  %v769_v35 = vld [vmem:[%s6888_s1 + $0x1738] sm:$0xff]  ;;  %v755_v27 = vld [vmem:[%s6888_s1 + $0x16c8] sm:$0xff]  ;;  %v738_v44 = vld [vmem:[%s6888_s1 + $0x1640] sm:$0xff] }
 0x15e   :  { %4261 = vmatprep.subr.bf16.mxu0 %v4260_v38  ;;  %v787_v38 = vld [vmem:[%s6888_s1 + $0x17c8] sm:$0xff]  ;;  %v4342_v41 = vpack.c.bf16 %v769_v35, %v768_v23  ;;  %v4312_v43 = vpack.c.bf16 %v755_v27, %v754_v36  ;;  %v757_v33 = vld [vmem:[%s6888_s1 + $0x16d8] sm:$0xff]  ;;  %v744_v22 = vld [vmem:[%s6888_s1 + $0x1670] sm:$0xff] }
 0x15f   :  { %4291 = vmatpush3.bf16.msra.mxu1 %v4290_v37  ;;  %v786_v37 = vld [vmem:[%s6888_s1 + $0x17c0] sm:$0xff]  ;;  %v4316_v56 = vpack.c.bf16 %v757_v33, %v756_v49  ;;  %v745_v24 = vld [vmem:[%s6888_s1 + $0x1678] sm:$0xff] }
 0x160   :  { %4293 = vmatprep.subr.bf16.mxu1 %v4292_v46  ;;  %v739_v46 = vld [vmem:[%s6888_s1 + $0x1648] sm:$0xff]  ;;  %v4344_v52 = vpack.c.bf16 %v787_v38, %v786_v37  ;;  %v4326_v32 = vpack.c.bf16 %v745_v24, %v744_v22 }
 0x161   :  { %4263 = vmatpush3.bf16.msra.mxu0 %v4262_v53  ;;  %v789_v53 = vld [vmem:[%s6888_s1 + $0x17d8] sm:$0xff] }
 0x162   :  { %4297 = vmatprep.subr.bf16.mxu0 %v4296_v55  ;;  %v4346_v55 = vpack.c.bf16 %v771_v48, %v770_v47  ;;  %v4348_v59 = vpack.c.bf16 %v789_v53, %v788_v50 }
 0x163   :  { %4295 = vmatpush3.bf16.msra.mxu1 %v4294_v54  ;;  %v4314_v54 = vpack.c.bf16 %v739_v46, %v738_v44 }
 0x164   :  { %4329 = vmatprep.subr.bf16.mxu1 %v4328_v58  ;;  %2530 = vmatmul.mubr.f32.vlgmr.msra.gmra.mrb[20].mxu0 %v6499_v9  ;;  %v734_v9 = vld [vmem:[%s6888_s1 + $0x1620] sm:$0xff]  ;;  %v772_v58 = vld [vmem:[%s6888_s1 + $0x1750] sm:$0xff] }
 0x165   :  { %4299 = vmatpush3.bf16.msra.mxu0 %v4298_v0  ;;  %2669 = vmatprep.mubr.f32.mxu0 %v1015_v26  ;;  %v4306_v29 = vpack.c.bf16 %v735_v19, %v734_v9  ;;  %v791_v0 = vld [vmem:[%s6888_s1 + $0x17e8] sm:$0xff]  ;;  %v760_v26 = vld [vmem:[%s6888_s1 + $0x16f0] sm:$0xff]  ;;  %v4322_v19 = vpack.c.bf16 %v743_v5, %v742_v4 }
 0x166   :  { %2600 = vmatmul.mubr.f32.vlgmr.msra.gmra.mrb[20].mxu1 %v6508_v12  ;;  %4301 = vmatprep.subr.bf16.mxu0 %v4300_v2  ;;  %v767_v12 = vld [vmem:[%s6888_s1 + $0x1728] sm:$0xff]  ;;  %v4350_v2 = vpack.c.bf16 %v773_v51, %v772_v58  ;;  %v4352_v8 = vpack.c.bf16 %v791_v0, %v790_v62 }
 0x167   :  { %4331 = vmatpush3.bf16.msra.mxu1 %v4330_v1  ;;  %2739 = vmatprep.mubr.f32.mxu1 %v1016_v15  ;;  %v4338_v31 = vpack.c.bf16 %v767_v12, %v766_v20  ;;  %v4318_v1 = vpack.c.bf16 %v741_v45, %v740_v57  ;;  %v4324_v12 = vpack.c.bf16 %v761_v11, %v760_v26 }
 0x168   :  { %4333 = vmatprep.subr.bf16.mxu1 %v4332_v13  ;;  %v774_v13 = vld [vmem:[%s6888_s1 + $0x1760] sm:$0xff] }
 0x169   :  { %4303 = vmatpush3.bf16.msra.mxu0 %v4302_v16  ;;  %v792_v16 = vld [vmem:[%s6888_s1 + $0x17f0] sm:$0xff] }
 0x16a   :  { %4305 = vmatprep.subr.bf16.mxu0 %v4304_v18 }
 0x16b   :  { %4335 = vmatpush3.bf16.msra.mxu1 %v4334_v17  ;;  %v793_v17 = vld [vmem:[%s6888_s1 + $0x17f8] sm:$0xff] }
 0x16c   :  { %4337 = vmatprep.subr.bf16.mxu1 %v4336_v21  ;;  %v4354_v21 = vpack.c.bf16 %v775_v7, %v774_v13  ;;  %v4356_v28 = vpack.c.bf16 %v793_v17, %v792_v16 }
 0x16d   :  { %4307 = vmatpush3.bf16.msra.mxu0 %v4306_v29  ;;  %v776_v29 = vld [vmem:[%s6888_s1 + $0x1770] sm:$0xff] }
 0x16e   :  { %4309 = vmatprep.subr.bf16.mxu0 %v4308_v30 }
 0x16f   :  { %4339 = vmatpush3.bf16.msra.mxu1 %v4338_v31  ;;  %v777_v31 = vld [vmem:[%s6888_s1 + $0x1778] sm:$0xff] }
 0x170   :  { %4341 = vmatprep.subr.bf16.mxu1 %v4340_v34  ;;  %v4358_v42 = vpack.c.bf16 %v777_v31, %v776_v29 }
 0x171   :  { %4311 = vmatpush3.bf16.msra.mxu0 %v4310_v40 }
 0x172   :  { %4313 = vmatprep.subr.bf16.mxu0 %v4312_v43 }
 0x173   :  { %4343 = vmatpush3.bf16.msra.mxu1 %v4342_v41 }
 0x174   :  { %4345 = vmatprep.subr.bf16.mxu1 %v4344_v52 }
 0x175   :  { %4315 = vmatpush3.bf16.msra.mxu0 %v4314_v54 }
 0x176   :  { %4317 = vmatprep.subr.bf16.mxu0 %v4316_v56 }
 0x177   :  { %4347 = vmatpush3.bf16.msra.mxu1 %v4346_v55  ;;  %v3064_v6 = vpop.f32.mrb[8].mxu0 }
 0x178   :  { %4349 = vmatprep.subr.bf16.mxu1 %v4348_v59  ;;  %v3065_v14 = vpop.f32.mrb[9].mxu0 }
 0x179   :  { %v3099_v15 = vpop.f32.mrb[8].mxu1  ;;  %v3066_v18 = vadd.f32 %v3065_v14, %v3064_v6  ;;  %4319 = vmatpush3.bf16.msra.mxu0 %v4318_v1 }
 0x17a   :  { %v3100_v9 = vpop.f32.mrb[9].mxu1  ;;  %4321 = vmatprep.subr.bf16.mxu0 %v4320_v3 }
 0x17b   :  { %v3101_v20 = vadd.f32 %v3100_v9, %v3099_v15  ;;  %4351 = vmatpush3.bf16.msra.mxu1 %v4350_v2  ;;  %v1692_v25 = vadd.f32 %v3066_v18, %v6688_v39 }
 0x17c   :  { %4353 = vmatprep.subr.bf16.mxu1 %v4352_v8 }
 0x17d   :  { %v1762_v30 = vadd.f32 %v3101_v20, %v1692_v25  ;;  %4323 = vmatpush3.bf16.msra.mxu0 %v4322_v19 }
 0x17e   :  { %4325 = vmatprep.subr.bf16.mxu0 %v4324_v12 }
 0x17f   :  { %4355 = vmatpush3.bf16.msra.mxu1 %v4354_v21 }
 0x180   :  { %4357 = vmatprep.subr.bf16.mxu1 %v4356_v28 }
 0x181   :  { %4327 = vmatpush3.bf16.msra.mxu0 %v4326_v32 }
 0x183   :  { %4359 = vmatpush3.bf16.msra.mxu1 %v4358_v42 }
 0x184   :  { %2670 = vmatmul.mubr.f32.vlgmr.msra.gmra.mrb[22].mxu0 %v6709_v61 }
 0x186   :  { %2740 = vmatmul.mubr.f32.vlgmr.msra.gmra.mrb[22].mxu1 %v6718_v63 }
 0x197   :  { %v3134_v39 = vpop.f32.mrb[10].mxu0 }
 0x198   :  { %v3135_v23 = vpop.f32.mrb[11].mxu0 }
 0x199   :  { %v3169_v34 = vpop.f32.mrb[10].mxu1  ;;  %v3136_v35 = vadd.f32 %v3135_v23, %v3134_v39 }
 0x19a   :  { %v3170_v36 = vpop.f32.mrb[11].mxu1 }
 0x19b   :  { %v3171_v27 = vadd.f32 %v3170_v36, %v3169_v34  ;;  %v1832_v37 = vadd.f32 %v3136_v35, %v1762_v30 }
 0x19d   :  { %v1902_v38 = vadd.f32 %v3171_v27, %v1832_v37 }
 0x1b7   :  { %v3204_v40 = vpop.f32.mrb[12].mxu0 }
 0x1b8   :  { %v3205_v41 = vpop.f32.mrb[13].mxu0 }
 0x1b9   :  { %v3239_v43 = vpop.f32.mrb[12].mxu1  ;;  %v3206_v44 = vadd.f32 %v3205_v41, %v3204_v40 }
 0x1ba   :  { %v3240_v46 = vpop.f32.mrb[13].mxu1 }
 0x1bb   :  { %v3241_v47 = vadd.f32 %v3240_v46, %v3239_v43  ;;  %v1972_v52 = vadd.f32 %v3206_v44, %v1902_v38 }
 0x1bd   :  { %v2042_v48 = vadd.f32 %v3241_v47, %v1972_v52 }
 0x1d7   :  { %v3274_v49 = vpop.f32.mrb[14].mxu0 }
 0x1d8   :  { %v3275_v61 = vpop.f32.mrb[15].mxu0 }
 0x1d9   :  { %v3309_v33 = vpop.f32.mrb[14].mxu1  ;;  %v3276_v63 = vadd.f32 %v3275_v61, %v3274_v49 }
 0x1da   :  { %v3310_v50 = vpop.f32.mrb[15].mxu1 }
 0x1db   :  { %v3311_v53 = vadd.f32 %v3310_v50, %v3309_v33  ;;  %v2112_v54 = vadd.f32 %v3276_v63, %v2042_v48 }
 0x1dd   :  { %v2182_v55 = vadd.f32 %v3311_v53, %v2112_v54 }
 0x1f7   :  { %v3344_v56 = vpop.f32.mrb[16].mxu0 }
 0x1f8   :  { %v3345_v57 = vpop.f32.mrb[17].mxu0 }
 0x1f9   :  { %v3379_v45 = vpop.f32.mrb[16].mxu1  ;;  %v3346_v58 = vadd.f32 %v3345_v57, %v3344_v56 }
 0x1fa   :  { %v3380_v59 = vpop.f32.mrb[17].mxu1 }
 0x1fb   :  { %v3381_v51 = vadd.f32 %v3380_v59, %v3379_v45  ;;  %v2252_v60 = vadd.f32 %v3346_v58, %v2182_v55 }
 0x1fd   :  { %v2322_v10 = vadd.f32 %v3381_v51, %v2252_v60 }
 0x217   :  { %v3414_v62 = vpop.f32.mrb[18].mxu0 }
 0x218   :  { %v3415_v0 = vpop.f32.mrb[19].mxu0 }
 0x219   :  { %v3449_v1 = vpop.f32.mrb[18].mxu1  ;;  %v3416_v2 = vadd.f32 %v3415_v0, %v3414_v62 }
 0x21a   :  { %v3450_v3 = vpop.f32.mrb[19].mxu1 }
 0x21b   :  { %v3451_v4 = vadd.f32 %v3450_v3, %v3449_v1  ;;  %v2392_v5 = vadd.f32 %v3416_v2, %v2322_v10 }
 0x21d   :  { %v2462_v13 = vadd.f32 %v3451_v4, %v2392_v5 }
 0x237   :  { %v3484_v6 = vpop.f32.mrb[20].mxu0 }
 0x238   :  { %v3485_v8 = vpop.f32.mrb[21].mxu0 }
 0x239   :  { %v3519_v7 = vpop.f32.mrb[20].mxu1  ;;  %v3486_v26 = vadd.f32 %v3485_v8, %v3484_v6 }
 0x23a   :  { %v3520_v11 = vpop.f32.mrb[21].mxu1 }
 0x23b   :  { %v3521_v14 = vadd.f32 %v3520_v11, %v3519_v7  ;;  %v2532_v15 = vadd.f32 %v3486_v26, %v2462_v13 }
 0x23d   :  { %v2602_v16 = vadd.f32 %v3521_v14, %v2532_v15 }
 0x257   :  { %v3554_v17 = vpop.f32.mrb[22].mxu0 }
 0x258   :  { %v3555_v18 = vpop.f32.mrb[23].mxu0 }
 0x259   :  { %v3589_v9 = vpop.f32.mrb[22].mxu1  ;;  %v3556_v19 = vadd.f32 %v3555_v18, %v3554_v17 }
 0x25a   :  { %v3590_v20 = vpop.f32.mrb[23].mxu1 }
 0x25b   :  { %v3591_v21 = vadd.f32 %v3590_v20, %v3589_v9  ;;  %v2672_v12 = vadd.f32 %v3556_v19, %v2602_v16 }
 0x25d   :  { %v2742_v22 = vadd.f32 %v3591_v21, %v2672_v12 }
 0x25f   :  { %2746 = vst.msk [vmem:[%s6891_s3] sm:$0x3] %vm2745_vm0, %v2742_v22 }

// kernel: vae_forward.10
= control target key start
LH: loop header
LB: loop body
LE: loop exit
PB: predicated region body
PF: predicated region fallthrough
CT: control target
= control target key end

     0   :  { %s2204_s12 = smov 0   ;;  %s2490_s0 = inlined_call_operand.vmem [shape: f32[2,16,384], index: 0, kind: input, shape index: {}]   ;;  %s2491_s1 = inlined_call_operand.vmem [shape: f32[9,8,16], index: 1, kind: input, shape index: {}]   ;;  %s2492_s2 = inlined_call_operand.vmem [shape: f32[8,1], index: 2, kind: input, shape index: {}]   ;;  %s2493_s3 = inlined_call_operand.vmem [shape: f32[2,8,384], index: 3, kind: output, shape index: {}]  }
   0x1 LB: > { %s1807_s13 = sadd.s32 4294967295, %s2170_s12   ;;  %p1811_p0 = scmp.ge.s32.totalorder %s2170_s12, 1  ;;  %s2170_s12 = sphi %s2204_s12, %s13_s12  }
   0x2   : > { %p137_p1 = scmp.lt.s32.totalorder %s2170_s12, 3 }
   0x4   : > { %p138_p2 = pnand %p1811_p0, %p137_p1 }
   0x5   : > { %p161_p3 = scmp.lt.s32.totalorder (!%p138_p2), %s1807_s13, 1  ;;  %v2172_v0 = vmov (!%p138_p2), 0.0|0.0   ;;  %s2173_s18 = smov (!%p138_p2), 18   ;;  %v2175_v10 = vmov (!%p138_p2), 0.0   ;;  %vm2176_vm0 = vmmov (!%p138_p2), 0   ;;  %v1666_v14 = vld [vmem:[%s2492_s2] sm:$0xff] (!%p138_p2)  ;;  %v189_v16 = vlaneseq (!%p138_p2) }
   0x6   : > { %141 = sbr.rel (%p138_p2) target bundleno = 432 (0x1b0), region = 32  ;;  %1940 = vmatprep.subr.bf16.mxu1 (!%p138_p2), %v2172_v0  ;;  %s2174_s19 = smov (!%p138_p2), 19   ;;  %288 = vmatprep.mubr.f32.mxu0 (!%p138_p2), %v2175_v10  ;;  %v2183_v15 = vmov (!%p138_p2), 0   ;;  %v1814_v50 = vld [vmem:[%s2491_s1 + $0x8] sm:$0xff] (!%p138_p2)  ;;  %vm220_vm3 = vcmask (!%p138_p2), 130048  }
   0x7   : > { %1877 = vmatprep.mubr.msk.f32.mxu1 (!%p138_p2), %vm2176_vm0, %v2175_v10  ;;  %s2177_s20 = smov (!%p138_p2), 17   ;;  %s2178_s21 = smov (!%p138_p2), 1   ;;  %2163 = vset.pattern.permute.xlu0 (!%p138_p2), %v2183_v15  ;;  %v2249_v18 = vand.u32 (!%p138_p2), 127, %v189_v16 }
   0x8   : > { %s2179_s22 = smov (!%p138_p2), 127   ;;  %s2180_s23 = smov (!%p138_p2), 111  }
   0x9   : > { %s2181_s24 = smov (!%p138_p2), 110   ;;  %s2182_s25 = smov (!%p138_p2), 109   ;;  %vm211_vm1 = vcmp.lt.s32.totalorder (!%p138_p2), %v2249_v18, 18  ;;  %vm191_vm2 = vcmp.lt.s32.totalorder (!%p138_p2), %v2249_v18, 19  ;;  %vm521_vm4 = vcmp.lt.s32.totalorder (!%p138_p2), %v2249_v18, 17  ;;  %vm689_vm5 = vcmp.lt.s32.totalorder (!%p138_p2), %v2249_v18, 1 }
   0xa   : > { %vm1006_vm6 = vcmp.lt.s32.totalorder (!%p138_p2), %v2249_v18, 127  ;;  %vm1174_vm7 = vcmp.lt.s32.totalorder (!%p138_p2), %v2249_v18, 111  ;;  %vm1342_vm8 = vcmp.lt.s32.totalorder (!%p138_p2), %v2249_v18, 110  ;;  %vm1510_vm9 = vcmp.lt.s32.totalorder (!%p138_p2), %v2249_v18, 109 }
   0xd   : > { %s2495_s13 = smov (!%p161_p3, %s1807_s13), 1 }
   0xe   : > { %s2015_s14 = smul.u32 48, %s2495_s13 }
  0x10   : > { %s165_s17 = scalar_lea.vmem %s2490_s0, %s2015_s14 }
  0x11   : > { %v2219_v1 = vld [vmem:[%s165_s17 + $0x10] sm:$0xff]  ;;  %v2221_v2 = vld [vmem:[%s165_s17 + $0x28] sm:$0xff]  ;;  %v2223_v3 = vld [vmem:[%s165_s17] sm:$0xff] }
  0x12   : > { %v2053_v4 = vpack.i.bf16 %v2221_v2, %v2219_v1  ;;  %v2227_v5 = vld [vmem:[%s165_s17 + $0x18] sm:$0xff]  ;;  %v2229_v6 = vld [vmem:[%s165_s17 + $0x8] sm:$0xff]  ;;  %v2231_v7 = vld [vmem:[%s165_s17 + $0x20] sm:$0xff]  ;;  %v1969_v13 = vpack.c.bf16 %v2221_v2, %v2219_v1 }
  0x13   : > { %v2043_v8 = vpack.i.bf16 %v2227_v5, %v2223_v3  ;;  %v2048_v9 = vpack.i.bf16 %v2231_v7, %v2229_v6  ;;  %v1964_v11 = vpack.c.bf16 %v2231_v7, %v2229_v6  ;;  %v1966_v12 = vpack.c.bf16 %v2227_v5, %v2223_v3  ;;  %v1831_v3 = vld [vmem:[%s2491_s1 + $0x30] sm:$0xff] }
  0x14   : > { %2054 = vrot.lane.b32.xlu1 %v2053_v4, %s2173_s18 }
  0x15   : > { %2044 = vrot.lane.b32.xlu0 %v2043_v8, %s2173_s18 }
  0x18   : > { %2059 = vrot.lane.b32.xlu1 %v2043_v8, %s2174_s19 }
  0x19   : > { %2049 = vrot.lane.b32.xlu0 %v2048_v9, %s2173_s18 }
  0x1c   : > { %2069 = vrot.lane.b32.xlu1 %v2053_v4, %s2174_s19 }
  0x1d   : > { %2064 = vrot.lane.b32.xlu0 %v2048_v9, %s2174_s19 }
  0x20   : > { %2079 = vrot.lane.b32.xlu1 %v2048_v9, %s2177_s20 }
  0x21   : > { %2074 = vrot.lane.b32.xlu0 %v2043_v8, %s2177_s20 }
  0x24   : > { %2089 = vrot.lane.b32.xlu1 %v2043_v8, %s2178_s21 }
  0x25   : > { %2084 = vrot.lane.b32.xlu0 %v2053_v4, %s2177_s20 }
  0x28   : > { %2099 = vrot.lane.b32.xlu1 %v2053_v4, %s2178_s21 }
  0x29   : > { %2094 = vrot.lane.b32.xlu0 %v2048_v9, %s2178_s21  ;;  %s2016_s21 = smul.u32 24, %s2495_s13 }
  0x2c   : > { %2109 = vrot.lane.b32.xlu1 %v2053_v4, %s2179_s22 }
  0x2d   : > { %2104 = vrot.lane.b32.xlu0 %v2048_v9, %s2179_s22 }
  0x30   : > { %2119 = vrot.lane.b32.xlu1 %v2048_v9, %s2180_s23 }
  0x31   : > { %2114 = vrot.lane.b32.xlu0 %v2043_v8, %s2179_s22 }
  0x34   : > { %2129 = vrot.lane.b32.xlu1 %v2043_v8, %s2180_s23 }
  0x35   : > { %2124 = vrot.lane.b32.xlu0 %v2053_v4, %s2180_s23 }
  0x38   : > { %2139 = vrot.lane.b32.xlu1 %v2053_v4, %s2181_s24 }
  0x39   : > { %2134 = vrot.lane.b32.xlu0 %v2048_v9, %s2181_s24 }
  0x3c   : > { %2149 = vrot.lane.b32.xlu1 %v2043_v8, %s2182_s25 }
  0x3d   : > { %2144 = vrot.lane.b32.xlu0 %v2043_v8, %s2181_s24  ;;  %s2479_s24 = scalar_lea.vmem %s2493_s3, %s2016_s21 }
  0x40   : > { %2159 = vrot.lane.b32.xlu1 %v2053_v4, %s2182_s25 }
  0x41   : > { %2154 = vrot.lane.b32.xlu0 %v2048_v9, %s2182_s25  ;;  %v198_v9 = vld [vmem:[%s2491_s1] sm:$0xff] }
  0x45   : > { %1669 = vperm.xlu0 %2163, %v1666_v14  }
  0x86   : > { %v2055_v17 = vpop.permute.xlu1 %2054 }
  0x87   : > { %v2045_v19 = vpop.permute.xlu0 %2044  ;;  %v2057_v20 = vunpack.i.h.bf16 %v2055_v17  ;;  %v2056_v21 = vunpack.i.l.bf16 %v2055_v17 }
  0x88   : > { %v2047_v22 = vunpack.i.h.bf16 %v2045_v19  ;;  %v2046_v23 = vunpack.i.l.bf16 %v2045_v19 }
  0x8a   : > { %v2060_v24 = vpop.permute.xlu1 %2059  ;;  %v216_v30 = vsel %vm211_vm1, %v2056_v21, %v2046_v23  ;;  %v217_v31 = vsel %vm211_vm1, %v2057_v20, %v2047_v22 }
  0x8b   : > { %v2050_v25 = vpop.permute.xlu0 %2049  ;;  %v2062_v28 = vunpack.i.h.bf16 %v2060_v24  ;;  %v2061_v29 = vunpack.i.l.bf16 %v2060_v24  ;;  %v1938_v44 = vpack.c.bf16 %v217_v31, %v216_v30 }
  0x8c   : > { %v2052_v26 = vunpack.i.h.bf16 %v2050_v25  ;;  %v2051_v27 = vunpack.i.l.bf16 %v2050_v25 }
  0x8e   : > { %v2070_v32 = vpop.permute.xlu1 %2069  ;;  %v214_v33 = vsel %vm211_vm1, %v2046_v23, %v2051_v27  ;;  %v215_v34 = vsel %vm211_vm1, %v2047_v22, %v2052_v26  ;;  %v212_v35 = vsel %vm211_vm1, %v2051_v27, %v2056_v21  ;;  %v213_v36 = vsel %vm211_vm1, %v2052_v26, %v2057_v20 }
  0x8f   : > { %v2072_v37 = vunpack.i.h.bf16 %v2070_v32  ;;  %v2071_v38 = vunpack.i.l.bf16 %v2070_v32  ;;  %v2065_v39 = vpop.permute.xlu0 %2064  ;;  %v1936_v40 = vpack.c.bf16 %v215_v34, %v214_v33  ;;  %v1941_v41 = vpack.c.bf16 %v213_v36, %v212_v35 }
  0x90   : > { %v2067_v42 = vunpack.i.h.bf16 %v2065_v39  ;;  %v2066_v43 = vunpack.i.l.bf16 %v2065_v39  ;;  %v1819_v39 = vld [vmem:[%s2491_s1 + $0x10] sm:$0xff] }
  0x91   : > { %v196_v45 = vsel %vm191_vm2, %v2071_v38, %v2061_v29  ;;  %v197_v46 = vsel %vm191_vm2, %v2072_v37, %v2062_v28  ;;  %1937 = vmatprep.subr.bf16.mxu0 %v1936_v40  ;;  %1942 = vmatpush3.bf16.msra.mxu1 %v1941_v41 }
  0x92   : > { %v193_v47 = vsel %vm191_vm2, %v2067_v42, %v2072_v37  ;;  %v192_v48 = vsel %vm191_vm2, %v2066_v43, %v2071_v38  ;;  %1939 = vmatpush1.bf16.msra.mxu0 %v1938_v44  ;;  %v2080_v49 = vpop.permute.xlu1 %2079  ;;  %1947 = vmatprep.subr.bf16.mxu1 %v2172_v0  ;;  %v194_v55 = vsel %vm191_vm2, %v2061_v29, %v2066_v43 }
  0x93   : > { %v1948_v51 = vpack.c.bf16 %v193_v47, %v192_v48  ;;  %v2075_v52 = vpop.permute.xlu0 %2074  ;;  %v2082_v53 = vunpack.i.h.bf16 %v2080_v49  ;;  %v2081_v54 = vunpack.i.l.bf16 %v2080_v49  ;;  %v1945_v56 = vpack.c.bf16 %v197_v46, %v196_v45 }
  0x94   : > { %v2077_v57 = vunpack.i.h.bf16 %v2075_v52  ;;  %v2076_v58 = vunpack.i.l.bf16 %v2075_v52  ;;  %1878 = vmatmul.mubr.msk.f32.vlgmr.msra.gmra.mrb[0].mxu1 %vm220_vm3, %v1814_v50  ;;  %v195_v59 = vsel %vm191_vm2, %v2062_v28, %v2067_v42  ;;  %v1822_v42 = vld [vmem:[%s2491_s1 + $0x18] sm:$0xff] }
  0x95   : > { %1815 = vmatmul.mubr.msk.f32.vlgmr.msra.gmra.mrb[0].mxu0 %vm220_vm3, %v1814_v50  ;;  %v1943_v60 = vpack.c.bf16 %v195_v59, %v194_v55  ;;  %1949 = vmatpush3.bf16.msra.mxu1 %v1948_v51  ;;  %v1825_v55 = vld [vmem:[%s2491_s1 + $0x20] sm:$0xff] }
  0x96   : > { %v2090_v61 = vpop.permute.xlu1 %2089  ;;  %v524_v62 = vsel %vm521_vm4, %v2076_v58, %v2081_v54  ;;  %v525_v63 = vsel %vm521_vm4, %v2077_v57, %v2082_v53  ;;  %432 = vmatprep.mubr.f32.mxu0 %v2175_v10  ;;  %1884 = vmatprep.mubr.msk.f32.mxu1 %vm2176_vm0, %v2175_v10 }
  0x97   : > { %1944 = vmatprep.subr.bf16.mxu0 %v1943_v60  ;;  %v2085_v4 = vpop.permute.xlu0 %2084  ;;  %v1950_v8 = vpack.c.bf16 %v525_v63, %v524_v62  ;;  %1954 = vmatprep.subr.bf16.mxu1 %v2172_v0  ;;  %v2092_v16 = vunpack.i.h.bf16 %v2090_v61  ;;  %v2091_v17 = vunpack.i.l.bf16 %v2090_v61  ;;  %v2365_v61 = vld [vmem:[%s2491_s1 + $0x28] sm:$0xff] }
  0x98   : > { %1946 = vmatpush1.bf16.msra.mxu0 %v1945_v56  ;;  %v2087_v14 = vunpack.i.h.bf16 %v2085_v4  ;;  %v2086_v15 = vunpack.i.l.bf16 %v2085_v4  ;;  %1885 = vmatmul.mubr.msk.f32.vlgmr.msra.gmra.mrb[2].mxu1 %vm220_vm3, %v198_v9 }
  0x99   : > { %1951 = vmatprep.subr.bf16.mxu0 %v1950_v8  ;;  %1891 = vmatprep.mubr.msk.f32.mxu1 %vm2176_vm0, %v2175_v10 }
  0x9a   : > { %v523_v19 = vsel %vm521_vm4, %v2082_v53, %v2087_v14  ;;  %v522_v20 = vsel %vm521_vm4, %v2081_v54, %v2086_v15  ;;  %v526_v21 = vsel %vm521_vm4, %v2086_v15, %v2076_v58  ;;  %v527_v22 = vsel %vm521_vm4, %v2087_v14, %v2077_v57  ;;  %v2100_v23 = vpop.permute.xlu1 %2099 }
  0x9b   : > { %v1952_v24 = vpack.c.bf16 %v527_v22, %v526_v21  ;;  %v1955_v25 = vpack.c.bf16 %v523_v19, %v522_v20  ;;  %v2102_v26 = vunpack.i.h.bf16 %v2100_v23  ;;  %v2101_v27 = vunpack.i.l.bf16 %v2100_v23  ;;  %v2095_v28 = vpop.permute.xlu0 %2094 }
  0x9c   : > { %v2097_v29 = vunpack.i.h.bf16 %v2095_v28  ;;  %v2096_v30 = vunpack.i.l.bf16 %v2095_v28 }
  0x9d   : > { %1817 = vmatmul.mubr.msk.f32.vlgmr.msra.gmra.mrb[0].mxu0 %vm220_vm3, %v198_v9  ;;  %1956 = vmatpush3.bf16.msra.mxu1 %v1955_v25  ;;  %v694_v31 = vsel %vm689_vm5, %v2101_v27, %v2091_v17  ;;  %v695_v36 = vsel %vm689_vm5, %v2102_v26, %v2092_v16 }
  0x9e   : > { %v691_v32 = vsel %vm689_vm5, %v2097_v29, %v2102_v26  ;;  %v690_v33 = vsel %vm689_vm5, %v2096_v30, %v2101_v27  ;;  %1953 = vmatpush1.bf16.msra.mxu0 %v1952_v24  ;;  %v692_v34 = vsel %vm689_vm5, %v2091_v17, %v2096_v30  ;;  %v2110_v35 = vpop.permute.xlu1 %2109  ;;  %v693_v38 = vsel %vm689_vm5, %v2092_v16, %v2097_v29 }
  0x9f   : > { %v1962_v37 = vpack.c.bf16 %v691_v32, %v690_v33  ;;  %597 = vmatprep.mubr.f32.mxu0 %v2175_v10  ;;  %1961 = vmatprep.subr.bf16.mxu1 %v2172_v0  ;;  %v2105_v40 = vpop.permute.xlu0 %2104  ;;  %v1957_v41 = vpack.c.bf16 %v693_v38, %v692_v34  ;;  %v1959_v43 = vpack.c.bf16 %v695_v36, %v694_v31  ;;  %v2112_v44 = vunpack.i.h.bf16 %v2110_v35 }
  0xa0   : > { %1892 = vmatmul.mubr.msk.f32.vlgmr.msra.gmra.mrb[4].mxu1 %vm220_vm3, %v1819_v39  ;;  %v2111_v45 = vunpack.i.l.bf16 %v2110_v35  ;;  %v2107_v48 = vunpack.i.h.bf16 %v2105_v40  ;;  %v2106_v49 = vunpack.i.l.bf16 %v2105_v40 }
  0xa1   : > { %1963 = vmatpush3.bf16.msra.mxu1 %v1962_v37  ;;  %1898 = vmatprep.mubr.msk.f32.mxu1 %vm2176_vm0, %v2175_v10  ;;  %v1834_v37 = vld [vmem:[%s2491_s1 + $0x38] sm:$0xff] }
  0xa2   : > { %1958 = vmatprep.subr.bf16.mxu0 %v1957_v41  ;;  %v2319_v46 = vpop.permute.xlu1 %2119  ;;  %1968 = vmatprep.subr.bf16.mxu1 %v2172_v0  ;;  %v1007_v59 = vsel %vm1006_vm6, %v2106_v49, %v2111_v45  ;;  %v1008_v60 = vsel %vm1006_vm6, %v2107_v48, %v2112_v44 }
  0xa3   : > { %v2115_v47 = vpop.permute.xlu0 %2114  ;;  %v1971_v4 = vpack.c.bf16 %v1008_v60, %v1007_v59  ;;  %v2122_v8 = vunpack.i.h.bf16 %v2319_v46  ;;  %v2121_v9 = vunpack.i.l.bf16 %v2319_v46 }
  0xa4   : > { %v2117_v50 = vunpack.i.h.bf16 %v2115_v47  ;;  %v2116_v51 = vunpack.i.l.bf16 %v2115_v47  ;;  %1899 = vmatmul.mubr.msk.f32.vlgmr.msra.gmra.mrb[6].mxu1 %vm220_vm3, %v1822_v42 }
  0xa5   : > { %1820 = vmatmul.mubr.msk.f32.vlgmr.msra.gmra.mrb[0].mxu0 %vm220_vm3, %v1819_v39  ;;  %1970 = vmatpush3.bf16.msra.mxu1 %v1969_v13 }
  0xa6   : > { %1960 = vmatpush1.bf16.msra.mxu0 %v1959_v43  ;;  %v1012_v52 = vsel %vm1006_vm6, %v2112_v44, %v2117_v50  ;;  %v1011_v53 = vsel %vm1006_vm6, %v2111_v45, %v2116_v51  ;;  %v2332_v54 = vpop.permute.xlu1 %2129  ;;  %765 = vmatprep.mubr.f32.mxu0 %v2175_v10  ;;  %v1009_v17 = vsel %vm1006_vm6, %v2116_v51, %v2106_v49  ;;  %v1837_v44 = vld [vmem:[%s2491_s1 + $0x40] sm:$0xff] }
  0xa7   : > { %v1976_v56 = vpack.c.bf16 %v1012_v52, %v1011_v53  ;;  %1965 = vmatprep.subr.bf16.mxu0 %v1964_v11  ;;  %v2132_v1 = vunpack.i.h.bf16 %v2332_v54  ;;  %v2131_v2 = vunpack.i.l.bf16 %v2332_v54  ;;  %v2125_v13 = vpop.permute.xlu0 %2124  ;;  %1905 = vmatprep.mubr.msk.f32.mxu1 %vm2176_vm0, %v2175_v10  ;;  %v1010_v19 = vsel %vm1006_vm6, %v2117_v50, %v2107_v48 }
  0xa8   : > { %v2127_v57 = vunpack.i.h.bf16 %v2125_v13  ;;  %v2126_v58 = vunpack.i.l.bf16 %v2125_v13  ;;  %1975 = vmatprep.subr.bf16.mxu1 %v2172_v0  ;;  %1906 = vmatmul.mubr.msk.f32.vlgmr.msra.gmra.mrb[8].mxu1 %vm220_vm3, %v1825_v55  ;;  %v1973_v25 = vpack.c.bf16 %v1010_v19, %v1009_v17 }
  0xa9   : > { %1977 = vmatpush3.bf16.msra.mxu1 %v1976_v56  ;;  %1912 = vmatprep.mubr.msk.f32.mxu1 %vm2176_vm0, %v2175_v10  ;;  %v1177_v39 = vsel %vm1174_vm7, %v2131_v2, %v2121_v9  ;;  %v1178_v40 = vsel %vm1174_vm7, %v2132_v1, %v2122_v8 }
  0xaa   : > { %v1180_v6 = vsel %vm1174_vm7, %v2127_v57, %v2132_v1  ;;  %v1179_v7 = vsel %vm1174_vm7, %v2126_v58, %v2131_v2  ;;  %v2140_v11 = vpop.permute.xlu1 %2139  ;;  %1982 = vmatprep.subr.bf16.mxu1 %v2172_v0  ;;  %v1175_v21 = vsel %vm1174_vm7, %v2121_v9, %v2126_v58  ;;  %v1176_v22 = vsel %vm1174_vm7, %v2122_v8, %v2127_v57 }
  0xab   : > { %v1983_v62 = vpack.c.bf16 %v1180_v6, %v1179_v7  ;;  %v2367_v63 = vpop.permute.xlu0 %2134  ;;  %v2142_v14 = vunpack.i.h.bf16 %v2140_v11  ;;  %v2141_v15 = vunpack.i.l.bf16 %v2140_v11  ;;  %v1978_v32 = vpack.c.bf16 %v1176_v22, %v1175_v21 }
  0xac   : > { %1913 = vmatmul.mubr.msk.f32.vlgmr.msra.gmra.mrb[10].mxu1 %vm220_vm3, %v2365_v61  ;;  %v2137_v33 = vunpack.i.h.bf16 %v2367_v63  ;;  %v2136_v34 = vunpack.i.l.bf16 %v2367_v63  ;;  %v1980_v45 = vpack.c.bf16 %v1178_v40, %v1177_v39  ;;  %v1679_v57 = vadd.s32 256, %v2249_v18 }
  0xad   : > { %1823 = vmatmul.mubr.msk.f32.vlgmr.msra.gmra.mrb[0].mxu0 %vm220_vm3, %v1822_v42  ;;  %1984 = vmatpush3.bf16.msra.mxu1 %v1983_v62 }
  0xae   : > { %1967 = vmatpush1.bf16.msra.mxu0 %v1966_v12  ;;  %914 = vmatprep.mubr.f32.mxu0 %v2175_v10  ;;  %v2379_v16 = vpop.permute.xlu1 %2149  ;;  %v1343_v41 = vsel %vm1342_vm8, %v2136_v34, %v2141_v15  ;;  %v1344_v42 = vsel %vm1342_vm8, %v2137_v33, %v2142_v14  ;;  %v1842_v60 = vadd.s32 4294967277, %v1679_v57 }
  0xaf   : > { %1972 = vmatprep.subr.bf16.mxu0 %v1971_v4  ;;  %v2145_v20 = vpop.permute.xlu0 %2144  ;;  %1919 = vmatprep.mubr.msk.f32.mxu1 %vm2176_vm0, %v2175_v10  ;;  %v2152_v23 = vunpack.i.h.bf16 %v2379_v16  ;;  %v2151_v24 = vunpack.i.l.bf16 %v2379_v16  ;;  %v1985_v46 = vpack.c.bf16 %v1344_v42, %v1343_v41  ;;  %v2462_v4 = vadd.s32 4294967277, %v2249_v18 }
  0xb0   : > { %v2147_v5 = vunpack.i.h.bf16 %v2145_v20  ;;  %v2146_v12 = vunpack.i.l.bf16 %v2145_v20  ;;  %1989 = vmatprep.subr.bf16.mxu1 %v2172_v0  ;;  %1920 = vmatmul.mubr.msk.f32.vlgmr.msra.gmra.mrb[12].mxu1 %vm220_vm3, %v1831_v3  ;;  %v2458_v7 = vmul.u32.u64.low 3817748708, %v1842_v60  ;;  %v2459_v11 = vmul.u32.u64.high 3817748708, %v1842_v60, %v2458_v7 }
  0xb1   : > { %1926 = vmatprep.mubr.msk.f32.mxu1 %vm2176_vm0, %v2175_v10  ;;  %vm1688_vm13 = vcmp.lt.s32.totalorder %v1842_v60, 288  ;;  %vm1683_vm7 = vcmp.ge.s32.totalorder %v2462_v4, 0 }
  0xb2   : > { %v1348_v26 = vsel %vm1342_vm8, %v2142_v14, %v2147_v5  ;;  %v1347_v27 = vsel %vm1342_vm8, %v2141_v15, %v2146_v12  ;;  %v2160_v28 = vpop.permute.xlu1 %2159  ;;  %v1345_v48 = vsel %vm1342_vm8, %v2146_v12, %v2136_v34  ;;  %v1346_v49 = vsel %vm1342_vm8, %v2147_v5, %v2137_v33 }
  0xb3   : > { %v1990_v29 = vpack.c.bf16 %v1348_v26, %v1347_v27  ;;  %v2162_v30 = vunpack.i.h.bf16 %v2160_v28  ;;  %v2161_v31 = vunpack.i.l.bf16 %v2160_v28  ;;  %v2155_v43 = vpop.permute.xlu0 %2154  ;;  %v1987_v52 = vpack.c.bf16 %v1346_v49, %v1345_v48 }
  0xb4   : > { %v2156_v47 = vunpack.i.l.bf16 %v2155_v43  ;;  %v1720_v9 = vshrl.u32 %v2459_v11, 4  ;;  %v1693_v14 = vsub.s32 0, %v2462_v4  ;;  %v1678_v27 = vadd.s32 128, %v2249_v18 }
  0xb5   : > { %1826 = vmatmul.mubr.msk.f32.vlgmr.msra.gmra.mrb[0].mxu0 %vm220_vm3, %v1825_v55  ;;  %v1515_v35 = vsel %vm1510_vm9, %v2161_v31, %v2151_v24  ;;  %v1516_v36 = vsel %vm1510_vm9, %v2162_v30, %v2152_v23  ;;  %1991 = vmatpush3.bf16.msra.mxu1 %v1990_v29 }
  0xb6   : > { %1974 = vmatpush1.bf16.msra.mxu0 %v1973_v25  ;;  %v1997_v38 = vpack.c.bf16 %v1516_v36, %v1515_v35  ;;  %1082 = vmatprep.mubr.f32.mxu0 %v2175_v10  ;;  %v1511_v50 = vsel %vm1510_vm9, %v2156_v47, %v2161_v31  ;;  %v1513_v55 = vsel %vm1510_vm9, %v2151_v24, %v2156_v47  ;;  %v1721_v19 = vmul.u32 18, %v1720_v9 }
  0xb7   : > { %1979 = vmatprep.subr.bf16.mxu0 %v1978_v32  ;;  %1996 = vmatprep.subr.bf16.mxu1 %v2172_v0  ;;  %v2157_v0 = vunpack.i.h.bf16 %v2155_v43  ;;  %v1843_v20 = vmin.u32 %v2462_v4, %v1693_v14  ;;  %v1841_v29 = vadd.s32 4294967277, %v1678_v27 }
  0xb8   : > { %1927 = vmatmul.mubr.msk.f32.vlgmr.msra.gmra.mrb[14].mxu1 %vm220_vm3, %v1834_v37  ;;  %v1722_v21 = vsub.s32 %v1842_v60, %v1721_v19 }
  0xb9   : > { %1998 = vmatpush3.bf16.msra.mxu1 %v1997_v38  ;;  %1933 = vmatprep.mubr.msk.f32.mxu1 %vm2176_vm0, %v2175_v10  ;;  %v1512_v51 = vsel %vm1510_vm9, %v2157_v0, %v2162_v30  ;;  %v1514_v54 = vsel %vm1510_vm9, %v2152_v23, %v2157_v0  ;;  %v2467_v22 = vmul.u32.u64.low 3817748708, %v1843_v20  ;;  %v2468_v23 = vmul.u32.u64.high 3817748708, %v1843_v20, %v2467_v22 }
  0xba   : > { %v1992_v53 = vpack.c.bf16 %v1512_v51, %v1511_v50  ;;  %v1994_v56 = vpack.c.bf16 %v1514_v54, %v1513_v55  ;;  %vm1727_vm10 = vcmp.ne.s32.totalorder %v1722_v21, 0  ;;  %vm1730_vm11 = vcmp.lt.s32.totalorder %v1722_v21, 0 }
  0xbb   : > { %v1736_v28 = vadd.s32 18, %v1722_v21  ;;  %vm1733_vm12 = vmand %vm1730_vm11, %vm1727_vm10  ;;  %v1698_v31 = vshrl.u32 %v2468_v23, 4  ;;  %v2472_v35 = vmul.u32.u64.low 3817748708, %v1841_v29  ;;  %v2473_v36 = vmul.u32.u64.high 3817748708, %v1841_v29, %v2472_v35 }
  0xbc   : > { %1934 = vmatmul.mubr.msk.f32.vlgmr.msra.gmra.mrb[16].mxu1 %vm220_vm3, %v1837_v44  ;;  %vm1692_vm0 = vcmp.lt.s32.totalorder %v2462_v4, 0 }
  0xbd   : > { %1829 = vmatmul.mubr.msk.f32.vlgmr.msra.gmra.mrb[0].mxu0 %vm220_vm3, %v2365_v61  ;;  %v1739_v34 = vsel %vm1733_vm12, %v1736_v28, %v1722_v21  ;;  %v1699_v39 = vmul.u32 18, %v1698_v31 }
  0xbe   : > { %1981 = vmatpush1.bf16.msra.mxu0 %v1980_v45  ;;  %1250 = vmatprep.mubr.f32.mxu0 %v2175_v10  ;;  %vm1742_vm14 = vcmp.lt.s32.totalorder %v1739_v34, 16  ;;  %v1709_v45 = vshrl.u32 %v2473_v36, 4 }
  0xbf   : > { %1986 = vmatprep.subr.bf16.mxu0 %v1985_v46  ;;  %vm1745_vm15 = vmand %vm1688_vm13, %vm1742_vm14  ;;  %v1700_v42 = vsub.s32 %v1843_v20, %v1699_v39 }
  0xc0   : > { %v1710_v0 = vmul.u32 18, %v1709_v45 }
  0xc1   : > { %v1701_v46 = vsub.s32 0, %v1700_v42 }
  0xc2   : > { %v1711_v48 = vsub.s32 %v1841_v29, %v1710_v0 }
  0xc3   : > { %v1702_v47 = vsel %vm1692_vm0, %v1701_v46, %v1700_v42 }
  0xc4   : > { %v1670_v38 = vpop.permute.xlu0 %1669  ;;  %vm1725_vm1 = vcmp.ne.s32.totalorder %v1702_v47, 0  ;;  %vm1728_vm2 = vcmp.lt.s32.totalorder %v1702_v47, 0  ;;  %v1734_v49 = vadd.s32 18, %v1702_v47  ;;  %vm1726_vm4 = vcmp.ne.s32.totalorder %v1711_v48, 0 }
  0xc5   : > { %1832 = vmatmul.mubr.msk.f32.vlgmr.msra.gmra.mrb[0].mxu0 %vm220_vm3, %v1831_v3  ;;  %vm1729_vm5 = vcmp.lt.s32.totalorder %v1711_v48, 0  ;;  %v1735_v51 = vadd.s32 18, %v1711_v48 }
  0xc6   : > { %1988 = vmatpush1.bf16.msra.mxu0 %v1987_v52  ;;  %1418 = vmatprep.mubr.f32.mxu0 %v2175_v10  ;;  %vm1732_vm6 = vmand %vm1729_vm5, %vm1726_vm4 }
  0xc7   : > { %1993 = vmatprep.subr.bf16.mxu0 %v1992_v53  ;;  %v1738_v53 = vsel %vm1732_vm6, %v1735_v51, %v1711_v48 }
  0xc8   : > { %vm1741_vm10 = vcmp.lt.s32.totalorder %v1738_v53, 16 }
  0xcd   : > { %1835 = vmatmul.mubr.msk.f32.vlgmr.msra.gmra.mrb[0].mxu0 %vm220_vm3, %v1834_v37 }
  0xce   : > { %1995 = vmatpush1.bf16.msra.mxu0 %v1994_v56  ;;  %1586 = vmatprep.mubr.f32.mxu0 %v2175_v10 }
  0xd5   : > { %1838 = vmatmul.mubr.msk.f32.vlgmr.msra.gmra.mrb[0].mxu0 %vm220_vm3, %v1837_v44  ;;  %vm1731_vm3 = vmand %vm1728_vm2, %vm1725_vm1 }
  0xd6   : > { %v1737_v50 = vsel %vm1731_vm3, %v1734_v49, %v1702_v47 }
  0xd7   : > { %vm1740_vm8 = vcmp.lt.s32.totalorder %v1737_v50, 16 }
  0xd8   : > { %vm1743_vm9 = vmand %vm1683_vm7, %vm1740_vm8 }
 0x167   : > { %v361_v1 = vpop.f32.mrb[0].mxu1 }
 0x168   : > { %v1879_v2 = vpop.f32.mrb[1].mxu1 }
 0x16b   : > { %v505_v13 = vpop.f32.mrb[2].mxu1 }
 0x16c   : > { %v506_v58 = vadd.f32 %v505_v13, %v361_v1  ;;  %v1886_v59 = vpop.f32.mrb[3].mxu1 }
 0x173   : > { %v670_v6 = vpop.f32.mrb[4].mxu1 }
 0x174   : > { %v676_v61 = vadd.f32 %v670_v6, %v506_v58  ;;  %v1893_v62 = vpop.f32.mrb[5].mxu1 }
 0x177   : > { %v838_v63 = vpop.f32.mrb[6].mxu1 }
 0x178   : > { %v844_v10 = vadd.f32 %v838_v63, %v676_v61  ;;  %v1900_v8 = vpop.f32.mrb[7].mxu1 }
 0x17b   : > { %v987_v15 = vpop.f32.mrb[8].mxu1 }
 0x17c   : > { %v993_v16 = vadd.f32 %v987_v15, %v844_v10  ;;  %v1907_v17 = vpop.f32.mrb[9].mxu1 }
 0x17f   : > { %v1155_v3 = vpop.f32.mrb[10].mxu1 }
 0x180   : > { %v1161_v5 = vadd.f32 %v1155_v3, %v993_v16  ;;  %v1914_v12 = vpop.f32.mrb[11].mxu1 }
 0x183   : > { %v1323_v24 = vpop.f32.mrb[12].mxu1 }
 0x184   : > { %v1329_v25 = vadd.f32 %v1323_v24, %v1161_v5  ;;  %v1921_v26 = vpop.f32.mrb[13].mxu1 }
 0x18b   : > { %v1491_v30 = vpop.f32.mrb[14].mxu1 }
 0x18c   : > { %v1497_v32 = vadd.f32 %v1491_v30, %v1329_v25  ;;  %v1928_v33 = vpop.f32.mrb[15].mxu1 }
 0x18f   : > { %v1659_v37 = vpop.f32.mrb[16].mxu1 }
 0x190   : > { %v1665_v40 = vadd.f32 %v1659_v37, %v1497_v32  ;;  %v1935_v18 = vpop.f32.mrb[17].mxu1 }
 0x192   : > { %v1674_v41 = vadd.f32 %v1670_v38, %v1665_v40 }
 0x194   : > { %v1677_v43 = vmax.f32 %v1674_v41, 0.0 }
 0x196   : > { %v1748_v44 = vsel %vm1745_vm15, %v1677_v43, 0.0 }
 0x197   : > { %1751 = vst [vmem:[%s2479_s24 + $0x10] sm:$0xff] %v1748_v44 }
 0x1a8   : > { %v1588_v52 = vpop.f32.mrb[0].mxu0 }
 0x1a9   : > { %v1672_v54 = vadd.f32 %v1670_v38, %v1588_v52  ;;  %v1590_v55 = vpop.f32.mrb[1].mxu0 }
 0x1aa   : > { %v1673_v56 = vadd.f32 %v1670_v38, %v1590_v55 }
 0x1ab   : > { %v1675_v1 = vmax.f32 %v1672_v54, 0.0 }
 0x1ac   : > { %v1676_v2 = vmax.f32 %v1673_v56, 0.0 }
 0x1ad   : > { %v1746_v13 = vsel %vm1743_vm9, %v1675_v1, 0.0 }
 0x1ae   : > { %1749 = vst [vmem:[%s2479_s24] sm:$0xff] %v1746_v13  ;;  %v1747_v57 = vsel %vm1741_vm10, %v1676_v2, 0.0 }
 0x1af   : > { %1750 = vst [vmem:[%s2479_s24 + $0x8] sm:$0xff] %v1747_v57 }
 0x1b0 PF: > { %s13_s12 = sadd.s32 1, %s2170_s12  }
 0x1b1   : > { %p10_p4 = scmp.ge.s32.totalorder %s13_s12, 4  }
 0x1b3   :  { %12 = sbr.rel (!%p10_p4) target bundleno = 1 (0x1), region = 70 }

// kernel: vae_forward.11
= control target key start
LH: loop header
LB: loop body
LE: loop exit
PB: predicated region body
PF: predicated region fallthrough
CT: control target
= control target key end

     0   :  { %s1943_s12 = smov 0   ;;  %s2144_s0 = inlined_call_operand.vmem [shape: f32[2,8,384], index: 0, kind: input, shape index: {}]   ;;  %s2145_s1 = inlined_call_operand.vmem [shape: f32[9,8,8], index: 1, kind: input, shape index: {}]   ;;  %s2146_s2 = inlined_call_operand.vmem [shape: f32[8,1], index: 2, kind: input, shape index: {}]   ;;  %s2147_s3 = inlined_call_operand.vmem [shape: f32[2,8,384], index: 3, kind: output, shape index: {}]  }
   0x1 LB: > { %s1747_s13 = sadd.s32 4294967295, %s1910_s12   ;;  %p1751_p0 = scmp.ge.s32.totalorder %s1910_s12, 1  ;;  %s1910_s12 = sphi %s1943_s12, %s13_s12  }
   0x2   : > { %p137_p1 = scmp.lt.s32.totalorder %s1910_s12, 3 }
   0x4   : > { %p138_p2 = pnand %p1751_p0, %p137_p1 }
   0x5   : > { %p161_p3 = scmp.lt.s32.totalorder (!%p138_p2), %s1747_s13, 1  ;;  %v1912_v0 = vmov (!%p138_p2), 0.0   ;;  %vm1913_vm0 = vmmov (!%p138_p2), 0   ;;  %s1914_s18 = smov (!%p138_p2), 18   ;;  %v1591_v4 = vld [vmem:[%s2146_s2] sm:$0xff] (!%p138_p2)  ;;  %v1922_v5 = vmov (!%p138_p2), 0   ;;  %v180_v6 = vlaneseq (!%p138_p2) }
   0x6   : > { %141 = sbr.rel (%p138_p2) target bundleno = 449 (0x1c1), region = 32  ;;  %1804 = vmatprep.subr.mxu1 (!%p138_p2), %v1912_v0  ;;  %267 = vmatprep.mubr.f32.mxu0 (!%p138_p2), %v1912_v0  ;;  %s1915_s19 = smov (!%p138_p2), 19   ;;  %v1754_v14 = vld [vmem:[%s2145_s1 + $0x8] sm:$0xff] (!%p138_p2)  ;;  %vm199_vm2 = vcmask (!%p138_p2), 64512   ;;  %v186_v21 = vld [vmem:[%s2145_s1] sm:$0xff] (!%p138_p2)  ;;  %v1759_v29 = vld [vmem:[%s2145_s1 + $0x10] sm:$0xff] (!%p138_p2) }
   0x7   : > { %1806 = vmatprep.mubr.msk.f32.mxu1 (!%p138_p2), %vm1913_vm0, %v1912_v0  ;;  %s1916_s20 = smov (!%p138_p2), 17   ;;  %s1917_s21 = smov (!%p138_p2), 1   ;;  %1891 = vset.pattern.permute.xlu0 (!%p138_p2), %v1922_v5  ;;  %v1996_v7 = vand.u32 (!%p138_p2), 127, %v180_v6  ;;  %v1762_v32 = vld [vmem:[%s2145_s1 + $0x18] sm:$0xff] (!%p138_p2)  ;;  %v1765_v38 = vld [vmem:[%s2145_s1 + $0x20] sm:$0xff] (!%p138_p2)  ;;  %v1768_v41 = vld [vmem:[%s2145_s1 + $0x28] sm:$0xff] (!%p138_p2) }
   0x8   : > { %s1918_s22 = smov (!%p138_p2), 127   ;;  %s1919_s23 = smov (!%p138_p2), 111   ;;  %v1771_v46 = vld [vmem:[%s2145_s1 + $0x30] sm:$0xff] (!%p138_p2)  ;;  %v1774_v54 = vld [vmem:[%s2145_s1 + $0x38] sm:$0xff] (!%p138_p2)  ;;  %v1777_v57 = vld [vmem:[%s2145_s1 + $0x40] sm:$0xff] (!%p138_p2) }
   0x9   : > { %s1920_s24 = smov (!%p138_p2), 110   ;;  %s1921_s25 = smov (!%p138_p2), 109   ;;  %vm193_vm1 = vcmp.lt.s32.totalorder (!%p138_p2), %v1996_v7, 18  ;;  %vm182_vm3 = vcmp.lt.s32.totalorder (!%p138_p2), %v1996_v7, 19  ;;  %vm494_vm4 = vcmp.lt.s32.totalorder (!%p138_p2), %v1996_v7, 17  ;;  %vm653_vm5 = vcmp.lt.s32.totalorder (!%p138_p2), %v1996_v7, 1 }
   0xa   : > { %vm961_vm6 = vcmp.lt.s32.totalorder (!%p138_p2), %v1996_v7, 127  ;;  %vm1120_vm7 = vcmp.lt.s32.totalorder (!%p138_p2), %v1996_v7, 111  ;;  %vm1279_vm8 = vcmp.lt.s32.totalorder (!%p138_p2), %v1996_v7, 110  ;;  %vm1438_vm9 = vcmp.lt.s32.totalorder (!%p138_p2), %v1996_v7, 109 }
   0xd   : > { %s2149_s13 = smov (!%p161_p3, %s1747_s13), 1 }
   0xe   : > { %s1865_s14 = smul.u32 24, %s2149_s13 }
  0x10   : > { %s165_s17 = scalar_lea.vmem %s2144_s0, %s1865_s14 }
  0x11   : > { %v1963_v1 = vld [vmem:[%s165_s17 + $0x10] sm:$0xff]  ;;  %v1965_v2 = vld [vmem:[%s165_s17] sm:$0xff]  ;;  %v1969_v3 = vld [vmem:[%s165_s17 + $0x8] sm:$0xff] }
  0x12   : > { %191 = vrot.lane.b32.xlu1 %v1963_v1, %s1914_s18  ;;  %187 = vrot.lane.b32.xlu0 %v1965_v2, %s1914_s18 }
  0x16   : > { %174 = vrot.lane.b32.xlu1 %v1965_v2, %s1915_s19  ;;  %189 = vrot.lane.b32.xlu0 %v1969_v3, %s1914_s18 }
  0x1a   : > { %178 = vrot.lane.b32.xlu1 %v1963_v1, %s1915_s19  ;;  %176 = vrot.lane.b32.xlu0 %v1969_v3, %s1915_s19 }
  0x1e   : > { %488 = vrot.lane.b32.xlu0 %v1965_v2, %s1916_s20  ;;  %490 = vrot.lane.b32.xlu1 %v1969_v3, %s1916_s20 }
  0x22   : > { %492 = vrot.lane.b32.xlu0 %v1963_v1, %s1916_s20  ;;  %647 = vrot.lane.b32.xlu1 %v1965_v2, %s1917_s21 }
  0x26   : > { %651 = vrot.lane.b32.xlu1 %v1963_v1, %s1917_s21  ;;  %649 = vrot.lane.b32.xlu0 %v1969_v3, %s1917_s21 }
  0x2a   : > { %959 = vrot.lane.b32.xlu1 %v1963_v1, %s1918_s22  ;;  %957 = vrot.lane.b32.xlu0 %v1969_v3, %s1918_s22 }
  0x2e   : > { %1116 = vrot.lane.b32.xlu1 %v1969_v3, %s1919_s23  ;;  %955 = vrot.lane.b32.xlu0 %v1965_v2, %s1918_s22 }
  0x32   : > { %1114 = vrot.lane.b32.xlu1 %v1965_v2, %s1919_s23  ;;  %1118 = vrot.lane.b32.xlu0 %v1963_v1, %s1919_s23 }
  0x36   : > { %1277 = vrot.lane.b32.xlu1 %v1963_v1, %s1920_s24  ;;  %1275 = vrot.lane.b32.xlu0 %v1969_v3, %s1920_s24 }
  0x3a   : > { %1432 = vrot.lane.b32.xlu1 %v1965_v2, %s1921_s25  ;;  %1273 = vrot.lane.b32.xlu0 %v1965_v2, %s1920_s24  ;;  %s2133_s24 = scalar_lea.vmem %s2147_s3, %s1865_s14 }
  0x3e   : > { %1436 = vrot.lane.b32.xlu1 %v1963_v1, %s1921_s25  ;;  %1434 = vrot.lane.b32.xlu0 %v1969_v3, %s1921_s25 }
  0x42   : > { %1594 = vperm.xlu0 %1891, %v1591_v4  }
  0x84   : > { %v192_v8 = vpop.permute.xlu1 %191  ;;  %v188_v9 = vpop.permute.xlu0 %187 }
  0x85   : > { %v196_v15 = vsel %vm193_vm1, %v192_v8, %v188_v9 }
  0x88   : > { %v175_v10 = vpop.permute.xlu1 %174  ;;  %v190_v11 = vpop.permute.xlu0 %189 }
  0x89   : > { %v195_v12 = vsel %vm193_vm1, %v188_v9, %v190_v11  ;;  %v194_v13 = vsel %vm193_vm1, %v190_v11, %v192_v8 }
  0x8a   : > { %203 = vmatprep.subr.mxu0 %v195_v12  ;;  %1805 = vmatpush3.msra.mxu1 %v194_v13 }
  0x8b   : > { %204 = vmatpush1.msra.mxu0 %v196_v15  ;;  %1809 = vmatprep.subr.mxu1 %v1912_v0 }
  0x8c   : > { %v179_v16 = vpop.permute.xlu1 %178  ;;  %1755 = vmatmul.mubr.msk.f32.vlgmr.msra.gmra.mrb[0].mxu0 %vm199_vm2, %v1754_v14  ;;  %v177_v17 = vpop.permute.xlu0 %176  ;;  %1807 = vmatmul.mubr.msk.f32.vlgmr.msra.gmra.mrb[0].mxu1 %vm199_vm2, %v1754_v14 }
  0x8d   : > { %v185_v18 = vsel %vm182_vm3, %v179_v16, %v175_v10  ;;  %v183_v19 = vsel %vm182_vm3, %v177_v17, %v179_v16  ;;  %v184_v20 = vsel %vm182_vm3, %v175_v10, %v177_v17  ;;  %411 = vmatprep.mubr.f32.mxu0 %v1912_v0  ;;  %1811 = vmatprep.mubr.msk.f32.mxu1 %vm1913_vm0, %v1912_v0 }
  0x8e   : > { %347 = vmatprep.subr.mxu0 %v184_v20  ;;  %1810 = vmatpush3.msra.mxu1 %v183_v19 }
  0x8f   : > { %348 = vmatpush1.msra.mxu0 %v185_v18  ;;  %1814 = vmatprep.subr.mxu1 %v1912_v0 }
  0x90   : > { %v489_v22 = vpop.permute.xlu0 %488  ;;  %v491_v23 = vpop.permute.xlu1 %490  ;;  %1812 = vmatmul.mubr.msk.f32.vlgmr.msra.gmra.mrb[2].mxu1 %vm199_vm2, %v186_v21 }
  0x91   : > { %v496_v24 = vsel %vm494_vm4, %v489_v22, %v491_v23  ;;  %1816 = vmatprep.mubr.msk.f32.mxu1 %vm1913_vm0, %v1912_v0 }
  0x92   : > { %503 = vmatprep.subr.mxu0 %v496_v24 }
  0x94   : > { %1757 = vmatmul.mubr.msk.f32.vlgmr.msra.gmra.mrb[0].mxu0 %vm199_vm2, %v186_v21  ;;  %v493_v25 = vpop.permute.xlu0 %492  ;;  %v648_v26 = vpop.permute.xlu1 %647 }
  0x95   : > { %v495_v27 = vsel %vm494_vm4, %v491_v23, %v493_v25  ;;  %v497_v28 = vsel %vm494_vm4, %v493_v25, %v489_v22  ;;  %567 = vmatprep.mubr.f32.mxu0 %v1912_v0  ;;  %v1619_v22 = vadd.s32 256, %v1996_v7 }
  0x96   : > { %504 = vmatpush1.msra.mxu0 %v497_v28  ;;  %1815 = vmatpush3.msra.mxu1 %v495_v27 }
  0x97   : > { %1819 = vmatprep.subr.mxu1 %v1912_v0  ;;  %1817 = vmatmul.mubr.msk.f32.vlgmr.msra.gmra.mrb[4].mxu1 %vm199_vm2, %v1759_v29  ;;  %v1782_v23 = vadd.s32 4294967277, %v1619_v22 }
  0x98   : > { %v652_v30 = vpop.permute.xlu1 %651  ;;  %v650_v31 = vpop.permute.xlu0 %649  ;;  %1821 = vmatprep.mubr.msk.f32.mxu1 %vm1913_vm0, %v1912_v0 }
  0x99   : > { %v654_v33 = vsel %vm653_vm5, %v650_v31, %v652_v30  ;;  %v655_v34 = vsel %vm653_vm5, %v648_v26, %v650_v31  ;;  %v656_v35 = vsel %vm653_vm5, %v652_v30, %v648_v26  ;;  %vm1628_vm13 = vcmp.lt.s32.totalorder %v1782_v23, 288 }
  0x9a   : > { %662 = vmatprep.subr.mxu0 %v655_v34  ;;  %1820 = vmatpush3.msra.mxu1 %v654_v33  ;;  %v2111_v27 = vmul.u32.u64.low 3817748708, %v1782_v23  ;;  %v2112_v28 = vmul.u32.u64.high 3817748708, %v1782_v23, %v2111_v27  ;;  %v2115_v33 = vadd.s32 4294967277, %v1996_v7 }
  0x9b   : > { %1822 = vmatmul.mubr.msk.f32.vlgmr.msra.gmra.mrb[6].mxu1 %vm199_vm2, %v1762_v32  ;;  %1824 = vmatprep.subr.mxu1 %v1912_v0 }
  0x9c   : > { %1760 = vmatmul.mubr.msk.f32.vlgmr.msra.gmra.mrb[0].mxu0 %vm199_vm2, %v1759_v29  ;;  %v960_v36 = vpop.permute.xlu1 %959  ;;  %v958_v37 = vpop.permute.xlu0 %957  ;;  %1825 = vmatpush3.msra.mxu1 %v1963_v1 }
  0x9d   : > { %663 = vmatpush1.msra.mxu0 %v656_v35  ;;  %726 = vmatprep.mubr.f32.mxu0 %v1912_v0  ;;  %v962_v43 = vsel %vm961_vm6, %v958_v37, %v960_v36 }
  0x9e   : > { %811 = vmatprep.subr.mxu0 %v1969_v3  ;;  %1826 = vmatprep.mubr.msk.f32.mxu1 %vm1913_vm0, %v1912_v0 }
  0x9f   : > { %1827 = vmatmul.mubr.msk.f32.vlgmr.msra.gmra.mrb[8].mxu1 %vm199_vm2, %v1765_v38  ;;  %1829 = vmatprep.subr.mxu1 %v1912_v0 }
  0xa0   : > { %v1117_v39 = vpop.permute.xlu1 %1116  ;;  %v956_v40 = vpop.permute.xlu0 %955  ;;  %1831 = vmatprep.mubr.msk.f32.mxu1 %vm1913_vm0, %v1912_v0 }
  0xa1   : > { %v964_v42 = vsel %vm961_vm6, %v960_v36, %v956_v40  ;;  %v963_v50 = vsel %vm961_vm6, %v956_v40, %v958_v37  ;;  %v1660_v36 = vshrl.u32 %v2112_v28, 4  ;;  %v1633_v37 = vsub.s32 0, %v2115_v33 }
  0xa2   : > { %1830 = vmatpush3.msra.mxu1 %v964_v42 }
  0xa3   : > { %1832 = vmatmul.mubr.msk.f32.vlgmr.msra.gmra.mrb[10].mxu1 %vm199_vm2, %v1768_v41  ;;  %1834 = vmatprep.subr.mxu1 %v1912_v0  ;;  %v1783_v40 = vmin.u32 %v2115_v33, %v1633_v37 }
  0xa4   : > { %1763 = vmatmul.mubr.msk.f32.vlgmr.msra.gmra.mrb[0].mxu0 %vm199_vm2, %v1762_v32  ;;  %v1115_v44 = vpop.permute.xlu1 %1114  ;;  %v1119_v45 = vpop.permute.xlu0 %1118  ;;  %1836 = vmatprep.mubr.msk.f32.mxu1 %vm1913_vm0, %v1912_v0 }
  0xa5   : > { %812 = vmatpush1.msra.mxu0 %v1965_v2  ;;  %875 = vmatprep.mubr.f32.mxu0 %v1912_v0  ;;  %v1123_v47 = vsel %vm1120_vm7, %v1119_v45, %v1115_v44  ;;  %v1121_v51 = vsel %vm1120_vm7, %v1117_v39, %v1119_v45  ;;  %v1122_v59 = vsel %vm1120_vm7, %v1115_v44, %v1117_v39  ;;  %v1661_v39 = vmul.u32 18, %v1660_v36 }
  0xa6   : > { %970 = vmatprep.subr.mxu0 %v962_v43  ;;  %1835 = vmatpush3.msra.mxu1 %v1123_v47  ;;  %v2120_v42 = vmul.u32.u64.low 3817748708, %v1783_v40  ;;  %v2121_v43 = vmul.u32.u64.high 3817748708, %v1783_v40, %v2120_v42  ;;  %v1618_v44 = vadd.s32 128, %v1996_v7  ;;  %vm1623_vm7 = vcmp.ge.s32.totalorder %v2115_v33, 0 }
  0xa7   : > { %1837 = vmatmul.mubr.msk.f32.vlgmr.msra.gmra.mrb[12].mxu1 %vm199_vm2, %v1771_v46  ;;  %1839 = vmatprep.subr.mxu1 %v1912_v0 }
  0xa8   : > { %v1278_v48 = vpop.permute.xlu1 %1277  ;;  %v1276_v49 = vpop.permute.xlu0 %1275  ;;  %1841 = vmatprep.mubr.msk.f32.mxu1 %vm1913_vm0, %v1912_v0 }
  0xa9   : > { %v1280_v60 = vsel %vm1279_vm8, %v1276_v49, %v1278_v48 }
  0xac   : > { %1766 = vmatmul.mubr.msk.f32.vlgmr.msra.gmra.mrb[0].mxu0 %vm199_vm2, %v1765_v38  ;;  %v1433_v52 = vpop.permute.xlu1 %1432  ;;  %v1274_v53 = vpop.permute.xlu0 %1273 }
  0xad   : > { %971 = vmatpush1.msra.mxu0 %v963_v50  ;;  %1034 = vmatprep.mubr.f32.mxu0 %v1912_v0  ;;  %v1282_v55 = vsel %vm1279_vm8, %v1278_v48, %v1274_v53  ;;  %v1281_v62 = vsel %vm1279_vm8, %v1274_v53, %v1276_v49  ;;  %v1781_v48 = vadd.s32 4294967277, %v1618_v44  ;;  %v1638_v49 = vshrl.u32 %v2121_v43, 4 }
  0xae   : > { %1129 = vmatprep.subr.mxu0 %v1121_v51  ;;  %1840 = vmatpush3.msra.mxu1 %v1282_v55 }
  0xaf   : > { %1842 = vmatmul.mubr.msk.f32.vlgmr.msra.gmra.mrb[14].mxu1 %vm199_vm2, %v1774_v54  ;;  %1844 = vmatprep.subr.mxu1 %v1912_v0  ;;  %v1639_v55 = vmul.u32 18, %v1638_v49 }
  0xb0   : > { %v1437_v56 = vpop.permute.xlu1 %1436  ;;  %1846 = vmatprep.mubr.msk.f32.mxu1 %vm1913_vm0, %v1912_v0  ;;  %v1435_v61 = vpop.permute.xlu0 %1434  ;;  %vm1632_vm0 = vcmp.lt.s32.totalorder %v2115_v33, 0 }
  0xb1   : > { %v1441_v58 = vsel %vm1438_vm9, %v1437_v56, %v1433_v52  ;;  %v1439_v63 = vsel %vm1438_vm9, %v1435_v61, %v1437_v56  ;;  %v1440_v1 = vsel %vm1438_vm9, %v1433_v52, %v1435_v61 }
  0xb2   : > { %1845 = vmatpush3.msra.mxu1 %v1441_v58  ;;  %v2125_v52 = vmul.u32.u64.low 3817748708, %v1781_v48  ;;  %v2126_v53 = vmul.u32.u64.high 3817748708, %v1781_v48, %v2125_v52 }
  0xb3   : > { %1847 = vmatmul.mubr.msk.f32.vlgmr.msra.gmra.mrb[16].mxu1 %vm199_vm2, %v1777_v57 }
  0xb4   : > { %1769 = vmatmul.mubr.msk.f32.vlgmr.msra.gmra.mrb[0].mxu0 %vm199_vm2, %v1768_v41  ;;  %v1662_v41 = vsub.s32 %v1782_v23, %v1661_v39 }
  0xb5   : > { %1130 = vmatpush1.msra.mxu0 %v1122_v59  ;;  %1193 = vmatprep.mubr.f32.mxu0 %v1912_v0 }
  0xb6   : > { %1288 = vmatprep.subr.mxu0 %v1280_v60  ;;  %vm1667_vm10 = vcmp.ne.s32.totalorder %v1662_v41, 0  ;;  %vm1670_vm11 = vcmp.lt.s32.totalorder %v1662_v41, 0  ;;  %v1640_v60 = vsub.s32 %v1783_v40, %v1639_v55 }
  0xb7   : > { %vm1673_vm12 = vmand %vm1670_vm11, %vm1667_vm10 }
  0xbc   : > { %1772 = vmatmul.mubr.msk.f32.vlgmr.msra.gmra.mrb[0].mxu0 %vm199_vm2, %v1771_v46  ;;  %v1676_v46 = vadd.s32 18, %v1662_v41 }
  0xbd   : > { %1289 = vmatpush1.msra.mxu0 %v1281_v62  ;;  %1352 = vmatprep.mubr.f32.mxu0 %v1912_v0 }
  0xbe   : > { %1447 = vmatprep.subr.mxu0 %v1439_v63  ;;  %v1679_v50 = vsel %vm1673_vm12, %v1676_v46, %v1662_v41 }
  0xbf   : > { %vm1682_vm14 = vcmp.lt.s32.totalorder %v1679_v50, 16 }
  0xc0   : > { %vm1685_vm15 = vmand %vm1628_vm13, %vm1682_vm14 }
  0xc1   : > { %v1595_v30 = vpop.permute.xlu0 %1594 }
  0xc4   : > { %1775 = vmatmul.mubr.msk.f32.vlgmr.msra.gmra.mrb[0].mxu0 %vm199_vm2, %v1774_v54 }
  0xc5   : > { %1448 = vmatpush1.msra.mxu0 %v1440_v1  ;;  %1511 = vmatprep.mubr.f32.mxu0 %v1912_v0  ;;  %v1649_v1 = vshrl.u32 %v2126_v53, 4 }
  0xcc   : > { %1778 = vmatmul.mubr.msk.f32.vlgmr.msra.gmra.mrb[0].mxu0 %vm199_vm2, %v1777_v57 }
 0x15f   : > { %v340_v2 = vpop.f32.mrb[0].mxu1 }
 0x160   : > { %v1808_v3 = vpop.f32.mrb[1].mxu1 }
 0x161   : > { %v1650_v3 = vmul.u32 18, %v1649_v1 }
 0x163   : > { %v484_v4 = vpop.f32.mrb[2].mxu1 }
 0x164   : > { %v485_v5 = vadd.f32 %v484_v4, %v340_v2  ;;  %v1813_v6 = vpop.f32.mrb[3].mxu1  ;;  %v1641_v2 = vsub.s32 0, %v1640_v60 }
 0x166   : > { %v1642_v4 = vsel %vm1632_vm0, %v1641_v2, %v1640_v60 }
 0x167   : > { %vm1665_vm1 = vcmp.ne.s32.totalorder %v1642_v4, 0  ;;  %vm1668_vm2 = vcmp.lt.s32.totalorder %v1642_v4, 0 }
 0x168   : > { %vm1671_vm3 = vmand %vm1668_vm2, %vm1665_vm1 }
 0x16a   : > { %v640_v8 = vpop.f32.mrb[4].mxu1 }
 0x16b   : > { %v646_v9 = vadd.f32 %v640_v8, %v485_v5  ;;  %v1818_v10 = vpop.f32.mrb[5].mxu1  ;;  %v1651_v5 = vsub.s32 %v1781_v48, %v1650_v3 }
 0x16c   : > { %v1674_v10 = vadd.s32 18, %v1642_v4 }
 0x16d   : > { %vm1666_vm4 = vcmp.ne.s32.totalorder %v1651_v5, 0  ;;  %vm1669_vm5 = vcmp.lt.s32.totalorder %v1651_v5, 0 }
 0x16e   : > { %v799_v11 = vpop.f32.mrb[6].mxu1  ;;  %vm1672_vm6 = vmand %vm1669_vm5, %vm1666_vm4 }
 0x16f   : > { %v805_v12 = vadd.f32 %v799_v11, %v646_v9  ;;  %v1823_v13 = vpop.f32.mrb[7].mxu1 }
 0x170   : > { %v1675_v13 = vadd.s32 18, %v1651_v5 }
 0x172   : > { %v948_v14 = vpop.f32.mrb[8].mxu1 }
 0x173   : > { %v954_v15 = vadd.f32 %v948_v14, %v805_v12  ;;  %v1828_v16 = vpop.f32.mrb[9].mxu1  ;;  %v1677_v12 = vsel %vm1671_vm3, %v1674_v10, %v1642_v4  ;;  %v1678_v14 = vsel %vm1672_vm6, %v1675_v13, %v1651_v5 }
 0x174   : > { %vm1680_vm8 = vcmp.lt.s32.totalorder %v1677_v12, 16  ;;  %vm1681_vm10 = vcmp.lt.s32.totalorder %v1678_v14, 16 }
 0x175   : > { %vm1683_vm9 = vmand %vm1623_vm7, %vm1680_vm8 }
 0x176   : > { %v1107_v17 = vpop.f32.mrb[10].mxu1 }
 0x177   : > { %v1113_v18 = vadd.f32 %v1107_v17, %v954_v15  ;;  %v1833_v19 = vpop.f32.mrb[11].mxu1 }
 0x17a   : > { %v1266_v0 = vpop.f32.mrb[12].mxu1 }
 0x17b   : > { %v1272_v20 = vadd.f32 %v1266_v0, %v1113_v18  ;;  %v1838_v21 = vpop.f32.mrb[13].mxu1 }
 0x182   : > { %v1425_v24 = vpop.f32.mrb[14].mxu1 }
 0x183   : > { %v1431_v25 = vadd.f32 %v1425_v24, %v1272_v20  ;;  %v1843_v26 = vpop.f32.mrb[15].mxu1 }
 0x186   : > { %v1584_v29 = vpop.f32.mrb[16].mxu1 }
 0x187   : > { %v1590_v31 = vadd.f32 %v1584_v29, %v1431_v25  ;;  %v1848_v32 = vpop.f32.mrb[17].mxu1 }
 0x189   : > { %v1599_v34 = vadd.f32 %v1595_v30, %v1590_v31 }
 0x18b   : > { %v1602_v35 = vsub.f32 0.0, %v1599_v34 }
 0x18d   : > { %v1607_v38 = vmul.f32 1.442695, %v1602_v35 }
 0x18f   : > { %1892 = vpow2.f32 %v1607_v38 }
 0x199   : > { %v1893_v45 = vpop.eup %1892 }
 0x19a   : > { %v1611_v47 = vadd.f32 1.0, %v1893_v45 }
 0x19c   : > { %1894 = vrcp.f32 %v1611_v47 }
 0x19f   : > { %v1513_v51 = vpop.f32.mrb[0].mxu0 }
 0x1a0   : > { %v1597_v54 = vadd.f32 %v1595_v30, %v1513_v51  ;;  %v1515_v56 = vpop.f32.mrb[1].mxu0 }
 0x1a1   : > { %v1598_v7 = vadd.f32 %v1595_v30, %v1515_v56 }
 0x1a2   : > { %v1600_v57 = vsub.f32 0.0, %v1597_v54 }
 0x1a3   : > { %v1601_v58 = vsub.f32 0.0, %v1598_v7 }
 0x1a4   : > { %v1603_v59 = vmul.f32 1.442695, %v1600_v57 }
 0x1a5   : > { %v1605_v61 = vmul.f32 1.442695, %v1601_v58 }
 0x1a6   : > { %v1895_v62 = vpop.eup %1894  ;;  %1896 = vpow2.f32 %v1603_v59 }
 0x1a7   : > { %v1688_v63 = vsel %vm1685_vm15, %v1895_v62, 0.0  ;;  %1898 = vpow2.f32 %v1605_v61 }
 0x1a8   : > { %1691 = vst [vmem:[%s2133_s24 + $0x10] sm:$0xff] %v1688_v63 }
 0x1b0   : > { %v1897_v6 = vpop.eup %1896 }
 0x1b1   : > { %v1899_v8 = vpop.eup %1898  ;;  %v1609_v9 = vadd.f32 1.0, %v1897_v6 }
 0x1b2   : > { %v1610_v11 = vadd.f32 1.0, %v1899_v8 }
 0x1b3   : > { %1900 = vrcp.f32 %v1609_v9 }
 0x1b4   : > { %1902 = vrcp.f32 %v1610_v11 }
 0x1bd   : > { %v1901_v15 = vpop.eup %1900 }
 0x1be   : > { %v1903_v16 = vpop.eup %1902  ;;  %v1686_v17 = vsel %vm1683_vm9, %v1901_v15, 0.0 }
 0x1bf   : > { %1689 = vst [vmem:[%s2133_s24] sm:$0xff] %v1686_v17  ;;  %v1687_v18 = vsel %vm1681_vm10, %v1903_v16, 0.0 }
 0x1c0   : > { %1690 = vst [vmem:[%s2133_s24 + $0x8] sm:$0xff] %v1687_v18 }
 0x1c1 PF: > { %s13_s12 = sadd.s32 1, %s1910_s12  }
 0x1c2   : > { %p10_p4 = scmp.ge.s32.totalorder %s13_s12, 4  }
 0x1c4   :  { %12 = sbr.rel (!%p10_p4) target bundleno = 1 (0x1), region = 70 }

// kernel: vae_forward.9
= control target key start
LH: loop header
LB: loop body
LE: loop exit
PB: predicated region body
PF: predicated region fallthrough
CT: control target
= control target key end

     0   :  { %v2488_v3 = vmov 0.0   ;;  %vm376_vm0 = vcmask 130048   ;;  %s3065_s3 = inlined_call_operand.vmem [shape: f32[16,6144], index: 3, kind: input, shape index: {}]   ;;  %s3066_s1 = inlined_call_operand.vmem [shape: f32[2,16], index: 1, kind: input, shape index: {}]   ;;  %s3067_s2 = inlined_call_operand.vmem [shape: f32[2,16], index: 2, kind: input, shape index: {}]   ;;  %s3068_s0 = inlined_call_operand.vmem [shape: f32[2,16], index: 0, kind: input, shape index: {}]   ;;  %s3069_s4 = inlined_call_operand.vmem [shape: f32[1,6144], index: 4, kind: input, shape index: {}]   ;;  %s3070_s5 = inlined_call_operand.vmem [shape: f32[2,6144], index: 5, kind: output, shape index: {}]  }
   0x1   :  { %v29_v0 = vld [vmem:[%s3065_s3 + $0x8] sm:$0xff]  ;;  %v31_v2 = vld [vmem:[%s3065_s3 + $0x18] sm:$0xff]  ;;  %444 = vmatprep.mubr.f32.mxu0 %v2488_v3  ;;  %515 = vmatprep.mubr.f32.mxu1 %v2488_v3  ;;  %v28_v6 = vld [vmem:[%s3065_s3] sm:$0xff] }
   0x2   :  { %v77_v1 = vld [vmem:[%s3065_s3 + $0x188] sm:$0xff]  ;;  %v79_v5 = vld [vmem:[%s3065_s3 + $0x198] sm:$0xff]  ;;  %v76_v7 = vld [vmem:[%s3065_s3 + $0x180] sm:$0xff] }
   0x3   :  { %v2388_v4 = vpack.c.bf16 %v77_v1, %v29_v0  ;;  %v2392_v8 = vpack.c.bf16 %v79_v5, %v31_v2  ;;  %v2390_v9 = vpack.c.bf16 %v76_v7, %v28_v6  ;;  %v30_v10 = vld [vmem:[%s3065_s3 + $0x10] sm:$0xff]  ;;  %v33_v12 = vld [vmem:[%s3065_s3 + $0x28] sm:$0xff]  ;;  %v35_v15 = vld [vmem:[%s3065_s3 + $0x38] sm:$0xff] }
   0x4   :  { %v78_v11 = vld [vmem:[%s3065_s3 + $0x190] sm:$0xff]  ;;  %v81_v14 = vld [vmem:[%s3065_s3 + $0x1a8] sm:$0xff]  ;;  %v83_v16 = vld [vmem:[%s3065_s3 + $0x1b8] sm:$0xff] }
   0x5   :  { %2389 = vmatprep.subr.bf16.mxu0 %v2388_v4  ;;  %v2394_v13 = vpack.c.bf16 %v78_v11, %v30_v10  ;;  %2393 = vmatprep.subr.bf16.mxu1 %v2392_v8  ;;  %v2396_v17 = vpack.c.bf16 %v81_v14, %v33_v12  ;;  %v2400_v18 = vpack.c.bf16 %v83_v16, %v35_v15  ;;  %v22_v19 = vld [vmem:[%s3066_s1] sm:$0x3]  ;;  %v34_v25 = vld [vmem:[%s3065_s3 + $0x30] sm:$0xff]  ;;  %v37_v29 = vld [vmem:[%s3065_s3 + $0x48] sm:$0xff] }
   0x6   :  { %2391 = vmatpush1.bf16.msra.mxu0 %v2390_v9  ;;  %v23_v20 = vmul.f32 0.5, %v22_v19  ;;  %v21_v22 = vld [vmem:[%s3067_s2] sm:$0x3]  ;;  %v82_v26 = vld [vmem:[%s3065_s3 + $0x1b0] sm:$0xff]  ;;  %v85_v31 = vld [vmem:[%s3065_s3 + $0x1c8] sm:$0xff] }
   0x7   :  { %2395 = vmatpush1.bf16.msra.mxu1 %v2394_v13  ;;  %2397 = vmatprep.subr.bf16.mxu0 %v2396_v17  ;;  %v32_v23 = vld [vmem:[%s3065_s3 + $0x20] sm:$0xff]  ;;  %v39_v32 = vld [vmem:[%s3065_s3 + $0x58] sm:$0xff]  ;;  %v2402_v35 = vpack.c.bf16 %v82_v26, %v34_v25  ;;  %v38_v39 = vld [vmem:[%s3065_s3 + $0x50] sm:$0xff]  ;;  %v2404_v41 = vpack.c.bf16 %v85_v31, %v37_v29 }
   0x8   :  { %2401 = vmatprep.subr.bf16.mxu1 %v2400_v18  ;;  %v24_v21 = vmul.f32 1.442695, %v23_v20  ;;  %v80_v24 = vld [vmem:[%s3065_s3 + $0x1a0] sm:$0xff]  ;;  %v87_v33 = vld [vmem:[%s3065_s3 + $0x1d8] sm:$0xff]  ;;  %v86_v40 = vld [vmem:[%s3065_s3 + $0x1d0] sm:$0xff] }
   0x9   :  { %v20_v28 = vld [vmem:[%s3068_s0] sm:$0x3]  ;;  %v2398_v34 = vpack.c.bf16 %v80_v24, %v32_v23  ;;  %v2408_v42 = vpack.c.bf16 %v87_v33, %v39_v32  ;;  %v41_v43 = vld [vmem:[%s3065_s3 + $0x68] sm:$0xff]  ;;  %v43_v45 = vld [vmem:[%s3065_s3 + $0x78] sm:$0xff]  ;;  %v2410_v48 = vpack.c.bf16 %v86_v40, %v38_v39 }
   0xa   :  { %2486 = vpow2.f32 %v24_v21  ;;  %v36_v36 = vld [vmem:[%s3065_s3 + $0x40] sm:$0xff]  ;;  %v89_v44 = vld [vmem:[%s3065_s3 + $0x1e8] sm:$0xff]  ;;  %v91_v46 = vld [vmem:[%s3065_s3 + $0x1f8] sm:$0xff] }
   0xb   :  { %v84_v38 = vld [vmem:[%s3065_s3 + $0x1c0] sm:$0xff]  ;;  %v42_v51 = vld [vmem:[%s3065_s3 + $0x70] sm:$0xff]  ;;  %v2412_v53 = vpack.c.bf16 %v89_v44, %v41_v43  ;;  %v2416_v54 = vpack.c.bf16 %v91_v46, %v43_v45  ;;  %v45_v55 = vld [vmem:[%s3065_s3 + $0x88] sm:$0xff] }
   0xc   :  { %v2406_v47 = vpack.c.bf16 %v84_v38, %v36_v36  ;;  %v40_v49 = vld [vmem:[%s3065_s3 + $0x60] sm:$0xff]  ;;  %v90_v52 = vld [vmem:[%s3065_s3 + $0x1f0] sm:$0xff]  ;;  %v93_v56 = vld [vmem:[%s3065_s3 + $0x208] sm:$0xff] }
   0xd   :  { %v88_v50 = vld [vmem:[%s3065_s3 + $0x1e0] sm:$0xff]  ;;  %v47_v57 = vld [vmem:[%s3065_s3 + $0x98] sm:$0xff]  ;;  %v2418_v60 = vpack.c.bf16 %v90_v52, %v42_v51  ;;  %v46_v63 = vld [vmem:[%s3065_s3 + $0x90] sm:$0xff]  ;;  %v2420_v1 = vpack.c.bf16 %v93_v56, %v45_v55 }
   0xe   :  { %v95_v58 = vld [vmem:[%s3065_s3 + $0x218] sm:$0xff]  ;;  %v2414_v59 = vpack.c.bf16 %v88_v50, %v40_v49  ;;  %v44_v61 = vld [vmem:[%s3065_s3 + $0x80] sm:$0xff]  ;;  %v94_v0 = vld [vmem:[%s3065_s3 + $0x210] sm:$0xff] }
   0xf   :  { %v92_v62 = vld [vmem:[%s3065_s3 + $0x200] sm:$0xff]  ;;  %v2424_v2 = vpack.c.bf16 %v95_v58, %v47_v57  ;;  %v49_v4 = vld [vmem:[%s3065_s3 + $0xa8] sm:$0xff]  ;;  %v51_v6 = vld [vmem:[%s3065_s3 + $0xb8] sm:$0xff]  ;;  %v2426_v9 = vpack.c.bf16 %v94_v0, %v46_v63 }
  0x10   :  { %v97_v5 = vld [vmem:[%s3065_s3 + $0x228] sm:$0xff]  ;;  %v99_v7 = vld [vmem:[%s3065_s3 + $0x238] sm:$0xff]  ;;  %v2422_v8 = vpack.c.bf16 %v92_v62, %v44_v61  ;;  %v48_v10 = vld [vmem:[%s3065_s3 + $0xa0] sm:$0xff] }
  0x11   :  { %v96_v11 = vld [vmem:[%s3065_s3 + $0x220] sm:$0xff]  ;;  %v50_v12 = vld [vmem:[%s3065_s3 + $0xb0] sm:$0xff]  ;;  %v2428_v14 = vpack.c.bf16 %v97_v5, %v49_v4  ;;  %v2432_v15 = vpack.c.bf16 %v99_v7, %v51_v6  ;;  %v53_v16 = vld [vmem:[%s3065_s3 + $0xc8] sm:$0xff] }
  0x12   :  { %v98_v13 = vld [vmem:[%s3065_s3 + $0x230] sm:$0xff]  ;;  %v101_v17 = vld [vmem:[%s3065_s3 + $0x248] sm:$0xff]  ;;  %v55_v18 = vld [vmem:[%s3065_s3 + $0xd8] sm:$0xff]  ;;  %v2430_v20 = vpack.c.bf16 %v96_v11, %v48_v10 }
  0x13   :  { %v103_v19 = vld [vmem:[%s3065_s3 + $0x258] sm:$0xff]  ;;  %v2434_v21 = vpack.c.bf16 %v98_v13, %v50_v12  ;;  %v100_v23 = vld [vmem:[%s3065_s3 + $0x240] sm:$0xff]  ;;  %v54_v24 = vld [vmem:[%s3065_s3 + $0xd0] sm:$0xff]  ;;  %v2436_v26 = vpack.c.bf16 %v101_v17, %v53_v16 }
  0x14   :  { %v2487_v27 = vpop.eup %2486  ;;  %v102_v25 = vld [vmem:[%s3065_s3 + $0x250] sm:$0xff]  ;;  %v105_v29 = vld [vmem:[%s3065_s3 + $0x268] sm:$0xff]  ;;  %v107_v31 = vld [vmem:[%s3065_s3 + $0x278] sm:$0xff] }
  0x15   :  { %v26_v30 = vmul.f32 %v2487_v27, %v21_v22  ;;  %v52_v22 = vld [vmem:[%s3065_s3 + $0xc0] sm:$0xff]  ;;  %v2440_v27 = vpack.c.bf16 %v103_v19, %v55_v18  ;;  %v2442_v33 = vpack.c.bf16 %v102_v25, %v54_v24  ;;  %v58_v36 = vld [vmem:[%s3065_s3 + $0xf0] sm:$0xff]  ;;  %v63_v43 = vld [vmem:[%s3065_s3 + $0x118] sm:$0xff] }
  0x16   :  { %v2438_v32 = vpack.c.bf16 %v100_v23, %v52_v22  ;;  %v106_v38 = vld [vmem:[%s3065_s3 + $0x270] sm:$0xff]  ;;  %v111_v44 = vld [vmem:[%s3065_s3 + $0x298] sm:$0xff] }
  0x17   :  { %v2594_v37 = vadd.f32 %v26_v30, %v20_v28  ;;  %v57_v28 = vld [vmem:[%s3065_s3 + $0xe8] sm:$0xff]  ;;  %v59_v30 = vld [vmem:[%s3065_s3 + $0xf8] sm:$0xff]  ;;  %v2450_v46 = vpack.c.bf16 %v106_v38, %v58_v36  ;;  %v62_v49 = vld [vmem:[%s3065_s3 + $0x110] sm:$0xff]  ;;  %v2456_v52 = vpack.c.bf16 %v111_v44, %v63_v43 }
  0x18   :  { %v2444_v39 = vpack.c.bf16 %v105_v29, %v57_v28  ;;  %v2448_v40 = vpack.c.bf16 %v107_v31, %v59_v30  ;;  %v110_v50 = vld [vmem:[%s3065_s3 + $0x290] sm:$0xff]  ;;  %v67_v55 = vld [vmem:[%s3065_s3 + $0x138] sm:$0xff]  ;;  %v136_v28 = vlaneseq }
  0x19   :  { %2364 = vmatmul.mubr.msk.f32.vlgmr.msra.gmra.mrb[0].mxu0 %vm376_vm0, %v2594_v37  ;;  %2365 = vmatmul.mubr.msk.f32.vlgmr.msra.gmra.mrb[0].mxu1 %vm376_vm0, %v2594_v37  ;;  %v115_v56 = vld [vmem:[%s3065_s3 + $0x2b8] sm:$0xff]  ;;  %v2458_v58 = vpack.c.bf16 %v110_v50, %v62_v49  ;;  %v66_v61 = vld [vmem:[%s3065_s3 + $0x130] sm:$0xff] }
  0x1a   :  { %2399 = vmatpush1.bf16.msra.mxu0 %v2398_v34  ;;  %2403 = vmatpush1.bf16.msra.mxu1 %v2402_v35  ;;  %v56_v34 = vld [vmem:[%s3065_s3 + $0xe0] sm:$0xff]  ;;  %v114_v62 = vld [vmem:[%s3065_s3 + $0x2b0] sm:$0xff]  ;;  %v2464_v0 = vpack.c.bf16 %v115_v56, %v67_v55  ;;  %v71_v4 = vld [vmem:[%s3065_s3 + $0x158] sm:$0xff]  ;;  %v137_v29 = vshrl.u32 %v136_v28, 7 }
  0x1b   :  { %586 = vmatprep.mubr.f32.mxu0 %v2488_v3  ;;  %657 = vmatprep.mubr.f32.mxu1 %v2488_v3  ;;  %v104_v35 = vld [vmem:[%s3065_s3 + $0x260] sm:$0xff]  ;;  %v119_v5 = vld [vmem:[%s3065_s3 + $0x2d8] sm:$0xff]  ;;  %v2466_v7 = vpack.c.bf16 %v114_v62, %v66_v61  ;;  %v70_v10 = vld [vmem:[%s3065_s3 + $0x150] sm:$0xff] }
  0x1c   :  { %2405 = vmatprep.subr.bf16.mxu0 %v2404_v41  ;;  %2409 = vmatprep.subr.bf16.mxu1 %v2408_v42  ;;  %v61_v41 = vld [vmem:[%s3065_s3 + $0x108] sm:$0xff]  ;;  %v2446_v45 = vpack.c.bf16 %v104_v35, %v56_v34  ;;  %v118_v11 = vld [vmem:[%s3065_s3 + $0x2d0] sm:$0xff]  ;;  %v2472_v13 = vpack.c.bf16 %v119_v5, %v71_v4  ;;  %v75_v16 = vld [vmem:[%s3065_s3 + $0x178] sm:$0xff]  ;;  %v2891_v30 = vsub.s32 0, %v137_v29  ;;  %v2893_v31 = vsub.s32 2, %v137_v29 }
  0x1d   :  { %2366 = vmatmul.mubr.msk.f32.vlgmr.msra.gmra.mrb[2].mxu0 %vm376_vm0, %v2594_v37  ;;  %2367 = vmatmul.mubr.msk.f32.vlgmr.msra.gmra.mrb[2].mxu1 %vm376_vm0, %v2594_v37  ;;  %v109_v42 = vld [vmem:[%s3065_s3 + $0x288] sm:$0xff]  ;;  %v123_v17 = vld [vmem:[%s3065_s3 + $0x2f8] sm:$0xff]  ;;  %v2474_v19 = vpack.c.bf16 %v118_v11, %v70_v10  ;;  %v74_v22 = vld [vmem:[%s3065_s3 + $0x170] sm:$0xff]  ;;  %v2898_v35 = vsub.s32 1, %v137_v29  ;;  %v2902_v36 = vsub.s32 4, %v137_v29  ;;  %v2910_v43 = vsub.s32 5, %v137_v29 }
  0x1e   :  { %2407 = vmatpush1.bf16.msra.mxu0 %v2406_v47  ;;  %2411 = vmatpush1.bf16.msra.mxu1 %v2410_v48  ;;  %v60_v47 = vld [vmem:[%s3065_s3 + $0x100] sm:$0xff]  ;;  %v2452_v51 = vpack.c.bf16 %v109_v42, %v61_v41  ;;  %v122_v23 = vld [vmem:[%s3065_s3 + $0x2f0] sm:$0xff]  ;;  %v2480_v25 = vpack.c.bf16 %v123_v17, %v75_v16  ;;  %v2912_v44 = vsub.s32 7, %v137_v29 }
  0x1f   :  { %728 = vmatprep.mubr.f32.mxu0 %v2488_v3  ;;  %799 = vmatprep.mubr.f32.mxu1 %v2488_v3  ;;  %v108_v48 = vld [vmem:[%s3065_s3 + $0x280] sm:$0xff] }
  0x20   :  { %2413 = vmatprep.subr.bf16.mxu0 %v2412_v53  ;;  %2417 = vmatprep.subr.bf16.mxu1 %v2416_v54  ;;  %v65_v53 = vld [vmem:[%s3065_s3 + $0x128] sm:$0xff]  ;;  %v2454_v57 = vpack.c.bf16 %v108_v48, %v60_v47  ;;  %v124_v34 = vld [vmem:[%s3069_s4] sm:$0xff] }
  0x21   :  { %2368 = vmatmul.mubr.msk.f32.vlgmr.msra.gmra.mrb[4].mxu0 %vm376_vm0, %v2594_v37  ;;  %2369 = vmatmul.mubr.msk.f32.vlgmr.msra.gmra.mrb[4].mxu1 %vm376_vm0, %v2594_v37  ;;  %v113_v54 = vld [vmem:[%s3065_s3 + $0x2a8] sm:$0xff]  ;;  %v147_v38 = vrot.slane %v124_v34, %v2893_v31  ;;  %v143_v41 = vrot.slane %v124_v34, %v2898_v35  ;;  %v155_v47 = vrot.slane %v124_v34, %v2902_v36 }
  0x22   :  { %2415 = vmatpush1.bf16.msra.mxu0 %v2414_v59  ;;  %2419 = vmatpush1.bf16.msra.mxu1 %v2418_v60  ;;  %v64_v59 = vld [vmem:[%s3065_s3 + $0x120] sm:$0xff]  ;;  %v2460_v63 = vpack.c.bf16 %v113_v54, %v65_v53  ;;  %v125_v54 = vld [vmem:[%s3069_s4 + $0x8] sm:$0xff] }
  0x23   :  { %870 = vmatprep.mubr.f32.mxu0 %v2488_v3  ;;  %941 = vmatprep.mubr.f32.mxu1 %v2488_v3  ;;  %v112_v60 = vld [vmem:[%s3065_s3 + $0x2a0] sm:$0xff] }
  0x24   :  { %2421 = vmatprep.subr.bf16.mxu0 %v2420_v1  ;;  %2425 = vmatprep.subr.bf16.mxu1 %v2424_v2  ;;  %v69_v1 = vld [vmem:[%s3065_s3 + $0x148] sm:$0xff]  ;;  %v2462_v6 = vpack.c.bf16 %v112_v60, %v64_v59 }
  0x25   :  { %2370 = vmatmul.mubr.msk.f32.vlgmr.msra.gmra.mrb[6].mxu0 %vm376_vm0, %v2594_v37  ;;  %2371 = vmatmul.mubr.msk.f32.vlgmr.msra.gmra.mrb[6].mxu1 %vm376_vm0, %v2594_v37  ;;  %v117_v2 = vld [vmem:[%s3065_s3 + $0x2c8] sm:$0xff] }
  0x26   :  { %2423 = vmatpush1.bf16.msra.mxu0 %v2422_v8  ;;  %2427 = vmatpush1.bf16.msra.mxu1 %v2426_v9  ;;  %v68_v8 = vld [vmem:[%s3065_s3 + $0x140] sm:$0xff]  ;;  %v2468_v12 = vpack.c.bf16 %v117_v2, %v69_v1 }
  0x27   :  { %1012 = vmatprep.mubr.f32.mxu0 %v2488_v3  ;;  %1083 = vmatprep.mubr.f32.mxu1 %v2488_v3  ;;  %v116_v9 = vld [vmem:[%s3065_s3 + $0x2c0] sm:$0xff] }
  0x28   :  { %2429 = vmatprep.subr.bf16.mxu0 %v2428_v14  ;;  %2433 = vmatprep.subr.bf16.mxu1 %v2432_v15  ;;  %v73_v14 = vld [vmem:[%s3065_s3 + $0x168] sm:$0xff]  ;;  %v2470_v18 = vpack.c.bf16 %v116_v9, %v68_v8 }
  0x29   :  { %2372 = vmatmul.mubr.msk.f32.vlgmr.msra.gmra.mrb[8].mxu0 %vm376_vm0, %v2594_v37  ;;  %2373 = vmatmul.mubr.msk.f32.vlgmr.msra.gmra.mrb[8].mxu1 %vm376_vm0, %v2594_v37  ;;  %v121_v15 = vld [vmem:[%s3065_s3 + $0x2e8] sm:$0xff] }
  0x2a   :  { %2431 = vmatpush1.bf16.msra.mxu0 %v2430_v20  ;;  %2435 = vmatpush1.bf16.msra.mxu1 %v2434_v21  ;;  %v72_v20 = vld [vmem:[%s3065_s3 + $0x160] sm:$0xff]  ;;  %v2476_v24 = vpack.c.bf16 %v121_v15, %v73_v14 }
  0x2b   :  { %1154 = vmatprep.mubr.f32.mxu0 %v2488_v3  ;;  %1225 = vmatprep.mubr.f32.mxu1 %v2488_v3  ;;  %v120_v21 = vld [vmem:[%s3065_s3 + $0x2e0] sm:$0xff] }
  0x2c   :  { %2437 = vmatprep.subr.bf16.mxu0 %v2436_v26  ;;  %2441 = vmatprep.subr.bf16.mxu1 %v2440_v27  ;;  %v2478_v26 = vpack.c.bf16 %v120_v21, %v72_v20  ;;  %v2482_v27 = vpack.c.bf16 %v122_v23, %v74_v22 }
  0x2d   :  { %2374 = vmatmul.mubr.msk.f32.vlgmr.msra.gmra.mrb[10].mxu0 %vm376_vm0, %v2594_v37  ;;  %2375 = vmatmul.mubr.msk.f32.vlgmr.msra.gmra.mrb[10].mxu1 %vm376_vm0, %v2594_v37 }
  0x2e   :  { %2439 = vmatpush1.bf16.msra.mxu0 %v2438_v32  ;;  %2443 = vmatpush1.bf16.msra.mxu1 %v2442_v33  ;;  %v2489_v32 = vmov 1983009808  }
  0x2f   :  { %1296 = vmatprep.mubr.f32.mxu0 %v2488_v3  ;;  %1367 = vmatprep.mubr.f32.mxu1 %v2488_v3  ;;  %v2135_v33 = vunpack.c.l.s4 %v2489_v32 }
  0x30   :  { %2445 = vmatprep.subr.bf16.mxu0 %v2444_v39  ;;  %2449 = vmatprep.subr.bf16.mxu1 %v2448_v40  ;;  %v2906_v40 = vsub.s32 6, %v137_v29 }
  0x31   :  { %2376 = vmatmul.mubr.msk.f32.vlgmr.msra.gmra.mrb[12].mxu0 %vm376_vm0, %v2594_v37  ;;  %2377 = vmatmul.mubr.msk.f32.vlgmr.msra.gmra.mrb[12].mxu1 %vm376_vm0, %v2594_v37  ;;  %v2136_v39 = vunpack.c.0.s8 %v2135_v33 }
  0x32   :  { %2447 = vmatpush1.bf16.msra.mxu0 %v2446_v45  ;;  %2451 = vmatpush1.bf16.msra.mxu1 %v2450_v46  ;;  %v163_v53 = vrot.slane %v124_v34, %v2906_v40 }
  0x33   :  { %1438 = vmatprep.mubr.f32.mxu0 %v2488_v3  ;;  %1509 = vmatprep.mubr.f32.mxu1 %v2488_v3 }
  0x34   :  { %2453 = vmatprep.subr.bf16.mxu0 %v2452_v51  ;;  %2457 = vmatprep.subr.bf16.mxu1 %v2456_v52  ;;  %v2915_v51 = vsub.s32 %v2136_v39, %v137_v29 }
  0x35   :  { %2378 = vmatmul.mubr.msk.f32.vlgmr.msra.gmra.mrb[14].mxu0 %vm376_vm0, %v2594_v37  ;;  %2379 = vmatmul.mubr.msk.f32.vlgmr.msra.gmra.mrb[14].mxu1 %vm376_vm0, %v2594_v37 }
  0x36   :  { %2455 = vmatpush1.bf16.msra.mxu0 %v2454_v57  ;;  %2459 = vmatpush1.bf16.msra.mxu1 %v2458_v58  ;;  %v159_v57 = vrot.slane %v124_v34, %v2910_v43  ;;  %v167_v58 = vrot.slane %v124_v34, %v2912_v44 }
  0x37   :  { %1580 = vmatprep.mubr.f32.mxu0 %v2488_v3  ;;  %1651 = vmatprep.mubr.f32.mxu1 %v2488_v3 }
  0x38   :  { %2461 = vmatprep.subr.bf16.mxu0 %v2460_v63  ;;  %2465 = vmatprep.subr.bf16.mxu1 %v2464_v0  ;;  %v171_v63 = vrot.slane %v125_v54, %v2891_v30  ;;  %v179_v0 = vrot.slane %v125_v54, %v2893_v31 }
  0x39   :  { %2380 = vmatmul.mubr.msk.f32.vlgmr.msra.gmra.mrb[16].mxu0 %vm376_vm0, %v2594_v37  ;;  %2381 = vmatmul.mubr.msk.f32.vlgmr.msra.gmra.mrb[16].mxu1 %vm376_vm0, %v2594_v37 }
  0x3a   :  { %2463 = vmatpush1.bf16.msra.mxu0 %v2462_v6  ;;  %2467 = vmatpush1.bf16.msra.mxu1 %v2466_v7  ;;  %v175_v6 = vrot.slane %v125_v54, %v2898_v35 }
  0x3b   :  { %1722 = vmatprep.mubr.f32.mxu0 %v2488_v3  ;;  %1793 = vmatprep.mubr.f32.mxu1 %v2488_v3 }
  0x3c   :  { %2469 = vmatprep.subr.bf16.mxu0 %v2468_v12  ;;  %2473 = vmatprep.subr.bf16.mxu1 %v2472_v13  ;;  %v187_v12 = vrot.slane %v125_v54, %v2902_v36 }
  0x3d   :  { %2382 = vmatmul.mubr.msk.f32.vlgmr.msra.gmra.mrb[18].mxu0 %vm376_vm0, %v2594_v37  ;;  %2383 = vmatmul.mubr.msk.f32.vlgmr.msra.gmra.mrb[18].mxu1 %vm376_vm0, %v2594_v37 }
  0x3e   :  { %2471 = vmatpush1.bf16.msra.mxu0 %v2470_v18  ;;  %2475 = vmatpush1.bf16.msra.mxu1 %v2474_v19  ;;  %v195_v18 = vrot.slane %v125_v54, %v2906_v40  ;;  %v2934_v19 = vld [vmem:[%s3069_s4 + $0x10] sm:$0xff] }
  0x3f   :  { %1864 = vmatprep.mubr.f32.mxu0 %v2488_v3  ;;  %1935 = vmatprep.mubr.f32.mxu1 %v2488_v3  ;;  %v203_v32 = vrot.slane %v2934_v19, %v2891_v30 }
  0x40   :  { %2477 = vmatprep.subr.bf16.mxu0 %v2476_v24  ;;  %2481 = vmatprep.subr.bf16.mxu1 %v2480_v25  ;;  %v191_v24 = vrot.slane %v125_v54, %v2910_v43  ;;  %v199_v25 = vrot.slane %v125_v54, %v2912_v44 }
  0x41   :  { %2384 = vmatmul.mubr.msk.f32.vlgmr.msra.gmra.mrb[20].mxu0 %vm376_vm0, %v2594_v37  ;;  %2385 = vmatmul.mubr.msk.f32.vlgmr.msra.gmra.mrb[20].mxu1 %vm376_vm0, %v2594_v37 }
  0x42   :  { %2479 = vmatpush1.bf16.msra.mxu0 %v2478_v26  ;;  %2483 = vmatpush1.bf16.msra.mxu1 %v2482_v27 }
  0x43   :  { %2006 = vmatprep.mubr.f32.mxu0 %v2488_v3  ;;  %2077 = vmatprep.mubr.f32.mxu1 %v2488_v3  ;;  %v2900_v3 = vsub.s32 3, %v137_v29 }
  0x45   :  { %2386 = vmatmul.mubr.msk.f32.vlgmr.msra.gmra.mrb[22].mxu0 %vm376_vm0, %v2594_v37  ;;  %2387 = vmatmul.mubr.msk.f32.vlgmr.msra.gmra.mrb[22].mxu1 %vm376_vm0, %v2594_v37  ;;  %v139_v37 = vrot.slane %v124_v34, %v2891_v30  ;;  %v151_v42 = vrot.slane %v124_v34, %v2900_v3  ;;  %v183_v7 = vrot.slane %v125_v54, %v2900_v3 }
  0xec   :  { %v446_v45 = vpop.f32.mrb[0].mxu0  ;;  %v517_v46 = vpop.f32.mrb[0].mxu1 }
  0xed   :  { %v447_v48 = vadd.f32 %v446_v45, %v139_v37  ;;  %v518_v49 = vadd.f32 %v517_v46, %v147_v38  ;;  %v448_v50 = vpop.f32.mrb[1].mxu0  ;;  %v519_v52 = vpop.f32.mrb[1].mxu1 }
  0xee   :  { %v449_v55 = vadd.f32 %v448_v50, %v143_v41  ;;  %v520_v56 = vadd.f32 %v519_v52, %v151_v42  ;;  %v211_v41 = vrot.slane %v2934_v19, %v2893_v31 }
  0xf0   :  { %v2132_v59 = vcombine.low %v447_v48, %v449_v55  ;;  %v2133_v60 = vcombine.low %v518_v49, %v520_v56  ;;  %v588_v61 = vpop.f32.mrb[2].mxu0  ;;  %v659_v62 = vpop.f32.mrb[2].mxu1  ;;  %v207_v48 = vrot.slane %v2934_v19, %v2898_v35  ;;  %v215_v49 = vrot.slane %v2934_v19, %v2900_v3 }
  0xf1   :  { %v589_v1 = vadd.f32 %v588_v61, %v155_v47  ;;  %v660_v2 = vadd.f32 %v659_v62, %v163_v53  ;;  %v590_v4 = vpop.f32.mrb[3].mxu0  ;;  %v661_v5 = vpop.f32.mrb[3].mxu1  ;;  %v219_v55 = vrot.slane %v2934_v19, %v2902_v36  ;;  %v227_v61 = vrot.slane %v2934_v19, %v2906_v40  ;;  %v2963_v62 = vld [vmem:[%s3069_s4 + $0x18] sm:$0xff] }
  0xf2   :  { %v2140_v8 = vrot.slane %v2132_v59, %v2915_v51  ;;  %v2147_v9 = vrot.slane %v2133_v60, %v2915_v51  ;;  %v591_v10 = vadd.f32 %v590_v4, %v159_v57  ;;  %v662_v11 = vadd.f32 %v661_v5, %v167_v58 }
  0xf3   :  { %v223_v4 = vrot.slane %v2934_v19, %v2910_v43  ;;  %v231_v5 = vrot.slane %v2934_v19, %v2912_v44 }
  0xf4   :  { %v2148_v13 = vcombine.low %v2140_v8, %v2147_v9  ;;  %v2149_v14 = vcombine.low %v589_v1, %v591_v10  ;;  %v2150_v15 = vcombine.low %v660_v2, %v662_v11  ;;  %v730_v16 = vpop.f32.mrb[4].mxu0  ;;  %v801_v17 = vpop.f32.mrb[4].mxu1  ;;  %v235_v10 = vrot.slane %v2963_v62, %v2891_v30 }
  0xf5   :  { %v731_v20 = vadd.f32 %v730_v16, %v171_v63  ;;  %v802_v21 = vadd.f32 %v801_v17, %v179_v0  ;;  %v732_v22 = vpop.f32.mrb[5].mxu0  ;;  %v803_v23 = vpop.f32.mrb[5].mxu1  ;;  %v243_v16 = vrot.slane %v2963_v62, %v2893_v31 }
  0xf6   :  { %2348 = vst [vmem:[%s3070_s5] sm:$0xff] %v2148_v13  ;;  %v2157_v26 = vrot.slane %v2149_v14, %v2915_v51  ;;  %v2164_v27 = vrot.slane %v2150_v15, %v2915_v51  ;;  %v733_v28 = vadd.f32 %v732_v22, %v175_v6  ;;  %v804_v29 = vadd.f32 %v803_v23, %v183_v7 }
  0xf7   :  { %v247_v22 = vrot.slane %v2963_v62, %v2900_v3 }
  0xf8   :  { %v2165_v33 = vcombine.low %v2157_v26, %v2164_v27  ;;  %v2166_v34 = vcombine.low %v731_v20, %v733_v28  ;;  %v2167_v37 = vcombine.low %v802_v21, %v804_v29  ;;  %v872_v38 = vpop.f32.mrb[6].mxu0  ;;  %v943_v39 = vpop.f32.mrb[6].mxu1  ;;  %v239_v21 = vrot.slane %v2963_v62, %v2898_v35 }
  0xf9   :  { %v873_v42 = vadd.f32 %v872_v38, %v187_v12  ;;  %v944_v45 = vadd.f32 %v943_v39, %v195_v18  ;;  %v874_v46 = vpop.f32.mrb[7].mxu0  ;;  %v945_v47 = vpop.f32.mrb[7].mxu1  ;;  %v251_v27 = vrot.slane %v2963_v62, %v2902_v36  ;;  %v2994_v38 = vld [vmem:[%s3069_s4 + $0x20] sm:$0xff] }
  0xfa   :  { %2349 = vst [vmem:[%s3070_s5 + $0x8] sm:$0xff] %v2165_v33  ;;  %v2174_v50 = vrot.slane %v2166_v34, %v2915_v51  ;;  %v2181_v52 = vrot.slane %v2167_v37, %v2915_v51  ;;  %v875_v53 = vadd.f32 %v874_v46, %v191_v24  ;;  %v946_v54 = vadd.f32 %v945_v47, %v199_v25 }
  0xfb   :  { %v259_v37 = vrot.slane %v2963_v62, %v2906_v40  ;;  %v255_v46 = vrot.slane %v2963_v62, %v2910_v43  ;;  %v263_v47 = vrot.slane %v2963_v62, %v2912_v44 }
  0xfc   :  { %v2182_v56 = vcombine.low %v2174_v50, %v2181_v52  ;;  %v2183_v57 = vcombine.low %v873_v42, %v875_v53  ;;  %v2184_v58 = vcombine.low %v944_v45, %v946_v54  ;;  %v1014_v59 = vpop.f32.mrb[8].mxu0  ;;  %v1085_v60 = vpop.f32.mrb[8].mxu1  ;;  %v267_v53 = vrot.slane %v2994_v38, %v2891_v30 }
  0xfd   :  { %v1015_v63 = vadd.f32 %v1014_v59, %v203_v32  ;;  %v1086_v0 = vadd.f32 %v1085_v60, %v211_v41  ;;  %v1016_v1 = vpop.f32.mrb[9].mxu0  ;;  %v1087_v2 = vpop.f32.mrb[9].mxu1  ;;  %v275_v59 = vrot.slane %v2994_v38, %v2893_v31 }
  0xfe   :  { %2350 = vst [vmem:[%s3070_s5 + $0x10] sm:$0xff] %v2182_v56  ;;  %v2191_v6 = vrot.slane %v2183_v57, %v2915_v51  ;;  %v2198_v7 = vrot.slane %v2184_v58, %v2915_v51  ;;  %v1017_v8 = vadd.f32 %v1016_v1, %v207_v48  ;;  %v1088_v9 = vadd.f32 %v1087_v2, %v215_v49 }
  0xff   :  { %v279_v1 = vrot.slane %v2994_v38, %v2900_v3 }
 0x100   :  { %v2199_v11 = vcombine.low %v2191_v6, %v2198_v7  ;;  %v2200_v12 = vcombine.low %v1015_v63, %v1017_v8  ;;  %v2201_v13 = vcombine.low %v1086_v0, %v1088_v9  ;;  %v1156_v14 = vpop.f32.mrb[10].mxu0  ;;  %v1227_v15 = vpop.f32.mrb[10].mxu1  ;;  %v271_v0 = vrot.slane %v2994_v38, %v2898_v35 }
 0x101   :  { %v1157_v17 = vadd.f32 %v1156_v14, %v219_v55  ;;  %v1228_v18 = vadd.f32 %v1227_v15, %v227_v61  ;;  %v1158_v19 = vpop.f32.mrb[11].mxu0  ;;  %v1229_v20 = vpop.f32.mrb[11].mxu1  ;;  %v283_v7 = vrot.slane %v2994_v38, %v2902_v36  ;;  %v129_v14 = vld [vmem:[%s3069_s4 + $0x28] sm:$0xff] }
 0x102   :  { %2351 = vst [vmem:[%s3070_s5 + $0x18] sm:$0xff] %v2199_v11  ;;  %v2208_v23 = vrot.slane %v2200_v12, %v2915_v51  ;;  %v2215_v24 = vrot.slane %v2201_v13, %v2915_v51  ;;  %v1159_v25 = vadd.f32 %v1158_v19, %v223_v4  ;;  %v1230_v26 = vadd.f32 %v1229_v20, %v231_v5 }
 0x103   :  { %v291_v13 = vrot.slane %v2994_v38, %v2906_v40  ;;  %v287_v19 = vrot.slane %v2994_v38, %v2910_v43  ;;  %v295_v20 = vrot.slane %v2994_v38, %v2912_v44 }
 0x104   :  { %v2216_v28 = vcombine.low %v2208_v23, %v2215_v24  ;;  %v2217_v29 = vcombine.low %v1157_v17, %v1159_v25  ;;  %v2218_v32 = vcombine.low %v1228_v18, %v1230_v26  ;;  %v1298_v33 = vpop.f32.mrb[12].mxu0  ;;  %v1369_v34 = vpop.f32.mrb[12].mxu1  ;;  %v299_v25 = vrot.slane %v129_v14, %v2891_v30 }
 0x105   :  { %v1299_v39 = vadd.f32 %v1298_v33, %v235_v10  ;;  %v1370_v41 = vadd.f32 %v1369_v34, %v243_v16  ;;  %v1300_v42 = vpop.f32.mrb[13].mxu0  ;;  %v1371_v45 = vpop.f32.mrb[13].mxu1  ;;  %v307_v33 = vrot.slane %v129_v14, %v2893_v31  ;;  %v315_v31 = vrot.slane %v129_v14, %v2902_v36 }
 0x106   :  { %2352 = vst [vmem:[%s3070_s5 + $0x20] sm:$0xff] %v2216_v28  ;;  %v2225_v48 = vrot.slane %v2217_v29, %v2915_v51  ;;  %v2232_v49 = vrot.slane %v2218_v32, %v2915_v51  ;;  %v1301_v50 = vadd.f32 %v1300_v42, %v239_v21  ;;  %v1372_v52 = vadd.f32 %v1371_v45, %v247_v22 }
 0x107   :  { %v311_v42 = vrot.slane %v129_v14, %v2900_v3 }
 0x108   :  { %v2233_v54 = vcombine.low %v2225_v48, %v2232_v49  ;;  %v2234_v55 = vcombine.low %v1299_v39, %v1301_v50  ;;  %v2235_v56 = vcombine.low %v1370_v41, %v1372_v52  ;;  %v1440_v57 = vpop.f32.mrb[14].mxu0  ;;  %v1511_v58 = vpop.f32.mrb[14].mxu1  ;;  %v303_v41 = vrot.slane %v129_v14, %v2898_v35 }
 0x109   :  { %v1441_v60 = vadd.f32 %v1440_v57, %v251_v27  ;;  %v1512_v61 = vadd.f32 %v1511_v58, %v259_v37  ;;  %v1442_v62 = vpop.f32.mrb[15].mxu0  ;;  %v1513_v63 = vpop.f32.mrb[15].mxu1  ;;  %v323_v35 = vrot.slane %v129_v14, %v2906_v40  ;;  %v319_v57 = vrot.slane %v129_v14, %v2910_v43 }
 0x10a   :  { %2353 = vst [vmem:[%s3070_s5 + $0x28] sm:$0xff] %v2233_v54  ;;  %v2242_v2 = vrot.slane %v2234_v55, %v2915_v51  ;;  %v2249_v4 = vrot.slane %v2235_v56, %v2915_v51  ;;  %v1443_v5 = vadd.f32 %v1442_v62, %v255_v46  ;;  %v1514_v6 = vadd.f32 %v1513_v63, %v263_v47 }
 0x10b   :  { %v327_v58 = vrot.slane %v129_v14, %v2912_v44 }
 0x10c   :  { %v2250_v8 = vcombine.low %v2242_v2, %v2249_v4  ;;  %v2251_v9 = vcombine.low %v1441_v60, %v1443_v5  ;;  %v2252_v10 = vcombine.low %v1512_v61, %v1514_v6  ;;  %v1582_v11 = vpop.f32.mrb[16].mxu0  ;;  %v1653_v12 = vpop.f32.mrb[16].mxu1 }
 0x10d   :  { %v1583_v15 = vadd.f32 %v1582_v11, %v267_v53  ;;  %v1654_v16 = vadd.f32 %v1653_v12, %v275_v59  ;;  %v1584_v17 = vpop.f32.mrb[17].mxu0  ;;  %v1655_v18 = vpop.f32.mrb[17].mxu1 }
 0x10e   :  { %2354 = vst [vmem:[%s3070_s5 + $0x30] sm:$0xff] %v2250_v8  ;;  %v2259_v21 = vrot.slane %v2251_v9, %v2915_v51  ;;  %v2266_v22 = vrot.slane %v2252_v10, %v2915_v51  ;;  %v1585_v23 = vadd.f32 %v1584_v17, %v271_v0  ;;  %v1656_v24 = vadd.f32 %v1655_v18, %v279_v1 }
 0x110   :  { %v2267_v26 = vcombine.low %v2259_v21, %v2266_v22  ;;  %v2268_v27 = vcombine.low %v1583_v15, %v1585_v23  ;;  %v2269_v28 = vcombine.low %v1654_v16, %v1656_v24  ;;  %v1724_v29 = vpop.f32.mrb[18].mxu0  ;;  %v1795_v32 = vpop.f32.mrb[18].mxu1 }
 0x111   :  { %v1725_v34 = vadd.f32 %v1724_v29, %v283_v7  ;;  %v1796_v37 = vadd.f32 %v1795_v32, %v291_v13  ;;  %v1726_v38 = vpop.f32.mrb[19].mxu0  ;;  %v1797_v39 = vpop.f32.mrb[19].mxu1 }
 0x112   :  { %2355 = vst [vmem:[%s3070_s5 + $0x38] sm:$0xff] %v2267_v26  ;;  %v2276_v30 = vrot.slane %v2268_v27, %v2915_v51  ;;  %v2283_v45 = vrot.slane %v2269_v28, %v2915_v51  ;;  %v1727_v46 = vadd.f32 %v1726_v38, %v287_v19  ;;  %v1798_v47 = vadd.f32 %v1797_v39, %v295_v20 }
 0x114   :  { %v2284_v48 = vcombine.low %v2276_v30, %v2283_v45  ;;  %v2285_v49 = vcombine.low %v1725_v34, %v1727_v46  ;;  %v2286_v50 = vcombine.low %v1796_v37, %v1798_v47  ;;  %v1866_v52 = vpop.f32.mrb[20].mxu0  ;;  %v1937_v53 = vpop.f32.mrb[20].mxu1 }
 0x115   :  { %v1867_v3 = vadd.f32 %v1866_v52, %v299_v25  ;;  %v1938_v54 = vadd.f32 %v1937_v53, %v307_v33  ;;  %v1868_v55 = vpop.f32.mrb[21].mxu0  ;;  %v1939_v56 = vpop.f32.mrb[21].mxu1 }
 0x116   :  { %2356 = vst [vmem:[%s3070_s5 + $0x40] sm:$0xff] %v2284_v48  ;;  %v2293_v36 = vrot.slane %v2285_v49, %v2915_v51  ;;  %v2300_v59 = vrot.slane %v2286_v50, %v2915_v51  ;;  %v1869_v60 = vadd.f32 %v1868_v55, %v303_v41  ;;  %v1940_v61 = vadd.f32 %v1939_v56, %v311_v42 }
 0x118   :  { %v2301_v62 = vcombine.low %v2293_v36, %v2300_v59  ;;  %v2302_v40 = vcombine.low %v1867_v3, %v1869_v60  ;;  %v2303_v63 = vcombine.low %v1938_v54, %v1940_v61  ;;  %v2008_v0 = vpop.f32.mrb[22].mxu0  ;;  %v2079_v1 = vpop.f32.mrb[22].mxu1 }
 0x119   :  { %v2009_v2 = vadd.f32 %v2008_v0, %v315_v31  ;;  %v2080_v4 = vadd.f32 %v2079_v1, %v323_v35  ;;  %v2010_v43 = vpop.f32.mrb[23].mxu0  ;;  %v2081_v5 = vpop.f32.mrb[23].mxu1 }
 0x11a   :  { %2357 = vst [vmem:[%s3070_s5 + $0x48] sm:$0xff] %v2301_v62  ;;  %v2310_v44 = vrot.slane %v2302_v40, %v2915_v51  ;;  %v2317_v6 = vrot.slane %v2303_v63, %v2915_v51  ;;  %v2011_v7 = vadd.f32 %v2010_v43, %v319_v57  ;;  %v2082_v8 = vadd.f32 %v2081_v5, %v327_v58 }
 0x11c   :  { %v2318_v9 = vcombine.low %v2310_v44, %v2317_v6  ;;  %v2319_v10 = vcombine.low %v2009_v2, %v2011_v7  ;;  %v2320_v11 = vcombine.low %v2080_v4, %v2082_v8 }
 0x11e   :  { %2358 = vst [vmem:[%s3070_s5 + $0x50] sm:$0xff] %v2318_v9  ;;  %v2327_v12 = vrot.slane %v2319_v10, %v2915_v51  ;;  %v2334_v13 = vrot.slane %v2320_v11, %v2915_v51 }
 0x120   :  { %v2335_v14 = vcombine.low %v2327_v12, %v2334_v13 }
 0x122   :  { %2359 = vst [vmem:[%s3070_s5 + $0x58] sm:$0xff] %v2335_v14 }

</bundles_post_ra>
